<compile_context>
chip_gen: v7x
topology: tpu7x:2x2x1
jax: 0.10.0
libtpu: 0.0.40
codegen_flags: <defaults>
</compile_context>

<pallas_src>
import functools
import math

import jax
import jax.numpy as jnp
from jax.experimental import pallas as pl
from jax.experimental.pallas import tpu as pltpu

EPS = 1e-5      # torch BatchNorm2d default
CHANGE = 0.1    # rotResBlock default


# ------------------------------ fused kernel --------------------------------

def _mapnet1_kernel(x_ref, mask_ref, w1_ref, b1_ref, filt_ref, cbias_ref,
                    gamma_ref, beta_ref, w2_ref, b2_ref, out_ref,
                    patch_ref, act_ref, *, B, H, W, sizeP, hid):
    """Whole MapNet1 forward.  Activations live as (C, B*H*W) values: channels
    on sublanes, batch folded into the lane axis -> lane-dense everywhere."""
    S = H * W
    L = B * S
    P2 = sizeP * sizeP
    pad = sizeP // 2

    # ---- conv1 (1x1): (hid, C) @ (C, S) per batch, written into the batched
    #      lane layout via the activation scratch (lane offsets % 128 == 0). ----
    for b in range(B):
        act_ref[:, pl.ds(b * S, S)] = (
            jnp.dot(w1_ref[...], x_ref[b], preferred_element_type=jnp.float32)
            + b1_ref[...])
    h = act_ref[...]                                           # (hid, B*S)

    def rot_conv(r, h):
        # Grouped sizeP x sizeP conv (groups = batch).  Taps are folded into
        # the matmul contraction: the im2col rows are built ONCE for the whole
        # batch with static lane rolls + zero-padding edge masks (the masks
        # also zero every position whose roll wrapped across a batch/image
        # boundary), then one (hid, P2*hid)@(P2*hid, S) MXU matmul per group.
        for tap in range(P2):
            di, dj = tap // sizeP, tap % sizeP
            off = (di - pad) * W + (dj - pad)
            shift = (-off) % L
            shifted = pltpu.roll(h, shift=shift, axis=1) if shift else h
            patch_ref[pl.ds(tap * hid, hid), :] = shifted * mask_ref[tap]
        for b in range(B):
            act_ref[:, pl.ds(b * S, S)] = (
                jnp.dot(filt_ref[r * B + b], patch_ref[:, pl.ds(b * S, S)],
                        preferred_element_type=jnp.float32)
                + cbias_ref[r])
        return act_ref[...]

    def batch_norm(r, y):
        # Training-mode BatchNorm2d: per-channel stats over (batch, spatial),
        # biased variance, single pass (sum + sum of squares) over B*S lanes.
        n = float(L)
        s1 = y.sum(axis=1, keepdims=True)
        s2 = (y * y).sum(axis=1, keepdims=True)
        mean = s1 / n
        var = s2 / n - mean * mean
        scale = gamma_ref[r] * jax.lax.rsqrt(var + EPS)        # (hid, 1)
        shift = beta_ref[r] - mean * scale
        return y * scale + shift

    # two rotResBlocks, fully fused
    for blk in range(2):
        res = h
        h = jnp.maximum(batch_norm(2 * blk, rot_conv(2 * blk, h)), 0.0)
        h = batch_norm(2 * blk + 1, rot_conv(2 * blk + 1, h))
        h = h * CHANGE + res

    # conv2 (1x1) + lane-dense stores (last dim = H*W, multiple of 128)
    for b in range(B):
        out_ref[b] = (jnp.dot(w2_ref[...], h[:, b * S:(b + 1) * S],
                              preferred_element_type=jnp.float32)
                      + b2_ref[...])


# ------------------------------ plain-JAX glue -------------------------------

def get_basis(theta, sizeP):
    """GetBasis.forward with s_w = s_l = 1.  Returns (B, sizeP*sizeP, 2*sizeP*sizeP)
    = concat([BasisC, BasisS], axis=-1), spatial dims flattened row-major."""
    inP = sizeP
    p = (sizeP - 1) / 2.0
    grid1d = jnp.arange(-p, p + 1, dtype=jnp.float32) / p
    inX, inY = jnp.meshgrid(grid1d, grid1d)          # 'xy' indexing (numpy default)
    inX = inX[None, None]                            # (1, 1, S, S)
    inY = inY[None, None]
    th = theta.astype(jnp.float32)[:, :, None, None]  # (B, 1, 1, 1)
    Xr = jnp.cos(th) * inX - jnp.sin(th) * inY
    Yr = jnp.sin(th) * inX + jnp.cos(th) * inY
    Xr = Xr[..., None, None]                          # (B, 1, S, S, 1, 1)
    Yr = Yr[..., None, None]
    mask = jnp.exp(-jnp.maximum(Xr ** 2 + Yr ** 2 - 1.0, 0.0) / 0.2)
    v = math.pi / inP * (inP - 1)
    half = inP / 2.0
    k = jnp.arange(inP, dtype=jnp.float32).reshape(1, 1, 1, 1, inP, 1)
    l = jnp.arange(inP, dtype=jnp.float32).reshape(1, 1, 1, 1, 1, inP)
    kk = k - inP * (k > half).astype(jnp.float32)
    ll = l - inP * (l > half).astype(jnp.float32)
    arg = kk * v * Xr + ll * v * Yr
    B = theta.shape[0]
    basis_c = (jnp.cos(arg) * mask).reshape(B, sizeP, sizeP, inP * inP)
    basis_s = (jnp.sin(arg) * mask).reshape(B, sizeP, sizeP, inP * inP)
    basis = jnp.concatenate([basis_c, basis_s], axis=-1)
    return basis.reshape(B, sizeP * sizeP, 2 * inP * inP)


def _tap_masks(H, W, sizeP, B):
    """Per-tap validity mask for 'same' zero padding, shape (P2, 1, B*H*W)."""
    pad = sizeP // 2
    hh = jnp.arange(H)[:, None]
    ww = jnp.arange(W)[None, :]
    rows = []
    for tap in range(sizeP * sizeP):
        di, dj = tap // sizeP, tap % sizeP
        ok = ((hh + di - pad >= 0) & (hh + di - pad < H)
              & (ww + dj - pad >= 0) & (ww + dj - pad < W))
        rows.append(ok.reshape(1, H * W))
    m = jnp.stack(rows, axis=0).astype(jnp.float32)             # (P2, 1, S)
    return jnp.tile(m, (1, 1, B))                                # (P2, 1, B*S)


def mapnet1_forward(params, x_nchw, theta, *, sizeP):
    B, C, H, W = x_nchw.shape
    S = H * W
    hid = params["conv1_w"].shape[1]
    P2 = sizeP * sizeP

    basis = get_basis(theta, sizeP)                           # (B, P2, 2*P2)

    def filt(weights):                                        # (hid, 2*P2, hid)
        # F[b, n, tap*Cin + m] = sum_k Basis[b, tap, k] * weights[n, k, m]
        f = jnp.einsum("btk,nkm->bntm", basis, weights,
                       precision=jax.lax.Precision.HIGHEST)   # (B, hid, P2, hid)
        return f.reshape(B, hid, P2 * hid)

    p1, p2 = params["block1"], params["block2"]
    filt_all = jnp.concatenate(
        [filt(p1["conv1_w"]), filt(p1["conv2_w"]),
         filt(p2["conv1_w"]), filt(p2["conv2_w"])], axis=0)   # (4*B, hid, P2*hid)
    cbias = jnp.stack([p1["conv1_c"], p1["conv2_c"],
                       p2["conv1_c"], p2["conv2_c"]])[:, :, None]     # (4, hid, 1)
    gamma = jnp.stack([p1["bn1_gamma"], p1["bn2_gamma"],
                       p2["bn1_gamma"], p2["bn2_gamma"]])[:, :, None]
    beta = jnp.stack([p1["bn1_beta"], p1["bn2_beta"],
                      p2["bn1_beta"], p2["bn2_beta"]])[:, :, None]

    x = x_nchw.reshape(B, C, S).astype(jnp.float32)           # free: NCHW flatten
    masks = _tap_masks(H, W, sizeP, B)

    out = pl.pallas_call(
        functools.partial(_mapnet1_kernel, B=B, H=H, W=W, sizeP=sizeP, hid=hid),
        out_shape=jax.ShapeDtypeStruct((B, C, S), jnp.float32),
        scratch_shapes=[pltpu.VMEM((P2 * hid, B * S), jnp.float32),  # im2col
                        pltpu.VMEM((hid, B * S), jnp.float32)],      # activation
    )(x, masks,
      params["conv1_w"].T, params["conv1_b"][:, None],
      filt_all, cbias, gamma, beta,
      params["conv2_w"].T, params["conv2_b"][:, None])
    return out.reshape(B, C, H, W)                            # free: NCHW unflatten


# ---------------------- deterministic parameter init ------------------------

def init_params(key, channel, hid, sizeP):
    ks = jax.random.split(key, 8)

    def rot_block_params(k1, k2):
        w_scale = 1.0 / sizeP / sizeP / 100.0   # matches torch init scale
        return {
            "conv1_w": jax.random.normal(k1, (hid, 2 * sizeP * sizeP, hid),
                                         jnp.float32) * w_scale,
            "conv1_c": jnp.zeros((hid,), jnp.float32),
            "bn1_gamma": jnp.ones((hid,), jnp.float32),
            "bn1_beta": jnp.zeros((hid,), jnp.float32),
            "conv2_w": jax.random.normal(k2, (hid, 2 * sizeP * sizeP, hid),
                                         jnp.float32) * w_scale,
            "conv2_c": jnp.zeros((hid,), jnp.float32),
            "bn2_gamma": jnp.ones((hid,), jnp.float32),
            "bn2_beta": jnp.zeros((hid,), jnp.float32),
        }

    return {
        "conv1_w": jax.random.normal(ks[0], (channel, hid), jnp.float32) * 0.2,
        "conv1_b": jax.random.normal(ks[1], (hid,), jnp.float32) * 0.1,
        "conv2_w": jax.random.normal(ks[2], (hid, channel), jnp.float32) * 0.2,
        "conv2_b": jax.random.normal(ks[3], (channel,), jnp.float32) * 0.1,
        "block1": rot_block_params(ks[4], ks[5]),
        "block2": rot_block_params(ks[6], ks[7]),
    }


# ----------------------- pure-JAX reference (validation) --------------------

def _conv_ref(x, w_conv, bias, sizeP):
    B, H, W, Cin = x.shape
    Cout = w_conv.shape[-1]
    pad = sizeP // 2
    xpad = jnp.pad(x, ((0, 0), (pad, pad), (pad, pad), (0, 0)))
    patches = jnp.stack(
        [xpad[:, di:di + H, dj:dj + W, :]
         for di in range(sizeP) for dj in range(sizeP)], axis=3)
    out = jnp.einsum("bhwkc,bkcn->bhwn", patches,
                     w_conv.reshape(B, sizeP * sizeP, Cin, Cout),
                     precision=jax.lax.Precision.HIGHEST)
    return out + bias.reshape(1, 1, 1, Cout)


def _bn_ref(x, gamma, beta):
    mean = x.mean(axis=(0, 1, 2), keepdims=True)
    var = ((x - mean) ** 2).mean(axis=(0, 1, 2), keepdims=True)
    return (x - mean) * jax.lax.rsqrt(var + EPS) * gamma + beta


def mapnet1_reference(params, x_nchw, theta, *, sizeP):
    x = jnp.transpose(x_nchw, (0, 2, 3, 1)).astype(jnp.float32)
    B, H, W, C = x.shape
    hid = params["conv1_w"].shape[1]
    h = (jnp.dot(x.reshape(-1, C), params["conv1_w"],
                 precision=jax.lax.Precision.HIGHEST)
         + params["conv1_b"]).reshape(B, H, W, hid)
    basis = get_basis(theta, sizeP)

    def make_w(weights):
        wr = jnp.transpose(weights, (1, 0, 2)).reshape(2 * sizeP * sizeP, -1)
        c = jnp.einsum("bsk,kn->bsn", basis, wr,
                       precision=jax.lax.Precision.HIGHEST)
        c = c.reshape(B, sizeP, sizeP, hid, hid)
        return jnp.transpose(c, (0, 1, 2, 4, 3))

    def block(h, p):
        y = _conv_ref(h, make_w(p["conv1_w"]), p["conv1_c"], sizeP)
        y = jnp.maximum(_bn_ref(y, p["bn1_gamma"], p["bn1_beta"]), 0.0)
        y = _conv_ref(y, make_w(p["conv2_w"]), p["conv2_c"], sizeP)
        return _bn_ref(y, p["bn2_gamma"], p["bn2_beta"]) * CHANGE + h

    h = block(h, params["block1"])
    h = block(h, params["block2"])
    out = (jnp.dot(h.reshape(-1, hid), params["conv2_w"],
                   precision=jax.lax.Precision.HIGHEST)
           + params["conv2_b"]).reshape(B, H, W, C)
    return jnp.transpose(out, (0, 3, 1, 2))


# ----------------------------------- main -----------------------------------

if __name__ == "__main__":
    channel, hid_channel, kernel_size = 4, 8, 5   # MapNet1(hid_channel, channel, kernel_size)
    B, H, W = 2, 16, 16

    key = jax.random.PRNGKey(0)
    kx, kt, kp = jax.random.split(key, 3)
    x = jax.random.normal(kx, (B, channel, H, W), jnp.float32)            # NCHW input
    theta = jax.random.uniform(kt, (B, 1), jnp.float32, 0.0, 2.0 * math.pi)
    params = init_params(kp, channel, hid_channel, kernel_size)

    fwd = jax.jit(functools.partial(mapnet1_forward, sizeP=kernel_size))
    out = jax.block_until_ready(fwd(params, x, theta))
    assert out.shape == (B, channel, H, W)
    assert bool(jnp.all(jnp.isfinite(out)))

    ref = mapnet1_reference(params, x, theta, sizeP=kernel_size)
    max_err = float(jnp.max(jnp.abs(out - ref)))
    assert jnp.allclose(out, ref, rtol=5e-2, atol=5e-2), max_err

    print("KERNEL_OK")
</pallas_src>

<mosaic_0001>
module attributes {stable_mosaic.version = 11 : i64} {
  func.func @_mapnet1_kernel(%arg0: memref<2x4x256xf32, #tpu.memory_space<vmem>>, %arg1: memref<25x1x512xf32, #tpu.memory_space<vmem>>, %arg2: memref<8x4xf32, #tpu.memory_space<vmem>>, %arg3: memref<8x1xf32, #tpu.memory_space<vmem>>, %arg4: memref<8x8x200xf32, #tpu.memory_space<vmem>>, %arg5: memref<4x8x1xf32, #tpu.memory_space<vmem>>, %arg6: memref<4x8x1xf32, #tpu.memory_space<vmem>>, %arg7: memref<4x8x1xf32, #tpu.memory_space<vmem>>, %arg8: memref<4x8xf32, #tpu.memory_space<vmem>>, %arg9: memref<4x1xf32, #tpu.memory_space<vmem>>, %arg10: memref<2x4x256xf32, #tpu.memory_space<vmem>>, %arg11: memref<200x512xf32, #tpu.memory_space<vmem>>, %arg12: memref<8x512xf32, #tpu.memory_space<vmem>>) attributes {dimension_semantics = [], scalar_prefetch = 0 : i64, scratch_operands = 2 : i64, tpu.core_type = #tpu.core_type<tc>} {
    %c0 = arith.constant 0 : index
    %c0_0 = arith.constant 0 : index
    %0 = vector.load %arg2[%c0, %c0_0] : memref<8x4xf32, #tpu.memory_space<vmem>>, vector<8x4xf32>
    %c0_1 = arith.constant 0 : index
    %c0_2 = arith.constant 0 : index
    %c0_3 = arith.constant 0 : index
    %1 = vector.load %arg0[%c0_1, %c0_2, %c0_3] : memref<2x4x256xf32, #tpu.memory_space<vmem>>, vector<1x4x256xf32>
    %2 = vector.shape_cast %1 : vector<1x4x256xf32> to vector<4x256xf32>
    %cst = arith.constant dense<0.000000e+00> : vector<8x256xf32>
    %3 = tpu.matmul %0, %2, %cst {dimension_numbers = #tpu.dot_dimension_numbers<[1], [0], [0], [1], [0, 0, 1, 1], [], []>} : vector<8x4xf32>, vector<4x256xf32>, vector<8x256xf32> -> vector<8x256xf32>
    %c0_4 = arith.constant 0 : index
    %c0_5 = arith.constant 0 : index
    %4 = vector.load %arg3[%c0_4, %c0_5] : memref<8x1xf32, #tpu.memory_space<vmem>>, vector<8x1xf32>
    %5 = vector.broadcast %4 : vector<8x1xf32> to vector<8x256xf32>
    %6 = arith.addf %3, %5 : vector<8x256xf32>
    %c0_6 = arith.constant 0 : index
    %c0_7 = arith.constant 0 : index
    %7 = vector.load %arg12[%c0_6, %c0_7] : memref<8x512xf32, #tpu.memory_space<vmem>>, vector<8x256xf32>
    tpu.vector_store %arg12[%c0_6, %c0_7], %6 {strides = array<i32>} : memref<8x512xf32, #tpu.memory_space<vmem>>, vector<8x256xf32>,
    %c0_8 = arith.constant 0 : index
    %c0_9 = arith.constant 0 : index
    %8 = vector.load %arg2[%c0_8, %c0_9] : memref<8x4xf32, #tpu.memory_space<vmem>>, vector<8x4xf32>
    %c1 = arith.constant 1 : index
    %c0_10 = arith.constant 0 : index
    %c0_11 = arith.constant 0 : index
    %9 = vector.load %arg0[%c1, %c0_10, %c0_11] : memref<2x4x256xf32, #tpu.memory_space<vmem>>, vector<1x4x256xf32>
    %10 = vector.shape_cast %9 : vector<1x4x256xf32> to vector<4x256xf32>
    %cst_12 = arith.constant dense<0.000000e+00> : vector<8x256xf32>
    %11 = tpu.matmul %8, %10, %cst_12 {dimension_numbers = #tpu.dot_dimension_numbers<[1], [0], [0], [1], [0, 0, 1, 1], [], []>} : vector<8x4xf32>, vector<4x256xf32>, vector<8x256xf32> -> vector<8x256xf32>
    %c0_13 = arith.constant 0 : index
    %c0_14 = arith.constant 0 : index
    %12 = vector.load %arg3[%c0_13, %c0_14] : memref<8x1xf32, #tpu.memory_space<vmem>>, vector<8x1xf32>
    %13 = vector.broadcast %12 : vector<8x1xf32> to vector<8x256xf32>
    %14 = arith.addf %11, %13 : vector<8x256xf32>
    %c0_15 = arith.constant 0 : index
    %c256 = arith.constant 256 : index
    %15 = vector.load %arg12[%c0_15, %c256] : memref<8x512xf32, #tpu.memory_space<vmem>>, vector<8x256xf32>
    tpu.vector_store %arg12[%c0_15, %c256], %14 {strides = array<i32>} : memref<8x512xf32, #tpu.memory_space<vmem>>, vector<8x256xf32>,
    %c0_16 = arith.constant 0 : index
    %c0_17 = arith.constant 0 : index
    %16 = vector.load %arg12[%c0_16, %c0_17] : memref<8x512xf32, #tpu.memory_space<vmem>>, vector<8x512xf32>
    %c34_i32 = arith.constant 34 : i32
    %17 = tpu.dynamic_rotate %16 by %c34_i32 dim 1 : vector<8x512xf32>, i32 -> vector<8x512xf32>
    %c0_18 = arith.constant 0 : index
    %c0_19 = arith.constant 0 : index
    %c0_20 = arith.constant 0 : index
    %18 = vector.load %arg1[%c0_18, %c0_19, %c0_20] : memref<25x1x512xf32, #tpu.memory_space<vmem>>, vector<1x1x512xf32>
    %19 = vector.shape_cast %18 : vector<1x1x512xf32> to vector<1x512xf32>
    %20 = vector.broadcast %19 : vector<1x512xf32> to vector<8x512xf32>
    %21 = arith.mulf %17, %20 : vector<8x512xf32>
    %c0_21 = arith.constant 0 : index
    %c0_22 = arith.constant 0 : index
    %22 = vector.load %arg11[%c0_21, %c0_22] : memref<200x512xf32, #tpu.memory_space<vmem>>, vector<8x512xf32>
    tpu.vector_store %arg11[%c0_21, %c0_22], %21 {strides = array<i32>} : memref<200x512xf32, #tpu.memory_space<vmem>>, vector<8x512xf32>,
    %c33_i32 = arith.constant 33 : i32
    %23 = tpu.dynamic_rotate %16 by %c33_i32 dim 1 : vector<8x512xf32>, i32 -> vector<8x512xf32>
    %c1_23 = arith.constant 1 : index
    %c0_24 = arith.constant 0 : index
    %c0_25 = arith.constant 0 : index
    %24 = vector.load %arg1[%c1_23, %c0_24, %c0_25] : memref<25x1x512xf32, #tpu.memory_space<vmem>>, vector<1x1x512xf32>
    %25 = vector.shape_cast %24 : vector<1x1x512xf32> to vector<1x512xf32>
    %26 = vector.broadcast %25 : vector<1x512xf32> to vector<8x512xf32>
    %27 = arith.mulf %23, %26 : vector<8x512xf32>
    %c8 = arith.constant 8 : index
    %c0_26 = arith.constant 0 : index
    %28 = vector.load %arg11[%c8, %c0_26] : memref<200x512xf32, #tpu.memory_space<vmem>>, vector<8x512xf32>
    tpu.vector_store %arg11[%c8, %c0_26], %27 {strides = array<i32>} : memref<200x512xf32, #tpu.memory_space<vmem>>, vector<8x512xf32>,
    %c32_i32 = arith.constant 32 : i32
    %29 = tpu.dynamic_rotate %16 by %c32_i32 dim 1 : vector<8x512xf32>, i32 -> vector<8x512xf32>
    %c2 = arith.constant 2 : index
    %c0_27 = arith.constant 0 : index
    %c0_28 = arith.constant 0 : index
    %30 = vector.load %arg1[%c2, %c0_27, %c0_28] : memref<25x1x512xf32, #tpu.memory_space<vmem>>, vector<1x1x512xf32>
    %31 = vector.shape_cast %30 : vector<1x1x512xf32> to vector<1x512xf32>
    %32 = vector.broadcast %31 : vector<1x512xf32> to vector<8x512xf32>
    %33 = arith.mulf %29, %32 : vector<8x512xf32>
    %c16 = arith.constant 16 : index
    %c0_29 = arith.constant 0 : index
    %34 = vector.load %arg11[%c16, %c0_29] : memref<200x512xf32, #tpu.memory_space<vmem>>, vector<8x512xf32>
    tpu.vector_store %arg11[%c16, %c0_29], %33 {strides = array<i32>} : memref<200x512xf32, #tpu.memory_space<vmem>>, vector<8x512xf32>,
    %c31_i32 = arith.constant 31 : i32
    %35 = tpu.dynamic_rotate %16 by %c31_i32 dim 1 : vector<8x512xf32>, i32 -> vector<8x512xf32>
    %c3 = arith.constant 3 : index
    %c0_30 = arith.constant 0 : index
    %c0_31 = arith.constant 0 : index
    %36 = vector.load %arg1[%c3, %c0_30, %c0_31] : memref<25x1x512xf32, #tpu.memory_space<vmem>>, vector<1x1x512xf32>
    %37 = vector.shape_cast %36 : vector<1x1x512xf32> to vector<1x512xf32>
    %38 = vector.broadcast %37 : vector<1x512xf32> to vector<8x512xf32>
    %39 = arith.mulf %35, %38 : vector<8x512xf32>
    %c24 = arith.constant 24 : index
    %c0_32 = arith.constant 0 : index
    %40 = vector.load %arg11[%c24, %c0_32] : memref<200x512xf32, #tpu.memory_space<vmem>>, vector<8x512xf32>
    tpu.vector_store %arg11[%c24, %c0_32], %39 {strides = array<i32>} : memref<200x512xf32, #tpu.memory_space<vmem>>, vector<8x512xf32>,
    %c30_i32 = arith.constant 30 : i32
    %41 = tpu.dynamic_rotate %16 by %c30_i32 dim 1 : vector<8x512xf32>, i32 -> vector<8x512xf32>
    %c4 = arith.constant 4 : index
    %c0_33 = arith.constant 0 : index
    %c0_34 = arith.constant 0 : index
    %42 = vector.load %arg1[%c4, %c0_33, %c0_34] : memref<25x1x512xf32, #tpu.memory_space<vmem>>, vector<1x1x512xf32>
    %43 = vector.shape_cast %42 : vector<1x1x512xf32> to vector<1x512xf32>
    %44 = vector.broadcast %43 : vector<1x512xf32> to vector<8x512xf32>
    %45 = arith.mulf %41, %44 : vector<8x512xf32>
    %c32 = arith.constant 32 : index
    %c0_35 = arith.constant 0 : index
    %46 = vector.load %arg11[%c32, %c0_35] : memref<200x512xf32, #tpu.memory_space<vmem>>, vector<8x512xf32>
    tpu.vector_store %arg11[%c32, %c0_35], %45 {strides = array<i32>} : memref<200x512xf32, #tpu.memory_space<vmem>>, vector<8x512xf32>,
    %c18_i32 = arith.constant 18 : i32
    %47 = tpu.dynamic_rotate %16 by %c18_i32 dim 1 : vector<8x512xf32>, i32 -> vector<8x512xf32>
    %c5 = arith.constant 5 : index
    %c0_36 = arith.constant 0 : index
    %c0_37 = arith.constant 0 : index
    %48 = vector.load %arg1[%c5, %c0_36, %c0_37] : memref<25x1x512xf32, #tpu.memory_space<vmem>>, vector<1x1x512xf32>
    %49 = vector.shape_cast %48 : vector<1x1x512xf32> to vector<1x512xf32>
    %50 = vector.broadcast %49 : vector<1x512xf32> to vector<8x512xf32>
    %51 = arith.mulf %47, %50 : vector<8x512xf32>
    %c40 = arith.constant 40 : index
    %c0_38 = arith.constant 0 : index
    %52 = vector.load %arg11[%c40, %c0_38] : memref<200x512xf32, #tpu.memory_space<vmem>>, vector<8x512xf32>
    tpu.vector_store %arg11[%c40, %c0_38], %51 {strides = array<i32>} : memref<200x512xf32, #tpu.memory_space<vmem>>, vector<8x512xf32>,
    %c17_i32 = arith.constant 17 : i32
    %53 = tpu.dynamic_rotate %16 by %c17_i32 dim 1 : vector<8x512xf32>, i32 -> vector<8x512xf32>
    %c6 = arith.constant 6 : index
    %c0_39 = arith.constant 0 : index
    %c0_40 = arith.constant 0 : index
    %54 = vector.load %arg1[%c6, %c0_39, %c0_40] : memref<25x1x512xf32, #tpu.memory_space<vmem>>, vector<1x1x512xf32>
    %55 = vector.shape_cast %54 : vector<1x1x512xf32> to vector<1x512xf32>
    %56 = vector.broadcast %55 : vector<1x512xf32> to vector<8x512xf32>
    %57 = arith.mulf %53, %56 : vector<8x512xf32>
    %c48 = arith.constant 48 : index
    %c0_41 = arith.constant 0 : index
    %58 = vector.load %arg11[%c48, %c0_41] : memref<200x512xf32, #tpu.memory_space<vmem>>, vector<8x512xf32>
    tpu.vector_store %arg11[%c48, %c0_41], %57 {strides = array<i32>} : memref<200x512xf32, #tpu.memory_space<vmem>>, vector<8x512xf32>,
    %c16_i32 = arith.constant 16 : i32
    %59 = tpu.dynamic_rotate %16 by %c16_i32 dim 1 : vector<8x512xf32>, i32 -> vector<8x512xf32>
    %c7 = arith.constant 7 : index
    %c0_42 = arith.constant 0 : index
    %c0_43 = arith.constant 0 : index
    %60 = vector.load %arg1[%c7, %c0_42, %c0_43] : memref<25x1x512xf32, #tpu.memory_space<vmem>>, vector<1x1x512xf32>
    %61 = vector.shape_cast %60 : vector<1x1x512xf32> to vector<1x512xf32>
    %62 = vector.broadcast %61 : vector<1x512xf32> to vector<8x512xf32>
    %63 = arith.mulf %59, %62 : vector<8x512xf32>
    %c56 = arith.constant 56 : index
    %c0_44 = arith.constant 0 : index
    %64 = vector.load %arg11[%c56, %c0_44] : memref<200x512xf32, #tpu.memory_space<vmem>>, vector<8x512xf32>
    tpu.vector_store %arg11[%c56, %c0_44], %63 {strides = array<i32>} : memref<200x512xf32, #tpu.memory_space<vmem>>, vector<8x512xf32>,
    %c15_i32 = arith.constant 15 : i32
    %65 = tpu.dynamic_rotate %16 by %c15_i32 dim 1 : vector<8x512xf32>, i32 -> vector<8x512xf32>
    %c8_45 = arith.constant 8 : index
    %c0_46 = arith.constant 0 : index
    %c0_47 = arith.constant 0 : index
    %66 = vector.load %arg1[%c8_45, %c0_46, %c0_47] : memref<25x1x512xf32, #tpu.memory_space<vmem>>, vector<1x1x512xf32>
    %67 = vector.shape_cast %66 : vector<1x1x512xf32> to vector<1x512xf32>
    %68 = vector.broadcast %67 : vector<1x512xf32> to vector<8x512xf32>
    %69 = arith.mulf %65, %68 : vector<8x512xf32>
    %c64 = arith.constant 64 : index
    %c0_48 = arith.constant 0 : index
    %70 = vector.load %arg11[%c64, %c0_48] : memref<200x512xf32, #tpu.memory_space<vmem>>, vector<8x512xf32>
    tpu.vector_store %arg11[%c64, %c0_48], %69 {strides = array<i32>} : memref<200x512xf32, #tpu.memory_space<vmem>>, vector<8x512xf32>,
    %c14_i32 = arith.constant 14 : i32
    %71 = tpu.dynamic_rotate %16 by %c14_i32 dim 1 : vector<8x512xf32>, i32 -> vector<8x512xf32>
    %c9 = arith.constant 9 : index
    %c0_49 = arith.constant 0 : index
    %c0_50 = arith.constant 0 : index
    %72 = vector.load %arg1[%c9, %c0_49, %c0_50] : memref<25x1x512xf32, #tpu.memory_space<vmem>>, vector<1x1x512xf32>
    %73 = vector.shape_cast %72 : vector<1x1x512xf32> to vector<1x512xf32>
    %74 = vector.broadcast %73 : vector<1x512xf32> to vector<8x512xf32>
    %75 = arith.mulf %71, %74 : vector<8x512xf32>
    %c72 = arith.constant 72 : index
    %c0_51 = arith.constant 0 : index
    %76 = vector.load %arg11[%c72, %c0_51] : memref<200x512xf32, #tpu.memory_space<vmem>>, vector<8x512xf32>
    tpu.vector_store %arg11[%c72, %c0_51], %75 {strides = array<i32>} : memref<200x512xf32, #tpu.memory_space<vmem>>, vector<8x512xf32>,
    %c2_i32 = arith.constant 2 : i32
    %77 = tpu.dynamic_rotate %16 by %c2_i32 dim 1 : vector<8x512xf32>, i32 -> vector<8x512xf32>
    %c10 = arith.constant 10 : index
    %c0_52 = arith.constant 0 : index
    %c0_53 = arith.constant 0 : index
    %78 = vector.load %arg1[%c10, %c0_52, %c0_53] : memref<25x1x512xf32, #tpu.memory_space<vmem>>, vector<1x1x512xf32>
    %79 = vector.shape_cast %78 : vector<1x1x512xf32> to vector<1x512xf32>
    %80 = vector.broadcast %79 : vector<1x512xf32> to vector<8x512xf32>
    %81 = arith.mulf %77, %80 : vector<8x512xf32>
    %c80 = arith.constant 80 : index
    %c0_54 = arith.constant 0 : index
    %82 = vector.load %arg11[%c80, %c0_54] : memref<200x512xf32, #tpu.memory_space<vmem>>, vector<8x512xf32>
    tpu.vector_store %arg11[%c80, %c0_54], %81 {strides = array<i32>} : memref<200x512xf32, #tpu.memory_space<vmem>>, vector<8x512xf32>,
    %c1_i32 = arith.constant 1 : i32
    %83 = tpu.dynamic_rotate %16 by %c1_i32 dim 1 : vector<8x512xf32>, i32 -> vector<8x512xf32>
    %c11 = arith.constant 11 : index
    %c0_55 = arith.constant 0 : index
    %c0_56 = arith.constant 0 : index
    %84 = vector.load %arg1[%c11, %c0_55, %c0_56] : memref<25x1x512xf32, #tpu.memory_space<vmem>>, vector<1x1x512xf32>
    %85 = vector.shape_cast %84 : vector<1x1x512xf32> to vector<1x512xf32>
    %86 = vector.broadcast %85 : vector<1x512xf32> to vector<8x512xf32>
    %87 = arith.mulf %83, %86 : vector<8x512xf32>
    %c88 = arith.constant 88 : index
    %c0_57 = arith.constant 0 : index
    %88 = vector.load %arg11[%c88, %c0_57] : memref<200x512xf32, #tpu.memory_space<vmem>>, vector<8x512xf32>
    tpu.vector_store %arg11[%c88, %c0_57], %87 {strides = array<i32>} : memref<200x512xf32, #tpu.memory_space<vmem>>, vector<8x512xf32>,
    %c12 = arith.constant 12 : index
    %c0_58 = arith.constant 0 : index
    %c0_59 = arith.constant 0 : index
    %89 = vector.load %arg1[%c12, %c0_58, %c0_59] : memref<25x1x512xf32, #tpu.memory_space<vmem>>, vector<1x1x512xf32>
    %90 = vector.shape_cast %89 : vector<1x1x512xf32> to vector<1x512xf32>
    %91 = vector.broadcast %90 : vector<1x512xf32> to vector<8x512xf32>
    %92 = arith.mulf %16, %91 : vector<8x512xf32>
    %c96 = arith.constant 96 : index
    %c0_60 = arith.constant 0 : index
    %93 = vector.load %arg11[%c96, %c0_60] : memref<200x512xf32, #tpu.memory_space<vmem>>, vector<8x512xf32>
    tpu.vector_store %arg11[%c96, %c0_60], %92 {strides = array<i32>} : memref<200x512xf32, #tpu.memory_space<vmem>>, vector<8x512xf32>,
    %c511_i32 = arith.constant 511 : i32
    %94 = tpu.dynamic_rotate %16 by %c511_i32 dim 1 : vector<8x512xf32>, i32 -> vector<8x512xf32>
    %c13 = arith.constant 13 : index
    %c0_61 = arith.constant 0 : index
    %c0_62 = arith.constant 0 : index
    %95 = vector.load %arg1[%c13, %c0_61, %c0_62] : memref<25x1x512xf32, #tpu.memory_space<vmem>>, vector<1x1x512xf32>
    %96 = vector.shape_cast %95 : vector<1x1x512xf32> to vector<1x512xf32>
    %97 = vector.broadcast %96 : vector<1x512xf32> to vector<8x512xf32>
    %98 = arith.mulf %94, %97 : vector<8x512xf32>
    %c104 = arith.constant 104 : index
    %c0_63 = arith.constant 0 : index
    %99 = vector.load %arg11[%c104, %c0_63] : memref<200x512xf32, #tpu.memory_space<vmem>>, vector<8x512xf32>
    tpu.vector_store %arg11[%c104, %c0_63], %98 {strides = array<i32>} : memref<200x512xf32, #tpu.memory_space<vmem>>, vector<8x512xf32>,
    %c510_i32 = arith.constant 510 : i32
    %100 = tpu.dynamic_rotate %16 by %c510_i32 dim 1 : vector<8x512xf32>, i32 -> vector<8x512xf32>
    %c14 = arith.constant 14 : index
    %c0_64 = arith.constant 0 : index
    %c0_65 = arith.constant 0 : index
    %101 = vector.load %arg1[%c14, %c0_64, %c0_65] : memref<25x1x512xf32, #tpu.memory_space<vmem>>, vector<1x1x512xf32>
    %102 = vector.shape_cast %101 : vector<1x1x512xf32> to vector<1x512xf32>
    %103 = vector.broadcast %102 : vector<1x512xf32> to vector<8x512xf32>
    %104 = arith.mulf %100, %103 : vector<8x512xf32>
    %c112 = arith.constant 112 : index
    %c0_66 = arith.constant 0 : index
    %105 = vector.load %arg11[%c112, %c0_66] : memref<200x512xf32, #tpu.memory_space<vmem>>, vector<8x512xf32>
    tpu.vector_store %arg11[%c112, %c0_66], %104 {strides = array<i32>} : memref<200x512xf32, #tpu.memory_space<vmem>>, vector<8x512xf32>,
    %c498_i32 = arith.constant 498 : i32
    %106 = tpu.dynamic_rotate %16 by %c498_i32 dim 1 : vector<8x512xf32>, i32 -> vector<8x512xf32>
    %c15 = arith.constant 15 : index
    %c0_67 = arith.constant 0 : index
    %c0_68 = arith.constant 0 : index
    %107 = vector.load %arg1[%c15, %c0_67, %c0_68] : memref<25x1x512xf32, #tpu.memory_space<vmem>>, vector<1x1x512xf32>
    %108 = vector.shape_cast %107 : vector<1x1x512xf32> to vector<1x512xf32>
    %109 = vector.broadcast %108 : vector<1x512xf32> to vector<8x512xf32>
    %110 = arith.mulf %106, %109 : vector<8x512xf32>
    %c120 = arith.constant 120 : index
    %c0_69 = arith.constant 0 : index
    %111 = vector.load %arg11[%c120, %c0_69] : memref<200x512xf32, #tpu.memory_space<vmem>>, vector<8x512xf32>
    tpu.vector_store %arg11[%c120, %c0_69], %110 {strides = array<i32>} : memref<200x512xf32, #tpu.memory_space<vmem>>, vector<8x512xf32>,
    %c497_i32 = arith.constant 497 : i32
    %112 = tpu.dynamic_rotate %16 by %c497_i32 dim 1 : vector<8x512xf32>, i32 -> vector<8x512xf32>
    %c16_70 = arith.constant 16 : index
    %c0_71 = arith.constant 0 : index
    %c0_72 = arith.constant 0 : index
    %113 = vector.load %arg1[%c16_70, %c0_71, %c0_72] : memref<25x1x512xf32, #tpu.memory_space<vmem>>, vector<1x1x512xf32>
    %114 = vector.shape_cast %113 : vector<1x1x512xf32> to vector<1x512xf32>
    %115 = vector.broadcast %114 : vector<1x512xf32> to vector<8x512xf32>
    %116 = arith.mulf %112, %115 : vector<8x512xf32>
    %c128 = arith.constant 128 : index
    %c0_73 = arith.constant 0 : index
    %117 = vector.load %arg11[%c128, %c0_73] : memref<200x512xf32, #tpu.memory_space<vmem>>, vector<8x512xf32>
    tpu.vector_store %arg11[%c128, %c0_73], %116 {strides = array<i32>} : memref<200x512xf32, #tpu.memory_space<vmem>>, vector<8x512xf32>,
    %c496_i32 = arith.constant 496 : i32
    %118 = tpu.dynamic_rotate %16 by %c496_i32 dim 1 : vector<8x512xf32>, i32 -> vector<8x512xf32>
    %c17 = arith.constant 17 : index
    %c0_74 = arith.constant 0 : index
    %c0_75 = arith.constant 0 : index
    %119 = vector.load %arg1[%c17, %c0_74, %c0_75] : memref<25x1x512xf32, #tpu.memory_space<vmem>>, vector<1x1x512xf32>
    %120 = vector.shape_cast %119 : vector<1x1x512xf32> to vector<1x512xf32>
    %121 = vector.broadcast %120 : vector<1x512xf32> to vector<8x512xf32>
    %122 = arith.mulf %118, %121 : vector<8x512xf32>
    %c136 = arith.constant 136 : index
    %c0_76 = arith.constant 0 : index
    %123 = vector.load %arg11[%c136, %c0_76] : memref<200x512xf32, #tpu.memory_space<vmem>>, vector<8x512xf32>
    tpu.vector_store %arg11[%c136, %c0_76], %122 {strides = array<i32>} : memref<200x512xf32, #tpu.memory_space<vmem>>, vector<8x512xf32>,
    %c495_i32 = arith.constant 495 : i32
    %124 = tpu.dynamic_rotate %16 by %c495_i32 dim 1 : vector<8x512xf32>, i32 -> vector<8x512xf32>
    %c18 = arith.constant 18 : index
    %c0_77 = arith.constant 0 : index
    %c0_78 = arith.constant 0 : index
    %125 = vector.load %arg1[%c18, %c0_77, %c0_78] : memref<25x1x512xf32, #tpu.memory_space<vmem>>, vector<1x1x512xf32>
    %126 = vector.shape_cast %125 : vector<1x1x512xf32> to vector<1x512xf32>
    %127 = vector.broadcast %126 : vector<1x512xf32> to vector<8x512xf32>
    %128 = arith.mulf %124, %127 : vector<8x512xf32>
    %c144 = arith.constant 144 : index
    %c0_79 = arith.constant 0 : index
    %129 = vector.load %arg11[%c144, %c0_79] : memref<200x512xf32, #tpu.memory_space<vmem>>, vector<8x512xf32>
    tpu.vector_store %arg11[%c144, %c0_79], %128 {strides = array<i32>} : memref<200x512xf32, #tpu.memory_space<vmem>>, vector<8x512xf32>,
    %c494_i32 = arith.constant 494 : i32
    %130 = tpu.dynamic_rotate %16 by %c494_i32 dim 1 : vector<8x512xf32>, i32 -> vector<8x512xf32>
    %c19 = arith.constant 19 : index
    %c0_80 = arith.constant 0 : index
    %c0_81 = arith.constant 0 : index
    %131 = vector.load %arg1[%c19, %c0_80, %c0_81] : memref<25x1x512xf32, #tpu.memory_space<vmem>>, vector<1x1x512xf32>
    %132 = vector.shape_cast %131 : vector<1x1x512xf32> to vector<1x512xf32>
    %133 = vector.broadcast %132 : vector<1x512xf32> to vector<8x512xf32>
    %134 = arith.mulf %130, %133 : vector<8x512xf32>
    %c152 = arith.constant 152 : index
    %c0_82 = arith.constant 0 : index
    %135 = vector.load %arg11[%c152, %c0_82] : memref<200x512xf32, #tpu.memory_space<vmem>>, vector<8x512xf32>
    tpu.vector_store %arg11[%c152, %c0_82], %134 {strides = array<i32>} : memref<200x512xf32, #tpu.memory_space<vmem>>, vector<8x512xf32>,
    %c482_i32 = arith.constant 482 : i32
    %136 = tpu.dynamic_rotate %16 by %c482_i32 dim 1 : vector<8x512xf32>, i32 -> vector<8x512xf32>
    %c20 = arith.constant 20 : index
    %c0_83 = arith.constant 0 : index
    %c0_84 = arith.constant 0 : index
    %137 = vector.load %arg1[%c20, %c0_83, %c0_84] : memref<25x1x512xf32, #tpu.memory_space<vmem>>, vector<1x1x512xf32>
    %138 = vector.shape_cast %137 : vector<1x1x512xf32> to vector<1x512xf32>
    %139 = vector.broadcast %138 : vector<1x512xf32> to vector<8x512xf32>
    %140 = arith.mulf %136, %139 : vector<8x512xf32>
    %c160 = arith.constant 160 : index
    %c0_85 = arith.constant 0 : index
    %141 = vector.load %arg11[%c160, %c0_85] : memref<200x512xf32, #tpu.memory_space<vmem>>, vector<8x512xf32>
    tpu.vector_store %arg11[%c160, %c0_85], %140 {strides = array<i32>} : memref<200x512xf32, #tpu.memory_space<vmem>>, vector<8x512xf32>,
    %c481_i32 = arith.constant 481 : i32
    %142 = tpu.dynamic_rotate %16 by %c481_i32 dim 1 : vector<8x512xf32>, i32 -> vector<8x512xf32>
    %c21 = arith.constant 21 : index
    %c0_86 = arith.constant 0 : index
    %c0_87 = arith.constant 0 : index
    %143 = vector.load %arg1[%c21, %c0_86, %c0_87] : memref<25x1x512xf32, #tpu.memory_space<vmem>>, vector<1x1x512xf32>
    %144 = vector.shape_cast %143 : vector<1x1x512xf32> to vector<1x512xf32>
    %145 = vector.broadcast %144 : vector<1x512xf32> to vector<8x512xf32>
    %146 = arith.mulf %142, %145 : vector<8x512xf32>
    %c168 = arith.constant 168 : index
    %c0_88 = arith.constant 0 : index
    %147 = vector.load %arg11[%c168, %c0_88] : memref<200x512xf32, #tpu.memory_space<vmem>>, vector<8x512xf32>
    tpu.vector_store %arg11[%c168, %c0_88], %146 {strides = array<i32>} : memref<200x512xf32, #tpu.memory_space<vmem>>, vector<8x512xf32>,
    %c480_i32 = arith.constant 480 : i32
    %148 = tpu.dynamic_rotate %16 by %c480_i32 dim 1 : vector<8x512xf32>, i32 -> vector<8x512xf32>
    %c22 = arith.constant 22 : index
    %c0_89 = arith.constant 0 : index
    %c0_90 = arith.constant 0 : index
    %149 = vector.load %arg1[%c22, %c0_89, %c0_90] : memref<25x1x512xf32, #tpu.memory_space<vmem>>, vector<1x1x512xf32>
    %150 = vector.shape_cast %149 : vector<1x1x512xf32> to vector<1x512xf32>
    %151 = vector.broadcast %150 : vector<1x512xf32> to vector<8x512xf32>
    %152 = arith.mulf %148, %151 : vector<8x512xf32>
    %c176 = arith.constant 176 : index
    %c0_91 = arith.constant 0 : index
    %153 = vector.load %arg11[%c176, %c0_91] : memref<200x512xf32, #tpu.memory_space<vmem>>, vector<8x512xf32>
    tpu.vector_store %arg11[%c176, %c0_91], %152 {strides = array<i32>} : memref<200x512xf32, #tpu.memory_space<vmem>>, vector<8x512xf32>,
    %c479_i32 = arith.constant 479 : i32
    %154 = tpu.dynamic_rotate %16 by %c479_i32 dim 1 : vector<8x512xf32>, i32 -> vector<8x512xf32>
    %c23 = arith.constant 23 : index
    %c0_92 = arith.constant 0 : index
    %c0_93 = arith.constant 0 : index
    %155 = vector.load %arg1[%c23, %c0_92, %c0_93] : memref<25x1x512xf32, #tpu.memory_space<vmem>>, vector<1x1x512xf32>
    %156 = vector.shape_cast %155 : vector<1x1x512xf32> to vector<1x512xf32>
    %157 = vector.broadcast %156 : vector<1x512xf32> to vector<8x512xf32>
    %158 = arith.mulf %154, %157 : vector<8x512xf32>
    %c184 = arith.constant 184 : index
    %c0_94 = arith.constant 0 : index
    %159 = vector.load %arg11[%c184, %c0_94] : memref<200x512xf32, #tpu.memory_space<vmem>>, vector<8x512xf32>
    tpu.vector_store %arg11[%c184, %c0_94], %158 {strides = array<i32>} : memref<200x512xf32, #tpu.memory_space<vmem>>, vector<8x512xf32>,
    %c478_i32 = arith.constant 478 : i32
    %160 = tpu.dynamic_rotate %16 by %c478_i32 dim 1 : vector<8x512xf32>, i32 -> vector<8x512xf32>
    %c24_95 = arith.constant 24 : index
    %c0_96 = arith.constant 0 : index
    %c0_97 = arith.constant 0 : index
    %161 = vector.load %arg1[%c24_95, %c0_96, %c0_97] : memref<25x1x512xf32, #tpu.memory_space<vmem>>, vector<1x1x512xf32>
    %162 = vector.shape_cast %161 : vector<1x1x512xf32> to vector<1x512xf32>
    %163 = vector.broadcast %162 : vector<1x512xf32> to vector<8x512xf32>
    %164 = arith.mulf %160, %163 : vector<8x512xf32>
    %c192 = arith.constant 192 : index
    %c0_98 = arith.constant 0 : index
    %165 = vector.load %arg11[%c192, %c0_98] : memref<200x512xf32, #tpu.memory_space<vmem>>, vector<8x512xf32>
    tpu.vector_store %arg11[%c192, %c0_98], %164 {strides = array<i32>} : memref<200x512xf32, #tpu.memory_space<vmem>>, vector<8x512xf32>,
    %c0_99 = arith.constant 0 : index
    %c0_100 = arith.constant 0 : index
    %c0_101 = arith.constant 0 : index
    %166 = vector.load %arg4[%c0_99, %c0_100, %c0_101] : memref<8x8x200xf32, #tpu.memory_space<vmem>>, vector<1x8x200xf32>
    %167 = vector.shape_cast %166 : vector<1x8x200xf32> to vector<8x200xf32>
    %c0_102 = arith.constant 0 : index
    %c0_103 = arith.constant 0 : index
    %168 = vector.load %arg11[%c0_102, %c0_103] : memref<200x512xf32, #tpu.memory_space<vmem>>, vector<200x256xf32>
    %cst_104 = arith.constant dense<0.000000e+00> : vector<8x256xf32>
    %169 = tpu.matmul %167, %168, %cst_104 {dimension_numbers = #tpu.dot_dimension_numbers<[1], [0], [0], [1], [0, 0, 1, 1], [], []>} : vector<8x200xf32>, vector<200x256xf32>, vector<8x256xf32> -> vector<8x256xf32>
    %c0_105 = arith.constant 0 : index
    %c0_106 = arith.constant 0 : index
    %c0_107 = arith.constant 0 : index
    %170 = vector.load %arg5[%c0_105, %c0_106, %c0_107] : memref<4x8x1xf32, #tpu.memory_space<vmem>>, vector<1x8x1xf32>
    %171 = vector.shape_cast %170 : vector<1x8x1xf32> to vector<8x1xf32>
    %172 = vector.broadcast %171 : vector<8x1xf32> to vector<8x256xf32>
    %173 = arith.addf %169, %172 : vector<8x256xf32>
    %c0_108 = arith.constant 0 : index
    %c0_109 = arith.constant 0 : index
    %174 = vector.load %arg12[%c0_108, %c0_109] : memref<8x512xf32, #tpu.memory_space<vmem>>, vector<8x256xf32>
    tpu.vector_store %arg12[%c0_108, %c0_109], %173 {strides = array<i32>} : memref<8x512xf32, #tpu.memory_space<vmem>>, vector<8x256xf32>,
    %c1_110 = arith.constant 1 : index
    %c0_111 = arith.constant 0 : index
    %c0_112 = arith.constant 0 : index
    %175 = vector.load %arg4[%c1_110, %c0_111, %c0_112] : memref<8x8x200xf32, #tpu.memory_space<vmem>>, vector<1x8x200xf32>
    %176 = vector.shape_cast %175 : vector<1x8x200xf32> to vector<8x200xf32>
    %c0_113 = arith.constant 0 : index
    %c256_114 = arith.constant 256 : index
    %177 = vector.load %arg11[%c0_113, %c256_114] : memref<200x512xf32, #tpu.memory_space<vmem>>, vector<200x256xf32>
    %cst_115 = arith.constant dense<0.000000e+00> : vector<8x256xf32>
    %178 = tpu.matmul %176, %177, %cst_115 {dimension_numbers = #tpu.dot_dimension_numbers<[1], [0], [0], [1], [0, 0, 1, 1], [], []>} : vector<8x200xf32>, vector<200x256xf32>, vector<8x256xf32> -> vector<8x256xf32>
    %c0_116 = arith.constant 0 : index
    %c0_117 = arith.constant 0 : index
    %c0_118 = arith.constant 0 : index
    %179 = vector.load %arg5[%c0_116, %c0_117, %c0_118] : memref<4x8x1xf32, #tpu.memory_space<vmem>>, vector<1x8x1xf32>
    %180 = vector.shape_cast %179 : vector<1x8x1xf32> to vector<8x1xf32>
    %181 = vector.broadcast %180 : vector<8x1xf32> to vector<8x256xf32>
    %182 = arith.addf %178, %181 : vector<8x256xf32>
    %c0_119 = arith.constant 0 : index
    %c256_120 = arith.constant 256 : index
    %183 = vector.load %arg12[%c0_119, %c256_120] : memref<8x512xf32, #tpu.memory_space<vmem>>, vector<8x256xf32>
    tpu.vector_store %arg12[%c0_119, %c256_120], %182 {strides = array<i32>} : memref<8x512xf32, #tpu.memory_space<vmem>>, vector<8x256xf32>,
    %c0_121 = arith.constant 0 : index
    %c0_122 = arith.constant 0 : index
    %184 = vector.load %arg12[%c0_121, %c0_122] : memref<8x512xf32, #tpu.memory_space<vmem>>, vector<8x512xf32>
    %cst_123 = arith.constant dense<0.000000e+00> : vector<8xf32>
    %185 = vector.multi_reduction <add>, %184, %cst_123 [1] : vector<8x512xf32> to vector<8xf32>
    %186 = vector.shape_cast %185 : vector<8xf32> to vector<8x1xf32>
    %187 = arith.mulf %184, %184 : vector<8x512xf32>
    %cst_124 = arith.constant dense<0.000000e+00> : vector<8xf32>
    %188 = vector.multi_reduction <add>, %187, %cst_124 [1] : vector<8x512xf32> to vector<8xf32>
    %189 = vector.shape_cast %188 : vector<8xf32> to vector<8x1xf32>
    %cst_125 = arith.constant 5.120000e+02 : f32
    %190 = vector.broadcast %cst_125 : f32 to vector<8x1xf32>
    %191 = arith.divf %186, %190 : vector<8x1xf32>
    %cst_126 = arith.constant 5.120000e+02 : f32
    %192 = vector.broadcast %cst_126 : f32 to vector<8x1xf32>
    %193 = arith.divf %189, %192 : vector<8x1xf32>
    %194 = arith.mulf %191, %191 : vector<8x1xf32>
    %195 = arith.subf %193, %194 : vector<8x1xf32>
    %c0_127 = arith.constant 0 : index
    %c0_128 = arith.constant 0 : index
    %c0_129 = arith.constant 0 : index
    %196 = vector.load %arg6[%c0_127, %c0_128, %c0_129] : memref<4x8x1xf32, #tpu.memory_space<vmem>>, vector<1x8x1xf32>
    %197 = vector.shape_cast %196 : vector<1x8x1xf32> to vector<8x1xf32>
    %cst_130 = arith.constant 9.99999974E-6 : f32
    %198 = vector.broadcast %cst_130 : f32 to vector<8x1xf32>
    %199 = arith.addf %195, %198 : vector<8x1xf32>
    %200 = math.rsqrt %199 : vector<8x1xf32>
    %201 = arith.mulf %197, %200 : vector<8x1xf32>
    %c0_131 = arith.constant 0 : index
    %c0_132 = arith.constant 0 : index
    %c0_133 = arith.constant 0 : index
    %202 = vector.load %arg7[%c0_131, %c0_132, %c0_133] : memref<4x8x1xf32, #tpu.memory_space<vmem>>, vector<1x8x1xf32>
    %203 = vector.shape_cast %202 : vector<1x8x1xf32> to vector<8x1xf32>
    %204 = arith.mulf %191, %201 : vector<8x1xf32>
    %205 = arith.subf %203, %204 : vector<8x1xf32>
    %206 = vector.broadcast %201 : vector<8x1xf32> to vector<8x512xf32>
    %207 = arith.mulf %184, %206 : vector<8x512xf32>
    %208 = vector.broadcast %205 : vector<8x1xf32> to vector<8x512xf32>
    %209 = arith.addf %207, %208 : vector<8x512xf32>
    %cst_134 = arith.constant 0.000000e+00 : f32
    %210 = vector.broadcast %cst_134 : f32 to vector<8x512xf32>
    %211 = arith.maximumf %209, %210 : vector<8x512xf32>
    %c34_i32_135 = arith.constant 34 : i32
    %212 = tpu.dynamic_rotate %211 by %c34_i32_135 dim 1 : vector<8x512xf32>, i32 -> vector<8x512xf32>
    %c0_136 = arith.constant 0 : index
    %c0_137 = arith.constant 0 : index
    %c0_138 = arith.constant 0 : index
    %213 = vector.load %arg1[%c0_136, %c0_137, %c0_138] : memref<25x1x512xf32, #tpu.memory_space<vmem>>, vector<1x1x512xf32>
    %214 = vector.shape_cast %213 : vector<1x1x512xf32> to vector<1x512xf32>
    %215 = vector.broadcast %214 : vector<1x512xf32> to vector<8x512xf32>
    %216 = arith.mulf %212, %215 : vector<8x512xf32>
    %c0_139 = arith.constant 0 : index
    %c0_140 = arith.constant 0 : index
    %217 = vector.load %arg11[%c0_139, %c0_140] : memref<200x512xf32, #tpu.memory_space<vmem>>, vector<8x512xf32>
    tpu.vector_store %arg11[%c0_139, %c0_140], %216 {strides = array<i32>} : memref<200x512xf32, #tpu.memory_space<vmem>>, vector<8x512xf32>,
    %c33_i32_141 = arith.constant 33 : i32
    %218 = tpu.dynamic_rotate %211 by %c33_i32_141 dim 1 : vector<8x512xf32>, i32 -> vector<8x512xf32>
    %c1_142 = arith.constant 1 : index
    %c0_143 = arith.constant 0 : index
    %c0_144 = arith.constant 0 : index
    %219 = vector.load %arg1[%c1_142, %c0_143, %c0_144] : memref<25x1x512xf32, #tpu.memory_space<vmem>>, vector<1x1x512xf32>
    %220 = vector.shape_cast %219 : vector<1x1x512xf32> to vector<1x512xf32>
    %221 = vector.broadcast %220 : vector<1x512xf32> to vector<8x512xf32>
    %222 = arith.mulf %218, %221 : vector<8x512xf32>
    %c8_145 = arith.constant 8 : index
    %c0_146 = arith.constant 0 : index
    %223 = vector.load %arg11[%c8_145, %c0_146] : memref<200x512xf32, #tpu.memory_space<vmem>>, vector<8x512xf32>
    tpu.vector_store %arg11[%c8_145, %c0_146], %222 {strides = array<i32>} : memref<200x512xf32, #tpu.memory_space<vmem>>, vector<8x512xf32>,
    %c32_i32_147 = arith.constant 32 : i32
    %224 = tpu.dynamic_rotate %211 by %c32_i32_147 dim 1 : vector<8x512xf32>, i32 -> vector<8x512xf32>
    %c2_148 = arith.constant 2 : index
    %c0_149 = arith.constant 0 : index
    %c0_150 = arith.constant 0 : index
    %225 = vector.load %arg1[%c2_148, %c0_149, %c0_150] : memref<25x1x512xf32, #tpu.memory_space<vmem>>, vector<1x1x512xf32>
    %226 = vector.shape_cast %225 : vector<1x1x512xf32> to vector<1x512xf32>
    %227 = vector.broadcast %226 : vector<1x512xf32> to vector<8x512xf32>
    %228 = arith.mulf %224, %227 : vector<8x512xf32>
    %c16_151 = arith.constant 16 : index
    %c0_152 = arith.constant 0 : index
    %229 = vector.load %arg11[%c16_151, %c0_152] : memref<200x512xf32, #tpu.memory_space<vmem>>, vector<8x512xf32>
    tpu.vector_store %arg11[%c16_151, %c0_152], %228 {strides = array<i32>} : memref<200x512xf32, #tpu.memory_space<vmem>>, vector<8x512xf32>,
    %c31_i32_153 = arith.constant 31 : i32
    %230 = tpu.dynamic_rotate %211 by %c31_i32_153 dim 1 : vector<8x512xf32>, i32 -> vector<8x512xf32>
    %c3_154 = arith.constant 3 : index
    %c0_155 = arith.constant 0 : index
    %c0_156 = arith.constant 0 : index
    %231 = vector.load %arg1[%c3_154, %c0_155, %c0_156] : memref<25x1x512xf32, #tpu.memory_space<vmem>>, vector<1x1x512xf32>
    %232 = vector.shape_cast %231 : vector<1x1x512xf32> to vector<1x512xf32>
    %233 = vector.broadcast %232 : vector<1x512xf32> to vector<8x512xf32>
    %234 = arith.mulf %230, %233 : vector<8x512xf32>
    %c24_157 = arith.constant 24 : index
    %c0_158 = arith.constant 0 : index
    %235 = vector.load %arg11[%c24_157, %c0_158] : memref<200x512xf32, #tpu.memory_space<vmem>>, vector<8x512xf32>
    tpu.vector_store %arg11[%c24_157, %c0_158], %234 {strides = array<i32>} : memref<200x512xf32, #tpu.memory_space<vmem>>, vector<8x512xf32>,
    %c30_i32_159 = arith.constant 30 : i32
    %236 = tpu.dynamic_rotate %211 by %c30_i32_159 dim 1 : vector<8x512xf32>, i32 -> vector<8x512xf32>
    %c4_160 = arith.constant 4 : index
    %c0_161 = arith.constant 0 : index
    %c0_162 = arith.constant 0 : index
    %237 = vector.load %arg1[%c4_160, %c0_161, %c0_162] : memref<25x1x512xf32, #tpu.memory_space<vmem>>, vector<1x1x512xf32>
    %238 = vector.shape_cast %237 : vector<1x1x512xf32> to vector<1x512xf32>
    %239 = vector.broadcast %238 : vector<1x512xf32> to vector<8x512xf32>
    %240 = arith.mulf %236, %239 : vector<8x512xf32>
    %c32_163 = arith.constant 32 : index
    %c0_164 = arith.constant 0 : index
    %241 = vector.load %arg11[%c32_163, %c0_164] : memref<200x512xf32, #tpu.memory_space<vmem>>, vector<8x512xf32>
    tpu.vector_store %arg11[%c32_163, %c0_164], %240 {strides = array<i32>} : memref<200x512xf32, #tpu.memory_space<vmem>>, vector<8x512xf32>,
    %c18_i32_165 = arith.constant 18 : i32
    %242 = tpu.dynamic_rotate %211 by %c18_i32_165 dim 1 : vector<8x512xf32>, i32 -> vector<8x512xf32>
    %c5_166 = arith.constant 5 : index
    %c0_167 = arith.constant 0 : index
    %c0_168 = arith.constant 0 : index
    %243 = vector.load %arg1[%c5_166, %c0_167, %c0_168] : memref<25x1x512xf32, #tpu.memory_space<vmem>>, vector<1x1x512xf32>
    %244 = vector.shape_cast %243 : vector<1x1x512xf32> to vector<1x512xf32>
    %245 = vector.broadcast %244 : vector<1x512xf32> to vector<8x512xf32>
    %246 = arith.mulf %242, %245 : vector<8x512xf32>
    %c40_169 = arith.constant 40 : index
    %c0_170 = arith.constant 0 : index
    %247 = vector.load %arg11[%c40_169, %c0_170] : memref<200x512xf32, #tpu.memory_space<vmem>>, vector<8x512xf32>
    tpu.vector_store %arg11[%c40_169, %c0_170], %246 {strides = array<i32>} : memref<200x512xf32, #tpu.memory_space<vmem>>, vector<8x512xf32>,
    %c17_i32_171 = arith.constant 17 : i32
    %248 = tpu.dynamic_rotate %211 by %c17_i32_171 dim 1 : vector<8x512xf32>, i32 -> vector<8x512xf32>
    %c6_172 = arith.constant 6 : index
    %c0_173 = arith.constant 0 : index
    %c0_174 = arith.constant 0 : index
    %249 = vector.load %arg1[%c6_172, %c0_173, %c0_174] : memref<25x1x512xf32, #tpu.memory_space<vmem>>, vector<1x1x512xf32>
    %250 = vector.shape_cast %249 : vector<1x1x512xf32> to vector<1x512xf32>
    %251 = vector.broadcast %250 : vector<1x512xf32> to vector<8x512xf32>
    %252 = arith.mulf %248, %251 : vector<8x512xf32>
    %c48_175 = arith.constant 48 : index
    %c0_176 = arith.constant 0 : index
    %253 = vector.load %arg11[%c48_175, %c0_176] : memref<200x512xf32, #tpu.memory_space<vmem>>, vector<8x512xf32>
    tpu.vector_store %arg11[%c48_175, %c0_176], %252 {strides = array<i32>} : memref<200x512xf32, #tpu.memory_space<vmem>>, vector<8x512xf32>,
    %c16_i32_177 = arith.constant 16 : i32
    %254 = tpu.dynamic_rotate %211 by %c16_i32_177 dim 1 : vector<8x512xf32>, i32 -> vector<8x512xf32>
    %c7_178 = arith.constant 7 : index
    %c0_179 = arith.constant 0 : index
    %c0_180 = arith.constant 0 : index
    %255 = vector.load %arg1[%c7_178, %c0_179, %c0_180] : memref<25x1x512xf32, #tpu.memory_space<vmem>>, vector<1x1x512xf32>
    %256 = vector.shape_cast %255 : vector<1x1x512xf32> to vector<1x512xf32>
    %257 = vector.broadcast %256 : vector<1x512xf32> to vector<8x512xf32>
    %258 = arith.mulf %254, %257 : vector<8x512xf32>
    %c56_181 = arith.constant 56 : index
    %c0_182 = arith.constant 0 : index
    %259 = vector.load %arg11[%c56_181, %c0_182] : memref<200x512xf32, #tpu.memory_space<vmem>>, vector<8x512xf32>
    tpu.vector_store %arg11[%c56_181, %c0_182], %258 {strides = array<i32>} : memref<200x512xf32, #tpu.memory_space<vmem>>, vector<8x512xf32>,
    %c15_i32_183 = arith.constant 15 : i32
    %260 = tpu.dynamic_rotate %211 by %c15_i32_183 dim 1 : vector<8x512xf32>, i32 -> vector<8x512xf32>
    %c8_184 = arith.constant 8 : index
    %c0_185 = arith.constant 0 : index
    %c0_186 = arith.constant 0 : index
    %261 = vector.load %arg1[%c8_184, %c0_185, %c0_186] : memref<25x1x512xf32, #tpu.memory_space<vmem>>, vector<1x1x512xf32>
    %262 = vector.shape_cast %261 : vector<1x1x512xf32> to vector<1x512xf32>
    %263 = vector.broadcast %262 : vector<1x512xf32> to vector<8x512xf32>
    %264 = arith.mulf %260, %263 : vector<8x512xf32>
    %c64_187 = arith.constant 64 : index
    %c0_188 = arith.constant 0 : index
    %265 = vector.load %arg11[%c64_187, %c0_188] : memref<200x512xf32, #tpu.memory_space<vmem>>, vector<8x512xf32>
    tpu.vector_store %arg11[%c64_187, %c0_188], %264 {strides = array<i32>} : memref<200x512xf32, #tpu.memory_space<vmem>>, vector<8x512xf32>,
    %c14_i32_189 = arith.constant 14 : i32
    %266 = tpu.dynamic_rotate %211 by %c14_i32_189 dim 1 : vector<8x512xf32>, i32 -> vector<8x512xf32>
    %c9_190 = arith.constant 9 : index
    %c0_191 = arith.constant 0 : index
    %c0_192 = arith.constant 0 : index
    %267 = vector.load %arg1[%c9_190, %c0_191, %c0_192] : memref<25x1x512xf32, #tpu.memory_space<vmem>>, vector<1x1x512xf32>
    %268 = vector.shape_cast %267 : vector<1x1x512xf32> to vector<1x512xf32>
    %269 = vector.broadcast %268 : vector<1x512xf32> to vector<8x512xf32>
    %270 = arith.mulf %266, %269 : vector<8x512xf32>
    %c72_193 = arith.constant 72 : index
    %c0_194 = arith.constant 0 : index
    %271 = vector.load %arg11[%c72_193, %c0_194] : memref<200x512xf32, #tpu.memory_space<vmem>>, vector<8x512xf32>
    tpu.vector_store %arg11[%c72_193, %c0_194], %270 {strides = array<i32>} : memref<200x512xf32, #tpu.memory_space<vmem>>, vector<8x512xf32>,
    %c2_i32_195 = arith.constant 2 : i32
    %272 = tpu.dynamic_rotate %211 by %c2_i32_195 dim 1 : vector<8x512xf32>, i32 -> vector<8x512xf32>
    %c10_196 = arith.constant 10 : index
    %c0_197 = arith.constant 0 : index
    %c0_198 = arith.constant 0 : index
    %273 = vector.load %arg1[%c10_196, %c0_197, %c0_198] : memref<25x1x512xf32, #tpu.memory_space<vmem>>, vector<1x1x512xf32>
    %274 = vector.shape_cast %273 : vector<1x1x512xf32> to vector<1x512xf32>
    %275 = vector.broadcast %274 : vector<1x512xf32> to vector<8x512xf32>
    %276 = arith.mulf %272, %275 : vector<8x512xf32>
    %c80_199 = arith.constant 80 : index
    %c0_200 = arith.constant 0 : index
    %277 = vector.load %arg11[%c80_199, %c0_200] : memref<200x512xf32, #tpu.memory_space<vmem>>, vector<8x512xf32>
    tpu.vector_store %arg11[%c80_199, %c0_200], %276 {strides = array<i32>} : memref<200x512xf32, #tpu.memory_space<vmem>>, vector<8x512xf32>,
    %c1_i32_201 = arith.constant 1 : i32
    %278 = tpu.dynamic_rotate %211 by %c1_i32_201 dim 1 : vector<8x512xf32>, i32 -> vector<8x512xf32>
    %c11_202 = arith.constant 11 : index
    %c0_203 = arith.constant 0 : index
    %c0_204 = arith.constant 0 : index
    %279 = vector.load %arg1[%c11_202, %c0_203, %c0_204] : memref<25x1x512xf32, #tpu.memory_space<vmem>>, vector<1x1x512xf32>
    %280 = vector.shape_cast %279 : vector<1x1x512xf32> to vector<1x512xf32>
    %281 = vector.broadcast %280 : vector<1x512xf32> to vector<8x512xf32>
    %282 = arith.mulf %278, %281 : vector<8x512xf32>
    %c88_205 = arith.constant 88 : index
    %c0_206 = arith.constant 0 : index
    %283 = vector.load %arg11[%c88_205, %c0_206] : memref<200x512xf32, #tpu.memory_space<vmem>>, vector<8x512xf32>
    tpu.vector_store %arg11[%c88_205, %c0_206], %282 {strides = array<i32>} : memref<200x512xf32, #tpu.memory_space<vmem>>, vector<8x512xf32>,
    %c12_207 = arith.constant 12 : index
    %c0_208 = arith.constant 0 : index
    %c0_209 = arith.constant 0 : index
    %284 = vector.load %arg1[%c12_207, %c0_208, %c0_209] : memref<25x1x512xf32, #tpu.memory_space<vmem>>, vector<1x1x512xf32>
    %285 = vector.shape_cast %284 : vector<1x1x512xf32> to vector<1x512xf32>
    %286 = vector.broadcast %285 : vector<1x512xf32> to vector<8x512xf32>
    %287 = arith.mulf %211, %286 : vector<8x512xf32>
    %c96_210 = arith.constant 96 : index
    %c0_211 = arith.constant 0 : index
    %288 = vector.load %arg11[%c96_210, %c0_211] : memref<200x512xf32, #tpu.memory_space<vmem>>, vector<8x512xf32>
    tpu.vector_store %arg11[%c96_210, %c0_211], %287 {strides = array<i32>} : memref<200x512xf32, #tpu.memory_space<vmem>>, vector<8x512xf32>,
    %c511_i32_212 = arith.constant 511 : i32
    %289 = tpu.dynamic_rotate %211 by %c511_i32_212 dim 1 : vector<8x512xf32>, i32 -> vector<8x512xf32>
    %c13_213 = arith.constant 13 : index
    %c0_214 = arith.constant 0 : index
    %c0_215 = arith.constant 0 : index
    %290 = vector.load %arg1[%c13_213, %c0_214, %c0_215] : memref<25x1x512xf32, #tpu.memory_space<vmem>>, vector<1x1x512xf32>
    %291 = vector.shape_cast %290 : vector<1x1x512xf32> to vector<1x512xf32>
    %292 = vector.broadcast %291 : vector<1x512xf32> to vector<8x512xf32>
    %293 = arith.mulf %289, %292 : vector<8x512xf32>
    %c104_216 = arith.constant 104 : index
    %c0_217 = arith.constant 0 : index
    %294 = vector.load %arg11[%c104_216, %c0_217] : memref<200x512xf32, #tpu.memory_space<vmem>>, vector<8x512xf32>
    tpu.vector_store %arg11[%c104_216, %c0_217], %293 {strides = array<i32>} : memref<200x512xf32, #tpu.memory_space<vmem>>, vector<8x512xf32>,
    %c510_i32_218 = arith.constant 510 : i32
    %295 = tpu.dynamic_rotate %211 by %c510_i32_218 dim 1 : vector<8x512xf32>, i32 -> vector<8x512xf32>
    %c14_219 = arith.constant 14 : index
    %c0_220 = arith.constant 0 : index
    %c0_221 = arith.constant 0 : index
    %296 = vector.load %arg1[%c14_219, %c0_220, %c0_221] : memref<25x1x512xf32, #tpu.memory_space<vmem>>, vector<1x1x512xf32>
    %297 = vector.shape_cast %296 : vector<1x1x512xf32> to vector<1x512xf32>
    %298 = vector.broadcast %297 : vector<1x512xf32> to vector<8x512xf32>
    %299 = arith.mulf %295, %298 : vector<8x512xf32>
    %c112_222 = arith.constant 112 : index
    %c0_223 = arith.constant 0 : index
    %300 = vector.load %arg11[%c112_222, %c0_223] : memref<200x512xf32, #tpu.memory_space<vmem>>, vector<8x512xf32>
    tpu.vector_store %arg11[%c112_222, %c0_223], %299 {strides = array<i32>} : memref<200x512xf32, #tpu.memory_space<vmem>>, vector<8x512xf32>,
    %c498_i32_224 = arith.constant 498 : i32
    %301 = tpu.dynamic_rotate %211 by %c498_i32_224 dim 1 : vector<8x512xf32>, i32 -> vector<8x512xf32>
    %c15_225 = arith.constant 15 : index
    %c0_226 = arith.constant 0 : index
    %c0_227 = arith.constant 0 : index
    %302 = vector.load %arg1[%c15_225, %c0_226, %c0_227] : memref<25x1x512xf32, #tpu.memory_space<vmem>>, vector<1x1x512xf32>
    %303 = vector.shape_cast %302 : vector<1x1x512xf32> to vector<1x512xf32>
    %304 = vector.broadcast %303 : vector<1x512xf32> to vector<8x512xf32>
    %305 = arith.mulf %301, %304 : vector<8x512xf32>
    %c120_228 = arith.constant 120 : index
    %c0_229 = arith.constant 0 : index
    %306 = vector.load %arg11[%c120_228, %c0_229] : memref<200x512xf32, #tpu.memory_space<vmem>>, vector<8x512xf32>
    tpu.vector_store %arg11[%c120_228, %c0_229], %305 {strides = array<i32>} : memref<200x512xf32, #tpu.memory_space<vmem>>, vector<8x512xf32>,
    %c497_i32_230 = arith.constant 497 : i32
    %307 = tpu.dynamic_rotate %211 by %c497_i32_230 dim 1 : vector<8x512xf32>, i32 -> vector<8x512xf32>
    %c16_231 = arith.constant 16 : index
    %c0_232 = arith.constant 0 : index
    %c0_233 = arith.constant 0 : index
    %308 = vector.load %arg1[%c16_231, %c0_232, %c0_233] : memref<25x1x512xf32, #tpu.memory_space<vmem>>, vector<1x1x512xf32>
    %309 = vector.shape_cast %308 : vector<1x1x512xf32> to vector<1x512xf32>
    %310 = vector.broadcast %309 : vector<1x512xf32> to vector<8x512xf32>
    %311 = arith.mulf %307, %310 : vector<8x512xf32>
    %c128_234 = arith.constant 128 : index
    %c0_235 = arith.constant 0 : index
    %312 = vector.load %arg11[%c128_234, %c0_235] : memref<200x512xf32, #tpu.memory_space<vmem>>, vector<8x512xf32>
    tpu.vector_store %arg11[%c128_234, %c0_235], %311 {strides = array<i32>} : memref<200x512xf32, #tpu.memory_space<vmem>>, vector<8x512xf32>,
    %c496_i32_236 = arith.constant 496 : i32
    %313 = tpu.dynamic_rotate %211 by %c496_i32_236 dim 1 : vector<8x512xf32>, i32 -> vector<8x512xf32>
    %c17_237 = arith.constant 17 : index
    %c0_238 = arith.constant 0 : index
    %c0_239 = arith.constant 0 : index
    %314 = vector.load %arg1[%c17_237, %c0_238, %c0_239] : memref<25x1x512xf32, #tpu.memory_space<vmem>>, vector<1x1x512xf32>
    %315 = vector.shape_cast %314 : vector<1x1x512xf32> to vector<1x512xf32>
    %316 = vector.broadcast %315 : vector<1x512xf32> to vector<8x512xf32>
    %317 = arith.mulf %313, %316 : vector<8x512xf32>
    %c136_240 = arith.constant 136 : index
    %c0_241 = arith.constant 0 : index
    %318 = vector.load %arg11[%c136_240, %c0_241] : memref<200x512xf32, #tpu.memory_space<vmem>>, vector<8x512xf32>
    tpu.vector_store %arg11[%c136_240, %c0_241], %317 {strides = array<i32>} : memref<200x512xf32, #tpu.memory_space<vmem>>, vector<8x512xf32>,
    %c495_i32_242 = arith.constant 495 : i32
    %319 = tpu.dynamic_rotate %211 by %c495_i32_242 dim 1 : vector<8x512xf32>, i32 -> vector<8x512xf32>
    %c18_243 = arith.constant 18 : index
    %c0_244 = arith.constant 0 : index
    %c0_245 = arith.constant 0 : index
    %320 = vector.load %arg1[%c18_243, %c0_244, %c0_245] : memref<25x1x512xf32, #tpu.memory_space<vmem>>, vector<1x1x512xf32>
    %321 = vector.shape_cast %320 : vector<1x1x512xf32> to vector<1x512xf32>
    %322 = vector.broadcast %321 : vector<1x512xf32> to vector<8x512xf32>
    %323 = arith.mulf %319, %322 : vector<8x512xf32>
    %c144_246 = arith.constant 144 : index
    %c0_247 = arith.constant 0 : index
    %324 = vector.load %arg11[%c144_246, %c0_247] : memref<200x512xf32, #tpu.memory_space<vmem>>, vector<8x512xf32>
    tpu.vector_store %arg11[%c144_246, %c0_247], %323 {strides = array<i32>} : memref<200x512xf32, #tpu.memory_space<vmem>>, vector<8x512xf32>,
    %c494_i32_248 = arith.constant 494 : i32
    %325 = tpu.dynamic_rotate %211 by %c494_i32_248 dim 1 : vector<8x512xf32>, i32 -> vector<8x512xf32>
    %c19_249 = arith.constant 19 : index
    %c0_250 = arith.constant 0 : index
    %c0_251 = arith.constant 0 : index
    %326 = vector.load %arg1[%c19_249, %c0_250, %c0_251] : memref<25x1x512xf32, #tpu.memory_space<vmem>>, vector<1x1x512xf32>
    %327 = vector.shape_cast %326 : vector<1x1x512xf32> to vector<1x512xf32>
    %328 = vector.broadcast %327 : vector<1x512xf32> to vector<8x512xf32>
    %329 = arith.mulf %325, %328 : vector<8x512xf32>
    %c152_252 = arith.constant 152 : index
    %c0_253 = arith.constant 0 : index
    %330 = vector.load %arg11[%c152_252, %c0_253] : memref<200x512xf32, #tpu.memory_space<vmem>>, vector<8x512xf32>
    tpu.vector_store %arg11[%c152_252, %c0_253], %329 {strides = array<i32>} : memref<200x512xf32, #tpu.memory_space<vmem>>, vector<8x512xf32>,
    %c482_i32_254 = arith.constant 482 : i32
    %331 = tpu.dynamic_rotate %211 by %c482_i32_254 dim 1 : vector<8x512xf32>, i32 -> vector<8x512xf32>
    %c20_255 = arith.constant 20 : index
    %c0_256 = arith.constant 0 : index
    %c0_257 = arith.constant 0 : index
    %332 = vector.load %arg1[%c20_255, %c0_256, %c0_257] : memref<25x1x512xf32, #tpu.memory_space<vmem>>, vector<1x1x512xf32>
    %333 = vector.shape_cast %332 : vector<1x1x512xf32> to vector<1x512xf32>
    %334 = vector.broadcast %333 : vector<1x512xf32> to vector<8x512xf32>
    %335 = arith.mulf %331, %334 : vector<8x512xf32>
    %c160_258 = arith.constant 160 : index
    %c0_259 = arith.constant 0 : index
    %336 = vector.load %arg11[%c160_258, %c0_259] : memref<200x512xf32, #tpu.memory_space<vmem>>, vector<8x512xf32>
    tpu.vector_store %arg11[%c160_258, %c0_259], %335 {strides = array<i32>} : memref<200x512xf32, #tpu.memory_space<vmem>>, vector<8x512xf32>,
    %c481_i32_260 = arith.constant 481 : i32
    %337 = tpu.dynamic_rotate %211 by %c481_i32_260 dim 1 : vector<8x512xf32>, i32 -> vector<8x512xf32>
    %c21_261 = arith.constant 21 : index
    %c0_262 = arith.constant 0 : index
    %c0_263 = arith.constant 0 : index
    %338 = vector.load %arg1[%c21_261, %c0_262, %c0_263] : memref<25x1x512xf32, #tpu.memory_space<vmem>>, vector<1x1x512xf32>
    %339 = vector.shape_cast %338 : vector<1x1x512xf32> to vector<1x512xf32>
    %340 = vector.broadcast %339 : vector<1x512xf32> to vector<8x512xf32>
    %341 = arith.mulf %337, %340 : vector<8x512xf32>
    %c168_264 = arith.constant 168 : index
    %c0_265 = arith.constant 0 : index
    %342 = vector.load %arg11[%c168_264, %c0_265] : memref<200x512xf32, #tpu.memory_space<vmem>>, vector<8x512xf32>
    tpu.vector_store %arg11[%c168_264, %c0_265], %341 {strides = array<i32>} : memref<200x512xf32, #tpu.memory_space<vmem>>, vector<8x512xf32>,
    %c480_i32_266 = arith.constant 480 : i32
    %343 = tpu.dynamic_rotate %211 by %c480_i32_266 dim 1 : vector<8x512xf32>, i32 -> vector<8x512xf32>
    %c22_267 = arith.constant 22 : index
    %c0_268 = arith.constant 0 : index
    %c0_269 = arith.constant 0 : index
    %344 = vector.load %arg1[%c22_267, %c0_268, %c0_269] : memref<25x1x512xf32, #tpu.memory_space<vmem>>, vector<1x1x512xf32>
    %345 = vector.shape_cast %344 : vector<1x1x512xf32> to vector<1x512xf32>
    %346 = vector.broadcast %345 : vector<1x512xf32> to vector<8x512xf32>
    %347 = arith.mulf %343, %346 : vector<8x512xf32>
    %c176_270 = arith.constant 176 : index
    %c0_271 = arith.constant 0 : index
    %348 = vector.load %arg11[%c176_270, %c0_271] : memref<200x512xf32, #tpu.memory_space<vmem>>, vector<8x512xf32>
    tpu.vector_store %arg11[%c176_270, %c0_271], %347 {strides = array<i32>} : memref<200x512xf32, #tpu.memory_space<vmem>>, vector<8x512xf32>,
    %c479_i32_272 = arith.constant 479 : i32
    %349 = tpu.dynamic_rotate %211 by %c479_i32_272 dim 1 : vector<8x512xf32>, i32 -> vector<8x512xf32>
    %c23_273 = arith.constant 23 : index
    %c0_274 = arith.constant 0 : index
    %c0_275 = arith.constant 0 : index
    %350 = vector.load %arg1[%c23_273, %c0_274, %c0_275] : memref<25x1x512xf32, #tpu.memory_space<vmem>>, vector<1x1x512xf32>
    %351 = vector.shape_cast %350 : vector<1x1x512xf32> to vector<1x512xf32>
    %352 = vector.broadcast %351 : vector<1x512xf32> to vector<8x512xf32>
    %353 = arith.mulf %349, %352 : vector<8x512xf32>
    %c184_276 = arith.constant 184 : index
    %c0_277 = arith.constant 0 : index
    %354 = vector.load %arg11[%c184_276, %c0_277] : memref<200x512xf32, #tpu.memory_space<vmem>>, vector<8x512xf32>
    tpu.vector_store %arg11[%c184_276, %c0_277], %353 {strides = array<i32>} : memref<200x512xf32, #tpu.memory_space<vmem>>, vector<8x512xf32>,
    %c478_i32_278 = arith.constant 478 : i32
    %355 = tpu.dynamic_rotate %211 by %c478_i32_278 dim 1 : vector<8x512xf32>, i32 -> vector<8x512xf32>
    %c24_279 = arith.constant 24 : index
    %c0_280 = arith.constant 0 : index
    %c0_281 = arith.constant 0 : index
    %356 = vector.load %arg1[%c24_279, %c0_280, %c0_281] : memref<25x1x512xf32, #tpu.memory_space<vmem>>, vector<1x1x512xf32>
    %357 = vector.shape_cast %356 : vector<1x1x512xf32> to vector<1x512xf32>
    %358 = vector.broadcast %357 : vector<1x512xf32> to vector<8x512xf32>
    %359 = arith.mulf %355, %358 : vector<8x512xf32>
    %c192_282 = arith.constant 192 : index
    %c0_283 = arith.constant 0 : index
    %360 = vector.load %arg11[%c192_282, %c0_283] : memref<200x512xf32, #tpu.memory_space<vmem>>, vector<8x512xf32>
    tpu.vector_store %arg11[%c192_282, %c0_283], %359 {strides = array<i32>} : memref<200x512xf32, #tpu.memory_space<vmem>>, vector<8x512xf32>,
    %c2_284 = arith.constant 2 : index
    %c0_285 = arith.constant 0 : index
    %c0_286 = arith.constant 0 : index
    %361 = vector.load %arg4[%c2_284, %c0_285, %c0_286] : memref<8x8x200xf32, #tpu.memory_space<vmem>>, vector<1x8x200xf32>
    %362 = vector.shape_cast %361 : vector<1x8x200xf32> to vector<8x200xf32>
    %c0_287 = arith.constant 0 : index
    %c0_288 = arith.constant 0 : index
    %363 = vector.load %arg11[%c0_287, %c0_288] : memref<200x512xf32, #tpu.memory_space<vmem>>, vector<200x256xf32>
    %cst_289 = arith.constant dense<0.000000e+00> : vector<8x256xf32>
    %364 = tpu.matmul %362, %363, %cst_289 {dimension_numbers = #tpu.dot_dimension_numbers<[1], [0], [0], [1], [0, 0, 1, 1], [], []>} : vector<8x200xf32>, vector<200x256xf32>, vector<8x256xf32> -> vector<8x256xf32>
    %c1_290 = arith.constant 1 : index
    %c0_291 = arith.constant 0 : index
    %c0_292 = arith.constant 0 : index
    %365 = vector.load %arg5[%c1_290, %c0_291, %c0_292] : memref<4x8x1xf32, #tpu.memory_space<vmem>>, vector<1x8x1xf32>
    %366 = vector.shape_cast %365 : vector<1x8x1xf32> to vector<8x1xf32>
    %367 = vector.broadcast %366 : vector<8x1xf32> to vector<8x256xf32>
    %368 = arith.addf %364, %367 : vector<8x256xf32>
    %c0_293 = arith.constant 0 : index
    %c0_294 = arith.constant 0 : index
    %369 = vector.load %arg12[%c0_293, %c0_294] : memref<8x512xf32, #tpu.memory_space<vmem>>, vector<8x256xf32>
    tpu.vector_store %arg12[%c0_293, %c0_294], %368 {strides = array<i32>} : memref<8x512xf32, #tpu.memory_space<vmem>>, vector<8x256xf32>,
    %c3_295 = arith.constant 3 : index
    %c0_296 = arith.constant 0 : index
    %c0_297 = arith.constant 0 : index
    %370 = vector.load %arg4[%c3_295, %c0_296, %c0_297] : memref<8x8x200xf32, #tpu.memory_space<vmem>>, vector<1x8x200xf32>
    %371 = vector.shape_cast %370 : vector<1x8x200xf32> to vector<8x200xf32>
    %c0_298 = arith.constant 0 : index
    %c256_299 = arith.constant 256 : index
    %372 = vector.load %arg11[%c0_298, %c256_299] : memref<200x512xf32, #tpu.memory_space<vmem>>, vector<200x256xf32>
    %cst_300 = arith.constant dense<0.000000e+00> : vector<8x256xf32>
    %373 = tpu.matmul %371, %372, %cst_300 {dimension_numbers = #tpu.dot_dimension_numbers<[1], [0], [0], [1], [0, 0, 1, 1], [], []>} : vector<8x200xf32>, vector<200x256xf32>, vector<8x256xf32> -> vector<8x256xf32>
    %c1_301 = arith.constant 1 : index
    %c0_302 = arith.constant 0 : index
    %c0_303 = arith.constant 0 : index
    %374 = vector.load %arg5[%c1_301, %c0_302, %c0_303] : memref<4x8x1xf32, #tpu.memory_space<vmem>>, vector<1x8x1xf32>
    %375 = vector.shape_cast %374 : vector<1x8x1xf32> to vector<8x1xf32>
    %376 = vector.broadcast %375 : vector<8x1xf32> to vector<8x256xf32>
    %377 = arith.addf %373, %376 : vector<8x256xf32>
    %c0_304 = arith.constant 0 : index
    %c256_305 = arith.constant 256 : index
    %378 = vector.load %arg12[%c0_304, %c256_305] : memref<8x512xf32, #tpu.memory_space<vmem>>, vector<8x256xf32>
    tpu.vector_store %arg12[%c0_304, %c256_305], %377 {strides = array<i32>} : memref<8x512xf32, #tpu.memory_space<vmem>>, vector<8x256xf32>,
    %c0_306 = arith.constant 0 : index
    %c0_307 = arith.constant 0 : index
    %379 = vector.load %arg12[%c0_306, %c0_307] : memref<8x512xf32, #tpu.memory_space<vmem>>, vector<8x512xf32>
    %cst_308 = arith.constant dense<0.000000e+00> : vector<8xf32>
    %380 = vector.multi_reduction <add>, %379, %cst_308 [1] : vector<8x512xf32> to vector<8xf32>
    %381 = vector.shape_cast %380 : vector<8xf32> to vector<8x1xf32>
    %382 = arith.mulf %379, %379 : vector<8x512xf32>
    %cst_309 = arith.constant dense<0.000000e+00> : vector<8xf32>
    %383 = vector.multi_reduction <add>, %382, %cst_309 [1] : vector<8x512xf32> to vector<8xf32>
    %384 = vector.shape_cast %383 : vector<8xf32> to vector<8x1xf32>
    %cst_310 = arith.constant 5.120000e+02 : f32
    %385 = vector.broadcast %cst_310 : f32 to vector<8x1xf32>
    %386 = arith.divf %381, %385 : vector<8x1xf32>
    %cst_311 = arith.constant 5.120000e+02 : f32
    %387 = vector.broadcast %cst_311 : f32 to vector<8x1xf32>
    %388 = arith.divf %384, %387 : vector<8x1xf32>
    %389 = arith.mulf %386, %386 : vector<8x1xf32>
    %390 = arith.subf %388, %389 : vector<8x1xf32>
    %c1_312 = arith.constant 1 : index
    %c0_313 = arith.constant 0 : index
    %c0_314 = arith.constant 0 : index
    %391 = vector.load %arg6[%c1_312, %c0_313, %c0_314] : memref<4x8x1xf32, #tpu.memory_space<vmem>>, vector<1x8x1xf32>
    %392 = vector.shape_cast %391 : vector<1x8x1xf32> to vector<8x1xf32>
    %cst_315 = arith.constant 9.99999974E-6 : f32
    %393 = vector.broadcast %cst_315 : f32 to vector<8x1xf32>
    %394 = arith.addf %390, %393 : vector<8x1xf32>
    %395 = math.rsqrt %394 : vector<8x1xf32>
    %396 = arith.mulf %392, %395 : vector<8x1xf32>
    %c1_316 = arith.constant 1 : index
    %c0_317 = arith.constant 0 : index
    %c0_318 = arith.constant 0 : index
    %397 = vector.load %arg7[%c1_316, %c0_317, %c0_318] : memref<4x8x1xf32, #tpu.memory_space<vmem>>, vector<1x8x1xf32>
    %398 = vector.shape_cast %397 : vector<1x8x1xf32> to vector<8x1xf32>
    %399 = arith.mulf %386, %396 : vector<8x1xf32>
    %400 = arith.subf %398, %399 : vector<8x1xf32>
    %401 = vector.broadcast %396 : vector<8x1xf32> to vector<8x512xf32>
    %402 = arith.mulf %379, %401 : vector<8x512xf32>
    %403 = vector.broadcast %400 : vector<8x1xf32> to vector<8x512xf32>
    %404 = arith.addf %402, %403 : vector<8x512xf32>
    %cst_319 = arith.constant 1.000000e-01 : f32
    %405 = vector.broadcast %cst_319 : f32 to vector<8x512xf32>
    %406 = arith.mulf %404, %405 : vector<8x512xf32>
    %407 = arith.addf %406, %16 : vector<8x512xf32>
    %c34_i32_320 = arith.constant 34 : i32
    %408 = tpu.dynamic_rotate %407 by %c34_i32_320 dim 1 : vector<8x512xf32>, i32 -> vector<8x512xf32>
    %c0_321 = arith.constant 0 : index
    %c0_322 = arith.constant 0 : index
    %c0_323 = arith.constant 0 : index
    %409 = vector.load %arg1[%c0_321, %c0_322, %c0_323] : memref<25x1x512xf32, #tpu.memory_space<vmem>>, vector<1x1x512xf32>
    %410 = vector.shape_cast %409 : vector<1x1x512xf32> to vector<1x512xf32>
    %411 = vector.broadcast %410 : vector<1x512xf32> to vector<8x512xf32>
    %412 = arith.mulf %408, %411 : vector<8x512xf32>
    %c0_324 = arith.constant 0 : index
    %c0_325 = arith.constant 0 : index
    %413 = vector.load %arg11[%c0_324, %c0_325] : memref<200x512xf32, #tpu.memory_space<vmem>>, vector<8x512xf32>
    tpu.vector_store %arg11[%c0_324, %c0_325], %412 {strides = array<i32>} : memref<200x512xf32, #tpu.memory_space<vmem>>, vector<8x512xf32>,
    %c33_i32_326 = arith.constant 33 : i32
    %414 = tpu.dynamic_rotate %407 by %c33_i32_326 dim 1 : vector<8x512xf32>, i32 -> vector<8x512xf32>
    %c1_327 = arith.constant 1 : index
    %c0_328 = arith.constant 0 : index
    %c0_329 = arith.constant 0 : index
    %415 = vector.load %arg1[%c1_327, %c0_328, %c0_329] : memref<25x1x512xf32, #tpu.memory_space<vmem>>, vector<1x1x512xf32>
    %416 = vector.shape_cast %415 : vector<1x1x512xf32> to vector<1x512xf32>
    %417 = vector.broadcast %416 : vector<1x512xf32> to vector<8x512xf32>
    %418 = arith.mulf %414, %417 : vector<8x512xf32>
    %c8_330 = arith.constant 8 : index
    %c0_331 = arith.constant 0 : index
    %419 = vector.load %arg11[%c8_330, %c0_331] : memref<200x512xf32, #tpu.memory_space<vmem>>, vector<8x512xf32>
    tpu.vector_store %arg11[%c8_330, %c0_331], %418 {strides = array<i32>} : memref<200x512xf32, #tpu.memory_space<vmem>>, vector<8x512xf32>,
    %c32_i32_332 = arith.constant 32 : i32
    %420 = tpu.dynamic_rotate %407 by %c32_i32_332 dim 1 : vector<8x512xf32>, i32 -> vector<8x512xf32>
    %c2_333 = arith.constant 2 : index
    %c0_334 = arith.constant 0 : index
    %c0_335 = arith.constant 0 : index
    %421 = vector.load %arg1[%c2_333, %c0_334, %c0_335] : memref<25x1x512xf32, #tpu.memory_space<vmem>>, vector<1x1x512xf32>
    %422 = vector.shape_cast %421 : vector<1x1x512xf32> to vector<1x512xf32>
    %423 = vector.broadcast %422 : vector<1x512xf32> to vector<8x512xf32>
    %424 = arith.mulf %420, %423 : vector<8x512xf32>
    %c16_336 = arith.constant 16 : index
    %c0_337 = arith.constant 0 : index
    %425 = vector.load %arg11[%c16_336, %c0_337] : memref<200x512xf32, #tpu.memory_space<vmem>>, vector<8x512xf32>
    tpu.vector_store %arg11[%c16_336, %c0_337], %424 {strides = array<i32>} : memref<200x512xf32, #tpu.memory_space<vmem>>, vector<8x512xf32>,
    %c31_i32_338 = arith.constant 31 : i32
    %426 = tpu.dynamic_rotate %407 by %c31_i32_338 dim 1 : vector<8x512xf32>, i32 -> vector<8x512xf32>
    %c3_339 = arith.constant 3 : index
    %c0_340 = arith.constant 0 : index
    %c0_341 = arith.constant 0 : index
    %427 = vector.load %arg1[%c3_339, %c0_340, %c0_341] : memref<25x1x512xf32, #tpu.memory_space<vmem>>, vector<1x1x512xf32>
    %428 = vector.shape_cast %427 : vector<1x1x512xf32> to vector<1x512xf32>
    %429 = vector.broadcast %428 : vector<1x512xf32> to vector<8x512xf32>
    %430 = arith.mulf %426, %429 : vector<8x512xf32>
    %c24_342 = arith.constant 24 : index
    %c0_343 = arith.constant 0 : index
    %431 = vector.load %arg11[%c24_342, %c0_343] : memref<200x512xf32, #tpu.memory_space<vmem>>, vector<8x512xf32>
    tpu.vector_store %arg11[%c24_342, %c0_343], %430 {strides = array<i32>} : memref<200x512xf32, #tpu.memory_space<vmem>>, vector<8x512xf32>,
    %c30_i32_344 = arith.constant 30 : i32
    %432 = tpu.dynamic_rotate %407 by %c30_i32_344 dim 1 : vector<8x512xf32>, i32 -> vector<8x512xf32>
    %c4_345 = arith.constant 4 : index
    %c0_346 = arith.constant 0 : index
    %c0_347 = arith.constant 0 : index
    %433 = vector.load %arg1[%c4_345, %c0_346, %c0_347] : memref<25x1x512xf32, #tpu.memory_space<vmem>>, vector<1x1x512xf32>
    %434 = vector.shape_cast %433 : vector<1x1x512xf32> to vector<1x512xf32>
    %435 = vector.broadcast %434 : vector<1x512xf32> to vector<8x512xf32>
    %436 = arith.mulf %432, %435 : vector<8x512xf32>
    %c32_348 = arith.constant 32 : index
    %c0_349 = arith.constant 0 : index
    %437 = vector.load %arg11[%c32_348, %c0_349] : memref<200x512xf32, #tpu.memory_space<vmem>>, vector<8x512xf32>
    tpu.vector_store %arg11[%c32_348, %c0_349], %436 {strides = array<i32>} : memref<200x512xf32, #tpu.memory_space<vmem>>, vector<8x512xf32>,
    %c18_i32_350 = arith.constant 18 : i32
    %438 = tpu.dynamic_rotate %407 by %c18_i32_350 dim 1 : vector<8x512xf32>, i32 -> vector<8x512xf32>
    %c5_351 = arith.constant 5 : index
    %c0_352 = arith.constant 0 : index
    %c0_353 = arith.constant 0 : index
    %439 = vector.load %arg1[%c5_351, %c0_352, %c0_353] : memref<25x1x512xf32, #tpu.memory_space<vmem>>, vector<1x1x512xf32>
    %440 = vector.shape_cast %439 : vector<1x1x512xf32> to vector<1x512xf32>
    %441 = vector.broadcast %440 : vector<1x512xf32> to vector<8x512xf32>
    %442 = arith.mulf %438, %441 : vector<8x512xf32>
    %c40_354 = arith.constant 40 : index
    %c0_355 = arith.constant 0 : index
    %443 = vector.load %arg11[%c40_354, %c0_355] : memref<200x512xf32, #tpu.memory_space<vmem>>, vector<8x512xf32>
    tpu.vector_store %arg11[%c40_354, %c0_355], %442 {strides = array<i32>} : memref<200x512xf32, #tpu.memory_space<vmem>>, vector<8x512xf32>,
    %c17_i32_356 = arith.constant 17 : i32
    %444 = tpu.dynamic_rotate %407 by %c17_i32_356 dim 1 : vector<8x512xf32>, i32 -> vector<8x512xf32>
    %c6_357 = arith.constant 6 : index
    %c0_358 = arith.constant 0 : index
    %c0_359 = arith.constant 0 : index
    %445 = vector.load %arg1[%c6_357, %c0_358, %c0_359] : memref<25x1x512xf32, #tpu.memory_space<vmem>>, vector<1x1x512xf32>
    %446 = vector.shape_cast %445 : vector<1x1x512xf32> to vector<1x512xf32>
    %447 = vector.broadcast %446 : vector<1x512xf32> to vector<8x512xf32>
    %448 = arith.mulf %444, %447 : vector<8x512xf32>
    %c48_360 = arith.constant 48 : index
    %c0_361 = arith.constant 0 : index
    %449 = vector.load %arg11[%c48_360, %c0_361] : memref<200x512xf32, #tpu.memory_space<vmem>>, vector<8x512xf32>
    tpu.vector_store %arg11[%c48_360, %c0_361], %448 {strides = array<i32>} : memref<200x512xf32, #tpu.memory_space<vmem>>, vector<8x512xf32>,
    %c16_i32_362 = arith.constant 16 : i32
    %450 = tpu.dynamic_rotate %407 by %c16_i32_362 dim 1 : vector<8x512xf32>, i32 -> vector<8x512xf32>
    %c7_363 = arith.constant 7 : index
    %c0_364 = arith.constant 0 : index
    %c0_365 = arith.constant 0 : index
    %451 = vector.load %arg1[%c7_363, %c0_364, %c0_365] : memref<25x1x512xf32, #tpu.memory_space<vmem>>, vector<1x1x512xf32>
    %452 = vector.shape_cast %451 : vector<1x1x512xf32> to vector<1x512xf32>
    %453 = vector.broadcast %452 : vector<1x512xf32> to vector<8x512xf32>
    %454 = arith.mulf %450, %453 : vector<8x512xf32>
    %c56_366 = arith.constant 56 : index
    %c0_367 = arith.constant 0 : index
    %455 = vector.load %arg11[%c56_366, %c0_367] : memref<200x512xf32, #tpu.memory_space<vmem>>, vector<8x512xf32>
    tpu.vector_store %arg11[%c56_366, %c0_367], %454 {strides = array<i32>} : memref<200x512xf32, #tpu.memory_space<vmem>>, vector<8x512xf32>,
    %c15_i32_368 = arith.constant 15 : i32
    %456 = tpu.dynamic_rotate %407 by %c15_i32_368 dim 1 : vector<8x512xf32>, i32 -> vector<8x512xf32>
    %c8_369 = arith.constant 8 : index
    %c0_370 = arith.constant 0 : index
    %c0_371 = arith.constant 0 : index
    %457 = vector.load %arg1[%c8_369, %c0_370, %c0_371] : memref<25x1x512xf32, #tpu.memory_space<vmem>>, vector<1x1x512xf32>
    %458 = vector.shape_cast %457 : vector<1x1x512xf32> to vector<1x512xf32>
    %459 = vector.broadcast %458 : vector<1x512xf32> to vector<8x512xf32>
    %460 = arith.mulf %456, %459 : vector<8x512xf32>
    %c64_372 = arith.constant 64 : index
    %c0_373 = arith.constant 0 : index
    %461 = vector.load %arg11[%c64_372, %c0_373] : memref<200x512xf32, #tpu.memory_space<vmem>>, vector<8x512xf32>
    tpu.vector_store %arg11[%c64_372, %c0_373], %460 {strides = array<i32>} : memref<200x512xf32, #tpu.memory_space<vmem>>, vector<8x512xf32>,
    %c14_i32_374 = arith.constant 14 : i32
    %462 = tpu.dynamic_rotate %407 by %c14_i32_374 dim 1 : vector<8x512xf32>, i32 -> vector<8x512xf32>
    %c9_375 = arith.constant 9 : index
    %c0_376 = arith.constant 0 : index
    %c0_377 = arith.constant 0 : index
    %463 = vector.load %arg1[%c9_375, %c0_376, %c0_377] : memref<25x1x512xf32, #tpu.memory_space<vmem>>, vector<1x1x512xf32>
    %464 = vector.shape_cast %463 : vector<1x1x512xf32> to vector<1x512xf32>
    %465 = vector.broadcast %464 : vector<1x512xf32> to vector<8x512xf32>
    %466 = arith.mulf %462, %465 : vector<8x512xf32>
    %c72_378 = arith.constant 72 : index
    %c0_379 = arith.constant 0 : index
    %467 = vector.load %arg11[%c72_378, %c0_379] : memref<200x512xf32, #tpu.memory_space<vmem>>, vector<8x512xf32>
    tpu.vector_store %arg11[%c72_378, %c0_379], %466 {strides = array<i32>} : memref<200x512xf32, #tpu.memory_space<vmem>>, vector<8x512xf32>,
    %c2_i32_380 = arith.constant 2 : i32
    %468 = tpu.dynamic_rotate %407 by %c2_i32_380 dim 1 : vector<8x512xf32>, i32 -> vector<8x512xf32>
    %c10_381 = arith.constant 10 : index
    %c0_382 = arith.constant 0 : index
    %c0_383 = arith.constant 0 : index
    %469 = vector.load %arg1[%c10_381, %c0_382, %c0_383] : memref<25x1x512xf32, #tpu.memory_space<vmem>>, vector<1x1x512xf32>
    %470 = vector.shape_cast %469 : vector<1x1x512xf32> to vector<1x512xf32>
    %471 = vector.broadcast %470 : vector<1x512xf32> to vector<8x512xf32>
    %472 = arith.mulf %468, %471 : vector<8x512xf32>
    %c80_384 = arith.constant 80 : index
    %c0_385 = arith.constant 0 : index
    %473 = vector.load %arg11[%c80_384, %c0_385] : memref<200x512xf32, #tpu.memory_space<vmem>>, vector<8x512xf32>
    tpu.vector_store %arg11[%c80_384, %c0_385], %472 {strides = array<i32>} : memref<200x512xf32, #tpu.memory_space<vmem>>, vector<8x512xf32>,
    %c1_i32_386 = arith.constant 1 : i32
    %474 = tpu.dynamic_rotate %407 by %c1_i32_386 dim 1 : vector<8x512xf32>, i32 -> vector<8x512xf32>
    %c11_387 = arith.constant 11 : index
    %c0_388 = arith.constant 0 : index
    %c0_389 = arith.constant 0 : index
    %475 = vector.load %arg1[%c11_387, %c0_388, %c0_389] : memref<25x1x512xf32, #tpu.memory_space<vmem>>, vector<1x1x512xf32>
    %476 = vector.shape_cast %475 : vector<1x1x512xf32> to vector<1x512xf32>
    %477 = vector.broadcast %476 : vector<1x512xf32> to vector<8x512xf32>
    %478 = arith.mulf %474, %477 : vector<8x512xf32>
    %c88_390 = arith.constant 88 : index
    %c0_391 = arith.constant 0 : index
    %479 = vector.load %arg11[%c88_390, %c0_391] : memref<200x512xf32, #tpu.memory_space<vmem>>, vector<8x512xf32>
    tpu.vector_store %arg11[%c88_390, %c0_391], %478 {strides = array<i32>} : memref<200x512xf32, #tpu.memory_space<vmem>>, vector<8x512xf32>,
    %c12_392 = arith.constant 12 : index
    %c0_393 = arith.constant 0 : index
    %c0_394 = arith.constant 0 : index
    %480 = vector.load %arg1[%c12_392, %c0_393, %c0_394] : memref<25x1x512xf32, #tpu.memory_space<vmem>>, vector<1x1x512xf32>
    %481 = vector.shape_cast %480 : vector<1x1x512xf32> to vector<1x512xf32>
    %482 = vector.broadcast %481 : vector<1x512xf32> to vector<8x512xf32>
    %483 = arith.mulf %407, %482 : vector<8x512xf32>
    %c96_395 = arith.constant 96 : index
    %c0_396 = arith.constant 0 : index
    %484 = vector.load %arg11[%c96_395, %c0_396] : memref<200x512xf32, #tpu.memory_space<vmem>>, vector<8x512xf32>
    tpu.vector_store %arg11[%c96_395, %c0_396], %483 {strides = array<i32>} : memref<200x512xf32, #tpu.memory_space<vmem>>, vector<8x512xf32>,
    %c511_i32_397 = arith.constant 511 : i32
    %485 = tpu.dynamic_rotate %407 by %c511_i32_397 dim 1 : vector<8x512xf32>, i32 -> vector<8x512xf32>
    %c13_398 = arith.constant 13 : index
    %c0_399 = arith.constant 0 : index
    %c0_400 = arith.constant 0 : index
    %486 = vector.load %arg1[%c13_398, %c0_399, %c0_400] : memref<25x1x512xf32, #tpu.memory_space<vmem>>, vector<1x1x512xf32>
    %487 = vector.shape_cast %486 : vector<1x1x512xf32> to vector<1x512xf32>
    %488 = vector.broadcast %487 : vector<1x512xf32> to vector<8x512xf32>
    %489 = arith.mulf %485, %488 : vector<8x512xf32>
    %c104_401 = arith.constant 104 : index
    %c0_402 = arith.constant 0 : index
    %490 = vector.load %arg11[%c104_401, %c0_402] : memref<200x512xf32, #tpu.memory_space<vmem>>, vector<8x512xf32>
    tpu.vector_store %arg11[%c104_401, %c0_402], %489 {strides = array<i32>} : memref<200x512xf32, #tpu.memory_space<vmem>>, vector<8x512xf32>,
    %c510_i32_403 = arith.constant 510 : i32
    %491 = tpu.dynamic_rotate %407 by %c510_i32_403 dim 1 : vector<8x512xf32>, i32 -> vector<8x512xf32>
    %c14_404 = arith.constant 14 : index
    %c0_405 = arith.constant 0 : index
    %c0_406 = arith.constant 0 : index
    %492 = vector.load %arg1[%c14_404, %c0_405, %c0_406] : memref<25x1x512xf32, #tpu.memory_space<vmem>>, vector<1x1x512xf32>
    %493 = vector.shape_cast %492 : vector<1x1x512xf32> to vector<1x512xf32>
    %494 = vector.broadcast %493 : vector<1x512xf32> to vector<8x512xf32>
    %495 = arith.mulf %491, %494 : vector<8x512xf32>
    %c112_407 = arith.constant 112 : index
    %c0_408 = arith.constant 0 : index
    %496 = vector.load %arg11[%c112_407, %c0_408] : memref<200x512xf32, #tpu.memory_space<vmem>>, vector<8x512xf32>
    tpu.vector_store %arg11[%c112_407, %c0_408], %495 {strides = array<i32>} : memref<200x512xf32, #tpu.memory_space<vmem>>, vector<8x512xf32>,
    %c498_i32_409 = arith.constant 498 : i32
    %497 = tpu.dynamic_rotate %407 by %c498_i32_409 dim 1 : vector<8x512xf32>, i32 -> vector<8x512xf32>
    %c15_410 = arith.constant 15 : index
    %c0_411 = arith.constant 0 : index
    %c0_412 = arith.constant 0 : index
    %498 = vector.load %arg1[%c15_410, %c0_411, %c0_412] : memref<25x1x512xf32, #tpu.memory_space<vmem>>, vector<1x1x512xf32>
    %499 = vector.shape_cast %498 : vector<1x1x512xf32> to vector<1x512xf32>
    %500 = vector.broadcast %499 : vector<1x512xf32> to vector<8x512xf32>
    %501 = arith.mulf %497, %500 : vector<8x512xf32>
    %c120_413 = arith.constant 120 : index
    %c0_414 = arith.constant 0 : index
    %502 = vector.load %arg11[%c120_413, %c0_414] : memref<200x512xf32, #tpu.memory_space<vmem>>, vector<8x512xf32>
    tpu.vector_store %arg11[%c120_413, %c0_414], %501 {strides = array<i32>} : memref<200x512xf32, #tpu.memory_space<vmem>>, vector<8x512xf32>,
    %c497_i32_415 = arith.constant 497 : i32
    %503 = tpu.dynamic_rotate %407 by %c497_i32_415 dim 1 : vector<8x512xf32>, i32 -> vector<8x512xf32>
    %c16_416 = arith.constant 16 : index
    %c0_417 = arith.constant 0 : index
    %c0_418 = arith.constant 0 : index
    %504 = vector.load %arg1[%c16_416, %c0_417, %c0_418] : memref<25x1x512xf32, #tpu.memory_space<vmem>>, vector<1x1x512xf32>
    %505 = vector.shape_cast %504 : vector<1x1x512xf32> to vector<1x512xf32>
    %506 = vector.broadcast %505 : vector<1x512xf32> to vector<8x512xf32>
    %507 = arith.mulf %503, %506 : vector<8x512xf32>
    %c128_419 = arith.constant 128 : index
    %c0_420 = arith.constant 0 : index
    %508 = vector.load %arg11[%c128_419, %c0_420] : memref<200x512xf32, #tpu.memory_space<vmem>>, vector<8x512xf32>
    tpu.vector_store %arg11[%c128_419, %c0_420], %507 {strides = array<i32>} : memref<200x512xf32, #tpu.memory_space<vmem>>, vector<8x512xf32>,
    %c496_i32_421 = arith.constant 496 : i32
    %509 = tpu.dynamic_rotate %407 by %c496_i32_421 dim 1 : vector<8x512xf32>, i32 -> vector<8x512xf32>
    %c17_422 = arith.constant 17 : index
    %c0_423 = arith.constant 0 : index
    %c0_424 = arith.constant 0 : index
    %510 = vector.load %arg1[%c17_422, %c0_423, %c0_424] : memref<25x1x512xf32, #tpu.memory_space<vmem>>, vector<1x1x512xf32>
    %511 = vector.shape_cast %510 : vector<1x1x512xf32> to vector<1x512xf32>
    %512 = vector.broadcast %511 : vector<1x512xf32> to vector<8x512xf32>
    %513 = arith.mulf %509, %512 : vector<8x512xf32>
    %c136_425 = arith.constant 136 : index
    %c0_426 = arith.constant 0 : index
    %514 = vector.load %arg11[%c136_425, %c0_426] : memref<200x512xf32, #tpu.memory_space<vmem>>, vector<8x512xf32>
    tpu.vector_store %arg11[%c136_425, %c0_426], %513 {strides = array<i32>} : memref<200x512xf32, #tpu.memory_space<vmem>>, vector<8x512xf32>,
    %c495_i32_427 = arith.constant 495 : i32
    %515 = tpu.dynamic_rotate %407 by %c495_i32_427 dim 1 : vector<8x512xf32>, i32 -> vector<8x512xf32>
    %c18_428 = arith.constant 18 : index
    %c0_429 = arith.constant 0 : index
    %c0_430 = arith.constant 0 : index
    %516 = vector.load %arg1[%c18_428, %c0_429, %c0_430] : memref<25x1x512xf32, #tpu.memory_space<vmem>>, vector<1x1x512xf32>
    %517 = vector.shape_cast %516 : vector<1x1x512xf32> to vector<1x512xf32>
    %518 = vector.broadcast %517 : vector<1x512xf32> to vector<8x512xf32>
    %519 = arith.mulf %515, %518 : vector<8x512xf32>
    %c144_431 = arith.constant 144 : index
    %c0_432 = arith.constant 0 : index
    %520 = vector.load %arg11[%c144_431, %c0_432] : memref<200x512xf32, #tpu.memory_space<vmem>>, vector<8x512xf32>
    tpu.vector_store %arg11[%c144_431, %c0_432], %519 {strides = array<i32>} : memref<200x512xf32, #tpu.memory_space<vmem>>, vector<8x512xf32>,
    %c494_i32_433 = arith.constant 494 : i32
    %521 = tpu.dynamic_rotate %407 by %c494_i32_433 dim 1 : vector<8x512xf32>, i32 -> vector<8x512xf32>
    %c19_434 = arith.constant 19 : index
    %c0_435 = arith.constant 0 : index
    %c0_436 = arith.constant 0 : index
    %522 = vector.load %arg1[%c19_434, %c0_435, %c0_436] : memref<25x1x512xf32, #tpu.memory_space<vmem>>, vector<1x1x512xf32>
    %523 = vector.shape_cast %522 : vector<1x1x512xf32> to vector<1x512xf32>
    %524 = vector.broadcast %523 : vector<1x512xf32> to vector<8x512xf32>
    %525 = arith.mulf %521, %524 : vector<8x512xf32>
    %c152_437 = arith.constant 152 : index
    %c0_438 = arith.constant 0 : index
    %526 = vector.load %arg11[%c152_437, %c0_438] : memref<200x512xf32, #tpu.memory_space<vmem>>, vector<8x512xf32>
    tpu.vector_store %arg11[%c152_437, %c0_438], %525 {strides = array<i32>} : memref<200x512xf32, #tpu.memory_space<vmem>>, vector<8x512xf32>,
    %c482_i32_439 = arith.constant 482 : i32
    %527 = tpu.dynamic_rotate %407 by %c482_i32_439 dim 1 : vector<8x512xf32>, i32 -> vector<8x512xf32>
    %c20_440 = arith.constant 20 : index
    %c0_441 = arith.constant 0 : index
    %c0_442 = arith.constant 0 : index
    %528 = vector.load %arg1[%c20_440, %c0_441, %c0_442] : memref<25x1x512xf32, #tpu.memory_space<vmem>>, vector<1x1x512xf32>
    %529 = vector.shape_cast %528 : vector<1x1x512xf32> to vector<1x512xf32>
    %530 = vector.broadcast %529 : vector<1x512xf32> to vector<8x512xf32>
    %531 = arith.mulf %527, %530 : vector<8x512xf32>
    %c160_443 = arith.constant 160 : index
    %c0_444 = arith.constant 0 : index
    %532 = vector.load %arg11[%c160_443, %c0_444] : memref<200x512xf32, #tpu.memory_space<vmem>>, vector<8x512xf32>
    tpu.vector_store %arg11[%c160_443, %c0_444], %531 {strides = array<i32>} : memref<200x512xf32, #tpu.memory_space<vmem>>, vector<8x512xf32>,
    %c481_i32_445 = arith.constant 481 : i32
    %533 = tpu.dynamic_rotate %407 by %c481_i32_445 dim 1 : vector<8x512xf32>, i32 -> vector<8x512xf32>
    %c21_446 = arith.constant 21 : index
    %c0_447 = arith.constant 0 : index
    %c0_448 = arith.constant 0 : index
    %534 = vector.load %arg1[%c21_446, %c0_447, %c0_448] : memref<25x1x512xf32, #tpu.memory_space<vmem>>, vector<1x1x512xf32>
    %535 = vector.shape_cast %534 : vector<1x1x512xf32> to vector<1x512xf32>
    %536 = vector.broadcast %535 : vector<1x512xf32> to vector<8x512xf32>
    %537 = arith.mulf %533, %536 : vector<8x512xf32>
    %c168_449 = arith.constant 168 : index
    %c0_450 = arith.constant 0 : index
    %538 = vector.load %arg11[%c168_449, %c0_450] : memref<200x512xf32, #tpu.memory_space<vmem>>, vector<8x512xf32>
    tpu.vector_store %arg11[%c168_449, %c0_450], %537 {strides = array<i32>} : memref<200x512xf32, #tpu.memory_space<vmem>>, vector<8x512xf32>,
    %c480_i32_451 = arith.constant 480 : i32
    %539 = tpu.dynamic_rotate %407 by %c480_i32_451 dim 1 : vector<8x512xf32>, i32 -> vector<8x512xf32>
    %c22_452 = arith.constant 22 : index
    %c0_453 = arith.constant 0 : index
    %c0_454 = arith.constant 0 : index
    %540 = vector.load %arg1[%c22_452, %c0_453, %c0_454] : memref<25x1x512xf32, #tpu.memory_space<vmem>>, vector<1x1x512xf32>
    %541 = vector.shape_cast %540 : vector<1x1x512xf32> to vector<1x512xf32>
    %542 = vector.broadcast %541 : vector<1x512xf32> to vector<8x512xf32>
    %543 = arith.mulf %539, %542 : vector<8x512xf32>
    %c176_455 = arith.constant 176 : index
    %c0_456 = arith.constant 0 : index
    %544 = vector.load %arg11[%c176_455, %c0_456] : memref<200x512xf32, #tpu.memory_space<vmem>>, vector<8x512xf32>
    tpu.vector_store %arg11[%c176_455, %c0_456], %543 {strides = array<i32>} : memref<200x512xf32, #tpu.memory_space<vmem>>, vector<8x512xf32>,
    %c479_i32_457 = arith.constant 479 : i32
    %545 = tpu.dynamic_rotate %407 by %c479_i32_457 dim 1 : vector<8x512xf32>, i32 -> vector<8x512xf32>
    %c23_458 = arith.constant 23 : index
    %c0_459 = arith.constant 0 : index
    %c0_460 = arith.constant 0 : index
    %546 = vector.load %arg1[%c23_458, %c0_459, %c0_460] : memref<25x1x512xf32, #tpu.memory_space<vmem>>, vector<1x1x512xf32>
    %547 = vector.shape_cast %546 : vector<1x1x512xf32> to vector<1x512xf32>
    %548 = vector.broadcast %547 : vector<1x512xf32> to vector<8x512xf32>
    %549 = arith.mulf %545, %548 : vector<8x512xf32>
    %c184_461 = arith.constant 184 : index
    %c0_462 = arith.constant 0 : index
    %550 = vector.load %arg11[%c184_461, %c0_462] : memref<200x512xf32, #tpu.memory_space<vmem>>, vector<8x512xf32>
    tpu.vector_store %arg11[%c184_461, %c0_462], %549 {strides = array<i32>} : memref<200x512xf32, #tpu.memory_space<vmem>>, vector<8x512xf32>,
    %c478_i32_463 = arith.constant 478 : i32
    %551 = tpu.dynamic_rotate %407 by %c478_i32_463 dim 1 : vector<8x512xf32>, i32 -> vector<8x512xf32>
    %c24_464 = arith.constant 24 : index
    %c0_465 = arith.constant 0 : index
    %c0_466 = arith.constant 0 : index
    %552 = vector.load %arg1[%c24_464, %c0_465, %c0_466] : memref<25x1x512xf32, #tpu.memory_space<vmem>>, vector<1x1x512xf32>
    %553 = vector.shape_cast %552 : vector<1x1x512xf32> to vector<1x512xf32>
    %554 = vector.broadcast %553 : vector<1x512xf32> to vector<8x512xf32>
    %555 = arith.mulf %551, %554 : vector<8x512xf32>
    %c192_467 = arith.constant 192 : index
    %c0_468 = arith.constant 0 : index
    %556 = vector.load %arg11[%c192_467, %c0_468] : memref<200x512xf32, #tpu.memory_space<vmem>>, vector<8x512xf32>
    tpu.vector_store %arg11[%c192_467, %c0_468], %555 {strides = array<i32>} : memref<200x512xf32, #tpu.memory_space<vmem>>, vector<8x512xf32>,
    %c4_469 = arith.constant 4 : index
    %c0_470 = arith.constant 0 : index
    %c0_471 = arith.constant 0 : index
    %557 = vector.load %arg4[%c4_469, %c0_470, %c0_471] : memref<8x8x200xf32, #tpu.memory_space<vmem>>, vector<1x8x200xf32>
    %558 = vector.shape_cast %557 : vector<1x8x200xf32> to vector<8x200xf32>
    %c0_472 = arith.constant 0 : index
    %c0_473 = arith.constant 0 : index
    %559 = vector.load %arg11[%c0_472, %c0_473] : memref<200x512xf32, #tpu.memory_space<vmem>>, vector<200x256xf32>
    %cst_474 = arith.constant dense<0.000000e+00> : vector<8x256xf32>
    %560 = tpu.matmul %558, %559, %cst_474 {dimension_numbers = #tpu.dot_dimension_numbers<[1], [0], [0], [1], [0, 0, 1, 1], [], []>} : vector<8x200xf32>, vector<200x256xf32>, vector<8x256xf32> -> vector<8x256xf32>
    %c2_475 = arith.constant 2 : index
    %c0_476 = arith.constant 0 : index
    %c0_477 = arith.constant 0 : index
    %561 = vector.load %arg5[%c2_475, %c0_476, %c0_477] : memref<4x8x1xf32, #tpu.memory_space<vmem>>, vector<1x8x1xf32>
    %562 = vector.shape_cast %561 : vector<1x8x1xf32> to vector<8x1xf32>
    %563 = vector.broadcast %562 : vector<8x1xf32> to vector<8x256xf32>
    %564 = arith.addf %560, %563 : vector<8x256xf32>
    %c0_478 = arith.constant 0 : index
    %c0_479 = arith.constant 0 : index
    %565 = vector.load %arg12[%c0_478, %c0_479] : memref<8x512xf32, #tpu.memory_space<vmem>>, vector<8x256xf32>
    tpu.vector_store %arg12[%c0_478, %c0_479], %564 {strides = array<i32>} : memref<8x512xf32, #tpu.memory_space<vmem>>, vector<8x256xf32>,
    %c5_480 = arith.constant 5 : index
    %c0_481 = arith.constant 0 : index
    %c0_482 = arith.constant 0 : index
    %566 = vector.load %arg4[%c5_480, %c0_481, %c0_482] : memref<8x8x200xf32, #tpu.memory_space<vmem>>, vector<1x8x200xf32>
    %567 = vector.shape_cast %566 : vector<1x8x200xf32> to vector<8x200xf32>
    %c0_483 = arith.constant 0 : index
    %c256_484 = arith.constant 256 : index
    %568 = vector.load %arg11[%c0_483, %c256_484] : memref<200x512xf32, #tpu.memory_space<vmem>>, vector<200x256xf32>
    %cst_485 = arith.constant dense<0.000000e+00> : vector<8x256xf32>
    %569 = tpu.matmul %567, %568, %cst_485 {dimension_numbers = #tpu.dot_dimension_numbers<[1], [0], [0], [1], [0, 0, 1, 1], [], []>} : vector<8x200xf32>, vector<200x256xf32>, vector<8x256xf32> -> vector<8x256xf32>
    %c2_486 = arith.constant 2 : index
    %c0_487 = arith.constant 0 : index
    %c0_488 = arith.constant 0 : index
    %570 = vector.load %arg5[%c2_486, %c0_487, %c0_488] : memref<4x8x1xf32, #tpu.memory_space<vmem>>, vector<1x8x1xf32>
    %571 = vector.shape_cast %570 : vector<1x8x1xf32> to vector<8x1xf32>
    %572 = vector.broadcast %571 : vector<8x1xf32> to vector<8x256xf32>
    %573 = arith.addf %569, %572 : vector<8x256xf32>
    %c0_489 = arith.constant 0 : index
    %c256_490 = arith.constant 256 : index
    %574 = vector.load %arg12[%c0_489, %c256_490] : memref<8x512xf32, #tpu.memory_space<vmem>>, vector<8x256xf32>
    tpu.vector_store %arg12[%c0_489, %c256_490], %573 {strides = array<i32>} : memref<8x512xf32, #tpu.memory_space<vmem>>, vector<8x256xf32>,
    %c0_491 = arith.constant 0 : index
    %c0_492 = arith.constant 0 : index
    %575 = vector.load %arg12[%c0_491, %c0_492] : memref<8x512xf32, #tpu.memory_space<vmem>>, vector<8x512xf32>
    %cst_493 = arith.constant dense<0.000000e+00> : vector<8xf32>
    %576 = vector.multi_reduction <add>, %575, %cst_493 [1] : vector<8x512xf32> to vector<8xf32>
    %577 = vector.shape_cast %576 : vector<8xf32> to vector<8x1xf32>
    %578 = arith.mulf %575, %575 : vector<8x512xf32>
    %cst_494 = arith.constant dense<0.000000e+00> : vector<8xf32>
    %579 = vector.multi_reduction <add>, %578, %cst_494 [1] : vector<8x512xf32> to vector<8xf32>
    %580 = vector.shape_cast %579 : vector<8xf32> to vector<8x1xf32>
    %cst_495 = arith.constant 5.120000e+02 : f32
    %581 = vector.broadcast %cst_495 : f32 to vector<8x1xf32>
    %582 = arith.divf %577, %581 : vector<8x1xf32>
    %cst_496 = arith.constant 5.120000e+02 : f32
    %583 = vector.broadcast %cst_496 : f32 to vector<8x1xf32>
    %584 = arith.divf %580, %583 : vector<8x1xf32>
    %585 = arith.mulf %582, %582 : vector<8x1xf32>
    %586 = arith.subf %584, %585 : vector<8x1xf32>
    %c2_497 = arith.constant 2 : index
    %c0_498 = arith.constant 0 : index
    %c0_499 = arith.constant 0 : index
    %587 = vector.load %arg6[%c2_497, %c0_498, %c0_499] : memref<4x8x1xf32, #tpu.memory_space<vmem>>, vector<1x8x1xf32>
    %588 = vector.shape_cast %587 : vector<1x8x1xf32> to vector<8x1xf32>
    %cst_500 = arith.constant 9.99999974E-6 : f32
    %589 = vector.broadcast %cst_500 : f32 to vector<8x1xf32>
    %590 = arith.addf %586, %589 : vector<8x1xf32>
    %591 = math.rsqrt %590 : vector<8x1xf32>
    %592 = arith.mulf %588, %591 : vector<8x1xf32>
    %c2_501 = arith.constant 2 : index
    %c0_502 = arith.constant 0 : index
    %c0_503 = arith.constant 0 : index
    %593 = vector.load %arg7[%c2_501, %c0_502, %c0_503] : memref<4x8x1xf32, #tpu.memory_space<vmem>>, vector<1x8x1xf32>
    %594 = vector.shape_cast %593 : vector<1x8x1xf32> to vector<8x1xf32>
    %595 = arith.mulf %582, %592 : vector<8x1xf32>
    %596 = arith.subf %594, %595 : vector<8x1xf32>
    %597 = vector.broadcast %592 : vector<8x1xf32> to vector<8x512xf32>
    %598 = arith.mulf %575, %597 : vector<8x512xf32>
    %599 = vector.broadcast %596 : vector<8x1xf32> to vector<8x512xf32>
    %600 = arith.addf %598, %599 : vector<8x512xf32>
    %cst_504 = arith.constant 0.000000e+00 : f32
    %601 = vector.broadcast %cst_504 : f32 to vector<8x512xf32>
    %602 = arith.maximumf %600, %601 : vector<8x512xf32>
    %c34_i32_505 = arith.constant 34 : i32
    %603 = tpu.dynamic_rotate %602 by %c34_i32_505 dim 1 : vector<8x512xf32>, i32 -> vector<8x512xf32>
    %c0_506 = arith.constant 0 : index
    %c0_507 = arith.constant 0 : index
    %c0_508 = arith.constant 0 : index
    %604 = vector.load %arg1[%c0_506, %c0_507, %c0_508] : memref<25x1x512xf32, #tpu.memory_space<vmem>>, vector<1x1x512xf32>
    %605 = vector.shape_cast %604 : vector<1x1x512xf32> to vector<1x512xf32>
    %606 = vector.broadcast %605 : vector<1x512xf32> to vector<8x512xf32>
    %607 = arith.mulf %603, %606 : vector<8x512xf32>
    %c0_509 = arith.constant 0 : index
    %c0_510 = arith.constant 0 : index
    %608 = vector.load %arg11[%c0_509, %c0_510] : memref<200x512xf32, #tpu.memory_space<vmem>>, vector<8x512xf32>
    tpu.vector_store %arg11[%c0_509, %c0_510], %607 {strides = array<i32>} : memref<200x512xf32, #tpu.memory_space<vmem>>, vector<8x512xf32>,
    %c33_i32_511 = arith.constant 33 : i32
    %609 = tpu.dynamic_rotate %602 by %c33_i32_511 dim 1 : vector<8x512xf32>, i32 -> vector<8x512xf32>
    %c1_512 = arith.constant 1 : index
    %c0_513 = arith.constant 0 : index
    %c0_514 = arith.constant 0 : index
    %610 = vector.load %arg1[%c1_512, %c0_513, %c0_514] : memref<25x1x512xf32, #tpu.memory_space<vmem>>, vector<1x1x512xf32>
    %611 = vector.shape_cast %610 : vector<1x1x512xf32> to vector<1x512xf32>
    %612 = vector.broadcast %611 : vector<1x512xf32> to vector<8x512xf32>
    %613 = arith.mulf %609, %612 : vector<8x512xf32>
    %c8_515 = arith.constant 8 : index
    %c0_516 = arith.constant 0 : index
    %614 = vector.load %arg11[%c8_515, %c0_516] : memref<200x512xf32, #tpu.memory_space<vmem>>, vector<8x512xf32>
    tpu.vector_store %arg11[%c8_515, %c0_516], %613 {strides = array<i32>} : memref<200x512xf32, #tpu.memory_space<vmem>>, vector<8x512xf32>,
    %c32_i32_517 = arith.constant 32 : i32
    %615 = tpu.dynamic_rotate %602 by %c32_i32_517 dim 1 : vector<8x512xf32>, i32 -> vector<8x512xf32>
    %c2_518 = arith.constant 2 : index
    %c0_519 = arith.constant 0 : index
    %c0_520 = arith.constant 0 : index
    %616 = vector.load %arg1[%c2_518, %c0_519, %c0_520] : memref<25x1x512xf32, #tpu.memory_space<vmem>>, vector<1x1x512xf32>
    %617 = vector.shape_cast %616 : vector<1x1x512xf32> to vector<1x512xf32>
    %618 = vector.broadcast %617 : vector<1x512xf32> to vector<8x512xf32>
    %619 = arith.mulf %615, %618 : vector<8x512xf32>
    %c16_521 = arith.constant 16 : index
    %c0_522 = arith.constant 0 : index
    %620 = vector.load %arg11[%c16_521, %c0_522] : memref<200x512xf32, #tpu.memory_space<vmem>>, vector<8x512xf32>
    tpu.vector_store %arg11[%c16_521, %c0_522], %619 {strides = array<i32>} : memref<200x512xf32, #tpu.memory_space<vmem>>, vector<8x512xf32>,
    %c31_i32_523 = arith.constant 31 : i32
    %621 = tpu.dynamic_rotate %602 by %c31_i32_523 dim 1 : vector<8x512xf32>, i32 -> vector<8x512xf32>
    %c3_524 = arith.constant 3 : index
    %c0_525 = arith.constant 0 : index
    %c0_526 = arith.constant 0 : index
    %622 = vector.load %arg1[%c3_524, %c0_525, %c0_526] : memref<25x1x512xf32, #tpu.memory_space<vmem>>, vector<1x1x512xf32>
    %623 = vector.shape_cast %622 : vector<1x1x512xf32> to vector<1x512xf32>
    %624 = vector.broadcast %623 : vector<1x512xf32> to vector<8x512xf32>
    %625 = arith.mulf %621, %624 : vector<8x512xf32>
    %c24_527 = arith.constant 24 : index
    %c0_528 = arith.constant 0 : index
    %626 = vector.load %arg11[%c24_527, %c0_528] : memref<200x512xf32, #tpu.memory_space<vmem>>, vector<8x512xf32>
    tpu.vector_store %arg11[%c24_527, %c0_528], %625 {strides = array<i32>} : memref<200x512xf32, #tpu.memory_space<vmem>>, vector<8x512xf32>,
    %c30_i32_529 = arith.constant 30 : i32
    %627 = tpu.dynamic_rotate %602 by %c30_i32_529 dim 1 : vector<8x512xf32>, i32 -> vector<8x512xf32>
    %c4_530 = arith.constant 4 : index
    %c0_531 = arith.constant 0 : index
    %c0_532 = arith.constant 0 : index
    %628 = vector.load %arg1[%c4_530, %c0_531, %c0_532] : memref<25x1x512xf32, #tpu.memory_space<vmem>>, vector<1x1x512xf32>
    %629 = vector.shape_cast %628 : vector<1x1x512xf32> to vector<1x512xf32>
    %630 = vector.broadcast %629 : vector<1x512xf32> to vector<8x512xf32>
    %631 = arith.mulf %627, %630 : vector<8x512xf32>
    %c32_533 = arith.constant 32 : index
    %c0_534 = arith.constant 0 : index
    %632 = vector.load %arg11[%c32_533, %c0_534] : memref<200x512xf32, #tpu.memory_space<vmem>>, vector<8x512xf32>
    tpu.vector_store %arg11[%c32_533, %c0_534], %631 {strides = array<i32>} : memref<200x512xf32, #tpu.memory_space<vmem>>, vector<8x512xf32>,
    %c18_i32_535 = arith.constant 18 : i32
    %633 = tpu.dynamic_rotate %602 by %c18_i32_535 dim 1 : vector<8x512xf32>, i32 -> vector<8x512xf32>
    %c5_536 = arith.constant 5 : index
    %c0_537 = arith.constant 0 : index
    %c0_538 = arith.constant 0 : index
    %634 = vector.load %arg1[%c5_536, %c0_537, %c0_538] : memref<25x1x512xf32, #tpu.memory_space<vmem>>, vector<1x1x512xf32>
    %635 = vector.shape_cast %634 : vector<1x1x512xf32> to vector<1x512xf32>
    %636 = vector.broadcast %635 : vector<1x512xf32> to vector<8x512xf32>
    %637 = arith.mulf %633, %636 : vector<8x512xf32>
    %c40_539 = arith.constant 40 : index
    %c0_540 = arith.constant 0 : index
    %638 = vector.load %arg11[%c40_539, %c0_540] : memref<200x512xf32, #tpu.memory_space<vmem>>, vector<8x512xf32>
    tpu.vector_store %arg11[%c40_539, %c0_540], %637 {strides = array<i32>} : memref<200x512xf32, #tpu.memory_space<vmem>>, vector<8x512xf32>,
    %c17_i32_541 = arith.constant 17 : i32
    %639 = tpu.dynamic_rotate %602 by %c17_i32_541 dim 1 : vector<8x512xf32>, i32 -> vector<8x512xf32>
    %c6_542 = arith.constant 6 : index
    %c0_543 = arith.constant 0 : index
    %c0_544 = arith.constant 0 : index
    %640 = vector.load %arg1[%c6_542, %c0_543, %c0_544] : memref<25x1x512xf32, #tpu.memory_space<vmem>>, vector<1x1x512xf32>
    %641 = vector.shape_cast %640 : vector<1x1x512xf32> to vector<1x512xf32>
    %642 = vector.broadcast %641 : vector<1x512xf32> to vector<8x512xf32>
    %643 = arith.mulf %639, %642 : vector<8x512xf32>
    %c48_545 = arith.constant 48 : index
    %c0_546 = arith.constant 0 : index
    %644 = vector.load %arg11[%c48_545, %c0_546] : memref<200x512xf32, #tpu.memory_space<vmem>>, vector<8x512xf32>
    tpu.vector_store %arg11[%c48_545, %c0_546], %643 {strides = array<i32>} : memref<200x512xf32, #tpu.memory_space<vmem>>, vector<8x512xf32>,
    %c16_i32_547 = arith.constant 16 : i32
    %645 = tpu.dynamic_rotate %602 by %c16_i32_547 dim 1 : vector<8x512xf32>, i32 -> vector<8x512xf32>
    %c7_548 = arith.constant 7 : index
    %c0_549 = arith.constant 0 : index
    %c0_550 = arith.constant 0 : index
    %646 = vector.load %arg1[%c7_548, %c0_549, %c0_550] : memref<25x1x512xf32, #tpu.memory_space<vmem>>, vector<1x1x512xf32>
    %647 = vector.shape_cast %646 : vector<1x1x512xf32> to vector<1x512xf32>
    %648 = vector.broadcast %647 : vector<1x512xf32> to vector<8x512xf32>
    %649 = arith.mulf %645, %648 : vector<8x512xf32>
    %c56_551 = arith.constant 56 : index
    %c0_552 = arith.constant 0 : index
    %650 = vector.load %arg11[%c56_551, %c0_552] : memref<200x512xf32, #tpu.memory_space<vmem>>, vector<8x512xf32>
    tpu.vector_store %arg11[%c56_551, %c0_552], %649 {strides = array<i32>} : memref<200x512xf32, #tpu.memory_space<vmem>>, vector<8x512xf32>,
    %c15_i32_553 = arith.constant 15 : i32
    %651 = tpu.dynamic_rotate %602 by %c15_i32_553 dim 1 : vector<8x512xf32>, i32 -> vector<8x512xf32>
    %c8_554 = arith.constant 8 : index
    %c0_555 = arith.constant 0 : index
    %c0_556 = arith.constant 0 : index
    %652 = vector.load %arg1[%c8_554, %c0_555, %c0_556] : memref<25x1x512xf32, #tpu.memory_space<vmem>>, vector<1x1x512xf32>
    %653 = vector.shape_cast %652 : vector<1x1x512xf32> to vector<1x512xf32>
    %654 = vector.broadcast %653 : vector<1x512xf32> to vector<8x512xf32>
    %655 = arith.mulf %651, %654 : vector<8x512xf32>
    %c64_557 = arith.constant 64 : index
    %c0_558 = arith.constant 0 : index
    %656 = vector.load %arg11[%c64_557, %c0_558] : memref<200x512xf32, #tpu.memory_space<vmem>>, vector<8x512xf32>
    tpu.vector_store %arg11[%c64_557, %c0_558], %655 {strides = array<i32>} : memref<200x512xf32, #tpu.memory_space<vmem>>, vector<8x512xf32>,
    %c14_i32_559 = arith.constant 14 : i32
    %657 = tpu.dynamic_rotate %602 by %c14_i32_559 dim 1 : vector<8x512xf32>, i32 -> vector<8x512xf32>
    %c9_560 = arith.constant 9 : index
    %c0_561 = arith.constant 0 : index
    %c0_562 = arith.constant 0 : index
    %658 = vector.load %arg1[%c9_560, %c0_561, %c0_562] : memref<25x1x512xf32, #tpu.memory_space<vmem>>, vector<1x1x512xf32>
    %659 = vector.shape_cast %658 : vector<1x1x512xf32> to vector<1x512xf32>
    %660 = vector.broadcast %659 : vector<1x512xf32> to vector<8x512xf32>
    %661 = arith.mulf %657, %660 : vector<8x512xf32>
    %c72_563 = arith.constant 72 : index
    %c0_564 = arith.constant 0 : index
    %662 = vector.load %arg11[%c72_563, %c0_564] : memref<200x512xf32, #tpu.memory_space<vmem>>, vector<8x512xf32>
    tpu.vector_store %arg11[%c72_563, %c0_564], %661 {strides = array<i32>} : memref<200x512xf32, #tpu.memory_space<vmem>>, vector<8x512xf32>,
    %c2_i32_565 = arith.constant 2 : i32
    %663 = tpu.dynamic_rotate %602 by %c2_i32_565 dim 1 : vector<8x512xf32>, i32 -> vector<8x512xf32>
    %c10_566 = arith.constant 10 : index
    %c0_567 = arith.constant 0 : index
    %c0_568 = arith.constant 0 : index
    %664 = vector.load %arg1[%c10_566, %c0_567, %c0_568] : memref<25x1x512xf32, #tpu.memory_space<vmem>>, vector<1x1x512xf32>
    %665 = vector.shape_cast %664 : vector<1x1x512xf32> to vector<1x512xf32>
    %666 = vector.broadcast %665 : vector<1x512xf32> to vector<8x512xf32>
    %667 = arith.mulf %663, %666 : vector<8x512xf32>
    %c80_569 = arith.constant 80 : index
    %c0_570 = arith.constant 0 : index
    %668 = vector.load %arg11[%c80_569, %c0_570] : memref<200x512xf32, #tpu.memory_space<vmem>>, vector<8x512xf32>
    tpu.vector_store %arg11[%c80_569, %c0_570], %667 {strides = array<i32>} : memref<200x512xf32, #tpu.memory_space<vmem>>, vector<8x512xf32>,
    %c1_i32_571 = arith.constant 1 : i32
    %669 = tpu.dynamic_rotate %602 by %c1_i32_571 dim 1 : vector<8x512xf32>, i32 -> vector<8x512xf32>
    %c11_572 = arith.constant 11 : index
    %c0_573 = arith.constant 0 : index
    %c0_574 = arith.constant 0 : index
    %670 = vector.load %arg1[%c11_572, %c0_573, %c0_574] : memref<25x1x512xf32, #tpu.memory_space<vmem>>, vector<1x1x512xf32>
    %671 = vector.shape_cast %670 : vector<1x1x512xf32> to vector<1x512xf32>
    %672 = vector.broadcast %671 : vector<1x512xf32> to vector<8x512xf32>
    %673 = arith.mulf %669, %672 : vector<8x512xf32>
    %c88_575 = arith.constant 88 : index
    %c0_576 = arith.constant 0 : index
    %674 = vector.load %arg11[%c88_575, %c0_576] : memref<200x512xf32, #tpu.memory_space<vmem>>, vector<8x512xf32>
    tpu.vector_store %arg11[%c88_575, %c0_576], %673 {strides = array<i32>} : memref<200x512xf32, #tpu.memory_space<vmem>>, vector<8x512xf32>,
    %c12_577 = arith.constant 12 : index
    %c0_578 = arith.constant 0 : index
    %c0_579 = arith.constant 0 : index
    %675 = vector.load %arg1[%c12_577, %c0_578, %c0_579] : memref<25x1x512xf32, #tpu.memory_space<vmem>>, vector<1x1x512xf32>
    %676 = vector.shape_cast %675 : vector<1x1x512xf32> to vector<1x512xf32>
    %677 = vector.broadcast %676 : vector<1x512xf32> to vector<8x512xf32>
    %678 = arith.mulf %602, %677 : vector<8x512xf32>
    %c96_580 = arith.constant 96 : index
    %c0_581 = arith.constant 0 : index
    %679 = vector.load %arg11[%c96_580, %c0_581] : memref<200x512xf32, #tpu.memory_space<vmem>>, vector<8x512xf32>
    tpu.vector_store %arg11[%c96_580, %c0_581], %678 {strides = array<i32>} : memref<200x512xf32, #tpu.memory_space<vmem>>, vector<8x512xf32>,
    %c511_i32_582 = arith.constant 511 : i32
    %680 = tpu.dynamic_rotate %602 by %c511_i32_582 dim 1 : vector<8x512xf32>, i32 -> vector<8x512xf32>
    %c13_583 = arith.constant 13 : index
    %c0_584 = arith.constant 0 : index
    %c0_585 = arith.constant 0 : index
    %681 = vector.load %arg1[%c13_583, %c0_584, %c0_585] : memref<25x1x512xf32, #tpu.memory_space<vmem>>, vector<1x1x512xf32>
    %682 = vector.shape_cast %681 : vector<1x1x512xf32> to vector<1x512xf32>
    %683 = vector.broadcast %682 : vector<1x512xf32> to vector<8x512xf32>
    %684 = arith.mulf %680, %683 : vector<8x512xf32>
    %c104_586 = arith.constant 104 : index
    %c0_587 = arith.constant 0 : index
    %685 = vector.load %arg11[%c104_586, %c0_587] : memref<200x512xf32, #tpu.memory_space<vmem>>, vector<8x512xf32>
    tpu.vector_store %arg11[%c104_586, %c0_587], %684 {strides = array<i32>} : memref<200x512xf32, #tpu.memory_space<vmem>>, vector<8x512xf32>,
    %c510_i32_588 = arith.constant 510 : i32
    %686 = tpu.dynamic_rotate %602 by %c510_i32_588 dim 1 : vector<8x512xf32>, i32 -> vector<8x512xf32>
    %c14_589 = arith.constant 14 : index
    %c0_590 = arith.constant 0 : index
    %c0_591 = arith.constant 0 : index
    %687 = vector.load %arg1[%c14_589, %c0_590, %c0_591] : memref<25x1x512xf32, #tpu.memory_space<vmem>>, vector<1x1x512xf32>
    %688 = vector.shape_cast %687 : vector<1x1x512xf32> to vector<1x512xf32>
    %689 = vector.broadcast %688 : vector<1x512xf32> to vector<8x512xf32>
    %690 = arith.mulf %686, %689 : vector<8x512xf32>
    %c112_592 = arith.constant 112 : index
    %c0_593 = arith.constant 0 : index
    %691 = vector.load %arg11[%c112_592, %c0_593] : memref<200x512xf32, #tpu.memory_space<vmem>>, vector<8x512xf32>
    tpu.vector_store %arg11[%c112_592, %c0_593], %690 {strides = array<i32>} : memref<200x512xf32, #tpu.memory_space<vmem>>, vector<8x512xf32>,
    %c498_i32_594 = arith.constant 498 : i32
    %692 = tpu.dynamic_rotate %602 by %c498_i32_594 dim 1 : vector<8x512xf32>, i32 -> vector<8x512xf32>
    %c15_595 = arith.constant 15 : index
    %c0_596 = arith.constant 0 : index
    %c0_597 = arith.constant 0 : index
    %693 = vector.load %arg1[%c15_595, %c0_596, %c0_597] : memref<25x1x512xf32, #tpu.memory_space<vmem>>, vector<1x1x512xf32>
    %694 = vector.shape_cast %693 : vector<1x1x512xf32> to vector<1x512xf32>
    %695 = vector.broadcast %694 : vector<1x512xf32> to vector<8x512xf32>
    %696 = arith.mulf %692, %695 : vector<8x512xf32>
    %c120_598 = arith.constant 120 : index
    %c0_599 = arith.constant 0 : index
    %697 = vector.load %arg11[%c120_598, %c0_599] : memref<200x512xf32, #tpu.memory_space<vmem>>, vector<8x512xf32>
    tpu.vector_store %arg11[%c120_598, %c0_599], %696 {strides = array<i32>} : memref<200x512xf32, #tpu.memory_space<vmem>>, vector<8x512xf32>,
    %c497_i32_600 = arith.constant 497 : i32
    %698 = tpu.dynamic_rotate %602 by %c497_i32_600 dim 1 : vector<8x512xf32>, i32 -> vector<8x512xf32>
    %c16_601 = arith.constant 16 : index
    %c0_602 = arith.constant 0 : index
    %c0_603 = arith.constant 0 : index
    %699 = vector.load %arg1[%c16_601, %c0_602, %c0_603] : memref<25x1x512xf32, #tpu.memory_space<vmem>>, vector<1x1x512xf32>
    %700 = vector.shape_cast %699 : vector<1x1x512xf32> to vector<1x512xf32>
    %701 = vector.broadcast %700 : vector<1x512xf32> to vector<8x512xf32>
    %702 = arith.mulf %698, %701 : vector<8x512xf32>
    %c128_604 = arith.constant 128 : index
    %c0_605 = arith.constant 0 : index
    %703 = vector.load %arg11[%c128_604, %c0_605] : memref<200x512xf32, #tpu.memory_space<vmem>>, vector<8x512xf32>
    tpu.vector_store %arg11[%c128_604, %c0_605], %702 {strides = array<i32>} : memref<200x512xf32, #tpu.memory_space<vmem>>, vector<8x512xf32>,
    %c496_i32_606 = arith.constant 496 : i32
    %704 = tpu.dynamic_rotate %602 by %c496_i32_606 dim 1 : vector<8x512xf32>, i32 -> vector<8x512xf32>
    %c17_607 = arith.constant 17 : index
    %c0_608 = arith.constant 0 : index
    %c0_609 = arith.constant 0 : index
    %705 = vector.load %arg1[%c17_607, %c0_608, %c0_609] : memref<25x1x512xf32, #tpu.memory_space<vmem>>, vector<1x1x512xf32>
    %706 = vector.shape_cast %705 : vector<1x1x512xf32> to vector<1x512xf32>
    %707 = vector.broadcast %706 : vector<1x512xf32> to vector<8x512xf32>
    %708 = arith.mulf %704, %707 : vector<8x512xf32>
    %c136_610 = arith.constant 136 : index
    %c0_611 = arith.constant 0 : index
    %709 = vector.load %arg11[%c136_610, %c0_611] : memref<200x512xf32, #tpu.memory_space<vmem>>, vector<8x512xf32>
    tpu.vector_store %arg11[%c136_610, %c0_611], %708 {strides = array<i32>} : memref<200x512xf32, #tpu.memory_space<vmem>>, vector<8x512xf32>,
    %c495_i32_612 = arith.constant 495 : i32
    %710 = tpu.dynamic_rotate %602 by %c495_i32_612 dim 1 : vector<8x512xf32>, i32 -> vector<8x512xf32>
    %c18_613 = arith.constant 18 : index
    %c0_614 = arith.constant 0 : index
    %c0_615 = arith.constant 0 : index
    %711 = vector.load %arg1[%c18_613, %c0_614, %c0_615] : memref<25x1x512xf32, #tpu.memory_space<vmem>>, vector<1x1x512xf32>
    %712 = vector.shape_cast %711 : vector<1x1x512xf32> to vector<1x512xf32>
    %713 = vector.broadcast %712 : vector<1x512xf32> to vector<8x512xf32>
    %714 = arith.mulf %710, %713 : vector<8x512xf32>
    %c144_616 = arith.constant 144 : index
    %c0_617 = arith.constant 0 : index
    %715 = vector.load %arg11[%c144_616, %c0_617] : memref<200x512xf32, #tpu.memory_space<vmem>>, vector<8x512xf32>
    tpu.vector_store %arg11[%c144_616, %c0_617], %714 {strides = array<i32>} : memref<200x512xf32, #tpu.memory_space<vmem>>, vector<8x512xf32>,
    %c494_i32_618 = arith.constant 494 : i32
    %716 = tpu.dynamic_rotate %602 by %c494_i32_618 dim 1 : vector<8x512xf32>, i32 -> vector<8x512xf32>
    %c19_619 = arith.constant 19 : index
    %c0_620 = arith.constant 0 : index
    %c0_621 = arith.constant 0 : index
    %717 = vector.load %arg1[%c19_619, %c0_620, %c0_621] : memref<25x1x512xf32, #tpu.memory_space<vmem>>, vector<1x1x512xf32>
    %718 = vector.shape_cast %717 : vector<1x1x512xf32> to vector<1x512xf32>
    %719 = vector.broadcast %718 : vector<1x512xf32> to vector<8x512xf32>
    %720 = arith.mulf %716, %719 : vector<8x512xf32>
    %c152_622 = arith.constant 152 : index
    %c0_623 = arith.constant 0 : index
    %721 = vector.load %arg11[%c152_622, %c0_623] : memref<200x512xf32, #tpu.memory_space<vmem>>, vector<8x512xf32>
    tpu.vector_store %arg11[%c152_622, %c0_623], %720 {strides = array<i32>} : memref<200x512xf32, #tpu.memory_space<vmem>>, vector<8x512xf32>,
    %c482_i32_624 = arith.constant 482 : i32
    %722 = tpu.dynamic_rotate %602 by %c482_i32_624 dim 1 : vector<8x512xf32>, i32 -> vector<8x512xf32>
    %c20_625 = arith.constant 20 : index
    %c0_626 = arith.constant 0 : index
    %c0_627 = arith.constant 0 : index
    %723 = vector.load %arg1[%c20_625, %c0_626, %c0_627] : memref<25x1x512xf32, #tpu.memory_space<vmem>>, vector<1x1x512xf32>
    %724 = vector.shape_cast %723 : vector<1x1x512xf32> to vector<1x512xf32>
    %725 = vector.broadcast %724 : vector<1x512xf32> to vector<8x512xf32>
    %726 = arith.mulf %722, %725 : vector<8x512xf32>
    %c160_628 = arith.constant 160 : index
    %c0_629 = arith.constant 0 : index
    %727 = vector.load %arg11[%c160_628, %c0_629] : memref<200x512xf32, #tpu.memory_space<vmem>>, vector<8x512xf32>
    tpu.vector_store %arg11[%c160_628, %c0_629], %726 {strides = array<i32>} : memref<200x512xf32, #tpu.memory_space<vmem>>, vector<8x512xf32>,
    %c481_i32_630 = arith.constant 481 : i32
    %728 = tpu.dynamic_rotate %602 by %c481_i32_630 dim 1 : vector<8x512xf32>, i32 -> vector<8x512xf32>
    %c21_631 = arith.constant 21 : index
    %c0_632 = arith.constant 0 : index
    %c0_633 = arith.constant 0 : index
    %729 = vector.load %arg1[%c21_631, %c0_632, %c0_633] : memref<25x1x512xf32, #tpu.memory_space<vmem>>, vector<1x1x512xf32>
    %730 = vector.shape_cast %729 : vector<1x1x512xf32> to vector<1x512xf32>
    %731 = vector.broadcast %730 : vector<1x512xf32> to vector<8x512xf32>
    %732 = arith.mulf %728, %731 : vector<8x512xf32>
    %c168_634 = arith.constant 168 : index
    %c0_635 = arith.constant 0 : index
    %733 = vector.load %arg11[%c168_634, %c0_635] : memref<200x512xf32, #tpu.memory_space<vmem>>, vector<8x512xf32>
    tpu.vector_store %arg11[%c168_634, %c0_635], %732 {strides = array<i32>} : memref<200x512xf32, #tpu.memory_space<vmem>>, vector<8x512xf32>,
    %c480_i32_636 = arith.constant 480 : i32
    %734 = tpu.dynamic_rotate %602 by %c480_i32_636 dim 1 : vector<8x512xf32>, i32 -> vector<8x512xf32>
    %c22_637 = arith.constant 22 : index
    %c0_638 = arith.constant 0 : index
    %c0_639 = arith.constant 0 : index
    %735 = vector.load %arg1[%c22_637, %c0_638, %c0_639] : memref<25x1x512xf32, #tpu.memory_space<vmem>>, vector<1x1x512xf32>
    %736 = vector.shape_cast %735 : vector<1x1x512xf32> to vector<1x512xf32>
    %737 = vector.broadcast %736 : vector<1x512xf32> to vector<8x512xf32>
    %738 = arith.mulf %734, %737 : vector<8x512xf32>
    %c176_640 = arith.constant 176 : index
    %c0_641 = arith.constant 0 : index
    %739 = vector.load %arg11[%c176_640, %c0_641] : memref<200x512xf32, #tpu.memory_space<vmem>>, vector<8x512xf32>
    tpu.vector_store %arg11[%c176_640, %c0_641], %738 {strides = array<i32>} : memref<200x512xf32, #tpu.memory_space<vmem>>, vector<8x512xf32>,
    %c479_i32_642 = arith.constant 479 : i32
    %740 = tpu.dynamic_rotate %602 by %c479_i32_642 dim 1 : vector<8x512xf32>, i32 -> vector<8x512xf32>
    %c23_643 = arith.constant 23 : index
    %c0_644 = arith.constant 0 : index
    %c0_645 = arith.constant 0 : index
    %741 = vector.load %arg1[%c23_643, %c0_644, %c0_645] : memref<25x1x512xf32, #tpu.memory_space<vmem>>, vector<1x1x512xf32>
    %742 = vector.shape_cast %741 : vector<1x1x512xf32> to vector<1x512xf32>
    %743 = vector.broadcast %742 : vector<1x512xf32> to vector<8x512xf32>
    %744 = arith.mulf %740, %743 : vector<8x512xf32>
    %c184_646 = arith.constant 184 : index
    %c0_647 = arith.constant 0 : index
    %745 = vector.load %arg11[%c184_646, %c0_647] : memref<200x512xf32, #tpu.memory_space<vmem>>, vector<8x512xf32>
    tpu.vector_store %arg11[%c184_646, %c0_647], %744 {strides = array<i32>} : memref<200x512xf32, #tpu.memory_space<vmem>>, vector<8x512xf32>,
    %c478_i32_648 = arith.constant 478 : i32
    %746 = tpu.dynamic_rotate %602 by %c478_i32_648 dim 1 : vector<8x512xf32>, i32 -> vector<8x512xf32>
    %c24_649 = arith.constant 24 : index
    %c0_650 = arith.constant 0 : index
    %c0_651 = arith.constant 0 : index
    %747 = vector.load %arg1[%c24_649, %c0_650, %c0_651] : memref<25x1x512xf32, #tpu.memory_space<vmem>>, vector<1x1x512xf32>
    %748 = vector.shape_cast %747 : vector<1x1x512xf32> to vector<1x512xf32>
    %749 = vector.broadcast %748 : vector<1x512xf32> to vector<8x512xf32>
    %750 = arith.mulf %746, %749 : vector<8x512xf32>
    %c192_652 = arith.constant 192 : index
    %c0_653 = arith.constant 0 : index
    %751 = vector.load %arg11[%c192_652, %c0_653] : memref<200x512xf32, #tpu.memory_space<vmem>>, vector<8x512xf32>
    tpu.vector_store %arg11[%c192_652, %c0_653], %750 {strides = array<i32>} : memref<200x512xf32, #tpu.memory_space<vmem>>, vector<8x512xf32>,
    %c6_654 = arith.constant 6 : index
    %c0_655 = arith.constant 0 : index
    %c0_656 = arith.constant 0 : index
    %752 = vector.load %arg4[%c6_654, %c0_655, %c0_656] : memref<8x8x200xf32, #tpu.memory_space<vmem>>, vector<1x8x200xf32>
    %753 = vector.shape_cast %752 : vector<1x8x200xf32> to vector<8x200xf32>
    %c0_657 = arith.constant 0 : index
    %c0_658 = arith.constant 0 : index
    %754 = vector.load %arg11[%c0_657, %c0_658] : memref<200x512xf32, #tpu.memory_space<vmem>>, vector<200x256xf32>
    %cst_659 = arith.constant dense<0.000000e+00> : vector<8x256xf32>
    %755 = tpu.matmul %753, %754, %cst_659 {dimension_numbers = #tpu.dot_dimension_numbers<[1], [0], [0], [1], [0, 0, 1, 1], [], []>} : vector<8x200xf32>, vector<200x256xf32>, vector<8x256xf32> -> vector<8x256xf32>
    %c3_660 = arith.constant 3 : index
    %c0_661 = arith.constant 0 : index
    %c0_662 = arith.constant 0 : index
    %756 = vector.load %arg5[%c3_660, %c0_661, %c0_662] : memref<4x8x1xf32, #tpu.memory_space<vmem>>, vector<1x8x1xf32>
    %757 = vector.shape_cast %756 : vector<1x8x1xf32> to vector<8x1xf32>
    %758 = vector.broadcast %757 : vector<8x1xf32> to vector<8x256xf32>
    %759 = arith.addf %755, %758 : vector<8x256xf32>
    %c0_663 = arith.constant 0 : index
    %c0_664 = arith.constant 0 : index
    %760 = vector.load %arg12[%c0_663, %c0_664] : memref<8x512xf32, #tpu.memory_space<vmem>>, vector<8x256xf32>
    tpu.vector_store %arg12[%c0_663, %c0_664], %759 {strides = array<i32>} : memref<8x512xf32, #tpu.memory_space<vmem>>, vector<8x256xf32>,
    %c7_665 = arith.constant 7 : index
    %c0_666 = arith.constant 0 : index
    %c0_667 = arith.constant 0 : index
    %761 = vector.load %arg4[%c7_665, %c0_666, %c0_667] : memref<8x8x200xf32, #tpu.memory_space<vmem>>, vector<1x8x200xf32>
    %762 = vector.shape_cast %761 : vector<1x8x200xf32> to vector<8x200xf32>
    %c0_668 = arith.constant 0 : index
    %c256_669 = arith.constant 256 : index
    %763 = vector.load %arg11[%c0_668, %c256_669] : memref<200x512xf32, #tpu.memory_space<vmem>>, vector<200x256xf32>
    %cst_670 = arith.constant dense<0.000000e+00> : vector<8x256xf32>
    %764 = tpu.matmul %762, %763, %cst_670 {dimension_numbers = #tpu.dot_dimension_numbers<[1], [0], [0], [1], [0, 0, 1, 1], [], []>} : vector<8x200xf32>, vector<200x256xf32>, vector<8x256xf32> -> vector<8x256xf32>
    %c3_671 = arith.constant 3 : index
    %c0_672 = arith.constant 0 : index
    %c0_673 = arith.constant 0 : index
    %765 = vector.load %arg5[%c3_671, %c0_672, %c0_673] : memref<4x8x1xf32, #tpu.memory_space<vmem>>, vector<1x8x1xf32>
    %766 = vector.shape_cast %765 : vector<1x8x1xf32> to vector<8x1xf32>
    %767 = vector.broadcast %766 : vector<8x1xf32> to vector<8x256xf32>
    %768 = arith.addf %764, %767 : vector<8x256xf32>
    %c0_674 = arith.constant 0 : index
    %c256_675 = arith.constant 256 : index
    %769 = vector.load %arg12[%c0_674, %c256_675] : memref<8x512xf32, #tpu.memory_space<vmem>>, vector<8x256xf32>
    tpu.vector_store %arg12[%c0_674, %c256_675], %768 {strides = array<i32>} : memref<8x512xf32, #tpu.memory_space<vmem>>, vector<8x256xf32>,
    %c0_676 = arith.constant 0 : index
    %c0_677 = arith.constant 0 : index
    %770 = vector.load %arg12[%c0_676, %c0_677] : memref<8x512xf32, #tpu.memory_space<vmem>>, vector<8x512xf32>
    %cst_678 = arith.constant dense<0.000000e+00> : vector<8xf32>
    %771 = vector.multi_reduction <add>, %770, %cst_678 [1] : vector<8x512xf32> to vector<8xf32>
    %772 = vector.shape_cast %771 : vector<8xf32> to vector<8x1xf32>
    %773 = arith.mulf %770, %770 : vector<8x512xf32>
    %cst_679 = arith.constant dense<0.000000e+00> : vector<8xf32>
    %774 = vector.multi_reduction <add>, %773, %cst_679 [1] : vector<8x512xf32> to vector<8xf32>
    %775 = vector.shape_cast %774 : vector<8xf32> to vector<8x1xf32>
    %cst_680 = arith.constant 5.120000e+02 : f32
    %776 = vector.broadcast %cst_680 : f32 to vector<8x1xf32>
    %777 = arith.divf %772, %776 : vector<8x1xf32>
    %cst_681 = arith.constant 5.120000e+02 : f32
    %778 = vector.broadcast %cst_681 : f32 to vector<8x1xf32>
    %779 = arith.divf %775, %778 : vector<8x1xf32>
    %780 = arith.mulf %777, %777 : vector<8x1xf32>
    %781 = arith.subf %779, %780 : vector<8x1xf32>
    %c3_682 = arith.constant 3 : index
    %c0_683 = arith.constant 0 : index
    %c0_684 = arith.constant 0 : index
    %782 = vector.load %arg6[%c3_682, %c0_683, %c0_684] : memref<4x8x1xf32, #tpu.memory_space<vmem>>, vector<1x8x1xf32>
    %783 = vector.shape_cast %782 : vector<1x8x1xf32> to vector<8x1xf32>
    %cst_685 = arith.constant 9.99999974E-6 : f32
    %784 = vector.broadcast %cst_685 : f32 to vector<8x1xf32>
    %785 = arith.addf %781, %784 : vector<8x1xf32>
    %786 = math.rsqrt %785 : vector<8x1xf32>
    %787 = arith.mulf %783, %786 : vector<8x1xf32>
    %c3_686 = arith.constant 3 : index
    %c0_687 = arith.constant 0 : index
    %c0_688 = arith.constant 0 : index
    %788 = vector.load %arg7[%c3_686, %c0_687, %c0_688] : memref<4x8x1xf32, #tpu.memory_space<vmem>>, vector<1x8x1xf32>
    %789 = vector.shape_cast %788 : vector<1x8x1xf32> to vector<8x1xf32>
    %790 = arith.mulf %777, %787 : vector<8x1xf32>
    %791 = arith.subf %789, %790 : vector<8x1xf32>
    %792 = vector.broadcast %787 : vector<8x1xf32> to vector<8x512xf32>
    %793 = arith.mulf %770, %792 : vector<8x512xf32>
    %794 = vector.broadcast %791 : vector<8x1xf32> to vector<8x512xf32>
    %795 = arith.addf %793, %794 : vector<8x512xf32>
    %cst_689 = arith.constant 1.000000e-01 : f32
    %796 = vector.broadcast %cst_689 : f32 to vector<8x512xf32>
    %797 = arith.mulf %795, %796 : vector<8x512xf32>
    %798 = arith.addf %797, %407 : vector<8x512xf32>
    %c0_690 = arith.constant 0 : index
    %c0_691 = arith.constant 0 : index
    %799 = vector.load %arg8[%c0_690, %c0_691] : memref<4x8xf32, #tpu.memory_space<vmem>>, vector<4x8xf32>
    %800 = vector.extract_strided_slice %798 {offsets = [0, 0], sizes = [8, 256], strides = [1, 1]} : vector<8x512xf32> to vector<8x256xf32>
    %cst_692 = arith.constant dense<0.000000e+00> : vector<4x256xf32>
    %801 = tpu.matmul %799, %800, %cst_692 {dimension_numbers = #tpu.dot_dimension_numbers<[1], [0], [0], [1], [0, 0, 1, 1], [], []>} : vector<4x8xf32>, vector<8x256xf32>, vector<4x256xf32> -> vector<4x256xf32>
    %c0_693 = arith.constant 0 : index
    %c0_694 = arith.constant 0 : index
    %802 = vector.load %arg9[%c0_693, %c0_694] : memref<4x1xf32, #tpu.memory_space<vmem>>, vector<4x1xf32>
    %803 = vector.broadcast %802 : vector<4x1xf32> to vector<4x256xf32>
    %804 = arith.addf %801, %803 : vector<4x256xf32>
    %c0_695 = arith.constant 0 : index
    %c0_696 = arith.constant 0 : index
    %c0_697 = arith.constant 0 : index
    %805 = vector.load %arg10[%c0_695, %c0_696, %c0_697] : memref<2x4x256xf32, #tpu.memory_space<vmem>>, vector<1x4x256xf32>
    %806 = vector.shape_cast %805 : vector<1x4x256xf32> to vector<4x256xf32>
    %807 = vector.shape_cast %804 : vector<4x256xf32> to vector<1x4x256xf32>
    tpu.vector_store %arg10[%c0_695, %c0_696, %c0_697], %807 {strides = array<i32>} : memref<2x4x256xf32, #tpu.memory_space<vmem>>, vector<1x4x256xf32>,
    %c0_698 = arith.constant 0 : index
    %c0_699 = arith.constant 0 : index
    %808 = vector.load %arg8[%c0_698, %c0_699] : memref<4x8xf32, #tpu.memory_space<vmem>>, vector<4x8xf32>
    %809 = vector.extract_strided_slice %798 {offsets = [0, 256], sizes = [8, 256], strides = [1, 1]} : vector<8x512xf32> to vector<8x256xf32>
    %cst_700 = arith.constant dense<0.000000e+00> : vector<4x256xf32>
    %810 = tpu.matmul %808, %809, %cst_700 {dimension_numbers = #tpu.dot_dimension_numbers<[1], [0], [0], [1], [0, 0, 1, 1], [], []>} : vector<4x8xf32>, vector<8x256xf32>, vector<4x256xf32> -> vector<4x256xf32>
    %c0_701 = arith.constant 0 : index
    %c0_702 = arith.constant 0 : index
    %811 = vector.load %arg9[%c0_701, %c0_702] : memref<4x1xf32, #tpu.memory_space<vmem>>, vector<4x1xf32>
    %812 = vector.broadcast %811 : vector<4x1xf32> to vector<4x256xf32>
    %813 = arith.addf %810, %812 : vector<4x256xf32>
    %c1_703 = arith.constant 1 : index
    %c0_704 = arith.constant 0 : index
    %c0_705 = arith.constant 0 : index
    %814 = vector.load %arg10[%c1_703, %c0_704, %c0_705] : memref<2x4x256xf32, #tpu.memory_space<vmem>>, vector<1x4x256xf32>
    %815 = vector.shape_cast %814 : vector<1x4x256xf32> to vector<4x256xf32>
    %816 = vector.shape_cast %813 : vector<4x256xf32> to vector<1x4x256xf32>
    tpu.vector_store %arg10[%c1_703, %c0_704, %c0_705], %816 {strides = array<i32>} : memref<2x4x256xf32, #tpu.memory_space<vmem>>, vector<1x4x256xf32>,
    return
  }
}

</mosaic_0001>

<bundles_post_ra>
// kernel: mapnet1_forward.1
= control target key start
LH: loop header
LB: loop body
LE: loop exit
PB: predicated region body
PF: predicated region fallthrough
CT: control target
= control target key end

     0   :  { %vm49_vm0 = vcmask 1043456   ;;  %v9650_v2 = vmov 0.0   ;;  %v6467_v5 = vmov 0   ;;  %vm45_vm1 = vcmask 31744   ;;  %s9711_s21 = smov 31   ;;  %s9707_s22 = smov 18   ;;  %s9627_s0 = inlined_call_operand.vmem [shape: f32[2,4,256], index: 0, kind: input, shape index: {}]   ;;  %s9628_s2 = inlined_call_operand.vmem [shape: f32[8,4], index: 2, kind: input, shape index: {}]   ;;  %s9629_s3 = inlined_call_operand.vmem [shape: f32[8,1], index: 3, kind: input, shape index: {}]   ;;  %s9630_s4 = inlined_call_operand.vmem [shape: f32[8,8,200], index: 4, kind: input, shape index: {}]   ;;  %s9631_s5 = inlined_call_operand.vmem [shape: f32[4,8,1], index: 5, kind: input, shape index: {}]   ;;  %s9632_s1 = inlined_call_operand.vmem [shape: f32[25,1,512], index: 1, kind: input, shape index: {}]   ;;  %s9633_s6 = inlined_call_operand.vmem [shape: f32[4,8,1], index: 6, kind: input, shape index: {}]   ;;  %s9634_s7 = inlined_call_operand.vmem [shape: f32[4,8,1], index: 7, kind: input, shape index: {}]   ;;  %s9635_s9 = inlined_call_operand.vmem [shape: f32[4,1], index: 9, kind: input, shape index: {}]   ;;  %s9636_s8 = inlined_call_operand.vmem [shape: f32[4,8], index: 8, kind: input, shape index: {}]   ;;  %s9637_s10 = inlined_call_operand.vmem [shape: f32[2,4,256], index: 10, kind: output, shape index: {}]  }
   0x1   :  { %v36_v0 = vld [vmem:[%s9627_s0] sm:$0xff]  ;;  %v5907_v1 = vld [vmem:[%s9627_s0 + $0x8] sm:$0xff]  ;;  %118 = vmatprep.mubr.f32.mxu0 %v9650_v2  ;;  %209 = vmatprep.mubr.f32.mxu1 %v9650_v2  ;;  %s9715_s0 = smov 33   ;;  %s9703_s23 = smov 16   ;;  %vm9674_vm2 = vcmask 588800   ;;  %v5937_v55 = vld [vmem:[%s9630_s4 + $0x18] sm:$0xff] }
   0x2   :  { %v44_v3 = vcombine.high %v36_v0, %v36_v0  ;;  %v137_v4 = vcombine.high %v5907_v1, %v5907_v1  ;;  %6454 = vset.pattern.permute.xlu0 %v6467_v5  ;;  %v37_v6 = vld [vmem:[%s9629_s3] sm:$0xff]  ;;  %6455 = vset.pattern.permute.xlu1 %v6467_v5  ;;  %s9713_s3 = smov 32   ;;  %s9709_s24 = smov 30   ;;  %v1311_v52 = vld [vmem:[%s9630_s4 + $0x8] sm:$0xff] }
   0x3   :  { %v35_v7 = vld [vmem:[%s9628_s2] sm:$0xff]  ;;  %40 = vperm.xlu0 %6454, %v37_v6   ;;  %s9717_s2 = smov 34   ;;  %s9697_s25 = smov 14  }
   0x4   :  { %5904 = vmatprep.subr.msk.mxu0 %vm49_vm0, %v44_v3  ;;  %5908 = vmatprep.subr.msk.mxu1 %vm49_vm0, %v137_v4  ;;  %s9693_s26 = smov 1   ;;  %s9691_s27 = smov 127   ;;  %v1362_v56 = vld [vmem:[%s9631_s5] sm:$0xff]  ;;  %v230_v3 = vlaneseq }
   0x5   :  { %5905 = vmatpush1.msk.msra.mxu0 %vm49_vm0, %v36_v0  ;;  %5909 = vmatpush1.msk.msra.mxu1 %vm49_vm0, %v5907_v1  ;;  %s9705_s28 = smov 17   ;;  %s9687_s29 = smov 126   ;;  %v1498_v61 = vld [vmem:[%s9631_s5] sm:$0xff] }
   0x6   :  { %5906 = vmatmul.mubr.msk.f32.vlgmr.msra.gmra.mrb[0].mxu0 %vm45_vm1, %v35_v7  ;;  %5910 = vmatmul.mubr.msk.f32.vlgmr.msra.gmra.mrb[0].mxu1 %vm45_vm1, %v35_v7  ;;  %s9685_s30 = smov 114   ;;  %s9699_s11 = smov 15   ;;  %v240_v7 = vshrl.u32 %v230_v3, 7 }
   0x7   :  { %133 = vperm.xlu0 %6454, %v37_v6   ;;  %s9683_s12 = smov 113   ;;  %s9642_s13 = smov 112   ;;  %5935 = vmatprep.mubr.msk.f32.mxu0 %vm9674_vm2, %v1311_v52  ;;  %v6885_v6 = vand.u32 127, %v230_v3 }
   0x8   :  { %s9695_s14 = smov 2   ;;  %s9640_s15 = smov 111   ;;  %5938 = vmatprep.mubr.msk.f32.mxu1 %vm9674_vm2, %v5937_v55 }
   0x9   :  { %s9646_s16 = smov 110   ;;  %s9638_s17 = smov 98   ;;  %vm232_vm3 = vcmp.lt.s32.totalorder %v6885_v6, 34  ;;  %vm275_vm4 = vcmp.lt.s32.totalorder %v6885_v6, 33  ;;  %vm319_vm5 = vcmp.lt.s32.totalorder %v6885_v6, 32  ;;  %vm9702_vm6 = vcmp.lt.s32.totalorder %v6885_v6, 31 }
   0xa   :  { %s9648_s18 = smov 97   ;;  %s9644_s19 = smov 96   ;;  %vm9690_vm7 = vcmp.lt.s32.totalorder %v6885_v6, 30  ;;  %vm9689_vm8 = vcmp.lt.s32.totalorder %v6885_v6, 18  ;;  %vm9701_vm9 = vcmp.lt.s32.totalorder %v6885_v6, 17  ;;  %vm9675_vm10 = vcmp.lt.s32.totalorder %v6885_v6, 16 }
   0xb   :  { %s9719_s20 = smov 95   ;;  %vm9677_vm11 = vcmp.lt.s32.totalorder %v6885_v6, 15  ;;  %vm9676_vm12 = vcmp.lt.s32.totalorder %v6885_v6, 14  ;;  %vm9679_vm13 = vcmp.lt.s32.totalorder %v6885_v6, 127  ;;  %vm671_vm14 = vcmp.lt.s32.totalorder %v6885_v6, 2 }
   0xc   :  { %vm878_vm15 = vcmp.lt.s32.totalorder %v6885_v6, 114  ;;  %vm9678_vm0 = vcmp.lt.s32.totalorder %v6885_v6, 126  ;;  %vm715_vm1 = vcmp.lt.s32.totalorder %v6885_v6, 1  ;;  %vm966_vm2 = vcmp.lt.s32.totalorder %v6885_v6, 112 }
  0x82   :  { %v6565_v8 = vpop.permute.xlu0 %40 }
  0x86   :  { %v6574_v14 = vpop.permute.xlu0 %133 }
  0xd9   :  { %v120_v9 = vpop.f32.mrb[0].mxu0  ;;  %v211_v10 = vpop.f32.mrb[0].mxu1 }
  0xda   :  { %v6568_v11 = vadd.f32 %v120_v9, %v6565_v8  ;;  %v6570_v12 = vpop.f32.mrb[1].mxu0  ;;  %v6572_v13 = vpop.f32.mrb[1].mxu1  ;;  %v6581_v15 = vadd.f32 %v211_v10, %v6574_v14  ;;  %v5911_v9 = vld [vmem:[%s9632_s1 + $0x4] sm:$0xf] }
  0xdb   :  { %v6673_v16 = vadd.f32 %v6570_v12, %v6565_v8  ;;  %v6677_v17 = vadd.f32 %v6572_v13, %v6574_v14  ;;  %v237_v8 = vld [vmem:[%s9632_s1] sm:$0xf]  ;;  %v6894_v12 = vsub.s32 1, %v240_v7  ;;  %v6896_v14 = vsub.s32 0, %v240_v7 }
  0xdc   :  { %9721 = vst [vmem:[#allocation4_spill] sm:$0xff] %v6568_v11  ;;  %267 = vrot.lane.b32.xlu0 %v6568_v11, %s9715_s0  ;;  %222 = vrot.lane.b32.xlu1 %v6568_v11, %s9717_s2  ;;  %9722 = vst [vmem:[#allocation5_spill] sm:$0xff] %v6581_v15 }
  0xdd   :  { %9723 = vst [vmem:[#allocation6_spill] sm:$0xff] %v6673_v16  ;;  %9724 = vst [vmem:[#allocation7_spill] sm:$0xff] %v6677_v17  ;;  %v246_v52 = vrot.slane %v237_v8, %v6894_v12  ;;  %v290_v55 = vrot.slane %v5911_v9, %v6894_v12  ;;  %v242_v2 = vrot.slane %v237_v8, %v6896_v14 }
  0xe0   :  { %226 = vrot.lane.b32.xlu0 %v6581_v15, %s9717_s2  ;;  %271 = vrot.lane.b32.xlu1 %v6581_v15, %s9715_s0 }
  0xe4   :  { %311 = vrot.lane.b32.xlu0 %v6568_v11, %s9713_s3  ;;  %359 = vrot.lane.b32.xlu1 %v6581_v15, %s9711_s21 }
  0xe8   :  { %355 = vrot.lane.b32.xlu0 %v6568_v11, %s9711_s21  ;;  %447 = vrot.lane.b32.xlu1 %v6581_v15, %s9707_s22 }
  0xec   :  { %315 = vrot.lane.b32.xlu0 %v6581_v15, %s9713_s3  ;;  %535 = vrot.lane.b32.xlu1 %v6581_v15, %s9703_s23 }
  0xf0   :  { %399 = vrot.lane.b32.xlu0 %v6568_v11, %s9709_s24  ;;  %623 = vrot.lane.b32.xlu1 %v6581_v15, %s9697_s25 }
  0xf4   :  { %443 = vrot.lane.b32.xlu0 %v6568_v11, %s9707_s22  ;;  %711 = vrot.lane.b32.xlu1 %v6581_v15, %s9693_s26 }
  0xf8   :  { %403 = vrot.lane.b32.xlu0 %v6581_v15, %s9709_s24  ;;  %786 = vrot.lane.b32.xlu1 %v6581_v15, %s9691_s27 }
  0xfc   :  { %487 = vrot.lane.b32.xlu0 %v6568_v11, %s9705_s28  ;;  %830 = vrot.lane.b32.xlu1 %v6581_v15, %s9687_s29 }
 0x100   :  { %531 = vrot.lane.b32.xlu0 %v6568_v11, %s9703_s23  ;;  %874 = vrot.lane.b32.xlu1 %v6581_v15, %s9685_s30 }
 0x104   :  { %491 = vrot.lane.b32.xlu0 %v6581_v15, %s9705_s28  ;;  %870 = vrot.lane.b32.xlu1 %v6568_v11, %s9685_s30 }
 0x108   :  { %575 = vrot.lane.b32.xlu0 %v6568_v11, %s9699_s11  ;;  %918 = vrot.lane.b32.xlu1 %v6581_v15, %s9683_s12 }
 0x10c   :  { %619 = vrot.lane.b32.xlu0 %v6568_v11, %s9697_s25  ;;  %962 = vrot.lane.b32.xlu1 %v6581_v15, %s9642_s13 }
 0x110   :  { %579 = vrot.lane.b32.xlu0 %v6581_v15, %s9699_s11  ;;  %958 = vrot.lane.b32.xlu1 %v6568_v11, %s9642_s13 }
 0x114   :  { %663 = vrot.lane.b32.xlu0 %v6568_v11, %s9695_s14  ;;  %1006 = vrot.lane.b32.xlu1 %v6581_v15, %s9640_s15 }
 0x118   :  { %707 = vrot.lane.b32.xlu0 %v6568_v11, %s9693_s26  ;;  %1050 = vrot.lane.b32.xlu1 %v6581_v15, %s9646_s16 }
 0x11c   :  { %667 = vrot.lane.b32.xlu0 %v6581_v15, %s9695_s14  ;;  %1046 = vrot.lane.b32.xlu1 %v6568_v11, %s9646_s16 }
 0x120   :  { %782 = vrot.lane.b32.xlu0 %v6568_v11, %s9691_s27  ;;  %1094 = vrot.lane.b32.xlu1 %v6581_v15, %s9638_s17 }
 0x124   :  { %826 = vrot.lane.b32.xlu0 %v6568_v11, %s9687_s29  ;;  %1138 = vrot.lane.b32.xlu1 %v6581_v15, %s9648_s18 }
 0x128   :  { %914 = vrot.lane.b32.xlu0 %v6568_v11, %s9683_s12  ;;  %1134 = vrot.lane.b32.xlu1 %v6568_v11, %s9648_s18 }
 0x12c   :  { %1002 = vrot.lane.b32.xlu0 %v6568_v11, %s9640_s15  ;;  %1182 = vrot.lane.b32.xlu1 %v6581_v15, %s9644_s19 }
 0x130   :  { %1090 = vrot.lane.b32.xlu0 %v6568_v11, %s9638_s17  ;;  %1226 = vrot.lane.b32.xlu1 %v6581_v15, %s9719_s20 }
 0x134   :  { %1178 = vrot.lane.b32.xlu0 %v6568_v11, %s9644_s19  ;;  %1222 = vrot.lane.b32.xlu1 %v6568_v11, %s9719_s20 }
 0x138   :  { %228 = vrot.lane.b32.xlu0 %v6677_v17, %s9717_s2  ;;  %224 = vrot.lane.b32.xlu1 %v6673_v16, %s9717_s2 }
 0x13c   :  { %317 = vrot.lane.b32.xlu0 %v6677_v17, %s9713_s3  ;;  %269 = vrot.lane.b32.xlu1 %v6673_v16, %s9715_s0 }
 0x140   :  { %405 = vrot.lane.b32.xlu0 %v6677_v17, %s9709_s24  ;;  %273 = vrot.lane.b32.xlu1 %v6677_v17, %s9715_s0 }
 0x144   :  { %493 = vrot.lane.b32.xlu0 %v6677_v17, %s9705_s28  ;;  %313 = vrot.lane.b32.xlu1 %v6673_v16, %s9713_s3 }
 0x148   :  { %581 = vrot.lane.b32.xlu0 %v6677_v17, %s9699_s11  ;;  %357 = vrot.lane.b32.xlu1 %v6673_v16, %s9711_s21 }
 0x14c   :  { %669 = vrot.lane.b32.xlu0 %v6677_v17, %s9695_s14  ;;  %361 = vrot.lane.b32.xlu1 %v6677_v17, %s9711_s21 }
 0x14e   :  { %v6703_v18 = vpop.permute.xlu0 %267  ;;  %v6705_v19 = vpop.permute.xlu1 %222 }
 0x150   :  { %784 = vrot.lane.b32.xlu0 %v6673_v16, %s9691_s27  ;;  %401 = vrot.lane.b32.xlu1 %v6673_v16, %s9709_s24 }
 0x152   :  { %v6711_v20 = vpop.permute.xlu0 %226  ;;  %v6713_v21 = vpop.permute.xlu1 %271 }
 0x154   :  { %828 = vrot.lane.b32.xlu0 %v6673_v16, %s9687_s29  ;;  %445 = vrot.lane.b32.xlu1 %v6673_v16, %s9707_s22 }
 0x156   :  { %v6719_v22 = vpop.permute.xlu0 %311  ;;  %v6721_v23 = vpop.permute.xlu1 %359 }
 0x158   :  { %872 = vrot.lane.b32.xlu0 %v6673_v16, %s9685_s30  ;;  %449 = vrot.lane.b32.xlu1 %v6677_v17, %s9707_s22 }
 0x15a   :  { %v6727_v24 = vpop.permute.xlu0 %355  ;;  %v6729_v25 = vpop.permute.xlu1 %447 }
 0x15c   :  { %832 = vrot.lane.b32.xlu0 %v6677_v17, %s9687_s29  ;;  %489 = vrot.lane.b32.xlu1 %v6673_v16, %s9705_s28 }
 0x15e   :  { %v6735_v26 = vpop.permute.xlu0 %315  ;;  %v6737_v27 = vpop.permute.xlu1 %535 }
 0x160   :  { %916 = vrot.lane.b32.xlu0 %v6673_v16, %s9683_s12  ;;  %533 = vrot.lane.b32.xlu1 %v6673_v16, %s9703_s23 }
 0x162   :  { %v6743_v28 = vpop.permute.xlu0 %399  ;;  %v6745_v29 = vpop.permute.xlu1 %623 }
 0x164   :  { %960 = vrot.lane.b32.xlu0 %v6673_v16, %s9642_s13  ;;  %537 = vrot.lane.b32.xlu1 %v6677_v17, %s9703_s23 }
 0x166   :  { %v6751_v30 = vpop.permute.xlu0 %443  ;;  %v6753_v31 = vpop.permute.xlu1 %711 }
 0x167   :  { %9725 = vst [vmem:[#allocation8_spill] sm:$0xff] %v6753_v31 }
 0x168   :  { %920 = vrot.lane.b32.xlu0 %v6677_v17, %s9683_s12  ;;  %577 = vrot.lane.b32.xlu1 %v6673_v16, %s9699_s11 }
 0x16a   :  { %v6759_v32 = vpop.permute.xlu0 %403  ;;  %v6761_v33 = vpop.permute.xlu1 %786 }
 0x16c   :  { %1004 = vrot.lane.b32.xlu0 %v6673_v16, %s9640_s15  ;;  %621 = vrot.lane.b32.xlu1 %v6673_v16, %s9697_s25 }
 0x16e   :  { %v6767_v34 = vpop.permute.xlu0 %487  ;;  %v6769_v35 = vpop.permute.xlu1 %830 }
 0x170   :  { %1048 = vrot.lane.b32.xlu0 %v6673_v16, %s9646_s16  ;;  %625 = vrot.lane.b32.xlu1 %v6677_v17, %s9697_s25 }
 0x172   :  { %v6775_v36 = vpop.permute.xlu0 %531  ;;  %v6777_v37 = vpop.permute.xlu1 %874 }
 0x174   :  { %1008 = vrot.lane.b32.xlu0 %v6677_v17, %s9640_s15  ;;  %665 = vrot.lane.b32.xlu1 %v6673_v16, %s9695_s14  ;;  %s9818_s15 = smov 111  }
 0x176   :  { %v6783_v38 = vpop.permute.xlu0 %491  ;;  %v6785_v39 = vpop.permute.xlu1 %870 }
 0x178   :  { %1092 = vrot.lane.b32.xlu0 %v6673_v16, %s9638_s17  ;;  %709 = vrot.lane.b32.xlu1 %v6673_v16, %s9693_s26 }
 0x17a   :  { %v6791_v40 = vpop.permute.xlu0 %575  ;;  %v6793_v41 = vpop.permute.xlu1 %918 }
 0x17b   :  { %9726 = vst [vmem:[#allocation9_spill] sm:$0xff] %v6793_v41 }
 0x17c   :  { %1136 = vrot.lane.b32.xlu0 %v6673_v16, %s9648_s18  ;;  %713 = vrot.lane.b32.xlu1 %v6677_v17, %s9693_s26 }
 0x17e   :  { %v6799_v42 = vpop.permute.xlu0 %619  ;;  %v6801_v43 = vpop.permute.xlu1 %962 }
 0x17f   :  { %9727 = vst [vmem:[#allocation10_spill] sm:$0xff] %v6801_v43 }
 0x180   :  { %1096 = vrot.lane.b32.xlu0 %v6677_v17, %s9638_s17  ;;  %788 = vrot.lane.b32.xlu1 %v6677_v17, %s9691_s27  ;;  %s9668_s17 = smov 94  }
 0x182   :  { %v6807_v44 = vpop.permute.xlu0 %579  ;;  %v6809_v45 = vpop.permute.xlu1 %958 }
 0x184   :  { %1180 = vrot.lane.b32.xlu0 %v6673_v16, %s9644_s19  ;;  %876 = vrot.lane.b32.xlu1 %v6677_v17, %s9685_s30 }
 0x186   :  { %v6815_v46 = vpop.permute.xlu0 %663  ;;  %v6817_v47 = vpop.permute.xlu1 %1006 }
 0x187   :  { %9728 = vst [vmem:[#allocation11_spill] sm:$0xff] %v6817_v47 }
 0x188   :  { %1224 = vrot.lane.b32.xlu0 %v6673_v16, %s9719_s20  ;;  %964 = vrot.lane.b32.xlu1 %v6677_v17, %s9642_s13  ;;  %s9860_s13 = smov 14  }
 0x18a   :  { %v6823_v48 = vpop.permute.xlu0 %707  ;;  %v6825_v49 = vpop.permute.xlu1 %1050 }
 0x18b   :  { %9729 = vst [vmem:[#allocation12_spill] sm:$0xff] %v6825_v49 }
 0x18c   :  { %1184 = vrot.lane.b32.xlu0 %v6677_v17, %s9644_s19  ;;  %1052 = vrot.lane.b32.xlu1 %v6677_v17, %s9646_s16  ;;  %s9819_s16 = smov 110   ;;  %s9859_s19 = smov 15  }
 0x18e   :  { %v6831_v50 = vpop.permute.xlu0 %667  ;;  %v6833_v51 = vpop.permute.xlu1 %1046 }
 0x18f   :  { %9730 = vst [vmem:[#allocation13_spill] sm:$0xff] %v6833_v51 }
 0x190   :  { %1268 = vrot.lane.b32.xlu0 %v6673_v16, %s9668_s17  ;;  %1140 = vrot.lane.b32.xlu1 %v6677_v17, %s9648_s18  ;;  %s9821_s18 = smov 97  }
 0x192   :  { %v6843_v53 = vpop.permute.xlu0 %782  ;;  %v6845_v54 = vpop.permute.xlu1 %1094 }
 0x193   :  { %9731 = vst [vmem:[#allocation14_spill] sm:$0xff] %v6845_v54 }
 0x194   :  { %1266 = vrot.lane.b32.xlu0 %v6568_v11, %s9668_s17  ;;  %1228 = vrot.lane.b32.xlu1 %v6677_v17, %s9719_s20 }
 0x196   :  { %v6858_v57 = vpop.permute.xlu0 %826  ;;  %v6860_v58 = vpop.permute.xlu1 %1138 }
 0x197   :  { %9732 = vst [vmem:[#allocation15_spill] sm:$0xff] %v6860_v58 }
 0x198   :  { %1365 = vperm.xlu0 %6454, %v1362_v56   ;;  %1270 = vrot.lane.b32.xlu1 %v6581_v15, %s9668_s17  ;;  %v6901_v56 = vsub.s32 3, %v240_v7 }
 0x19a   :  { %v6864_v59 = vpop.permute.xlu0 %914  ;;  %v6866_v60 = vpop.permute.xlu1 %1134  ;;  %v298_v47 = vrot.slane %v5911_v9, %v6901_v56 }
 0x19b   :  { %9733 = vst [vmem:[#allocation16_spill] sm:$0xff] %v6864_v59  ;;  %9734 = vst [vmem:[#allocation17_spill] sm:$0xff] %v6866_v60 }
 0x19c   :  { %1272 = vrot.lane.b32.xlu1 %v6677_v17, %s9668_s17  ;;  %s9817_s17 = smov 112  }
 0x19e   :  { %v6873_v62 = vpop.permute.xlu0 %1002  ;;  %v6875_v63 = vpop.permute.xlu1 %1182 }
 0x19f   :  { %9735 = vst [vmem:[#allocation18_spill] sm:$0xff] %v6873_v62  ;;  %9736 = vst [vmem:[#allocation19_spill] sm:$0xff] %v6875_v63  ;;  %v254_v63 = vrot.slane %v237_v8, %v6901_v56 }
 0x1a0   :  { %1501 = vperm.xlu1 %6455, %v1498_v61   ;;  %v6903_v61 = vsub.s32 2, %v240_v7 }
 0x1a2   :  { %v6877_v0 = vpop.permute.xlu0 %1090  ;;  %v6879_v1 = vpop.permute.xlu1 %1226  ;;  %v250_v51 = vrot.slane %v237_v8, %v6903_v61 }
 0x1a3   :  { %9737 = vst [vmem:[#allocation20_spill] sm:$0xff] %v6877_v0  ;;  %9738 = vst [vmem:[#allocation21_spill] sm:$0xff] %v6879_v1  ;;  %v294_v1 = vrot.slane %v5911_v9, %v6903_v61  ;;  %v286_v0 = vrot.slane %v5911_v9, %v6896_v14 }
 0x1a6   :  { %v6881_v4 = vpop.permute.xlu0 %1178  ;;  %v6883_v5 = vpop.permute.xlu1 %1222 }
 0x1a7   :  { %9739 = vst [vmem:[#allocation22_spill] sm:$0xff] %v6881_v4  ;;  %9740 = vst [vmem:[#allocation23_spill] sm:$0xff] %v6883_v5 }
 0x1aa   :  { %v229_v10 = vpop.permute.xlu0 %228  ;;  %v225_v13 = vpop.permute.xlu1 %224 }
 0x1ab   :  { %v235_v3 = vsel %vm232_vm3, %v6705_v19, %v225_v13  ;;  %v236_v7 = vsel %vm232_vm3, %v229_v10, %v6705_v19  ;;  %v233_v49 = vsel %vm232_vm3, %v6711_v20, %v229_v10  ;;  %v234_v19 = vsel %vm232_vm3, %v225_v13, %v6711_v20 }
 0x1ac   :  { %v260_v54 = vmul.f32 %v246_v52, %v235_v3  ;;  %v259_v31 = vmul.f32 %v242_v2, %v236_v7  ;;  %v5913_v2 = vld [vmem:[%s9632_s1 + $0xc] sm:$0xf] }
 0x1ad   :  { %v374_v3 = vrot.slane %v5913_v2, %v6896_v14 }
 0x1ae   :  { %v318_v5 = vpop.permute.xlu0 %317  ;;  %v270_v4 = vpop.permute.xlu1 %269 }
 0x1af   :  { %v278_v60 = vsel %vm275_vm4, %v6703_v18, %v270_v4  ;;  %v277_v62 = vsel %vm275_vm4, %v270_v4, %v6713_v21  ;;  %v262_v4 = vmul.f32 %v254_v63, %v233_v49  ;;  %v323_v7 = vsel %vm319_vm5, %v318_v5, %v6719_v22 }
 0x1b0   :  { %v304_v58 = vmul.f32 %v290_v55, %v278_v60  ;;  %v305_v10 = vmul.f32 %v294_v1, %v277_v62  ;;  %v5922_v62 = vld [vmem:[%s9632_s1 + $0x30] sm:$0xf] }
 0x1b2   :  { %v6926_v43 = vpop.permute.xlu0 %405  ;;  %v274_v59 = vpop.permute.xlu1 %273  ;;  %v6044_v41 = vpack.c.bf16 %v304_v58, %v260_v54  ;;  %v261_v54 = vmul.f32 %v250_v51, %v234_v19 }
 0x1b3   :  { %v276_v60 = vsel %vm275_vm4, %v6713_v21, %v274_v59  ;;  %v279_v9 = vsel %vm275_vm4, %v274_v59, %v6703_v18  ;;  %v5912_v18 = vld [vmem:[%s9632_s1 + $0x8] sm:$0xf] }
 0x1b4   :  { %v303_v8 = vmul.f32 %v286_v0, %v279_v9  ;;  %v306_v52 = vmul.f32 %v298_v47, %v276_v60  ;;  %6045 = vmatprep.subr.bf16.mxu0 %v6044_v41  ;;  %v6094_v21 = vpack.c.bf16 %v305_v10, %v261_v54  ;;  %v334_v47 = vrot.slane %v5912_v18, %v6894_v12 }
 0x1b5   :  { %v378_v41 = vrot.slane %v5913_v2, %v6894_v12  ;;  %v330_v49 = vrot.slane %v5912_v18, %v6896_v14  ;;  %v342_v63 = vrot.slane %v5912_v18, %v6901_v56  ;;  %v382_v0 = vrot.slane %v5913_v2, %v6903_v61 }
 0x1b6   :  { %v6046_v58 = vpack.c.bf16 %v303_v8, %v259_v31  ;;  %v6940_v20 = vpop.permute.xlu0 %493  ;;  %v314_v13 = vpop.permute.xlu1 %313  ;;  %v6092_v55 = vpack.c.bf16 %v306_v52, %v262_v4  ;;  %v386_v9 = vrot.slane %v5913_v2, %v6901_v56  ;;  %v320_v4 = vsel %vm319_vm5, %v6735_v26, %v318_v5 }
 0x1b7   :  { %v322_v31 = vsel %vm319_vm5, %v6719_v22, %v314_v13  ;;  %v757_v8 = vrot.slane %v5922_v62, %v6896_v14  ;;  %v338_v52 = vrot.slane %v5912_v18, %v6903_v61  ;;  %v761_v2 = vrot.slane %v5922_v62, %v6894_v12 }
 0x1b8   :  { %6047 = vmatpush1.bf16.msra.mxu0 %v6046_v58  ;;  %6093 = vmatprep.subr.bf16.mxu1 %v6092_v55  ;;  %v348_v19 = vmul.f32 %v334_v47, %v322_v31  ;;  %v765_v55 = vrot.slane %v5922_v62, %v6903_v61  ;;  %v321_v5 = vsel %vm319_vm5, %v314_v13, %v6735_v26  ;;  %v6996_v26 = vld [vmem:[%s9632_s1 + $0x10] sm:$0xf] }
 0x1b9   :  { %6095 = vmatpush1.bf16.msra.mxu1 %v6094_v21  ;;  %v347_v21 = vmul.f32 %v330_v49, %v323_v7  ;;  %v5915_v49 = vld [vmem:[%s9632_s1 + $0x14] sm:$0xf]  ;;  %v769_v7 = vrot.slane %v5922_v62, %v6901_v56  ;;  %v7009_v62 = vld [vmem:[%s9632_s1 + $0x20] sm:$0xf] }
 0x1ba   :  { %v6953_v51 = vpop.permute.xlu0 %581  ;;  %v358_v59 = vpop.permute.xlu1 %357 }
 0x1bb   :  { %v366_v1 = vsel %vm9702_vm6, %v6727_v24, %v358_v59  ;;  %v365_v10 = vsel %vm9702_vm6, %v358_v59, %v6721_v23 }
 0x1bc   :  { %v392_v60 = vmul.f32 %v378_v41, %v366_v1  ;;  %v350_v41 = vmul.f32 %v342_v63, %v320_v4  ;;  %v393_v31 = vmul.f32 %v382_v0, %v365_v10  ;;  %v7004_v0 = vld [vmem:[%s9632_s1 + $0x18] sm:$0xf]  ;;  %v7023_v10 = vld [vmem:[%s9632_s1 + $0x28] sm:$0xf] }
 0x1be   :  { %v6976_v54 = vpop.permute.xlu0 %669  ;;  %v362_v58 = vpop.permute.xlu1 %361  ;;  %v6048_v22 = vpack.c.bf16 %v392_v60, %v348_v19  ;;  %v7015_v60 = vmul.f32 %v765_v55, %v6581_v15 }
 0x1bf   :  { %v364_v47 = vsel %vm9702_vm6, %v6721_v23, %v362_v58  ;;  %v367_v18 = vsel %vm9702_vm6, %v362_v58, %v6727_v24  ;;  %v349_v23 = vmul.f32 %v338_v52, %v321_v5  ;;  %v422_v52 = vrot.slane %v6996_v26, %v6894_v12 }
 0x1c0   :  { %v391_v59 = vmul.f32 %v374_v3, %v367_v18  ;;  %v394_v1 = vmul.f32 %v386_v9, %v364_v47  ;;  %6049 = vmatprep.subr.bf16.mxu0 %v6048_v22  ;;  %v7012_v3 = vmul.f32 %v757_v8, %v6568_v11  ;;  %v7018_v9 = vmul.f32 %v761_v2, %v6673_v16 }
 0x1c1   :  { %v6098_v4 = vpack.c.bf16 %v393_v31, %v349_v23  ;;  %v466_v8 = vrot.slane %v5915_v49, %v6894_v12  ;;  %v418_v58 = vrot.slane %v6996_v26, %v6896_v14  ;;  %v430_v22 = vrot.slane %v6996_v26, %v6901_v56 }
 0x1c2   :  { %v6050_v13 = vpack.c.bf16 %v391_v59, %v347_v21  ;;  %v6998_v19 = vpop.permute.xlu0 %784  ;;  %v402_v24 = vpop.permute.xlu1 %401  ;;  %v6096_v63 = vpack.c.bf16 %v394_v1, %v350_v41  ;;  %v7037_v2 = vmul.f32 %v769_v7, %v6677_v17  ;;  %v7050_v41 = vld [vmem:[%s9632_s1 + $0x34] sm:$0xf]  ;;  %v7059_v7 = vld [vmem:[%s9632_s1 + $0x38] sm:$0xf]  ;;  %v470_v23 = vrot.slane %v5915_v49, %v6903_v61 }
 0x1c3   :  { %v410_v55 = vsel %vm9690_vm7, %v6743_v28, %v402_v24  ;;  %v474_v47 = vrot.slane %v5915_v49, %v6901_v56  ;;  %v408_v5 = vsel %vm9690_vm7, %v6759_v32, %v6926_v43 }
 0x1c4   :  { %6051 = vmatpush1.bf16.msra.mxu0 %v6050_v13  ;;  %6097 = vmatprep.subr.bf16.mxu1 %v6096_v63  ;;  %v462_v63 = vrot.slane %v5915_v49, %v6896_v14  ;;  %v436_v1 = vmul.f32 %v422_v52, %v410_v55  ;;  %v426_v49 = vrot.slane %v6996_v26, %v6903_v61 }
 0x1c5   :  { %6099 = vmatpush1.bf16.msra.mxu1 %v6098_v4  ;;  %v411_v4 = vsel %vm9690_vm7, %v6926_v43, %v6743_v28  ;;  %v7092_v43 = vld [vmem:[%s9632_s1 + $0x3c] sm:$0xf]  ;;  %v438_v52 = vmul.f32 %v430_v22, %v408_v5 }
 0x1c6   :  { %v7052_v31 = vpop.permute.xlu0 %828  ;;  %v446_v59 = vpop.permute.xlu1 %445  ;;  %v435_v15 = vmul.f32 %v418_v58, %v411_v4  ;;  %v7108_v58 = vld [vmem:[%s9632_s1 + $0x40] sm:$0xf]  ;;  %v5917_v22 = vld [vmem:[%s9632_s1 + $0x1c] sm:$0xf]  ;;  %v510_v4 = vrot.slane %v7004_v0, %v6894_v12 }
 0x1c7   :  { %v454_v13 = vsel %vm9689_vm8, %v6751_v30, %v446_v59  ;;  %v453_v28 = vsel %vm9689_vm8, %v446_v59, %v6729_v25  ;;  %v409_v59 = vsel %vm9690_vm7, %v402_v24, %v6759_v32 }
 0x1c8   :  { %v480_v18 = vmul.f32 %v466_v8, %v454_v13  ;;  %v481_v17 = vmul.f32 %v470_v23, %v453_v28  ;;  %v514_v28 = vrot.slane %v7004_v0, %v6903_v61 }
 0x1ca   :  { %v7094_v55 = vpop.permute.xlu0 %872  ;;  %v450_v13 = vpop.permute.xlu1 %449  ;;  %v6052_v21 = vpack.c.bf16 %v480_v18, %v436_v1 }
 0x1cb   :  { %v452_v26 = vsel %vm9689_vm8, %v6729_v25, %v450_v13  ;;  %v455_v8 = vsel %vm9689_vm8, %v450_v13, %v6751_v30  ;;  %v7171_v30 = vld [vmem:[%s9632_s1 + $0x4c] sm:$0xf] }
 0x1cc   :  { %v479_v16 = vmul.f32 %v462_v63, %v455_v8  ;;  %v482_v11 = vmul.f32 %v474_v47, %v452_v26  ;;  %6053 = vmatprep.subr.bf16.mxu0 %v6052_v21  ;;  %v437_v21 = vmul.f32 %v426_v49, %v409_v59  ;;  %v7128_v63 = vld [vmem:[%s9632_s1 + $0x44] sm:$0xf]  ;;  %v7144_v8 = vld [vmem:[%s9632_s1 + $0x48] sm:$0xf]  ;;  %v550_v26 = vrot.slane %v5917_v22, %v6896_v14 }
 0x1cd   :  { %v598_v59 = vrot.slane %v7009_v62, %v6894_v12 }
 0x1ce   :  { %v6054_v5 = vpack.c.bf16 %v479_v16, %v435_v15  ;;  %v7123_v18 = vpop.permute.xlu0 %832  ;;  %v490_v1 = vpop.permute.xlu1 %489  ;;  %v6100_v23 = vpack.c.bf16 %v482_v11, %v438_v52  ;;  %v6102_v49 = vpack.c.bf16 %v481_v17, %v437_v21  ;;  %v554_v11 = vrot.slane %v5917_v22, %v6894_v12  ;;  %v7157_v21 = vld [vmem:[%s9632_s1 + $0x24] sm:$0xf] }
 0x1cf   :  { %v558_v52 = vrot.slane %v5917_v22, %v6903_v61  ;;  %v498_v13 = vsel %vm9701_vm9, %v6767_v34, %v490_v1  ;;  %v562_v15 = vrot.slane %v5917_v22, %v6901_v56  ;;  %v499_v17 = vsel %vm9701_vm9, %v6940_v20, %v6767_v34  ;;  %v7224_v22 = vld [vmem:[%s9632_s1 + $0x50] sm:$0xf] }
 0x1d0   :  { %6055 = vmatpush1.bf16.msra.mxu0 %v6054_v5  ;;  %6101 = vmatprep.subr.bf16.mxu1 %v6100_v23  ;;  %v524_v32 = vmul.f32 %v510_v4, %v498_v13  ;;  %v496_v23 = vsel %vm9701_vm9, %v6783_v38, %v6940_v20  ;;  %v638_v20 = vrot.slane %v7157_v21, %v6896_v14 }
 0x1d1   :  { %6103 = vmatpush1.bf16.msra.mxu1 %v6102_v49  ;;  %v497_v4 = vsel %vm9701_vm9, %v490_v1, %v6783_v38 }
 0x1d2   :  { %v7159_v5 = vpop.permute.xlu0 %916  ;;  %v534_v16 = vpop.permute.xlu1 %533 }
 0x1d3   :  { %v542_v49 = vsel %vm9675_vm10, %v6775_v36, %v534_v16  ;;  %v541_v47 = vsel %vm9675_vm10, %v534_v16, %v6737_v27  ;;  %v9741_v16 = vrot.slane %v7004_v0, %v6896_v14 }
 0x1d4   :  { %v568_v24 = vmul.f32 %v554_v11, %v542_v49  ;;  %v569_v38 = vmul.f32 %v558_v52, %v541_v47  ;;  %v686_v47 = vrot.slane %v7023_v10, %v6894_v12  ;;  %v525_v52 = vmul.f32 %v514_v28, %v497_v4 }
 0x1d5   :  { %v523_v34 = vmul.f32 %v9741_v16, %v499_v17  ;;  %v9742_v17 = vrot.slane %v7004_v0, %v6901_v56 }
 0x1d6   :  { %v7201_v11 = vpop.permute.xlu0 %960  ;;  %v538_v13 = vpop.permute.xlu1 %537  ;;  %v6056_v49 = vpack.c.bf16 %v568_v24, %v524_v32 }
 0x1d7   :  { %v540_v32 = vsel %vm9675_vm10, %v6737_v27, %v538_v13  ;;  %v543_v24 = vsel %vm9675_vm10, %v538_v13, %v6775_v36  ;;  %v526_v16 = vmul.f32 %v9742_v17, %v496_v23  ;;  %v7233_v27 = vld [vmem:[%s9632_s1 + $0x2c] sm:$0xf]  ;;  %v7238_v36 = vld [vmem:[%s9632_s1 + $0x54] sm:$0xf]  ;;  %vm9680_vm10 = vcmp.lt.s32.totalorder %v6885_v6, 113 }
 0x1d8   :  { %v567_v1 = vmul.f32 %v550_v26, %v543_v24  ;;  %v570_v25 = vmul.f32 %v562_v15, %v540_v32  ;;  %6057 = vmatprep.subr.bf16.mxu0 %v6056_v49  ;;  %v587_v15 = vsel %vm9677_vm11, %v6953_v51, %v6791_v40 }
 0x1da   :  { %v6058_v26 = vpack.c.bf16 %v567_v1, %v523_v34  ;;  %v7250_v13 = vpop.permute.xlu0 %920  ;;  %v578_v49 = vpop.permute.xlu1 %577  ;;  %v6104_v32 = vpack.c.bf16 %v570_v25, %v526_v16  ;;  %v7265_v34 = vld [vmem:[%s9632_s1 + $0x58] sm:$0xf]  ;;  %v6106_v25 = vpack.c.bf16 %v569_v38, %v525_v52 }
 0x1db   :  { %v586_v28 = vsel %vm9677_vm11, %v6791_v40, %v578_v49 }
 0x1dc   :  { %6059 = vmatpush1.bf16.msra.mxu0 %v6058_v26  ;;  %6105 = vmatprep.subr.bf16.mxu1 %v6104_v32  ;;  %v7286_v26 = vld [vmem:[%s9632_s1 + $0x5c] sm:$0xf]  ;;  %v612_v52 = vmul.f32 %v598_v59, %v586_v28  ;;  %v9743_v32 = vrot.slane %v7157_v21, %v6894_v12  ;;  %v792_v28 = vsel %vm9679_vm13, %v6998_v19, %v6761_v33 }
 0x1dd   :  { %6107 = vmatpush1.bf16.msra.mxu1 %v6106_v25  ;;  %v584_v25 = vsel %vm9677_vm11, %v6807_v44, %v6953_v51  ;;  %v9745_v51 = vrot.slane %v7009_v62, %v6901_v56  ;;  %v675_v59 = vsel %vm671_vm14, %v6976_v54, %v6815_v46 }
 0x1de   :  { %v7288_v24 = vpop.permute.xlu0 %1004  ;;  %v622_v4 = vpop.permute.xlu1 %621 }
 0x1df   :  { %v630_v17 = vsel %vm9676_vm12, %v6799_v42, %v622_v4  ;;  %v629_v38 = vsel %vm9676_vm12, %v622_v4, %v6745_v29  ;;  %v614_v16 = vmul.f32 %v9745_v51, %v584_v25  ;;  %v9746_v51 = vrot.slane %v7157_v21, %v6903_v61 }
 0x1e0   :  { %v656_v1 = vmul.f32 %v9743_v32, %v630_v17  ;;  %v9744_v32 = vrot.slane %v7009_v62, %v6896_v14 }
 0x1e2   :  { %v611_v40 = vmul.f32 %v9744_v32, %v587_v15  ;;  %v7338_v0 = vpop.permute.xlu0 %1048  ;;  %v626_v4 = vpop.permute.xlu1 %625  ;;  %v6060_v23 = vpack.c.bf16 %v656_v1, %v612_v52  ;;  %v585_v15 = vsel %vm9677_vm11, %v578_v49, %v6807_v44  ;;  %v793_v52 = vsel %vm9679_vm13, %v6843_v53, %v6998_v19 }
 0x1e3   :  { %v628_v25 = vsel %vm9676_vm12, %v6745_v29, %v626_v4  ;;  %v631_v1 = vsel %vm9676_vm12, %v626_v4, %v6799_v42  ;;  %v657_v32 = vmul.f32 %v9746_v51, %v629_v38  ;;  %v9747_v29 = vrot.slane %v7157_v21, %v6901_v56 }
 0x1e4   :  { %v655_v44 = vmul.f32 %v638_v20, %v631_v1  ;;  %6061 = vmatprep.subr.bf16.mxu0 %v6060_v23  ;;  %v672_v42 = vsel %vm671_vm14, %v6831_v50, %v6976_v54  ;;  %v881_v19 = vsel %vm878_vm15, %v6785_v39, %v7094_v55  ;;  %v880_v21 = vsel %vm878_vm15, %v7094_v55, %v6777_v37 }
 0x1e5   :  { %v658_v49 = vmul.f32 %v9747_v29, %v628_v25  ;;  %v9748_v23 = vrot.slane %v7009_v62, %v6903_v61  ;;  %v9749_v20 = vrot.slane %v7050_v41, %v6896_v14  ;;  %v9750_v55 = vrot.slane %v7050_v41, %v6894_v12 }
 0x1e6   :  { %v6062_v25 = vpack.c.bf16 %v655_v44, %v611_v40  ;;  %v7388_v1 = vpop.permute.xlu0 %1008  ;;  %v666_v51 = vpop.permute.xlu1 %665  ;;  %vm1054_vm12 = vcmp.lt.s32.totalorder %v6885_v6, 110  ;;  %v836_v54 = vsel %vm9678_vm0, %v7052_v31, %v6769_v35  ;;  %v9751_v40 = vrot.slane %v7092_v43, %v6896_v14 }
 0x1e7   :  { %v613_v4 = vmul.f32 %v9748_v23, %v585_v15  ;;  %v6108_v29 = vpack.c.bf16 %v658_v49, %v614_v16  ;;  %v7397_v38 = vmul.f32 %v9749_v20, %v793_v52  ;;  %v7402_v62 = vmul.f32 %v9750_v55, %v792_v28 }
 0x1e8   :  { %v837_v16 = vsel %vm9678_vm0, %v6858_v57, %v7052_v31  ;;  %v7416_v15 = vmul.f32 %v9751_v40, %v881_v19  ;;  %vm9681_vm11 = vcmp.lt.s32.totalorder %v6885_v6, 111  ;;  %6063 = vmatpush1.bf16.msra.mxu0 %v6062_v25  ;;  %v9752_v44 = vrot.slane %v7092_v43, %v6894_v12  ;;  %v9758_v40 = vld [vmem:[#allocation8_spill] sm:$0xff]  ;;  %v9761_v19 = vld [vmem:[#allocation10_spill] sm:$0xff] }
 0x1e9   :  { %v6110_v28 = vpack.c.bf16 %v657_v32, %v613_v4  ;;  %v674_v31 = vsel %vm671_vm14, %v6815_v46, %v666_v51  ;;  %6109 = vmatprep.subr.bf16.mxu1 %v6108_v29  ;;  %v9753_v20 = vrot.slane %v7023_v10, %v6896_v14  ;;  %v9754_v4 = vrot.slane %v7023_v10, %v6901_v56 }
 0x1ea   :  { %v7424_v49 = vmul.f32 %v9752_v44, %v880_v21  ;;  %v9755_v25 = vrot.slane %v7059_v7, %v6896_v14  ;;  %v7444_v46 = vpop.permute.xlu0 %1092  ;;  %v710_v29 = vpop.permute.xlu1 %709  ;;  %v6070_v44 = vpack.c.bf16 %v7397_v38, %v7012_v3 }
 0x1eb   :  { %v699_v23 = vmul.f32 %v9753_v20, %v675_v59  ;;  %v702_v21 = vmul.f32 %v9754_v4, %v672_v42  ;;  %6111 = vmatpush1.bf16.msra.mxu1 %v6110_v28  ;;  %v9756_v59 = vrot.slane %v7059_v7, %v6894_v12  ;;  %v718_v42 = vsel %vm715_vm1, %v6823_v48, %v710_v29 }
 0x1ec   :  { %v7442_v55 = vmul.f32 %v9755_v25, %v837_v16  ;;  %v6068_v16 = vpack.c.bf16 %v7402_v62, %v7018_v9  ;;  %v969_v4 = vsel %vm966_vm2, %v6809_v45, %v7201_v11  ;;  %v9757_v25 = vrot.slane %v7233_v27, %v6894_v12 }
 0x1ed   :  { %v7453_v20 = vmul.f32 %v9756_v59, %v836_v54  ;;  %v700_v54 = vmul.f32 %v686_v47, %v674_v31  ;;  %v835_v9 = vsel %vm9678_vm0, %v6769_v35, %v7123_v18  ;;  %v838_v62 = vsel %vm9678_vm0, %v7123_v18, %v6858_v57  ;;  %v9759_v31 = vld [vmem:[#allocation9_spill] sm:$0xff] }
 0x1ee   :  { %v744_v59 = vmul.f32 %v9757_v25, %v718_v42  ;;  %v717_v32 = vsel %vm715_vm1, %v710_v29, %v9758_v40  ;;  %v924_v42 = vsel %vm9680_vm10, %v7159_v5, %v9759_v31  ;;  %v9760_v25 = vld [vmem:[#allocation16_spill] sm:$0xff]  ;;  %v968_v57 = vsel %vm966_vm2, %v7201_v11, %v9761_v19  ;;  %v7497_v18 = vpop.permute.xlu0 %1136  ;;  %v714_v29 = vpop.permute.xlu1 %713 }
 0x1ef   :  { %v6072_v47 = vpack.c.bf16 %v7424_v49, %v7453_v20  ;;  %v925_v35 = vsel %vm9680_vm10, %v9760_v25, %v7159_v5  ;;  %v9762_v49 = vrot.slane %v7128_v63, %v6896_v14  ;;  %v673_v28 = vsel %vm671_vm14, %v666_v51, %v6831_v50 }
 0x1f0   :  { %v6064_v52 = vpack.c.bf16 %v744_v59, %v700_v54  ;;  %v716_v5 = vsel %vm715_vm1, %v9758_v40, %v714_v29  ;;  %v719_v11 = vsel %vm715_vm1, %v714_v29, %v6823_v48  ;;  %v9763_v54 = vrot.slane %v7059_v7, %v6903_v61 }
 0x1f1   :  { %v7502_v20 = vmul.f32 %v9762_v49, %v969_v4  ;;  %v9764_v4 = vrot.slane %v7233_v27, %v6903_v61  ;;  %v9765_v50 = vrot.slane %v7233_v27, %v6896_v14  ;;  %v9766_v40 = vrot.slane %v7233_v27, %v6901_v56 }
 0x1f2   :  { %v7516_v59 = vmul.f32 %v9763_v54, %v835_v9  ;;  %6065 = vmatprep.subr.bf16.mxu0 %v6064_v52  ;;  %v9767_v48 = vrot.slane %v7059_v7, %v6901_v56  ;;  %v9768_v9 = vrot.slane %v7108_v58, %v6896_v14  ;;  %v9770_v27 = vrot.slane %v7128_v63, %v6894_v12  ;;  %v9771_v7 = vld [vmem:[#allocation13_spill] sm:$0xff] }
 0x1f3   :  { %v745_v49 = vmul.f32 %v9764_v4, %v717_v32  ;;  %v743_v51 = vmul.f32 %v9765_v50, %v719_v11  ;;  %v746_v17 = vmul.f32 %v9766_v40, %v716_v5  ;;  %v9769_v32 = vrot.slane %v7108_v58, %v6894_v12  ;;  %v7555_v50 = vpop.permute.xlu0 %1096 }
 0x1f4   :  { %v7530_v29 = vmul.f32 %v9767_v48, %v838_v62  ;;  %v7535_v54 = vmul.f32 %v9768_v9, %v925_v35  ;;  %v7545_v5 = vmul.f32 %v9770_v27, %v968_v57  ;;  %vm1098_vm0 = vcmp.lt.s32.totalorder %v6885_v6, 98  ;;  %v9773_v48 = vld [vmem:[#allocation18_spill] sm:$0xff] }
 0x1f5   :  { %v7540_v4 = vmul.f32 %v9769_v32, %v924_v42  ;;  %v1057_v52 = vsel %vm1054_vm12, %v9771_v7, %v7338_v0  ;;  %v9772_v62 = vrot.slane %v7023_v10, %v6903_v61  ;;  %v6066_v11 = vpack.c.bf16 %v743_v51, %v699_v23  ;;  %v789_v42 = vpop.permute.xlu1 %788  ;;  %v9774_v23 = vld [vmem:[#allocation12_spill] sm:$0xff] }
 0x1f6   :  { %v6112_v40 = vpack.c.bf16 %v746_v17, %v702_v21  ;;  %v6078_v57 = vpack.c.bf16 %v7502_v20, %v7535_v54  ;;  %v1013_v9 = vsel %vm9681_vm11, %v9773_v48, %v7288_v24  ;;  %v791_v32 = vsel %vm9679_vm13, %v6761_v33, %v789_v42 }
 0x1f7   :  { %v701_v35 = vmul.f32 %v9772_v62, %v673_v28  ;;  %v794_v10 = vsel %vm9679_vm13, %v789_v42, %v6843_v53  ;;  %v1056_v17 = vsel %vm1054_vm12, %v7338_v0, %v9774_v23  ;;  %v9775_v28 = vrot.slane %v7050_v41, %v6903_v61  ;;  %6067 = vmatpush1.bf16.msra.mxu0 %v6066_v11 }
 0x1f8   :  { %v9776_v27 = vrot.slane %v7050_v41, %v6901_v56  ;;  %v923_v33 = vsel %vm9680_vm10, %v9759_v31, %v7250_v13  ;;  %v9777_v53 = vrot.slane %v7171_v30, %v6896_v14  ;;  %vm1142_vm13 = vcmp.lt.s32.totalorder %v6885_v6, 97  ;;  %6113 = vmatprep.subr.bf16.mxu1 %v6112_v40  ;;  %6069 = vmatprep.subr.bf16.mxu0 %v6068_v16 }
 0x1f9   :  { %v6114_v21 = vpack.c.bf16 %v745_v49, %v701_v35  ;;  %v820_v51 = vmul.f32 %v9775_v28, %v791_v32  ;;  %v6076_v0 = vpack.c.bf16 %v7545_v5, %v7540_v4  ;;  %v926_v41 = vsel %vm9680_vm10, %v7250_v13, %v9760_v25  ;;  %v9778_v49 = vld [vmem:[#allocation11_spill] sm:$0xff]  ;;  %v7600_v35 = vpop.permute.xlu0 %1180  ;;  %v877_v11 = vpop.permute.xlu1 %876 }
 0x1fa   :  { %v821_v62 = vmul.f32 %v9776_v27, %v794_v10  ;;  %v7586_v42 = vmul.f32 %v9777_v53, %v1057_v52  ;;  %v1012_v31 = vsel %vm9681_vm11, %v7288_v24, %v9778_v49  ;;  %v9779_v4 = vrot.slane %v7144_v8, %v6896_v14 }
 0x1fb   :  { %v6118_v52 = vpack.c.bf16 %v820_v51, %v7015_v60  ;;  %6115 = vmatpush1.bf16.msra.mxu1 %v6114_v21  ;;  %v9780_v13 = vrot.slane %v7171_v30, %v6894_v12  ;;  %v879_v24 = vsel %vm878_vm15, %v6777_v37, %v877_v11  ;;  %v882_v60 = vsel %vm878_vm15, %v877_v11, %v6785_v39 }
 0x1fc   :  { %v6116_v16 = vpack.c.bf16 %v821_v62, %v7037_v2  ;;  %v7606_v5 = vmul.f32 %v9779_v4, %v1013_v9  ;;  %v9781_v2 = vrot.slane %v7108_v58, %v6903_v61  ;;  %v1011_v9 = vsel %vm9681_vm11, %v9778_v49, %v7388_v1  ;;  %6071 = vmatpush1.bf16.msra.mxu0 %v6070_v44 }
 0x1fd   :  { %v1083_v25 = vmul.f32 %v9780_v13, %v1056_v17  ;;  %v9782_v32 = vrot.slane %v7092_v43, %v6903_v61  ;;  %v9783_v37 = vrot.slane %v7092_v43, %v6901_v56  ;;  %v9784_v39 = vrot.slane %v7108_v58, %v6901_v56  ;;  %6073 = vmatprep.subr.bf16.mxu0 %v6072_v47  ;;  %v9786_v43 = vld [vmem:[#allocation15_spill] sm:$0xff]  ;;  %v1225_v44 = vpop.permute.xlu0 %1224  ;;  %v965_v62 = vpop.permute.xlu1 %964 }
 0x1fe   :  { %v952_v40 = vmul.f32 %v9781_v2, %v923_v33  ;;  %v9785_v28 = vrot.slane %v7144_v8, %v6894_v12  ;;  %v6082_v27 = vpack.c.bf16 %v7586_v42, %v7606_v5  ;;  %vm9682_vm10 = vcmp.lt.s32.totalorder %v6885_v6, 96  ;;  %6117 = vmatprep.subr.bf16.mxu1 %v6116_v16  ;;  %v9794_v5 = vld [vmem:[#allocation17_spill] sm:$0xff] }
 0x1ff   :  { %v908_v10 = vmul.f32 %v9782_v32, %v879_v24  ;;  %v909_v17 = vmul.f32 %v9783_v37, %v882_v60  ;;  %v953_v21 = vmul.f32 %v9784_v39, %v926_v41  ;;  %v1014_v3 = vsel %vm9681_vm11, %v7388_v1, %v9773_v48  ;;  %6119 = vmatpush1.bf16.msra.mxu1 %v6118_v52  ;;  %v9788_v41 = vld [vmem:[#allocation14_spill] sm:$0xff]  ;;  %v9799_v37 = vld [vmem:[#allocation21_spill] sm:$0xff] }
 0x200   :  { %v1039_v51 = vmul.f32 %v9785_v28, %v1012_v31  ;;  %v1144_v58 = vsel %vm1142_vm13, %v7497_v18, %v9786_v43  ;;  %v9787_v47 = vrot.slane %v7144_v8, %v6903_v61  ;;  %v967_v1 = vsel %vm966_vm2, %v9761_v19, %v965_v62 }
 0x201   :  { %v6122_v38 = vpack.c.bf16 %v908_v10, %v7516_v59  ;;  %v6120_v33 = vpack.c.bf16 %v909_v17, %v7530_v29  ;;  %v970_v48 = vsel %vm966_vm2, %v965_v62, %v6809_v45  ;;  %v1100_v59 = vsel %vm1098_vm0, %v7444_v46, %v9788_v41  ;;  %v9789_v29 = vld [vmem:[#allocation20_spill] sm:$0xff]  ;;  %v9804_v62 = vld [vmem:[#allocation19_spill] sm:$0xff] }
 0x202   :  { %v1040_v53 = vmul.f32 %v9787_v47, %v1011_v9  ;;  %v6080_v42 = vpack.c.bf16 %v1083_v25, %v1039_v51  ;;  %v1101_v49 = vsel %vm1098_vm0, %v9789_v29, %v7444_v46  ;;  %v9790_v31 = vrot.slane %v7128_v63, %v6903_v61 }
 0x203   :  { %v9791_v19 = vrot.slane %v7128_v63, %v6901_v56  ;;  %v9792_v45 = vpack.c.bf16 %v7416_v15, %v7442_v55  ;;  %v9793_v16 = vrot.slane %v7144_v8, %v6901_v56  ;;  %v1145_v46 = vsel %vm1142_vm13, %v9794_v5, %v7497_v18  ;;  %6121 = vmatprep.subr.bf16.mxu1 %v6120_v33  ;;  %v1185_v55 = vpop.permute.xlu0 %1184  ;;  %v1053_v18 = vpop.permute.xlu1 %1052  ;;  %v9805_v33 = vld [vmem:[#allocation22_spill] sm:$0xff] }
 0x204   :  { %v996_v52 = vmul.f32 %v9790_v31, %v967_v1  ;;  %v9795_v13 = vrot.slane %v7238_v36, %v6894_v12  ;;  %vm1230_vm11 = vcmp.lt.s32.totalorder %v6885_v6, 95  ;;  %v1099_v63 = vsel %vm1098_vm0, %v9788_v41, %v7555_v50  ;;  %6123 = vmatpush1.bf16.msra.mxu1 %v6122_v38 }
 0x205   :  { %v997_v11 = vmul.f32 %v9791_v19, %v970_v48  ;;  %6075 = vmatpush1.bf16.msra.mxu0 %v9792_v45  ;;  %v1041_v4 = vmul.f32 %v9793_v16, %v1014_v3  ;;  %v1102_v8 = vsel %vm1098_vm0, %v7555_v50, %v9789_v29  ;;  %v9796_v60 = vrot.slane %v7224_v22, %v6896_v14 }
 0x206   :  { %v1171_v25 = vmul.f32 %v9795_v13, %v1144_v58  ;;  %6077 = vmatprep.subr.bf16.mxu0 %v6076_v0  ;;  %v6126_v15 = vpack.c.bf16 %v996_v52, %v952_v40  ;;  %v9797_v0 = vrot.slane %v7224_v22, %v6894_v12  ;;  %v1055_v32 = vsel %vm1054_vm12, %v9774_v23, %v1053_v18 }
 0x207   :  { %v6124_v24 = vpack.c.bf16 %v997_v11, %v953_v21  ;;  %v1126_v2 = vmul.f32 %v9796_v60, %v1101_v49  ;;  %v1058_v50 = vsel %vm1054_vm12, %v1053_v18, %v9771_v7  ;;  %v9798_v40 = vrot.slane %v7238_v36, %v6896_v14  ;;  %v1141_v47 = vpop.permute.xlu1 %1140 }
 0x208   :  { %v1127_v9 = vmul.f32 %v9797_v0, %v1100_v59  ;;  %v1232_v17 = vsel %vm1230_vm11, %v1225_v44, %v9799_v37  ;;  %v9800_v39 = vrot.slane %v7171_v30, %v6903_v61  ;;  %v9801_v28 = vrot.slane %v7171_v30, %v6901_v56 }
 0x209   :  { %v1170_v10 = vmul.f32 %v9798_v40, %v1145_v46  ;;  %6079 = vmatpush1.bf16.msra.mxu0 %v6078_v57  ;;  %v9802_v7 = vrot.slane %v7224_v22, %v6903_v61  ;;  %v9803_v3 = vrot.slane %v7224_v22, %v6901_v56  ;;  %6125 = vmatprep.subr.bf16.mxu1 %v6124_v24  ;;  %v1269_v57 = vpop.permute.xlu0 %1268  ;;  %v9806_v22 = vld [vmem:[#allocation23_spill] sm:$0xff] }
 0x20a   :  { %v1084_v21 = vmul.f32 %v9800_v39, %v1055_v32  ;;  %v1085_v23 = vmul.f32 %v9801_v28, %v1058_v50  ;;  %6081 = vmatprep.subr.bf16.mxu0 %v6080_v42  ;;  %v6084_v38 = vpack.c.bf16 %v1171_v25, %v1127_v9  ;;  %v1188_v30 = vsel %vm9682_vm10, %v7600_v35, %v9804_v62 }
 0x20b   :  { %v1128_v51 = vmul.f32 %v9802_v7, %v1099_v63  ;;  %v1129_v58 = vmul.f32 %v9803_v3, %v1102_v8  ;;  %v1189_v20 = vsel %vm9682_vm10, %v9805_v33, %v7600_v35  ;;  %6127 = vmatpush1.bf16.msra.mxu1 %v6126_v15  ;;  %v1233_v48 = vsel %vm1230_vm11, %v9806_v22, %v1225_v44  ;;  %v1229_v13 = vpop.permute.xlu1 %1228  ;;  %v1310_v3 = vld [vmem:[%s9630_s4] sm:$0xff] }
 0x20c   :  { %v6130_v54 = vpack.c.bf16 %v1084_v21, %v1040_v53  ;;  %v6128_v1 = vpack.c.bf16 %v1085_v23, %v1041_v4  ;;  %v9807_v42 = vrot.slane %v7286_v26, %v6894_v12  ;;  %v1143_v59 = vsel %vm1142_vm13, %v9786_v43, %v1141_v47  ;;  %v5934_v43 = vld [vmem:[%s9632_s1 + $0x60] sm:$0xf] }
 0x20d   :  { %v1146_v35 = vsel %vm1142_vm13, %v1141_v47, %v9794_v5  ;;  %v1187_v53 = vsel %vm9682_vm10, %v9804_v62, %v1185_v55  ;;  %v9808_v29 = vrot.slane %v7238_v36, %v6903_v61  ;;  %v9809_v49 = vrot.slane %v7238_v36, %v6901_v56  ;;  %6083 = vmatpush1.bf16.msra.mxu0 %v6082_v27 }
 0x20e   :  { %v1259_v41 = vmul.f32 %v9807_v42, %v1232_v17  ;;  %6129 = vmatprep.subr.bf16.mxu1 %v6128_v1  ;;  %v6086_v52 = vpack.c.bf16 %v1170_v10, %v1126_v2  ;;  %v9810_v19 = vrot.slane %v7265_v34, %v6894_v12  ;;  %v1190_v45 = vsel %vm9682_vm10, %v1185_v55, %v9805_v33  ;;  %v1267_v2 = vpop.permute.xlu0 %1266  ;;  %v5936_v33 = vld [vmem:[%s9630_s4 + $0x10] sm:$0xff] }
 0x20f   :  { %v1172_v44 = vmul.f32 %v9808_v29, %v1143_v59  ;;  %v1173_v31 = vmul.f32 %v9809_v49, %v1146_v35  ;;  %6085 = vmatprep.subr.bf16.mxu0 %v6084_v38  ;;  %v1289_v16 = vrot.slane %v5934_v43, %v6894_v12  ;;  %v9811_v36 = vrot.slane %v7265_v34, %v6896_v14 }
 0x210   :  { %v1215_v11 = vmul.f32 %v9810_v19, %v1188_v30  ;;  %v9812_v4 = vrot.slane %v7286_v26, %v6896_v14  ;;  %6131 = vmatpush1.bf16.msra.mxu1 %v6130_v54  ;;  %v9813_v63 = vrot.slane %v7265_v34, %v6903_v61  ;;  %v1231_v15 = vsel %vm1230_vm11, %v9799_v37, %v1229_v13 }
 0x211   :  { %v1214_v27 = vmul.f32 %v9811_v36, %v1189_v20  ;;  %v6134_v46 = vpack.c.bf16 %v1172_v44, %v1128_v51  ;;  %v6132_v25 = vpack.c.bf16 %v1173_v31, %v1129_v58  ;;  %v1234_v55 = vsel %vm1230_vm11, %v1229_v13, %v9806_v22  ;;  %6087 = vmatpush1.bf16.msra.mxu0 %v6086_v52  ;;  %v1603_v13 = vld [vmem:[%s9633_s6] sm:$0xff] }
 0x212   :  { %v1258_v5 = vmul.f32 %v9812_v4, %v1233_v48  ;;  %v1216_v8 = vmul.f32 %v9813_v63, %v1187_v53  ;;  %v6088_v18 = vpack.c.bf16 %v1259_v41, %v1215_v11  ;;  %v9814_v24 = vrot.slane %v7265_v34, %v6901_v56  ;;  %v1271_v34 = vpop.permute.xlu1 %1270 }
 0x213   :  { %vm1274_vm10 = vcmp.lt.s32.totalorder %v6885_v6, 94  ;;  %v9815_v0 = vrot.slane %v7286_v26, %v6903_v61  ;;  %v9816_v32 = vrot.slane %v7286_v26, %v6901_v56  ;;  %6133 = vmatprep.subr.bf16.mxu1 %v6132_v25  ;;  %v1285_v10 = vrot.slane %v5934_v43, %v6896_v14 }
 0x214   :  { %v1217_v60 = vmul.f32 %v9814_v24, %v1190_v45  ;;  %6089 = vmatprep.subr.bf16.mxu0 %v6088_v18  ;;  %v6090_v40 = vpack.c.bf16 %v1258_v5, %v1214_v27  ;;  %6135 = vmatpush1.bf16.msra.mxu1 %v6134_v46  ;;  %v1277_v39 = vsel %vm1274_vm10, %v1267_v2, %v1269_v57 }
 0x215   :  { %v1260_v9 = vmul.f32 %v9815_v0, %v1231_v15  ;;  %v1261_v50 = vmul.f32 %v9816_v32, %v1234_v55  ;;  %v1276_v21 = vsel %vm1274_vm10, %v1269_v57, %v1271_v34  ;;  %v1293_v26 = vrot.slane %v5934_v43, %v6903_v61 }
 0x216   :  { %6091 = vmatpush1.bf16.msra.mxu0 %v6090_v40  ;;  %v1303_v28 = vmul.f32 %v1289_v16, %v1276_v21  ;;  %v1297_v23 = vrot.slane %v5934_v43, %v6901_v56  ;;  %v1302_v7 = vmul.f32 %v1285_v10, %v1277_v39  ;;  %v1273_v51 = vpop.permute.xlu1 %1272  ;;  %v1644_v21 = vld [vmem:[%s9632_s1] sm:$0xf] }
 0x217   :  { %v6138_v37 = vpack.c.bf16 %v1260_v9, %v1216_v8  ;;  %v6136_v17 = vpack.c.bf16 %v1261_v50, %v1217_v60  ;;  %v1275_v58 = vsel %vm1274_vm10, %v1271_v34, %v1273_v51  ;;  %v1278_v38 = vsel %vm1274_vm10, %v1273_v51, %v1267_v2  ;;  %v1366_v20 = vpop.permute.xlu0 %1365  ;;  %v1607_v8 = vld [vmem:[%s9634_s7] sm:$0xff] }
 0x218   :  { %1420 = vmatprep.subr.mxu0 %v1303_v28  ;;  %v1304_v62 = vmul.f32 %v1293_v26, %v1275_v58  ;;  %v1305_v30 = vmul.f32 %v1297_v23, %v1278_v38  ;;  %v5939_v26 = vld [vmem:[%s9632_s1 + $0x4] sm:$0xf] }
 0x219   :  { %6137 = vmatprep.subr.bf16.mxu1 %v6136_v17  ;;  %v1695_v51 = vrot.slane %v5939_v26, %v6894_v12 }
 0x21a   :  { %6139 = vmatpush1.bf16.msra.mxu1 %v6138_v37  ;;  %1421 = vmatpush1.msra.mxu0 %v1302_v7  ;;  %v1653_v7 = vrot.slane %v1644_v21, %v6894_v12 }
 0x21b   :  { %1437 = vmatmul.mubr.f32.vlgmr.msra.gmra.mrb[2].mxu0 %v1310_v3  ;;  %1555 = vmatprep.subr.mxu1 %v1305_v30  ;;  %v1691_v30 = vrot.slane %v5939_v26, %v6896_v14 }
 0x21e   :  { %1556 = vmatpush1.msra.mxu1 %v1304_v62 }
 0x21f   :  { %1572 = vmatmul.mubr.f32.vlgmr.msra.gmra.mrb[2].mxu1 %v5936_v33  ;;  %v1502_v1 = vpop.permute.xlu1 %1501 }
 0x2ee   :  { %v1438_v54 = vpop.f32.mrb[2].mxu0 }
 0x2ef   :  { %v1439_v57 = vadd.f32 %v1438_v54, %v1366_v20  ;;  %v1440_v47 = vpop.f32.mrb[3].mxu0  ;;  %v1649_v54 = vrot.slane %v1644_v21, %v6896_v14 }
 0x2f0   :  { %v1441_v22 = vadd.f32 %v1440_v47, %v1366_v20 }
 0x2f1   :  { %v1589_v48 = vmul.f32 %v1439_v57, %v1439_v57 }
 0x2f2   :  { %v1573_v42 = vpop.f32.mrb[2].mxu1  ;;  %v1584_v41 = vadd.f32 %v1441_v22, %v1439_v57  ;;  %v1590_v59 = vmul.f32 %v1441_v22, %v1441_v22 }
 0x2f3   :  { %v1574_v35 = vadd.f32 %v1573_v42, %v1502_v1  ;;  %v1575_v53 = vpop.f32.mrb[3].mxu1 }
 0x2f4   :  { %v1576_v29 = vadd.f32 %v1575_v53, %v1502_v1  ;;  %v1593_v44 = vadd.f32 %v1590_v59, %v1589_v48  ;;  %v1657_v59 = vrot.slane %v1644_v21, %v6903_v61 }
 0x2f5   :  { %v1585_v49 = vadd.f32 %v1584_v41, %v1574_v35  ;;  %v1591_v31 = vmul.f32 %v1574_v35, %v1574_v35  ;;  %v1703_v41 = vrot.slane %v5939_v26, %v6901_v56 }
 0x2f6   :  { %v1592_v43 = vmul.f32 %v1576_v29, %v1576_v29 }
 0x2f7   :  { %v1586_v52 = vadd.f32 %v1585_v49, %v1576_v29  ;;  %v1594_v19 = vadd.f32 %v1593_v44, %v1591_v31 }
 0x2f9   :  { %1587 = vadd.xlane.f32.xlu0 %v1586_v52  ;;  %v1595_v11 = vadd.f32 %v1594_v19, %v1592_v43 }
 0x2fb   :  { %1596 = vadd.xlane.f32.xlu1 %v1595_v11 }
 0x386   :  { %v1588_v45 = vpop.xlane.xlu0 %1587 }
 0x387   :  { %v1599_v16 = vmul.f32 0.001953125, %v1588_v45 }
 0x388   :  { %v1597_v36 = vpop.xlane.xlu1 %1596 }
 0x389   :  { %v1601_v27 = vmul.f32 %v1599_v16, %v1599_v16  ;;  %v1600_v4 = vmul.f32 0.001953125, %v1597_v36 }
 0x38b   :  { %v1602_v5 = vsub.f32 %v1600_v4, %v1601_v27  ;;  %v5940_v4 = vld [vmem:[%s9632_s1 + $0x8] sm:$0xf] }
 0x38d   :  { %v1604_v46 = vadd.f32 1e-05, %v1602_v5  ;;  %v5941_v5 = vld [vmem:[%s9632_s1 + $0xc] sm:$0xf] }
 0x38f   :  { %6458 = vrsqrt.f32 %v1604_v46 }
 0x399   :  { %v6459_v25 = vpop.eup %6458 }
 0x39a   :  { %v1606_v63 = vmul.f32 %v6459_v25, %v1603_v13 }
 0x39c   :  { %1612 = vperm.xlu0 %6454, %v1606_v63   ;;  %v1608_v15 = vmul.f32 %v1606_v63, %v1599_v16 }
 0x39e   :  { %v1609_v55 = vsub.f32 %v1607_v8, %v1608_v15  ;;  %v1737_v8 = vrot.slane %v5940_v4, %v6894_v12  ;;  %v1779_v15 = vrot.slane %v5941_v5, %v6894_v12 }
 0x3a0   :  { %1621 = vperm.xlu1 %6455, %v1609_v55  }
 0x41b   :  { %v1613_v18 = vpop.permute.xlu0 %1612 }
 0x41c   :  { %v1615_v24 = vmul.f32 %v1613_v18, %v1439_v57  ;;  %v1616_v60 = vmul.f32 %v1613_v18, %v1441_v22  ;;  %v1618_v40 = vmul.f32 %v1613_v18, %v1576_v29  ;;  %v1617_v37 = vmul.f32 %v1613_v18, %v1574_v35 }
 0x41d   :  { %v1699_v22 = vrot.slane %v5939_v26, %v6903_v61  ;;  %v1661_v29 = vrot.slane %v1644_v21, %v6901_v56  ;;  %v1783_v21 = vrot.slane %v5941_v5, %v6903_v61 }
 0x41f   :  { %v1622_v2 = vpop.permute.xlu1 %1621 }
 0x420   :  { %v1624_v0 = vadd.f32 %v1622_v2, %v1615_v24  ;;  %v1625_v9 = vadd.f32 %v1622_v2, %v1616_v60  ;;  %v1627_v10 = vadd.f32 %v1622_v2, %v1618_v40  ;;  %v1626_v34 = vadd.f32 %v1622_v2, %v1617_v37 }
 0x421   :  { %v1733_v40 = vrot.slane %v5940_v4, %v6896_v14 }
 0x422   :  { %v7817_v32 = vmax.f32 %v1624_v0, 0.0  ;;  %v7819_v50 = vmax.f32 %v1625_v9, 0.0  ;;  %v7829_v17 = vmax.f32 %v1627_v10, 0.0  ;;  %v7835_v39 = vmax.f32 %v1626_v34, 0.0 }
 0x423   :  { %v1775_v9 = vrot.slane %v5941_v5, %v6896_v14 }
 0x424   :  { %1634 = vrot.lane.b32.xlu1 %v7819_v50, %s9717_s2  ;;  %1632 = vrot.lane.b32.xlu0 %v7817_v32, %s9717_s2 }
 0x428   :  { %1676 = vrot.lane.b32.xlu1 %v7819_v50, %s9715_s0  ;;  %1674 = vrot.lane.b32.xlu0 %v7817_v32, %s9715_s0 }
 0x42c   :  { %1680 = vrot.lane.b32.xlu1 %v7829_v17, %s9715_s0  ;;  %1638 = vrot.lane.b32.xlu0 %v7829_v17, %s9717_s2 }
 0x430   :  { %1678 = vrot.lane.b32.xlu1 %v7835_v39, %s9715_s0  ;;  %1636 = vrot.lane.b32.xlu0 %v7835_v39, %s9717_s2 }
 0x434   :  { %1718 = vrot.lane.b32.xlu1 %v7819_v50, %s9713_s3  ;;  %1716 = vrot.lane.b32.xlu0 %v7817_v32, %s9713_s3 }
 0x438   :  { %1760 = vrot.lane.b32.xlu1 %v7819_v50, %s9711_s21  ;;  %1758 = vrot.lane.b32.xlu0 %v7817_v32, %s9711_s21 }
 0x43c   :  { %1764 = vrot.lane.b32.xlu1 %v7829_v17, %s9711_s21  ;;  %1722 = vrot.lane.b32.xlu0 %v7829_v17, %s9713_s3 }
 0x440   :  { %1762 = vrot.lane.b32.xlu1 %v7835_v39, %s9711_s21  ;;  %1720 = vrot.lane.b32.xlu0 %v7835_v39, %s9713_s3 }
 0x444   :  { %1802 = vrot.lane.b32.xlu1 %v7819_v50, %s9709_s24  ;;  %1800 = vrot.lane.b32.xlu0 %v7817_v32, %s9709_s24 }
 0x448   :  { %1844 = vrot.lane.b32.xlu1 %v7819_v50, %s9707_s22  ;;  %1842 = vrot.lane.b32.xlu0 %v7817_v32, %s9707_s22 }
 0x44c   :  { %1848 = vrot.lane.b32.xlu1 %v7829_v17, %s9707_s22  ;;  %1806 = vrot.lane.b32.xlu0 %v7829_v17, %s9709_s24 }
 0x450   :  { %1846 = vrot.lane.b32.xlu1 %v7835_v39, %s9707_s22  ;;  %1804 = vrot.lane.b32.xlu0 %v7835_v39, %s9709_s24 }
 0x454   :  { %1886 = vrot.lane.b32.xlu1 %v7819_v50, %s9705_s28  ;;  %1884 = vrot.lane.b32.xlu0 %v7817_v32, %s9705_s28 }
 0x458   :  { %1928 = vrot.lane.b32.xlu1 %v7819_v50, %s9703_s23  ;;  %1926 = vrot.lane.b32.xlu0 %v7817_v32, %s9703_s23 }
 0x45c   :  { %1932 = vrot.lane.b32.xlu1 %v7829_v17, %s9703_s23  ;;  %1890 = vrot.lane.b32.xlu0 %v7829_v17, %s9705_s28 }
 0x460   :  { %1930 = vrot.lane.b32.xlu1 %v7835_v39, %s9703_s23  ;;  %1888 = vrot.lane.b32.xlu0 %v7835_v39, %s9705_s28 }
 0x464   :  { %1970 = vrot.lane.b32.xlu1 %v7819_v50, %s9699_s11  ;;  %1968 = vrot.lane.b32.xlu0 %v7817_v32, %s9699_s11 }
 0x468   :  { %2012 = vrot.lane.b32.xlu1 %v7819_v50, %s9697_s25  ;;  %2010 = vrot.lane.b32.xlu0 %v7817_v32, %s9697_s25 }
 0x46c   :  { %2016 = vrot.lane.b32.xlu1 %v7829_v17, %s9697_s25  ;;  %1974 = vrot.lane.b32.xlu0 %v7829_v17, %s9699_s11 }
 0x470   :  { %2014 = vrot.lane.b32.xlu1 %v7835_v39, %s9697_s25  ;;  %1972 = vrot.lane.b32.xlu0 %v7835_v39, %s9699_s11  ;;  %s9829_s25 = smov 94   ;;  %s9863_s11 = smov 127  }
 0x474   :  { %2054 = vrot.lane.b32.xlu1 %v7819_v50, %s9695_s14  ;;  %2052 = vrot.lane.b32.xlu0 %v7817_v32, %s9695_s14 }
 0x478   :  { %2096 = vrot.lane.b32.xlu1 %v7819_v50, %s9693_s26  ;;  %2094 = vrot.lane.b32.xlu0 %v7817_v32, %s9693_s26 }
 0x47c   :  { %2100 = vrot.lane.b32.xlu1 %v7829_v17, %s9693_s26  ;;  %2058 = vrot.lane.b32.xlu0 %v7829_v17, %s9695_s14 }
 0x480   :  { %2098 = vrot.lane.b32.xlu1 %v7835_v39, %s9693_s26  ;;  %2056 = vrot.lane.b32.xlu0 %v7835_v39, %s9695_s14  ;;  %s9861_s26 = smov 2   ;;  %s9864_s14 = smov 126  }
 0x484   :  { %2170 = vrot.lane.b32.xlu1 %v7835_v39, %s9691_s27  ;;  %2168 = vrot.lane.b32.xlu0 %v7819_v50, %s9691_s27 }
 0x488   :  { %2172 = vrot.lane.b32.xlu1 %v7829_v17, %s9691_s27  ;;  %2166 = vrot.lane.b32.xlu0 %v7817_v32, %s9691_s27  ;;  %s9862_s27 = smov 1  }
 0x48c   :  { %2212 = vrot.lane.b32.xlu1 %v7835_v39, %s9687_s29  ;;  %2210 = vrot.lane.b32.xlu0 %v7819_v50, %s9687_s29 }
 0x490   :  { %2254 = vrot.lane.b32.xlu1 %v7835_v39, %s9685_s30  ;;  %2252 = vrot.lane.b32.xlu0 %v7819_v50, %s9685_s30 }
 0x494   :  { %2250 = vrot.lane.b32.xlu1 %v7817_v32, %s9685_s30  ;;  %2208 = vrot.lane.b32.xlu0 %v7817_v32, %s9687_s29 }
 0x496   :  { %v1635_v28 = vpop.permute.xlu1 %1634  ;;  %v1633_v23 = vpop.permute.xlu0 %1632 }
 0x497   :  { %v1642_v3 = vsel %vm232_vm3, %v1633_v23, %v1635_v28 }
 0x498   :  { %2256 = vrot.lane.b32.xlu1 %v7829_v17, %s9685_s30  ;;  %2214 = vrot.lane.b32.xlu0 %v7829_v17, %s9687_s29  ;;  %v1667_v33 = vmul.f32 %v1653_v7, %v1642_v3  ;;  %v1741_v7 = vrot.slane %v5940_v4, %v6903_v61  ;;  %s9823_s29 = smov 96   ;;  %s9865_s30 = smov 114  }
 0x49a   :  { %v1677_v58 = vpop.permute.xlu1 %1676  ;;  %v1675_v38 = vpop.permute.xlu0 %1674 }
 0x49b   :  { %v1684_v62 = vsel %vm275_vm4, %v1675_v38, %v1677_v58 }
 0x49c   :  { %v1709_v20 = vmul.f32 %v1695_v51, %v1684_v62  ;;  %2296 = vrot.lane.b32.xlu1 %v7835_v39, %s9683_s12  ;;  %2294 = vrot.lane.b32.xlu0 %v7819_v50, %s9683_s12 }
 0x49e   :  { %v1681_v57 = vpop.permute.xlu1 %1680  ;;  %v1639_v47 = vpop.permute.xlu0 %1638  ;;  %v6140_v1 = vpack.c.bf16 %v1709_v20, %v1667_v33 }
 0x49f   :  { %v1685_v48 = vsel %vm275_vm4, %v1681_v57, %v1675_v38  ;;  %v1643_v42 = vsel %vm232_vm3, %v1639_v47, %v1633_v23  ;;  %v1787_v23 = vrot.slane %v5941_v5, %v6901_v56 }
 0x4a0   :  { %v1708_v35 = vmul.f32 %v1691_v30, %v1685_v48  ;;  %v1666_v53 = vmul.f32 %v1649_v54, %v1643_v42  ;;  %2338 = vrot.lane.b32.xlu1 %v7835_v39, %s9817_s17  ;;  %2336 = vrot.lane.b32.xlu0 %v7819_v50, %s9817_s17  ;;  %v5942_v42 = vld [vmem:[%s9632_s1 + $0x10] sm:$0xf] }
 0x4a1   :  { %6141 = vmatprep.subr.bf16.mxu0 %v6140_v1 }
 0x4a2   :  { %v6142_v44 = vpack.c.bf16 %v1708_v35, %v1666_v53  ;;  %v1679_v49 = vpop.permute.xlu1 %1678  ;;  %v1637_v31 = vpop.permute.xlu0 %1636 }
 0x4a3   :  { %v1682_v43 = vsel %vm275_vm4, %v1679_v49, %v1681_v57  ;;  %v1683_v52 = vsel %vm275_vm4, %v1677_v58, %v1679_v49  ;;  %v1640_v19 = vsel %vm232_vm3, %v1637_v31, %v1639_v47  ;;  %v1641_v11 = vsel %vm232_vm3, %v1635_v28, %v1637_v31 }
 0x4a4   :  { %v1710_v45 = vmul.f32 %v1699_v22, %v1683_v52  ;;  %v1711_v16 = vmul.f32 %v1703_v41, %v1682_v43  ;;  %v1668_v36 = vmul.f32 %v1657_v59, %v1641_v11  ;;  %v1669_v27 = vmul.f32 %v1661_v29, %v1640_v19  ;;  %2334 = vrot.lane.b32.xlu1 %v7817_v32, %s9817_s17  ;;  %v5943_v41 = vld [vmem:[%s9632_s1 + $0x14] sm:$0xf] }
 0x4a5   :  { %2292 = vrot.lane.b32.xlu0 %v7817_v32, %s9683_s12  ;;  %6143 = vmatpush1.bf16.msra.mxu0 %v6142_v44  ;;  %v1745_v58 = vrot.slane %v5940_v4, %v6901_v56  ;;  %v1821_v44 = vrot.slane %v5942_v42, %v6894_v12  ;;  %v1863_v49 = vrot.slane %v5943_v41, %v6894_v12 }
 0x4a6   :  { %v6190_v46 = vpack.c.bf16 %v1710_v45, %v1668_v36  ;;  %v1719_v13 = vpop.permute.xlu1 %1718  ;;  %v1717_v25 = vpop.permute.xlu0 %1716  ;;  %v6188_v63 = vpack.c.bf16 %v1711_v16, %v1669_v27  ;;  %v1859_v16 = vrot.slane %v5943_v41, %v6896_v14  ;;  %v1817_v36 = vrot.slane %v5942_v42, %v6896_v14 }
 0x4a7   :  { %v1726_v55 = vsel %vm319_vm5, %v1717_v25, %v1719_v13 }
 0x4a8   :  { %2340 = vrot.lane.b32.xlu1 %v7829_v17, %s9817_s17  ;;  %6189 = vmatprep.subr.bf16.mxu1 %v6188_v63  ;;  %v1751_v2 = vmul.f32 %v1737_v8, %v1726_v55  ;;  %v1871_v63 = vrot.slane %v5943_v41, %v6901_v56  ;;  %v1825_v8 = vrot.slane %v5942_v42, %v6903_v61 }
 0x4a9   :  { %2298 = vrot.lane.b32.xlu0 %v7829_v17, %s9683_s12  ;;  %6191 = vmatpush1.bf16.msra.mxu1 %v6190_v46  ;;  %s9820_s12 = smov 98   ;;  %v1867_v46 = vrot.slane %v5943_v41, %v6903_v61 }
 0x4aa   :  { %v1761_v18 = vpop.permute.xlu1 %1760  ;;  %v1759_v24 = vpop.permute.xlu0 %1758 }
 0x4ab   :  { %v1768_v60 = vsel %vm9702_vm6, %v1759_v24, %v1761_v18 }
 0x4ac   :  { %v1793_v0 = vmul.f32 %v1779_v15, %v1768_v60  ;;  %2380 = vrot.lane.b32.xlu1 %v7835_v39, %s9818_s15 }
 0x4ad   :  { %2378 = vrot.lane.b32.xlu0 %v7819_v50, %s9818_s15 }
 0x4ae   :  { %v1765_v10 = vpop.permute.xlu1 %1764  ;;  %v1723_v37 = vpop.permute.xlu0 %1722  ;;  %v6144_v34 = vpack.c.bf16 %v1793_v0, %v1751_v2 }
 0x4af   :  { %v1769_v26 = vsel %vm9702_vm6, %v1765_v10, %v1759_v24  ;;  %v1727_v28 = vsel %vm319_vm5, %v1723_v37, %v1717_v25 }
 0x4b0   :  { %v1792_v51 = vmul.f32 %v1775_v9, %v1769_v26  ;;  %v1750_v3 = vmul.f32 %v1733_v40, %v1727_v28  ;;  %2422 = vrot.lane.b32.xlu1 %v7835_v39, %s9819_s16  ;;  %6145 = vmatprep.subr.bf16.mxu0 %v6144_v34  ;;  %v5944_v28 = vld [vmem:[%s9632_s1 + $0x18] sm:$0xf] }
 0x4b1   :  { %2420 = vrot.lane.b32.xlu0 %v7819_v50, %s9819_s16 }
 0x4b2   :  { %v6146_v38 = vpack.c.bf16 %v1792_v51, %v1750_v3  ;;  %v1763_v62 = vpop.permute.xlu1 %1762  ;;  %v1721_v30 = vpop.permute.xlu0 %1720 }
 0x4b3   :  { %v1766_v33 = vsel %vm9702_vm6, %v1763_v62, %v1765_v10  ;;  %v1767_v20 = vsel %vm9702_vm6, %v1761_v18, %v1763_v62  ;;  %v1724_v54 = vsel %vm319_vm5, %v1721_v30, %v1723_v37  ;;  %v1725_v57 = vsel %vm319_vm5, %v1719_v13, %v1721_v30 }
 0x4b4   :  { %v1794_v47 = vmul.f32 %v1783_v21, %v1767_v20  ;;  %v1795_v1 = vmul.f32 %v1787_v23, %v1766_v33  ;;  %v1752_v22 = vmul.f32 %v1741_v7, %v1725_v57  ;;  %v1753_v48 = vmul.f32 %v1745_v58, %v1724_v54  ;;  %2418 = vrot.lane.b32.xlu1 %v7817_v32, %s9819_s16  ;;  %v5945_v23 = vld [vmem:[%s9632_s1 + $0x1c] sm:$0xf] }
 0x4b5   :  { %2376 = vrot.lane.b32.xlu0 %v7817_v32, %s9818_s15  ;;  %6147 = vmatpush1.bf16.msra.mxu0 %v6146_v38  ;;  %v1829_v18 = vrot.slane %v5942_v42, %v6901_v56  ;;  %v1905_v38 = vrot.slane %v5944_v28, %v6894_v12  ;;  %v1947_v62 = vrot.slane %v5945_v23, %v6894_v12 }
 0x4b6   :  { %v6194_v59 = vpack.c.bf16 %v1794_v47, %v1752_v22  ;;  %v1803_v35 = vpop.permute.xlu1 %1802  ;;  %v1801_v53 = vpop.permute.xlu0 %1800  ;;  %v6192_v29 = vpack.c.bf16 %v1795_v1, %v1753_v48  ;;  %v1943_v1 = vrot.slane %v5945_v23, %v6896_v14  ;;  %v1901_v22 = vrot.slane %v5944_v28, %v6896_v14 }
 0x4b7   :  { %v1810_v31 = vsel %vm9690_vm7, %v1801_v53, %v1803_v35 }
 0x4b8   :  { %2424 = vrot.lane.b32.xlu1 %v7829_v17, %s9819_s16  ;;  %6193 = vmatprep.subr.bf16.mxu1 %v6192_v29  ;;  %v1835_v11 = vmul.f32 %v1821_v44, %v1810_v31  ;;  %v1955_v29 = vrot.slane %v5945_v23, %v6901_v56  ;;  %v1909_v44 = vrot.slane %v5944_v28, %v6903_v61 }
 0x4b9   :  { %2382 = vrot.lane.b32.xlu0 %v7829_v17, %s9818_s15  ;;  %6195 = vmatpush1.bf16.msra.mxu1 %v6194_v59  ;;  %v1951_v59 = vrot.slane %v5945_v23, %v6903_v61 }
 0x4ba   :  { %v1845_v43 = vpop.permute.xlu1 %1844  ;;  %v1843_v52 = vpop.permute.xlu0 %1842 }
 0x4bb   :  { %v1852_v19 = vsel %vm9689_vm8, %v1843_v52, %v1845_v43 }
 0x4bc   :  { %v1877_v45 = vmul.f32 %v1863_v49, %v1852_v19  ;;  %2464 = vrot.lane.b32.xlu1 %v7835_v39, %s9820_s12 }
 0x4bd   :  { %2462 = vrot.lane.b32.xlu0 %v7819_v50, %s9820_s12 }
 0x4be   :  { %v1849_v27 = vpop.permute.xlu1 %1848  ;;  %v1807_v4 = vpop.permute.xlu0 %1806  ;;  %v6148_v5 = vpack.c.bf16 %v1877_v45, %v1835_v11 }
 0x4bf   :  { %v1853_v13 = vsel %vm9689_vm8, %v1849_v27, %v1843_v52  ;;  %v1811_v25 = vsel %vm9690_vm7, %v1807_v4, %v1801_v53 }
 0x4c0   :  { %v1876_v15 = vmul.f32 %v1859_v16, %v1853_v13  ;;  %v1834_v55 = vmul.f32 %v1817_v36, %v1811_v25  ;;  %2506 = vrot.lane.b32.xlu1 %v7835_v39, %s9821_s18  ;;  %6149 = vmatprep.subr.bf16.mxu0 %v6148_v5  ;;  %v5946_v25 = vld [vmem:[%s9632_s1 + $0x20] sm:$0xf] }
 0x4c1   :  { %2504 = vrot.lane.b32.xlu0 %v7819_v50, %s9821_s18 }
 0x4c2   :  { %v6150_v24 = vpack.c.bf16 %v1876_v15, %v1834_v55  ;;  %v1847_v60 = vpop.permute.xlu1 %1846  ;;  %v1805_v2 = vpop.permute.xlu0 %1804 }
 0x4c3   :  { %v1850_v0 = vsel %vm9689_vm8, %v1847_v60, %v1849_v27  ;;  %v1851_v9 = vsel %vm9689_vm8, %v1845_v43, %v1847_v60  ;;  %v1808_v40 = vsel %vm9690_vm7, %v1805_v2, %v1807_v4  ;;  %v1809_v10 = vsel %vm9690_vm7, %v1803_v35, %v1805_v2  ;;  %v5968_v60 = vld [vmem:[%s9630_s4 + $0x38] sm:$0xff] }
 0x4c4   :  { %v1878_v37 = vmul.f32 %v1867_v46, %v1851_v9  ;;  %v1879_v34 = vmul.f32 %v1871_v63, %v1850_v0  ;;  %v1836_v21 = vmul.f32 %v1825_v8, %v1809_v10  ;;  %v1837_v26 = vmul.f32 %v1829_v18, %v1808_v40  ;;  %2502 = vrot.lane.b32.xlu1 %v7817_v32, %s9821_s18  ;;  %v5947_v63 = vld [vmem:[%s9632_s1 + $0x24] sm:$0xf] }
 0x4c5   :  { %2460 = vrot.lane.b32.xlu0 %v7817_v32, %s9820_s12  ;;  %6151 = vmatpush1.bf16.msra.mxu0 %v6150_v24  ;;  %vm9822_vm8 = vcmp.lt.s32.totalorder %v6885_v6, 16  ;;  %v1913_v43 = vrot.slane %v5944_v28, %v6901_v56  ;;  %v5964_v24 = vld [vmem:[%s9630_s4 + $0x28] sm:$0xff]  ;;  %v1989_v2 = vrot.slane %v5946_v25, %v6894_v12  ;;  %v2031_v0 = vrot.slane %v5947_v63, %v6894_v12 }
 0x4c6   :  { %v6198_v7 = vpack.c.bf16 %v1878_v37, %v1836_v21  ;;  %v1887_v51 = vpop.permute.xlu1 %1886  ;;  %v1885_v3 = vpop.permute.xlu0 %1884  ;;  %v6196_v58 = vpack.c.bf16 %v1879_v34, %v1837_v26  ;;  %vm9824_vm7 = vmmov %vm9822_vm8  ;;  %v2027_v26 = vrot.slane %v5947_v63, %v6896_v14  ;;  %v1985_v28 = vrot.slane %v5946_v25, %v6896_v14 }
 0x4c7   :  { %v1894_v30 = vsel %vm9701_vm9, %v1885_v3, %v1887_v51 }
 0x4c8   :  { %2508 = vrot.lane.b32.xlu1 %v7829_v17, %s9821_s18  ;;  %6197 = vmatprep.subr.bf16.mxu1 %v6196_v58  ;;  %v1919_v57 = vmul.f32 %v1905_v38, %v1894_v30  ;;  %v1993_v30 = vrot.slane %v5946_v25, %v6903_v61 }
 0x4c9   :  { %2466 = vrot.lane.b32.xlu0 %v7829_v17, %s9820_s12  ;;  %6199 = vmatpush1.bf16.msra.mxu1 %v6198_v7 }
 0x4ca   :  { %v1929_v33 = vpop.permute.xlu1 %1928  ;;  %v1927_v20 = vpop.permute.xlu0 %1926 }
 0x4cb   :  { %v1936_v54 = vsel %vm9822_vm8, %v1927_v20, %v1929_v33  ;;  %vm9825_vm8 = vmmov %vm9824_vm7 }
 0x4cc   :  { %v1961_v47 = vmul.f32 %v1947_v62, %v1936_v54  ;;  %2548 = vrot.lane.b32.xlu1 %v7835_v39, %s9823_s29  ;;  %v2039_v62 = vrot.slane %v5947_v63, %v6901_v56  ;;  %v1997_v54 = vrot.slane %v5946_v25, %v6901_v56 }
 0x4cd   :  { %2546 = vrot.lane.b32.xlu0 %v7819_v50, %s9823_s29 }
 0x4ce   :  { %v1933_v48 = vpop.permute.xlu1 %1932  ;;  %v1891_v42 = vpop.permute.xlu0 %1890  ;;  %v6152_v41 = vpack.c.bf16 %v1961_v47, %v1919_v57  ;;  %v5969_v57 = vld [vmem:[%s9631_s5 + $0x8] sm:$0xff] }
 0x4cf   :  { %v1937_v35 = vsel %vm9824_vm7, %v1933_v48, %v1927_v20  ;;  %v1895_v53 = vsel %vm9701_vm9, %v1891_v42, %v1885_v3  ;;  %v2035_v3 = vrot.slane %v5947_v63, %v6903_v61 }
 0x4d0   :  { %v1960_v49 = vmul.f32 %v1943_v1, %v1937_v35  ;;  %v1918_v31 = vmul.f32 %v1901_v22, %v1895_v53  ;;  %2590 = vrot.lane.b32.xlu1 %v7835_v39, %s9719_s20  ;;  %6153 = vmatprep.subr.bf16.mxu0 %v6152_v41 }
 0x4d1   :  { %2588 = vrot.lane.b32.xlu0 %v7819_v50, %s9719_s20 }
 0x4d2   :  { %v6154_v52 = vpack.c.bf16 %v1960_v49, %v1918_v31  ;;  %v1931_v19 = vpop.permute.xlu1 %1930  ;;  %v1889_v11 = vpop.permute.xlu0 %1888  ;;  %v5948_v49 = vld [vmem:[%s9632_s1 + $0x28] sm:$0xf]  ;;  %v5949_v31 = vld [vmem:[%s9632_s1 + $0x2c] sm:$0xf] }
 0x4d3   :  { %v1934_v45 = vsel %vm9824_vm7, %v1931_v19, %v1933_v48  ;;  %v1935_v16 = vsel %vm9825_vm8, %v1929_v33, %v1931_v19  ;;  %v1892_v36 = vsel %vm9701_vm9, %v1889_v11, %v1891_v42  ;;  %v1893_v27 = vsel %vm9701_vm9, %v1887_v51, %v1889_v11 }
 0x4d4   :  { %v1962_v4 = vmul.f32 %v1951_v59, %v1935_v16  ;;  %v1963_v5 = vmul.f32 %v1955_v29, %v1934_v45  ;;  %v1920_v46 = vmul.f32 %v1909_v44, %v1893_v27  ;;  %v1921_v13 = vmul.f32 %v1913_v43, %v1892_v36  ;;  %2586 = vrot.lane.b32.xlu1 %v7817_v32, %s9719_s20 }
 0x4d5   :  { %2544 = vrot.lane.b32.xlu0 %v7817_v32, %s9823_s29  ;;  %6155 = vmatpush1.bf16.msra.mxu0 %v6154_v52  ;;  %vm9826_vm7 = vcmask 588800   ;;  %vm9827_vm8 = vcmp.lt.s32.totalorder %v6885_v6, 15  ;;  %vm9828_vm9 = vcmp.lt.s32.totalorder %v6885_v6, 14  ;;  %v2073_v45 = vrot.slane %v5948_v49, %v6894_v12 }
 0x4d6   :  { %v6202_v8 = vpack.c.bf16 %v1962_v4, %v1920_v46  ;;  %v1971_v15 = vpop.permute.xlu1 %1970  ;;  %v1969_v55 = vpop.permute.xlu0 %1968  ;;  %v6200_v18 = vpack.c.bf16 %v1963_v5, %v1921_v13  ;;  %5966 = vmatprep.mubr.msk.f32.mxu0 %vm9826_vm7, %v5964_v24  ;;  %5970 = vmatprep.mubr.msk.f32.mxu1 %vm9826_vm7, %v5968_v60  ;;  %v2115_v16 = vrot.slane %v5949_v31, %v6894_v12 }
 0x4d7   :  { %v1978_v9 = vsel %vm9827_vm8, %v1969_v55, %v1971_v15  ;;  %vm9830_vm8 = vmmov %vm9828_vm9  ;;  %v2111_v25 = vrot.slane %v5949_v31, %v6896_v14  ;;  %v2069_v63 = vrot.slane %v5948_v49, %v6896_v14  ;;  %v2119_v60 = vrot.slane %v5949_v31, %v6903_v61 }
 0x4d8   :  { %2592 = vrot.lane.b32.xlu1 %v7829_v17, %s9719_s20  ;;  %6201 = vmatprep.subr.bf16.mxu1 %v6200_v18  ;;  %v2003_v34 = vmul.f32 %v1989_v2, %v1978_v9  ;;  %vm9832_vm7 = vmmov %vm9830_vm8  ;;  %v2123_v2 = vrot.slane %v5949_v31, %v6901_v56  ;;  %v5950_v9 = vld [vmem:[%s9632_s1 + $0x30] sm:$0xf] }
 0x4d9   :  { %2550 = vrot.lane.b32.xlu0 %v7829_v17, %s9823_s29  ;;  %6203 = vmatpush1.bf16.msra.mxu1 %v6202_v8 }
 0x4da   :  { %v2013_v40 = vpop.permute.xlu1 %2012  ;;  %v2011_v10 = vpop.permute.xlu0 %2010 }
 0x4db   :  { %v2020_v37 = vsel %vm9828_vm9, %v2011_v10, %v2013_v40  ;;  %vm9831_vm9 = vcmp.lt.s32.totalorder %v6885_v6, 15 }
 0x4dc   :  { %v2045_v21 = vmul.f32 %v2031_v0, %v2020_v37  ;;  %2632 = vrot.lane.b32.xlu1 %v7835_v39, %s9829_s25  ;;  %vm9834_vm6 = vmmov %vm9831_vm9  ;;  %v5951_v0 = vld [vmem:[%s9632_s1 + $0x34] sm:$0xf]  ;;  %v2077_v37 = vrot.slane %v5948_v49, %v6903_v61 }
 0x4dd   :  { %2630 = vrot.lane.b32.xlu0 %v7819_v50, %s9829_s25 }
 0x4de   :  { %v2017_v23 = vpop.permute.xlu1 %2016  ;;  %v1975_v7 = vpop.permute.xlu0 %1974  ;;  %v6156_v51 = vpack.c.bf16 %v2045_v21, %v2003_v34  ;;  %v2081_v34 = vrot.slane %v5948_v49, %v6901_v56 }
 0x4df   :  { %v2021_v58 = vsel %vm9830_vm8, %v2017_v23, %v2011_v10  ;;  %v1979_v38 = vsel %vm9831_vm9, %v1975_v7, %v1969_v55  ;;  %vm9833_vm8 = vmmov %vm9832_vm7 }
 0x4e0   :  { %v2044_v33 = vmul.f32 %v2027_v26, %v2021_v58  ;;  %v2002_v20 = vmul.f32 %v1985_v28, %v1979_v38  ;;  %2634 = vrot.lane.b32.xlu1 %v7829_v17, %s9829_s25  ;;  %6157 = vmatprep.subr.bf16.mxu0 %v6156_v51 }
 0x4e1   :  { %2628 = vrot.lane.b32.xlu0 %v7817_v32, %s9829_s25 }
 0x4e2   :  { %v6158_v47 = vpack.c.bf16 %v2044_v33, %v2002_v20  ;;  %v2015_v1 = vpop.permute.xlu1 %2014  ;;  %v1973_v22 = vpop.permute.xlu0 %1972 }
 0x4e3   :  { %v2018_v48 = vsel %vm9832_vm7, %v2015_v1, %v2017_v23  ;;  %v2019_v42 = vsel %vm9833_vm8, %v2013_v40, %v2015_v1  ;;  %v1976_v41 = vsel %vm9831_vm9, %v1973_v22, %v1975_v7  ;;  %v1977_v59 = vsel %vm9834_vm6, %v1971_v15, %v1973_v22 }
 0x4e4   :  { %v2046_v35 = vmul.f32 %v2035_v3, %v2019_v42  ;;  %v2047_v53 = vmul.f32 %v2039_v62, %v2018_v48  ;;  %v2004_v29 = vmul.f32 %v1993_v30, %v1977_v59  ;;  %v2005_v44 = vmul.f32 %v1997_v54, %v1976_v41  ;;  %2862 = vperm.xlu1 %6455, %v5969_v57  }
 0x4e5   :  { %2727 = vperm.xlu0 %6454, %v5969_v57   ;;  %6159 = vmatpush1.bf16.msra.mxu0 %v6158_v47  ;;  %v2187_v23 = vrot.slane %v5951_v0, %v6894_v12  ;;  %v2145_v7 = vrot.slane %v5950_v9, %v6894_v12  ;;  %v2149_v22 = vrot.slane %v5950_v9, %v6903_v61  ;;  %vm9835_vm6 = vcmp.lt.s32.totalorder %v6885_v6, 127 }
 0x4e6   :  { %v6206_v43 = vpack.c.bf16 %v2046_v35, %v2004_v29  ;;  %v2055_v52 = vpop.permute.xlu1 %2054  ;;  %v2053_v19 = vpop.permute.xlu0 %2052  ;;  %v6204_v11 = vpack.c.bf16 %v2047_v53, %v2005_v44  ;;  %v2141_v42 = vrot.slane %v5950_v9, %v6896_v14  ;;  %v2153_v59 = vrot.slane %v5950_v9, %v6901_v56  ;;  %vm9836_vm7 = vmmov %vm9835_vm6 }
 0x4e7   :  { %v2062_v36 = vsel %vm671_vm14, %v2053_v19, %v2055_v52  ;;  %v2159_v41 = vmul.f32 %v2145_v7, %v7819_v50  ;;  %v2191_v53 = vrot.slane %v5951_v0, %v6903_v61  ;;  %v2183_v29 = vrot.slane %v5951_v0, %v6896_v14  ;;  %vm9837_vm8 = vmmov %vm9835_vm6 }
 0x4e8   :  { %6205 = vmatprep.subr.bf16.mxu1 %v6204_v11  ;;  %v2087_v46 = vmul.f32 %v2073_v45, %v2062_v36  ;;  %v2195_v44 = vrot.slane %v5951_v0, %v6901_v56  ;;  %v2160_v49 = vmul.f32 %v2149_v22, %v7835_v39  ;;  %v2158_v50 = vmul.f32 %v2141_v42, %v7817_v32  ;;  %vm9838_vm9 = vmmov %vm9835_vm6  ;;  %v5953_v32 = vld [vmem:[%s9632_s1 + $0x3c] sm:$0xf]  ;;  %v5955_v42 = vld [vmem:[%s9632_s1 + $0x44] sm:$0xf] }
 0x4e9   :  { %6207 = vmatpush1.bf16.msra.mxu1 %v6206_v43  ;;  %v2161_v39 = vmul.f32 %v2153_v59, %v7829_v17  ;;  %v2267_v0 = vrot.slane %v5953_v32, %v6896_v14 }
 0x4ea   :  { %v2097_v27 = vpop.permute.xlu1 %2096  ;;  %v2095_v4 = vpop.permute.xlu0 %2094 }
 0x4eb   :  { %v2104_v5 = vsel %vm715_vm1, %v2095_v4, %v2097_v27 }
 0x4ec   :  { %v2129_v13 = vmul.f32 %v2115_v16, %v2104_v5 }
 0x4ee   :  { %v2101_v8 = vpop.permute.xlu1 %2100  ;;  %v2059_v15 = vpop.permute.xlu0 %2058  ;;  %v6160_v55 = vpack.c.bf16 %v2129_v13, %v2087_v46 }
 0x4ef   :  { %v2105_v18 = vsel %vm715_vm1, %v2101_v8, %v2095_v4  ;;  %v2063_v24 = vsel %vm671_vm14, %v2059_v15, %v2053_v19  ;;  %v5952_v4 = vld [vmem:[%s9632_s1 + $0x38] sm:$0xf] }
 0x4f0   :  { %v2128_v40 = vmul.f32 %v2111_v25, %v2105_v18  ;;  %v2086_v10 = vmul.f32 %v2069_v63, %v2063_v24  ;;  %6161 = vmatprep.subr.bf16.mxu0 %v6160_v55  ;;  %v2225_v9 = vrot.slane %v5952_v4, %v6896_v14 }
 0x4f2   :  { %v6162_v21 = vpack.c.bf16 %v2128_v40, %v2086_v10  ;;  %v2099_v26 = vpop.permute.xlu1 %2098  ;;  %v2057_v28 = vpop.permute.xlu0 %2056 }
 0x4f3   :  { %v2102_v51 = vsel %vm715_vm1, %v2099_v26, %v2101_v8  ;;  %v2103_v3 = vsel %vm715_vm1, %v2097_v27, %v2099_v26  ;;  %v2060_v58 = vsel %vm671_vm14, %v2057_v28, %v2059_v15  ;;  %v2061_v38 = vsel %vm671_vm14, %v2055_v52, %v2057_v28 }
 0x4f4   :  { %v2130_v62 = vmul.f32 %v2119_v60, %v2103_v3  ;;  %v2131_v30 = vmul.f32 %v2123_v2, %v2102_v51  ;;  %v2088_v33 = vmul.f32 %v2077_v37, %v2061_v38  ;;  %v2089_v20 = vmul.f32 %v2081_v34, %v2060_v58  ;;  %6163 = vmatpush1.bf16.msra.mxu0 %v6162_v21 }
 0x4f5   :  { %v2229_v8 = vrot.slane %v5952_v4, %v6894_v12  ;;  %v2271_v15 = vrot.slane %v5953_v32, %v6894_v12  ;;  %v2275_v26 = vrot.slane %v5953_v32, %v6903_v61  ;;  %v2279_v28 = vrot.slane %v5953_v32, %v6901_v56 }
 0x4f6   :  { %v6210_v54 = vpack.c.bf16 %v2130_v62, %v2088_v33  ;;  %v2171_v57 = vpop.permute.xlu1 %2170  ;;  %v2169_v47 = vpop.permute.xlu0 %2168  ;;  %v6208_v1 = vpack.c.bf16 %v2131_v30, %v2089_v20  ;;  %v2233_v51 = vrot.slane %v5952_v4, %v6903_v61  ;;  %v2237_v3 = vrot.slane %v5952_v4, %v6901_v56 }
 0x4f7   :  { %v2175_v48 = vsel %vm9835_vm6, %v2169_v47, %v2171_v57  ;;  %vm9839_vm6 = vcmp.lt.s32.totalorder %v6885_v6, 126 }
 0x4f8   :  { %v2201_v35 = vmul.f32 %v2187_v23, %v2175_v48  ;;  %6209 = vmatprep.subr.bf16.mxu1 %v6208_v1  ;;  %v5954_v48 = vld [vmem:[%s9632_s1 + $0x40] sm:$0xf] }
 0x4f9   :  { %6211 = vmatpush1.bf16.msra.mxu1 %v6210_v54 }
 0x4fa   :  { %v2173_v31 = vpop.permute.xlu1 %2172  ;;  %v2167_v43 = vpop.permute.xlu0 %2166  ;;  %v6164_v52 = vpack.c.bf16 %v2201_v35, %v2159_v41 }
 0x4fb   :  { %v2174_v19 = vsel %vm9836_vm7, %v2171_v57, %v2173_v31  ;;  %v2176_v11 = vsel %vm9837_vm8, %v2167_v43, %v2169_v47  ;;  %v2177_v45 = vsel %vm9838_vm9, %v2173_v31, %v2167_v43  ;;  %vm9840_vm7 = vmmov %vm9839_vm6 }
 0x4fc   :  { %v2202_v16 = vmul.f32 %v2191_v53, %v2174_v19  ;;  %v2200_v36 = vmul.f32 %v2183_v29, %v2176_v11  ;;  %v2203_v27 = vmul.f32 %v2195_v44, %v2177_v45  ;;  %6165 = vmatprep.subr.bf16.mxu0 %v6164_v52  ;;  %vm9841_vm8 = vmmov %vm9839_vm6  ;;  %v2313_v29 = vrot.slane %v5954_v48, %v6894_v12 }
 0x4fd   :  { %vm9842_vm9 = vmmov %vm9839_vm6  ;;  %v2355_v44 = vrot.slane %v5955_v42, %v6894_v12  ;;  %v2351_v11 = vrot.slane %v5955_v42, %v6896_v14  ;;  %v2309_v45 = vrot.slane %v5954_v48, %v6896_v14 }
 0x4fe   :  { %v6214_v5 = vpack.c.bf16 %v2202_v16, %v2160_v49  ;;  %v6166_v46 = vpack.c.bf16 %v2200_v36, %v2158_v50  ;;  %v2213_v13 = vpop.permute.xlu1 %2212  ;;  %v2211_v25 = vpop.permute.xlu0 %2210  ;;  %v6212_v63 = vpack.c.bf16 %v2203_v27, %v2161_v39 }
 0x4ff   :  { %v2217_v17 = vsel %vm9839_vm6, %v2211_v25, %v2213_v13  ;;  %vm9843_vm6 = vcmp.lt.s32.totalorder %v6885_v6, 113 }
 0x500   :  { %6167 = vmatpush1.bf16.msra.mxu0 %v6166_v46  ;;  %6213 = vmatprep.subr.bf16.mxu1 %v6212_v63  ;;  %v2243_v60 = vmul.f32 %v2229_v8, %v2217_v17  ;;  %v2363_v46 = vrot.slane %v5955_v42, %v6901_v56  ;;  %v2321_v63 = vrot.slane %v5954_v48, %v6901_v56 }
 0x501   :  { %6215 = vmatpush1.bf16.msra.mxu1 %v6214_v5  ;;  %v2359_v5 = vrot.slane %v5955_v42, %v6903_v61 }
 0x502   :  { %v2255_v55 = vpop.permute.xlu1 %2254  ;;  %v2253_v18 = vpop.permute.xlu0 %2252 }
 0x503   :  { %v2259_v24 = vsel %vm878_vm15, %v2253_v18, %v2255_v55 }
 0x504   :  { %v2285_v2 = vmul.f32 %v2271_v15, %v2259_v24 }
 0x506   :  { %v2251_v40 = vpop.permute.xlu1 %2250  ;;  %v2209_v10 = vpop.permute.xlu0 %2208  ;;  %v6168_v37 = vpack.c.bf16 %v2285_v2, %v2243_v60 }
 0x507   :  { %v2260_v34 = vsel %vm878_vm15, %v2251_v40, %v2253_v18  ;;  %v2218_v21 = vsel %vm9840_vm7, %v2209_v10, %v2211_v25  ;;  %vm9844_vm7 = vmmov %vm9843_vm6  ;;  %v2317_v25 = vrot.slane %v5954_v48, %v6903_v61 }
 0x508   :  { %v2284_v23 = vmul.f32 %v2267_v0, %v2260_v34  ;;  %v2242_v7 = vmul.f32 %v2225_v9, %v2218_v21  ;;  %6169 = vmatprep.subr.bf16.mxu0 %v6168_v37  ;;  %v5956_v37 = vld [vmem:[%s9632_s1 + $0x48] sm:$0xf]  ;;  %v5957_v34 = vld [vmem:[%s9632_s1 + $0x4c] sm:$0xf] }
 0x509   :  { %v2443_v42 = vrot.slane %v5957_v34, %v6903_v61 }
 0x50a   :  { %v6170_v58 = vpack.c.bf16 %v2284_v23, %v2242_v7  ;;  %v2257_v38 = vpop.permute.xlu1 %2256  ;;  %v2215_v62 = vpop.permute.xlu0 %2214  ;;  %v2397_v23 = vrot.slane %v5956_v37, %v6894_v12  ;;  %v2439_v7 = vrot.slane %v5957_v34, %v6894_v12 }
 0x50b   :  { %v2258_v30 = vsel %vm878_vm15, %v2255_v55, %v2257_v38  ;;  %v2261_v33 = vsel %vm878_vm15, %v2257_v38, %v2251_v40  ;;  %v2216_v20 = vsel %vm9841_vm8, %v2213_v13, %v2215_v62  ;;  %v2219_v54 = vsel %vm9842_vm9, %v2215_v62, %v2209_v10  ;;  %vm9845_vm8 = vmmov %vm9843_vm6 }
 0x50c   :  { %v2286_v57 = vmul.f32 %v2275_v26, %v2258_v30  ;;  %v2287_v47 = vmul.f32 %v2279_v28, %v2261_v33  ;;  %v2244_v1 = vmul.f32 %v2233_v51, %v2216_v20  ;;  %v2245_v22 = vmul.f32 %v2237_v3, %v2219_v54  ;;  %6171 = vmatpush1.bf16.msra.mxu0 %v6170_v58  ;;  %vm9846_vm9 = vmmov %vm9843_vm6 }
 0x50d   :  { %v2435_v62 = vrot.slane %v5957_v34, %v6896_v14  ;;  %v2393_v20 = vrot.slane %v5956_v37, %v6896_v14 }
 0x50e   :  { %v6218_v41 = vpack.c.bf16 %v2286_v57, %v2244_v1  ;;  %v2297_v59 = vpop.permute.xlu1 %2296  ;;  %v2295_v35 = vpop.permute.xlu0 %2294  ;;  %v6216_v53 = vpack.c.bf16 %v2287_v47, %v2245_v22 }
 0x50f   :  { %v2301_v49 = vsel %vm9843_vm6, %v2295_v35, %v2297_v59  ;;  %vm9847_vm6 = vcmp.lt.s32.totalorder %v6885_v6, 111 }
 0x510   :  { %6217 = vmatprep.subr.bf16.mxu1 %v6216_v53  ;;  %v2327_v19 = vmul.f32 %v2313_v29, %v2301_v49  ;;  %v2405_v53 = vrot.slane %v5956_v37, %v6901_v56 }
 0x511   :  { %6219 = vmatpush1.bf16.msra.mxu1 %v6218_v41  ;;  %v2447_v41 = vrot.slane %v5957_v34, %v6901_v56 }
 0x512   :  { %v2339_v31 = vpop.permute.xlu1 %2338  ;;  %v2337_v43 = vpop.permute.xlu0 %2336 }
 0x513   :  { %v2343_v52 = vsel %vm966_vm2, %v2337_v43, %v2339_v31 }
 0x514   :  { %v2369_v50 = vmul.f32 %v2355_v44, %v2343_v52 }
 0x516   :  { %v2335_v16 = vpop.permute.xlu1 %2334  ;;  %v6172_v36 = vpack.c.bf16 %v2369_v50, %v2327_v19 }
 0x517   :  { %v2344_v27 = vsel %vm966_vm2, %v2335_v16, %v2337_v43  ;;  %v2293_v39 = vpop.permute.xlu0 %2292 }
 0x518   :  { %v2368_v4 = vmul.f32 %v2351_v11, %v2344_v27  ;;  %v2302_v32 = vsel %vm9844_vm7, %v2293_v39, %v2295_v35  ;;  %6173 = vmatprep.subr.bf16.mxu0 %v6172_v36  ;;  %vm9848_vm7 = vmmov %vm9847_vm6  ;;  %v2401_v35 = vrot.slane %v5956_v37, %v6903_v61  ;;  %v5958_v27 = vld [vmem:[%s9632_s1 + $0x50] sm:$0xf] }
 0x519   :  { %v2326_v13 = vmul.f32 %v2309_v45, %v2302_v32 }
 0x51a   :  { %v2341_v8 = vpop.permute.xlu1 %2340 }
 0x51b   :  { %v6174_v15 = vpack.c.bf16 %v2368_v4, %v2326_v13  ;;  %v2342_v17 = vsel %vm966_vm2, %v2339_v31, %v2341_v8  ;;  %v2345_v55 = vsel %vm966_vm2, %v2341_v8, %v2335_v16  ;;  %v2299_v18 = vpop.permute.xlu0 %2298 }
 0x51c   :  { %v2370_v24 = vmul.f32 %v2359_v5, %v2342_v17  ;;  %v2371_v60 = vmul.f32 %v2363_v46, %v2345_v55  ;;  %v2300_v2 = vsel %vm9845_vm8, %v2297_v59, %v2299_v18  ;;  %v2303_v0 = vsel %vm9846_vm9, %v2299_v18, %v2293_v39  ;;  %vm9849_vm8 = vmmov %vm9847_vm6  ;;  %v5959_v39 = vld [vmem:[%s9632_s1 + $0x54] sm:$0xf] }
 0x51d   :  { %v2328_v9 = vmul.f32 %v2317_v25, %v2300_v2  ;;  %v2329_v40 = vmul.f32 %v2321_v63, %v2303_v0  ;;  %6175 = vmatpush1.bf16.msra.mxu0 %v6174_v15  ;;  %vm9850_vm9 = vmmov %vm9847_vm6  ;;  %v2481_v46 = vrot.slane %v5958_v27, %v6894_v12  ;;  %v2523_v13 = vrot.slane %v5959_v39, %v6894_v12 }
 0x51e   :  { %v2381_v10 = vpop.permute.xlu1 %2380  ;;  %v2519_v17 = vrot.slane %v5959_v39, %v6896_v14  ;;  %v2527_v37 = vrot.slane %v5959_v39, %v6903_v61  ;;  %v2531_v34 = vrot.slane %v5959_v39, %v6901_v56 }
 0x51f   :  { %v6222_v21 = vpack.c.bf16 %v2370_v24, %v2328_v9  ;;  %v2379_v26 = vpop.permute.xlu0 %2378  ;;  %v6220_v28 = vpack.c.bf16 %v2371_v60, %v2329_v40  ;;  %v2477_v24 = vrot.slane %v5958_v27, %v6896_v14 }
 0x520   :  { %v2385_v51 = vsel %vm9847_vm6, %v2379_v26, %v2381_v10  ;;  %vm9851_vm6 = vcmp.lt.s32.totalorder %v6885_v6, 96 }
 0x521   :  { %6221 = vmatprep.subr.bf16.mxu1 %v6220_v28  ;;  %v2411_v30 = vmul.f32 %v2397_v23, %v2385_v51  ;;  %v2489_v28 = vrot.slane %v5958_v27, %v6901_v56 }
 0x522   :  { %6223 = vmatpush1.bf16.msra.mxu1 %v6222_v21  ;;  %v2423_v3 = vpop.permute.xlu1 %2422 }
 0x523   :  { %v2421_v58 = vpop.permute.xlu0 %2420 }
 0x524   :  { %v2427_v38 = vsel %vm1054_vm12, %v2421_v58, %v2423_v3 }
 0x525   :  { %v2453_v33 = vmul.f32 %v2439_v7, %v2427_v38 }
 0x526   :  { %v2419_v54 = vpop.permute.xlu1 %2418 }
 0x527   :  { %v2428_v57 = vsel %vm1054_vm12, %v2419_v54, %v2421_v58  ;;  %v2377_v47 = vpop.permute.xlu0 %2376  ;;  %v6176_v1 = vpack.c.bf16 %v2453_v33, %v2411_v30 }
 0x528   :  { %v2452_v22 = vmul.f32 %v2435_v62, %v2428_v57  ;;  %v2386_v48 = vsel %vm9848_vm7, %v2377_v47, %v2379_v26  ;;  %v2485_v26 = vrot.slane %v5958_v27, %v6903_v61  ;;  %vm9852_vm7 = vmmov %vm9851_vm6 }
 0x529   :  { %v2410_v59 = vmul.f32 %v2393_v20, %v2386_v48  ;;  %6177 = vmatprep.subr.bf16.mxu0 %v6176_v1  ;;  %v5961_v1 = vld [vmem:[%s9632_s1 + $0x5c] sm:$0xf] }
 0x52a   :  { %v2425_v29 = vpop.permute.xlu1 %2424  ;;  %v2611_v27 = vrot.slane %v5961_v1, %v6903_v61  ;;  %v2615_v39 = vrot.slane %v5961_v1, %v6901_v56 }
 0x52b   :  { %v6178_v44 = vpack.c.bf16 %v2452_v22, %v2410_v59  ;;  %v2426_v49 = vsel %vm1054_vm12, %v2423_v3, %v2425_v29  ;;  %v2429_v31 = vsel %vm1054_vm12, %v2425_v29, %v2419_v54  ;;  %v2383_v43 = vpop.permute.xlu0 %2382  ;;  %v2607_v59 = vrot.slane %v5961_v1, %v6894_v12 }
 0x52c   :  { %v2454_v52 = vmul.f32 %v2443_v42, %v2426_v49  ;;  %v2455_v19 = vmul.f32 %v2447_v41, %v2429_v31  ;;  %v2384_v50 = vsel %vm9849_vm8, %v2381_v10, %v2383_v43  ;;  %v2387_v11 = vsel %vm9850_vm9, %v2383_v43, %v2377_v47  ;;  %v5960_v47 = vld [vmem:[%s9632_s1 + $0x58] sm:$0xf]  ;;  %vm9853_vm8 = vmmov %vm9851_vm6 }
 0x52d   :  { %v2412_v45 = vmul.f32 %v2401_v35, %v2384_v50  ;;  %v2413_v16 = vmul.f32 %v2405_v53, %v2387_v11  ;;  %6179 = vmatpush1.bf16.msra.mxu0 %v6178_v44  ;;  %v2565_v41 = vrot.slane %v5960_v47, %v6894_v12  ;;  %v2603_v49 = vrot.slane %v5961_v1, %v6896_v14  ;;  %vm9854_vm9 = vmmov %vm9851_vm6 }
 0x52e   :  { %v2465_v36 = vpop.permute.xlu1 %2464 }
 0x52f   :  { %v6226_v4 = vpack.c.bf16 %v2454_v52, %v2412_v45  ;;  %v2463_v32 = vpop.permute.xlu0 %2462  ;;  %v6224_v5 = vpack.c.bf16 %v2455_v19, %v2413_v16  ;;  %v2561_v52 = vrot.slane %v5960_v47, %v6896_v14 }
 0x530   :  { %v2469_v25 = vsel %vm1098_vm0, %v2463_v32, %v2465_v36 }
 0x531   :  { %6225 = vmatprep.subr.bf16.mxu1 %v6224_v5  ;;  %v2495_v55 = vmul.f32 %v2481_v46, %v2469_v25  ;;  %v2573_v5 = vrot.slane %v5960_v47, %v6901_v56 }
 0x532   :  { %6227 = vmatpush1.bf16.msra.mxu1 %v6226_v4  ;;  %v2507_v63 = vpop.permute.xlu1 %2506 }
 0x533   :  { %v2505_v8 = vpop.permute.xlu0 %2504 }
 0x534   :  { %v2511_v15 = vsel %vm1142_vm13, %v2505_v8, %v2507_v63 }
 0x535   :  { %v2537_v18 = vmul.f32 %v2523_v13, %v2511_v15  ;;  %v5962_v13 = vld [vmem:[%s9632_s1 + $0x60] sm:$0xf] }
 0x536   :  { %v2503_v60 = vpop.permute.xlu1 %2502 }
 0x537   :  { %v2512_v2 = vsel %vm1142_vm13, %v2503_v60, %v2505_v8  ;;  %v2461_v0 = vpop.permute.xlu0 %2460  ;;  %v6180_v9 = vpack.c.bf16 %v2537_v18, %v2495_v55 }
 0x538   :  { %v2536_v40 = vmul.f32 %v2519_v17, %v2512_v2  ;;  %v2470_v10 = vsel %vm1098_vm0, %v2461_v0, %v2463_v32  ;;  %v2569_v32 = vrot.slane %v5960_v47, %v6903_v61 }
 0x539   :  { %v2494_v21 = vmul.f32 %v2477_v24, %v2470_v10  ;;  %6181 = vmatprep.subr.bf16.mxu0 %v6180_v9 }
 0x53a   :  { %v2509_v23 = vpop.permute.xlu1 %2508 }
 0x53b   :  { %v6182_v7 = vpack.c.bf16 %v2536_v40, %v2494_v21  ;;  %v2510_v51 = vsel %vm1142_vm13, %v2507_v63, %v2509_v23  ;;  %v2513_v3 = vsel %vm1142_vm13, %v2509_v23, %v2503_v60  ;;  %v2467_v58 = vpop.permute.xlu0 %2466  ;;  %v2653_v21 = vrot.slane %v5962_v13, %v6903_v61 }
 0x53c   :  { %v2538_v38 = vmul.f32 %v2527_v37, %v2510_v51  ;;  %v2539_v62 = vmul.f32 %v2531_v34, %v2513_v3  ;;  %v2468_v30 = vsel %vm1098_vm0, %v2465_v36, %v2467_v58  ;;  %v2471_v33 = vsel %vm1098_vm0, %v2467_v58, %v2461_v0 }
 0x53d   :  { %v2496_v20 = vmul.f32 %v2485_v26, %v2468_v30  ;;  %v2497_v54 = vmul.f32 %v2489_v28, %v2471_v33  ;;  %6183 = vmatpush1.bf16.msra.mxu0 %v6182_v7  ;;  %v2649_v0 = vrot.slane %v5962_v13, %v6894_v12  ;;  %v2645_v26 = vrot.slane %v5962_v13, %v6896_v14 }
 0x53e   :  { %v2549_v57 = vpop.permute.xlu1 %2548  ;;  %v2657_v23 = vrot.slane %v5962_v13, %v6901_v56 }
 0x53f   :  { %v6230_v22 = vpack.c.bf16 %v2538_v38, %v2496_v20  ;;  %v2547_v48 = vpop.permute.xlu0 %2546  ;;  %v6228_v42 = vpack.c.bf16 %v2539_v62, %v2497_v54  ;;  %v5963_v20 = vld [vmem:[%s9630_s4 + $0x20] sm:$0xff]  ;;  %v5967_v54 = vld [vmem:[%s9630_s4 + $0x30] sm:$0xff] }
 0x540   :  { %v2553_v35 = vsel %vm9851_vm6, %v2547_v48, %v2549_v57  ;;  %vm9867_vm6 = vcmp.lt.s32.totalorder %v6885_v6, 31 }
 0x541   :  { %6229 = vmatprep.subr.bf16.mxu1 %v6228_v42  ;;  %v2579_v31 = vmul.f32 %v2565_v41, %v2553_v35 }
 0x542   :  { %6231 = vmatpush1.bf16.msra.mxu1 %v6230_v22  ;;  %v2591_v53 = vpop.permute.xlu1 %2590 }
 0x543   :  { %v2589_v29 = vpop.permute.xlu0 %2588 }
 0x544   :  { %v2595_v44 = vsel %vm1230_vm11, %v2589_v29, %v2591_v53 }
 0x545   :  { %v2621_v43 = vmul.f32 %v2607_v59, %v2595_v44 }
 0x546   :  { %v2587_v19 = vpop.permute.xlu1 %2586 }
 0x547   :  { %v2596_v50 = vsel %vm1230_vm11, %v2587_v19, %v2589_v29  ;;  %v2545_v11 = vpop.permute.xlu0 %2544  ;;  %v6184_v45 = vpack.c.bf16 %v2621_v43, %v2579_v31 }
 0x548   :  { %v2620_v16 = vmul.f32 %v2603_v49, %v2596_v50  ;;  %v2554_v36 = vsel %vm9852_vm7, %v2545_v11, %v2547_v48  ;;  %vm9868_vm7 = vmmov %vm9867_vm6 }
 0x549   :  { %v2578_v4 = vmul.f32 %v2561_v52, %v2554_v36  ;;  %6185 = vmatprep.subr.bf16.mxu0 %v6184_v45 }
 0x54a   :  { %v2593_v46 = vpop.permute.xlu1 %2592 }
 0x54b   :  { %v6186_v25 = vpack.c.bf16 %v2620_v16, %v2578_v4  ;;  %v2594_v63 = vsel %vm1230_vm11, %v2591_v53, %v2593_v46  ;;  %v2597_v8 = vsel %vm1230_vm11, %v2593_v46, %v2587_v19  ;;  %v2551_v15 = vpop.permute.xlu0 %2550  ;;  %v5971_v46 = vld [vmem:[%s9633_s6 + $0x8] sm:$0xff] }
 0x54c   :  { %v2622_v17 = vmul.f32 %v2611_v27, %v2594_v63  ;;  %v2623_v55 = vmul.f32 %v2615_v39, %v2597_v8  ;;  %v2552_v18 = vsel %vm9853_vm8, %v2549_v57, %v2551_v15  ;;  %v2555_v24 = vsel %vm9854_vm9, %v2551_v15, %v2545_v11  ;;  %v5972_v63 = vld [vmem:[%s9634_s7 + $0x8] sm:$0xff]  ;;  %vm9869_vm8 = vmmov %vm9867_vm6 }
 0x54d   :  { %v2580_v60 = vmul.f32 %v2569_v32, %v2552_v18  ;;  %v2581_v2 = vmul.f32 %v2573_v5, %v2555_v24  ;;  %6187 = vmatpush1.bf16.msra.mxu0 %v6186_v25  ;;  %vm9870_vm9 = vmmov %vm9867_vm6 }
 0x54e   :  { %v2633_v9 = vpop.permute.xlu1 %2632 }
 0x54f   :  { %v6234_v40 = vpack.c.bf16 %v2622_v17, %v2580_v60  ;;  %v2631_v10 = vpop.permute.xlu0 %2630  ;;  %v6232_v37 = vpack.c.bf16 %v2623_v55, %v2581_v2 }
 0x550   :  { %v2637_v34 = vsel %vm1274_vm10, %v2631_v10, %v2633_v9 }
 0x551   :  { %6233 = vmatprep.subr.bf16.mxu1 %v6232_v37  ;;  %v2663_v28 = vmul.f32 %v2649_v0, %v2637_v34  ;;  %v9855_v37 = vld [vmem:[#allocation4_spill] sm:$0xff] }
 0x552   :  { %6235 = vmatpush1.bf16.msra.mxu1 %v6234_v40  ;;  %v2635_v7 = vpop.permute.xlu1 %2634 }
 0x553   :  { %v2636_v51 = vsel %vm1274_vm10, %v2633_v9, %v2635_v7  ;;  %v2629_v3 = vpop.permute.xlu0 %2628  ;;  %2781 = vmatprep.subr.mxu0 %v2663_v28 }
 0x554   :  { %v2664_v58 = vmul.f32 %v2653_v21, %v2636_v51  ;;  %v2638_v38 = vsel %vm1274_vm10, %v2629_v3, %v2631_v10  ;;  %v2639_v62 = vsel %vm1274_vm10, %v2635_v7, %v2629_v3  ;;  %v9856_v21 = vld [vmem:[#allocation6_spill] sm:$0xff]  ;;  %v9857_v3 = vld [vmem:[#allocation7_spill] sm:$0xff] }
 0x555   :  { %v2662_v30 = vmul.f32 %v2645_v26, %v2638_v38  ;;  %v2665_v33 = vmul.f32 %v2657_v23, %v2639_v62  ;;  %v9858_v38 = vld [vmem:[#allocation5_spill] sm:$0xff] }
 0x557   :  { %2782 = vmatpush1.msra.mxu0 %v2662_v30  ;;  %2916 = vmatprep.subr.mxu1 %v2665_v33  ;;  %v3010_v30 = vld [vmem:[%s9632_s1] sm:$0xf]  ;;  %v5973_v33 = vld [vmem:[%s9632_s1 + $0x4] sm:$0xf] }
 0x558   :  { %2798 = vmatmul.mubr.f32.vlgmr.msra.gmra.mrb[4].mxu0 %v5963_v20  ;;  %2917 = vmatpush1.msra.mxu1 %v2664_v58 }
 0x559   :  { %2933 = vmatmul.mubr.f32.vlgmr.msra.gmra.mrb[4].mxu1 %v5967_v54 }
 0x563   :  { %v2863_v57 = vpop.permute.xlu1 %2862 }
 0x564   :  { %v2728_v47 = vpop.permute.xlu0 %2727 }
 0x62b   :  { %v2799_v1 = vpop.f32.mrb[4].mxu0 }
 0x62c   :  { %v2800_v22 = vadd.f32 %v2799_v1, %v2728_v47  ;;  %v2801_v48 = vpop.f32.mrb[5].mxu0  ;;  %v2934_v42 = vpop.f32.mrb[4].mxu1 }
 0x62d   :  { %v2802_v41 = vadd.f32 %v2801_v48, %v2728_v47  ;;  %v2935_v59 = vadd.f32 %v2934_v42, %v2863_v57  ;;  %v2936_v35 = vpop.f32.mrb[5].mxu1  ;;  %v3061_v47 = vrot.slane %v5973_v33, %v6894_v12 }
 0x62e   :  { %v2950_v53 = vmul.f32 %v2800_v22, %v2800_v22  ;;  %v2937_v49 = vadd.f32 %v2936_v35, %v2863_v57  ;;  %v3019_v57 = vrot.slane %v3010_v30, %v6894_v12 }
 0x62f   :  { %v2945_v29 = vadd.f32 %v2802_v41, %v2800_v22  ;;  %v2951_v44 = vmul.f32 %v2802_v41, %v2802_v41  ;;  %v2952_v52 = vmul.f32 %v2935_v59, %v2935_v59 }
 0x630   :  { %v2953_v19 = vmul.f32 %v2937_v49, %v2937_v49 }
 0x631   :  { %v2954_v31 = vadd.f32 %v2951_v44, %v2950_v53  ;;  %v2946_v43 = vadd.f32 %v2945_v29, %v2935_v59  ;;  %v3015_v53 = vrot.slane %v3010_v30, %v6896_v14 }
 0x633   :  { %v2947_v50 = vadd.f32 %v2946_v43, %v2937_v49  ;;  %v2955_v11 = vadd.f32 %v2954_v31, %v2952_v52  ;;  %v3065_v31 = vrot.slane %v5973_v33, %v6903_v61 }
 0x635   :  { %2948 = vadd.xlane.f32.xlu0 %v2947_v50  ;;  %v2956_v45 = vadd.f32 %v2955_v11, %v2953_v19  ;;  %v3069_v19 = vrot.slane %v5973_v33, %v6901_v56  ;;  %v3023_v50 = vrot.slane %v3010_v30, %v6903_v61 }
 0x637   :  { %2957 = vadd.xlane.f32.xlu1 %v2956_v45 }
 0x6c2   :  { %v2949_v16 = vpop.xlane.xlu0 %2948 }
 0x6c3   :  { %v2959_v36 = vmul.f32 0.001953125, %v2949_v16  ;;  %v3027_v16 = vrot.slane %v3010_v30, %v6901_v56 }
 0x6c4   :  { %v2958_v27 = vpop.xlane.xlu1 %2957 }
 0x6c5   :  { %v2961_v39 = vmul.f32 %v2959_v36, %v2959_v36  ;;  %v2960_v4 = vmul.f32 0.001953125, %v2958_v27 }
 0x6c7   :  { %v2962_v32 = vsub.f32 %v2960_v4, %v2961_v39 }
 0x6c9   :  { %v2965_v5 = vadd.f32 1e-05, %v2962_v32 }
 0x6cb   :  { %6460 = vrsqrt.f32 %v2965_v5 }
 0x6d5   :  { %v6461_v13 = vpop.eup %6460 }
 0x6d6   :  { %v2967_v25 = vmul.f32 %v6461_v13, %v5971_v46 }
 0x6d8   :  { %2974 = vperm.xlu0 %6454, %v2967_v25   ;;  %v2970_v8 = vmul.f32 %v2967_v25, %v2959_v36 }
 0x6da   :  { %v2971_v15 = vsub.f32 %v5972_v63, %v2970_v8 }
 0x6dc   :  { %2983 = vperm.xlu1 %6455, %v2971_v15   ;;  %v5974_v15 = vld [vmem:[%s9632_s1 + $0x8] sm:$0xf] }
 0x757   :  { %v2975_v17 = vpop.permute.xlu0 %2974 }
 0x758   :  { %v2977_v55 = vmul.f32 %v2975_v17, %v2800_v22  ;;  %v2978_v18 = vmul.f32 %v2975_v17, %v2802_v41  ;;  %v2980_v0 = vmul.f32 %v2975_v17, %v2937_v49  ;;  %v2979_v28 = vmul.f32 %v2975_v17, %v2935_v59  ;;  %v5975_v17 = vld [vmem:[%s9632_s1 + $0xc] sm:$0xf] }
 0x759   :  { %v3057_v41 = vrot.slane %v5973_v33, %v6896_v14  ;;  %v3149_v30 = vrot.slane %v5975_v17, %v6903_v61 }
 0x75b   :  { %v2984_v24 = vpop.permute.xlu1 %2983 }
 0x75c   :  { %v2986_v60 = vadd.f32 %v2984_v24, %v2977_v55  ;;  %v2987_v2 = vadd.f32 %v2984_v24, %v2978_v18  ;;  %v2989_v10 = vadd.f32 %v2984_v24, %v2980_v0  ;;  %v2988_v23 = vadd.f32 %v2984_v24, %v2979_v28 }
 0x75d   :  { %v3145_v0 = vrot.slane %v5975_v17, %v6894_v12 }
 0x75e   :  { %v2990_v9 = vmul.f32 0.1, %v2986_v60  ;;  %v2991_v40 = vmul.f32 0.1, %v2987_v2  ;;  %v2993_v7 = vmul.f32 0.1, %v2989_v10  ;;  %v3103_v2 = vrot.slane %v5974_v15, %v6894_v12 }
 0x75f   :  { %v2992_v51 = vmul.f32 0.1, %v2988_v23  ;;  %v3141_v23 = vrot.slane %v5975_v17, %v6896_v14 }
 0x760   :  { %v8412_v34 = vadd.f32 %v2990_v9, %v9855_v37  ;;  %v8415_v26 = vadd.f32 %v2991_v40, %v9856_v21  ;;  %v8426_v58 = vadd.f32 %v2993_v7, %v9857_v3  ;;  %v3099_v7 = vrot.slane %v5974_v15, %v6896_v14 }
 0x761   :  { %v8433_v62 = vadd.f32 %v2992_v51, %v9858_v38 }
 0x762   :  { %3000 = vrot.lane.b32.xlu1 %v8415_v26, %s9717_s2  ;;  %2998 = vrot.lane.b32.xlu0 %v8412_v34, %s9717_s2 }
 0x766   :  { %3042 = vrot.lane.b32.xlu1 %v8415_v26, %s9715_s0  ;;  %3040 = vrot.lane.b32.xlu0 %v8412_v34, %s9715_s0 }
 0x76a   :  { %3046 = vrot.lane.b32.xlu1 %v8426_v58, %s9715_s0  ;;  %3004 = vrot.lane.b32.xlu0 %v8426_v58, %s9717_s2 }
 0x76e   :  { %3044 = vrot.lane.b32.xlu1 %v8433_v62, %s9715_s0  ;;  %3002 = vrot.lane.b32.xlu0 %v8433_v62, %s9717_s2  ;;  %s9919_s0 = smov 32   ;;  %s9920_s2 = smov 31  }
 0x772   :  { %3084 = vrot.lane.b32.xlu1 %v8415_v26, %s9713_s3  ;;  %3082 = vrot.lane.b32.xlu0 %v8412_v34, %s9713_s3 }
 0x776   :  { %3126 = vrot.lane.b32.xlu1 %v8415_v26, %s9711_s21  ;;  %3124 = vrot.lane.b32.xlu0 %v8412_v34, %s9711_s21 }
 0x77a   :  { %3130 = vrot.lane.b32.xlu1 %v8426_v58, %s9711_s21  ;;  %3088 = vrot.lane.b32.xlu0 %v8426_v58, %s9713_s3 }
 0x77e   :  { %3128 = vrot.lane.b32.xlu1 %v8433_v62, %s9711_s21  ;;  %3086 = vrot.lane.b32.xlu0 %v8433_v62, %s9713_s3  ;;  %s9888_s21 = smov 95   ;;  %s9921_s3 = smov 30  }
 0x782   :  { %3168 = vrot.lane.b32.xlu1 %v8415_v26, %s9709_s24  ;;  %3166 = vrot.lane.b32.xlu0 %v8412_v34, %s9709_s24 }
 0x786   :  { %3210 = vrot.lane.b32.xlu1 %v8415_v26, %s9707_s22  ;;  %3208 = vrot.lane.b32.xlu0 %v8412_v34, %s9707_s22 }
 0x78a   :  { %3214 = vrot.lane.b32.xlu1 %v8426_v58, %s9707_s22  ;;  %3172 = vrot.lane.b32.xlu0 %v8426_v58, %s9709_s24 }
 0x78e   :  { %3212 = vrot.lane.b32.xlu1 %v8433_v62, %s9707_s22  ;;  %3170 = vrot.lane.b32.xlu0 %v8433_v62, %s9709_s24  ;;  %s9866_s22 = smov 113   ;;  %s9917_s24 = smov 34  }
 0x792   :  { %3252 = vrot.lane.b32.xlu1 %v8415_v26, %s9705_s28  ;;  %3250 = vrot.lane.b32.xlu0 %v8412_v34, %s9705_s28 }
 0x796   :  { %3294 = vrot.lane.b32.xlu1 %v8415_v26, %s9703_s23  ;;  %3292 = vrot.lane.b32.xlu0 %v8412_v34, %s9703_s23 }
 0x79a   :  { %3298 = vrot.lane.b32.xlu1 %v8426_v58, %s9703_s23  ;;  %3256 = vrot.lane.b32.xlu0 %v8426_v58, %s9705_s28 }
 0x79e   :  { %3296 = vrot.lane.b32.xlu1 %v8433_v62, %s9703_s23  ;;  %3254 = vrot.lane.b32.xlu0 %v8433_v62, %s9705_s28  ;;  %s9918_s28 = smov 33   ;;  %s9923_s23 = smov 17  }
 0x7a2   :  { %3336 = vrot.lane.b32.xlu1 %v8415_v26, %s9859_s19  ;;  %3334 = vrot.lane.b32.xlu0 %v8412_v34, %s9859_s19 }
 0x7a6   :  { %3378 = vrot.lane.b32.xlu1 %v8415_v26, %s9860_s13  ;;  %3376 = vrot.lane.b32.xlu0 %v8412_v34, %s9860_s13 }
 0x7aa   :  { %3382 = vrot.lane.b32.xlu1 %v8426_v58, %s9860_s13  ;;  %3340 = vrot.lane.b32.xlu0 %v8426_v58, %s9859_s19 }
 0x7ae   :  { %3380 = vrot.lane.b32.xlu1 %v8433_v62, %s9860_s13  ;;  %3338 = vrot.lane.b32.xlu0 %v8433_v62, %s9859_s19 }
 0x7b2   :  { %3420 = vrot.lane.b32.xlu1 %v8415_v26, %s9861_s26  ;;  %3418 = vrot.lane.b32.xlu0 %v8412_v34, %s9861_s26 }
 0x7b6   :  { %3462 = vrot.lane.b32.xlu1 %v8415_v26, %s9862_s27  ;;  %3460 = vrot.lane.b32.xlu0 %v8412_v34, %s9862_s27 }
 0x7ba   :  { %3466 = vrot.lane.b32.xlu1 %v8426_v58, %s9862_s27  ;;  %3424 = vrot.lane.b32.xlu0 %v8426_v58, %s9861_s26 }
 0x7be   :  { %3464 = vrot.lane.b32.xlu1 %v8433_v62, %s9862_s27  ;;  %3422 = vrot.lane.b32.xlu0 %v8433_v62, %s9861_s26 }
 0x7c2   :  { %3536 = vrot.lane.b32.xlu1 %v8433_v62, %s9863_s11  ;;  %3534 = vrot.lane.b32.xlu0 %v8415_v26, %s9863_s11 }
 0x7c6   :  { %3538 = vrot.lane.b32.xlu1 %v8426_v58, %s9863_s11  ;;  %3532 = vrot.lane.b32.xlu0 %v8412_v34, %s9863_s11 }
 0x7ca   :  { %3578 = vrot.lane.b32.xlu1 %v8433_v62, %s9864_s14  ;;  %3576 = vrot.lane.b32.xlu0 %v8415_v26, %s9864_s14 }
 0x7ce   :  { %3620 = vrot.lane.b32.xlu1 %v8433_v62, %s9865_s30  ;;  %3618 = vrot.lane.b32.xlu0 %v8415_v26, %s9865_s30 }
 0x7d2   :  { %3616 = vrot.lane.b32.xlu1 %v8412_v34, %s9865_s30  ;;  %3574 = vrot.lane.b32.xlu0 %v8412_v34, %s9864_s14 }
 0x7d4   :  { %v3001_v20 = vpop.permute.xlu1 %3000  ;;  %v2999_v54 = vpop.permute.xlu0 %2998 }
 0x7d5   :  { %v3008_v1 = vsel %vm232_vm3, %v2999_v54, %v3001_v20 }
 0x7d6   :  { %3622 = vrot.lane.b32.xlu1 %v8426_v58, %s9865_s30  ;;  %3580 = vrot.lane.b32.xlu0 %v8426_v58, %s9864_s14  ;;  %v3033_v59 = vmul.f32 %v3019_v57, %v3008_v1  ;;  %v3107_v57 = vrot.slane %v5974_v15, %v6903_v61 }
 0x7d8   :  { %v3043_v22 = vpop.permute.xlu1 %3042  ;;  %v3041_v48 = vpop.permute.xlu0 %3040 }
 0x7d9   :  { %v3050_v42 = vsel %vm275_vm4, %v3041_v48, %v3043_v22 }
 0x7da   :  { %v3075_v35 = vmul.f32 %v3061_v47, %v3050_v42  ;;  %3662 = vrot.lane.b32.xlu1 %v8433_v62, %s9866_s22  ;;  %3660 = vrot.lane.b32.xlu0 %v8415_v26, %s9866_s22 }
 0x7dc   :  { %v3047_v29 = vpop.permute.xlu1 %3046  ;;  %v3005_v44 = vpop.permute.xlu0 %3004  ;;  %v6236_v49 = vpack.c.bf16 %v3075_v35, %v3033_v59 }
 0x7dd   :  { %v3051_v43 = vsel %vm275_vm4, %v3047_v29, %v3041_v48  ;;  %v3009_v52 = vsel %vm232_vm3, %v3005_v44, %v2999_v54  ;;  %v3153_v54 = vrot.slane %v5975_v17, %v6901_v56 }
 0x7de   :  { %v3074_v11 = vmul.f32 %v3057_v41, %v3051_v43  ;;  %v3032_v45 = vmul.f32 %v3015_v53, %v3009_v52  ;;  %3704 = vrot.lane.b32.xlu1 %v8433_v62, %s9817_s17  ;;  %3702 = vrot.lane.b32.xlu0 %v8415_v26, %s9817_s17  ;;  %v5976_v52 = vld [vmem:[%s9632_s1 + $0x10] sm:$0xf] }
 0x7df   :  { %6237 = vmatprep.subr.bf16.mxu0 %v6236_v49 }
 0x7e0   :  { %v6238_v36 = vpack.c.bf16 %v3074_v11, %v3032_v45  ;;  %v3045_v27 = vpop.permute.xlu1 %3044  ;;  %v3003_v39 = vpop.permute.xlu0 %3002 }
 0x7e1   :  { %v3048_v4 = vsel %vm275_vm4, %v3045_v27, %v3047_v29  ;;  %v3049_v32 = vsel %vm275_vm4, %v3043_v22, %v3045_v27  ;;  %v3006_v5 = vsel %vm232_vm3, %v3003_v39, %v3005_v44  ;;  %v3007_v46 = vsel %vm232_vm3, %v3001_v20, %v3003_v39 }
 0x7e2   :  { %v3076_v13 = vmul.f32 %v3065_v31, %v3049_v32  ;;  %v3077_v25 = vmul.f32 %v3069_v19, %v3048_v4  ;;  %v3034_v63 = vmul.f32 %v3023_v50, %v3007_v46  ;;  %v3035_v8 = vmul.f32 %v3027_v16, %v3006_v5  ;;  %3700 = vrot.lane.b32.xlu1 %v8412_v34, %s9817_s17  ;;  %v5977_v19 = vld [vmem:[%s9632_s1 + $0x14] sm:$0xf] }
 0x7e3   :  { %3658 = vrot.lane.b32.xlu0 %v8412_v34, %s9866_s22  ;;  %6239 = vmatpush1.bf16.msra.mxu0 %v6238_v36  ;;  %v3111_v22 = vrot.slane %v5974_v15, %v6901_v56  ;;  %v3187_v36 = vrot.slane %v5976_v52, %v6894_v12  ;;  %v3229_v27 = vrot.slane %v5977_v19, %v6894_v12 }
 0x7e4   :  { %v6286_v55 = vpack.c.bf16 %v3076_v13, %v3034_v63  ;;  %v3085_v18 = vpop.permute.xlu1 %3084  ;;  %v3083_v24 = vpop.permute.xlu0 %3082  ;;  %v6284_v60 = vpack.c.bf16 %v3077_v25, %v3035_v8  ;;  %v3225_v25 = vrot.slane %v5977_v19, %v6896_v14  ;;  %v3183_v63 = vrot.slane %v5976_v52, %v6896_v14 }
 0x7e5   :  { %v3092_v9 = vsel %vm319_vm5, %v3083_v24, %v3085_v18 }
 0x7e6   :  { %3706 = vrot.lane.b32.xlu1 %v8426_v58, %s9817_s17  ;;  %6285 = vmatprep.subr.bf16.mxu1 %v6284_v60  ;;  %v3117_v21 = vmul.f32 %v3103_v2, %v3092_v9  ;;  %v3237_v60 = vrot.slane %v5977_v19, %v6901_v56  ;;  %v3191_v2 = vrot.slane %v5976_v52, %v6903_v61 }
 0x7e7   :  { %3664 = vrot.lane.b32.xlu0 %v8426_v58, %s9866_s22  ;;  %6287 = vmatpush1.bf16.msra.mxu1 %v6286_v55  ;;  %v3233_v55 = vrot.slane %v5977_v19, %v6903_v61 }
 0x7e8   :  { %v3127_v40 = vpop.permute.xlu1 %3126  ;;  %v3125_v10 = vpop.permute.xlu0 %3124 }
 0x7e9   :  { %v3134_v37 = vsel %vm9867_vm6, %v3125_v10, %v3127_v40  ;;  %vm9871_vm6 = vcmp.lt.s32.totalorder %v6885_v6, 30 }
 0x7ea   :  { %v3159_v28 = vmul.f32 %v3145_v0, %v3134_v37  ;;  %3746 = vrot.lane.b32.xlu1 %v8433_v62, %s9818_s15 }
 0x7eb   :  { %3744 = vrot.lane.b32.xlu0 %v8415_v26, %s9818_s15 }
 0x7ec   :  { %v3131_v51 = vpop.permute.xlu1 %3130  ;;  %v3089_v3 = vpop.permute.xlu0 %3088  ;;  %v6240_v38 = vpack.c.bf16 %v3159_v28, %v3117_v21 }
 0x7ed   :  { %v3135_v33 = vsel %vm9868_vm7, %v3131_v51, %v3125_v10  ;;  %v3093_v20 = vsel %vm319_vm5, %v3089_v3, %v3083_v24  ;;  %vm9872_vm7 = vcmp.lt.s32.totalorder %v6885_v6, 18 }
 0x7ee   :  { %v3158_v47 = vmul.f32 %v3141_v23, %v3135_v33  ;;  %v3116_v1 = vmul.f32 %v3099_v7, %v3093_v20  ;;  %3788 = vrot.lane.b32.xlu1 %v8433_v62, %s9819_s16  ;;  %6241 = vmatprep.subr.bf16.mxu0 %v6240_v38  ;;  %v5978_v20 = vld [vmem:[%s9632_s1 + $0x18] sm:$0xf] }
 0x7ef   :  { %3786 = vrot.lane.b32.xlu0 %v8415_v26, %s9819_s16 }
 0x7f0   :  { %v6242_v48 = vpack.c.bf16 %v3158_v47, %v3116_v1  ;;  %v3129_v42 = vpop.permute.xlu1 %3128  ;;  %v3087_v41 = vpop.permute.xlu0 %3086 }
 0x7f1   :  { %v3132_v59 = vsel %vm9869_vm8, %v3129_v42, %v3131_v51  ;;  %v3133_v35 = vsel %vm9870_vm9, %v3127_v40, %v3129_v42  ;;  %v3090_v53 = vsel %vm319_vm5, %v3087_v41, %v3089_v3  ;;  %v3091_v29 = vsel %vm319_vm5, %v3085_v18, %v3087_v41  ;;  %vm9873_vm8 = vmmov %vm9872_vm7 }
 0x7f2   :  { %v3160_v44 = vmul.f32 %v3149_v30, %v3133_v35  ;;  %v3161_v49 = vmul.f32 %v3153_v54, %v3132_v59  ;;  %v3118_v31 = vmul.f32 %v3107_v57, %v3091_v29  ;;  %v3119_v43 = vmul.f32 %v3111_v22, %v3090_v53  ;;  %3784 = vrot.lane.b32.xlu1 %v8412_v34, %s9819_s16  ;;  %vm9874_vm9 = vmmov %vm9871_vm6  ;;  %v5979_v54 = vld [vmem:[%s9632_s1 + $0x1c] sm:$0xf] }
 0x7f3   :  { %3742 = vrot.lane.b32.xlu0 %v8412_v34, %s9818_s15  ;;  %6243 = vmatpush1.bf16.msra.mxu0 %v6242_v48  ;;  %v3195_v40 = vrot.slane %v5976_v52, %v6901_v56  ;;  %v3271_v48 = vrot.slane %v5978_v20, %v6894_v12  ;;  %v3313_v42 = vrot.slane %v5979_v54, %v6894_v12 }
 0x7f4   :  { %v6290_v50 = vpack.c.bf16 %v3160_v44, %v3118_v31  ;;  %v3169_v11 = vpop.permute.xlu1 %3168  ;;  %v3167_v45 = vpop.permute.xlu0 %3166  ;;  %v6288_v16 = vpack.c.bf16 %v3161_v49, %v3119_v43  ;;  %v3309_v49 = vrot.slane %v5979_v54, %v6896_v14  ;;  %v3267_v31 = vrot.slane %v5978_v20, %v6896_v14 }
 0x7f5   :  { %v3176_v39 = vsel %vm9871_vm6, %v3167_v45, %v3169_v11  ;;  %vm9875_vm6 = vmmov %vm9872_vm7 }
 0x7f6   :  { %3790 = vrot.lane.b32.xlu1 %v8426_v58, %s9819_s16  ;;  %6289 = vmatprep.subr.bf16.mxu1 %v6288_v16  ;;  %v3201_v46 = vmul.f32 %v3187_v36, %v3176_v39  ;;  %v3321_v16 = vrot.slane %v5979_v54, %v6901_v56  ;;  %v3275_v36 = vrot.slane %v5978_v20, %v6903_v61 }
 0x7f7   :  { %3748 = vrot.lane.b32.xlu0 %v8426_v58, %s9818_s15  ;;  %6291 = vmatpush1.bf16.msra.mxu1 %v6290_v50  ;;  %v3317_v50 = vrot.slane %v5979_v54, %v6903_v61 }
 0x7f8   :  { %v3211_v4 = vpop.permute.xlu1 %3210  ;;  %v3209_v32 = vpop.permute.xlu0 %3208 }
 0x7f9   :  { %v3218_v5 = vsel %vm9872_vm7, %v3209_v32, %v3211_v4  ;;  %vm9876_vm7 = vmmov %vm9875_vm6 }
 0x7fa   :  { %v3243_v13 = vmul.f32 %v3229_v27, %v3218_v5  ;;  %3830 = vrot.lane.b32.xlu1 %v8433_v62, %s9820_s12 }
 0x7fb   :  { %3828 = vrot.lane.b32.xlu0 %v8415_v26, %s9820_s12 }
 0x7fc   :  { %v3215_v8 = vpop.permute.xlu1 %3214  ;;  %v3173_v15 = vpop.permute.xlu0 %3172  ;;  %v6244_v17 = vpack.c.bf16 %v3243_v13, %v3201_v46 }
 0x7fd   :  { %v3219_v18 = vsel %vm9873_vm8, %v3215_v8, %v3209_v32  ;;  %v3177_v24 = vsel %vm9874_vm9, %v3173_v15, %v3167_v45  ;;  %vm9877_vm8 = vmmov %vm9874_vm9 }
 0x7fe   :  { %v3242_v0 = vmul.f32 %v3225_v25, %v3219_v18  ;;  %v3200_v9 = vmul.f32 %v3183_v63, %v3177_v24  ;;  %3872 = vrot.lane.b32.xlu1 %v8433_v62, %s9821_s18  ;;  %6245 = vmatprep.subr.bf16.mxu0 %v6244_v17  ;;  %vm9878_vm9 = vmmov %vm9877_vm8  ;;  %v5980_v24 = vld [vmem:[%s9632_s1 + $0x20] sm:$0xf] }
 0x7ff   :  { %3870 = vrot.lane.b32.xlu0 %v8415_v26, %s9821_s18 }
 0x800   :  { %v6246_v10 = vpack.c.bf16 %v3242_v0, %v3200_v9  ;;  %v3213_v37 = vpop.permute.xlu1 %3212  ;;  %v3171_v21 = vpop.permute.xlu0 %3170 }
 0x801   :  { %v3216_v28 = vsel %vm9875_vm6, %v3213_v37, %v3215_v8  ;;  %v3217_v23 = vsel %vm9876_vm7, %v3211_v4, %v3213_v37  ;;  %v3174_v7 = vsel %vm9877_vm8, %v3171_v21, %v3173_v15  ;;  %v3175_v51 = vsel %vm9878_vm9, %v3169_v11, %v3171_v21  ;;  %v6002_v37 = vld [vmem:[%s9630_s4 + $0x58] sm:$0xff] }
 0x802   :  { %v3244_v3 = vmul.f32 %v3233_v55, %v3217_v23  ;;  %v3245_v38 = vmul.f32 %v3237_v60, %v3216_v28  ;;  %v3202_v30 = vmul.f32 %v3191_v2, %v3175_v51  ;;  %v3203_v33 = vmul.f32 %v3195_v40, %v3174_v7  ;;  %3868 = vrot.lane.b32.xlu1 %v8412_v34, %s9821_s18  ;;  %v5981_v60 = vld [vmem:[%s9632_s1 + $0x24] sm:$0xf] }
 0x803   :  { %3826 = vrot.lane.b32.xlu0 %v8412_v34, %s9820_s12  ;;  %6247 = vmatpush1.bf16.msra.mxu0 %v6246_v10  ;;  %vm9879_vm6 = vcmp.lt.s32.totalorder %v6885_v6, 17  ;;  %vm9880_vm7 = vcmp.lt.s32.totalorder %v6885_v6, 16  ;;  %v3279_v4 = vrot.slane %v5978_v20, %v6901_v56  ;;  %v5998_v10 = vld [vmem:[%s9630_s4 + $0x48] sm:$0xff]  ;;  %v3355_v21 = vrot.slane %v5980_v24, %v6894_v12 }
 0x804   :  { %v6294_v57 = vpack.c.bf16 %v3244_v3, %v3202_v30  ;;  %v3253_v47 = vpop.permute.xlu1 %3252  ;;  %v3251_v1 = vpop.permute.xlu0 %3250  ;;  %v6292_v22 = vpack.c.bf16 %v3245_v38, %v3203_v33  ;;  %vm9881_vm8 = vmmov %vm9880_vm7  ;;  %v3397_v28 = vrot.slane %v5981_v60, %v6894_v12  ;;  %v3393_v33 = vrot.slane %v5981_v60, %v6896_v14 }
 0x805   :  { %v3260_v41 = vsel %vm9879_vm6, %v3251_v1, %v3253_v47  ;;  %vm9882_vm9 = vmmov %vm9879_vm6  ;;  %v3351_v20 = vrot.slane %v5980_v24, %v6896_v14 }
 0x806   :  { %3874 = vrot.lane.b32.xlu1 %v8426_v58, %s9821_s18  ;;  %6293 = vmatprep.subr.bf16.mxu1 %v6292_v22  ;;  %v3285_v29 = vmul.f32 %v3271_v48, %v3260_v41  ;;  %vm9883_vm6 = vmmov %vm9880_vm7  ;;  %v3359_v41 = vrot.slane %v5980_v24, %v6903_v61 }
 0x807   :  { %3832 = vrot.lane.b32.xlu0 %v8426_v58, %s9820_s12  ;;  %6295 = vmatpush1.bf16.msra.mxu1 %v6294_v57 }
 0x808   :  { %v3295_v59 = vpop.permute.xlu1 %3294  ;;  %v3293_v35 = vpop.permute.xlu0 %3292 }
 0x809   :  { %v3302_v53 = vsel %vm9880_vm7, %v3293_v35, %v3295_v59  ;;  %vm9884_vm7 = vmmov %vm9883_vm6 }
 0x80a   :  { %v3327_v44 = vmul.f32 %v3313_v42, %v3302_v53  ;;  %3914 = vrot.lane.b32.xlu1 %v8433_v62, %s9823_s29  ;;  %v3405_v42 = vrot.slane %v5981_v60, %v6901_v56  ;;  %v3363_v53 = vrot.slane %v5980_v24, %v6901_v56 }
 0x80b   :  { %3912 = vrot.lane.b32.xlu0 %v8415_v26, %s9823_s29 }
 0x80c   :  { %v3299_v43 = vpop.permute.xlu1 %3298  ;;  %v3257_v52 = vpop.permute.xlu0 %3256  ;;  %v6248_v19 = vpack.c.bf16 %v3327_v44, %v3285_v29  ;;  %v6003_v29 = vld [vmem:[%s9631_s5 + $0x10] sm:$0xff] }
 0x80d   :  { %v3303_v11 = vsel %vm9881_vm8, %v3299_v43, %v3293_v35  ;;  %v3261_v45 = vsel %vm9882_vm9, %v3257_v52, %v3251_v1  ;;  %vm9885_vm8 = vmmov %vm9882_vm9  ;;  %v3401_v1 = vrot.slane %v5981_v60, %v6903_v61 }
 0x80e   :  { %v3326_v27 = vmul.f32 %v3309_v49, %v3303_v11  ;;  %v3284_v39 = vmul.f32 %v3267_v31, %v3261_v45  ;;  %3956 = vrot.lane.b32.xlu1 %v8433_v62, %s9719_s20  ;;  %6249 = vmatprep.subr.bf16.mxu0 %v6248_v19  ;;  %vm9886_vm9 = vmmov %vm9885_vm8 }
 0x80f   :  { %3954 = vrot.lane.b32.xlu0 %v8415_v26, %s9719_s20 }
 0x810   :  { %v6250_v32 = vpack.c.bf16 %v3326_v27, %v3284_v39  ;;  %v3297_v5 = vpop.permute.xlu1 %3296  ;;  %v3255_v46 = vpop.permute.xlu0 %3254  ;;  %v5982_v27 = vld [vmem:[%s9632_s1 + $0x28] sm:$0xf]  ;;  %v5983_v39 = vld [vmem:[%s9632_s1 + $0x2c] sm:$0xf] }
 0x811   :  { %v3300_v13 = vsel %vm9883_vm6, %v3297_v5, %v3299_v43  ;;  %v3301_v25 = vsel %vm9884_vm7, %v3295_v59, %v3297_v5  ;;  %v3258_v63 = vsel %vm9885_vm8, %v3255_v46, %v3257_v52  ;;  %v3259_v8 = vsel %vm9886_vm9, %v3253_v47, %v3255_v46 }
 0x812   :  { %v3328_v15 = vmul.f32 %v3317_v50, %v3301_v25  ;;  %v3329_v17 = vmul.f32 %v3321_v16, %v3300_v13  ;;  %v3286_v55 = vmul.f32 %v3275_v36, %v3259_v8  ;;  %v3287_v18 = vmul.f32 %v3279_v4, %v3258_v63  ;;  %3952 = vrot.lane.b32.xlu1 %v8412_v34, %s9719_s20  ;;  %s9922_s20 = smov 18  }
 0x813   :  { %3910 = vrot.lane.b32.xlu0 %v8412_v34, %s9823_s29  ;;  %6251 = vmatpush1.bf16.msra.mxu0 %v6250_v32  ;;  %vm9887_vm6 = vcmask 588800   ;;  %vm9889_vm7 = vcmp.lt.s32.totalorder %v6885_v6, 15  ;;  %vm9891_vm9 = vcmp.lt.s32.totalorder %v6885_v6, 14  ;;  %v3439_v13 = vrot.slane %v5982_v27, %v6894_v12 }
 0x814   :  { %v6298_v2 = vpack.c.bf16 %v3328_v15, %v3286_v55  ;;  %v3337_v0 = vpop.permute.xlu1 %3336  ;;  %v3335_v9 = vpop.permute.xlu0 %3334  ;;  %v6296_v40 = vpack.c.bf16 %v3329_v17, %v3287_v18  ;;  %6000 = vmatprep.mubr.msk.f32.mxu0 %vm9887_vm6, %v5998_v10  ;;  %vm9890_vm8 = vmmov %vm9887_vm6  ;;  %v3481_v25 = vrot.slane %v5983_v39, %v6894_v12  ;;  %v3477_v24 = vrot.slane %v5983_v39, %v6896_v14 }
 0x815   :  { %v3344_v23 = vsel %vm9889_vm7, %v3335_v9, %v3337_v0  ;;  %6004 = vmatprep.mubr.msk.f32.mxu1 %vm9890_vm8, %v6002_v37  ;;  %vm9892_vm6 = vmmov %vm9891_vm9  ;;  %v3435_v60 = vrot.slane %v5982_v27, %v6896_v14  ;;  %v3485_v37 = vrot.slane %v5983_v39, %v6903_v61 }
 0x816   :  { %3958 = vrot.lane.b32.xlu1 %v8426_v58, %s9888_s21  ;;  %6297 = vmatprep.subr.bf16.mxu1 %v6296_v40  ;;  %v3369_v38 = vmul.f32 %v3355_v21, %v3344_v23  ;;  %vm9893_vm8 = vmmov %vm9892_vm6  ;;  %v3489_v21 = vrot.slane %v5983_v39, %v6901_v56  ;;  %v5984_v23 = vld [vmem:[%s9632_s1 + $0x30] sm:$0xf] }
 0x817   :  { %3916 = vrot.lane.b32.xlu0 %v8426_v58, %s9823_s29  ;;  %6299 = vmatpush1.bf16.msra.mxu1 %v6298_v2 }
 0x818   :  { %v3379_v7 = vpop.permute.xlu1 %3378  ;;  %v3377_v51 = vpop.permute.xlu0 %3376 }
 0x819   :  { %v3386_v3 = vsel %vm9891_vm9, %v3377_v51, %v3379_v7  ;;  %vm9894_vm9 = vmmov %vm9892_vm6 }
 0x81a   :  { %v3411_v30 = vmul.f32 %v3397_v28, %v3386_v3  ;;  %3998 = vrot.lane.b32.xlu1 %v8433_v62, %s9829_s25  ;;  %v5985_v28 = vld [vmem:[%s9632_s1 + $0x34] sm:$0xf]  ;;  %v3443_v3 = vrot.slane %v5982_v27, %v6903_v61 }
 0x81b   :  { %3996 = vrot.lane.b32.xlu0 %v8415_v26, %s9829_s25 }
 0x81c   :  { %v3383_v54 = vpop.permute.xlu1 %3382  ;;  %v3341_v57 = vpop.permute.xlu0 %3340  ;;  %v6252_v47 = vpack.c.bf16 %v3411_v30, %v3369_v38  ;;  %v3447_v38 = vrot.slane %v5982_v27, %v6901_v56 }
 0x81d   :  { %v3387_v22 = vsel %vm9892_vm6, %v3383_v54, %v3377_v51  ;;  %v3345_v48 = vsel %vm9889_vm7, %v3341_v57, %v3335_v9  ;;  %vm9895_vm6 = vmmov %vm9889_vm7 }
 0x81e   :  { %v3410_v59 = vmul.f32 %v3393_v33, %v3387_v22  ;;  %v3368_v35 = vmul.f32 %v3351_v20, %v3345_v48  ;;  %4000 = vrot.lane.b32.xlu1 %v8426_v58, %s9829_s25  ;;  %6253 = vmatprep.subr.bf16.mxu0 %v6252_v47  ;;  %vm9896_vm7 = vmmov %vm9895_vm6 }
 0x81f   :  { %3994 = vrot.lane.b32.xlu0 %v8412_v34, %s9829_s25 }
 0x820   :  { %v6254_v44 = vpack.c.bf16 %v3410_v59, %v3368_v35  ;;  %v3381_v49 = vpop.permute.xlu1 %3380  ;;  %v3339_v31 = vpop.permute.xlu0 %3338 }
 0x821   :  { %v3384_v43 = vsel %vm9893_vm8, %v3381_v49, %v3383_v54  ;;  %v3385_v52 = vsel %vm9894_vm9, %v3379_v7, %v3381_v49  ;;  %v3342_v19 = vsel %vm9895_vm6, %v3339_v31, %v3341_v57  ;;  %v3343_v50 = vsel %vm9896_vm7, %v3337_v0, %v3339_v31 }
 0x822   :  { %v3412_v11 = vmul.f32 %v3401_v1, %v3385_v52  ;;  %v3413_v45 = vmul.f32 %v3405_v42, %v3384_v43  ;;  %v3370_v16 = vmul.f32 %v3359_v41, %v3343_v50  ;;  %v3371_v36 = vmul.f32 %v3363_v53, %v3342_v19  ;;  %4228 = vperm.xlu1 %6455, %v6003_v29  }
 0x823   :  { %4093 = vperm.xlu0 %6454, %v6003_v29   ;;  %6255 = vmatpush1.bf16.msra.mxu0 %v6254_v44  ;;  %v3553_v54 = vrot.slane %v5985_v28, %v6894_v12  ;;  %v3511_v57 = vrot.slane %v5984_v23, %v6894_v12  ;;  %v3515_v31 = vrot.slane %v5984_v23, %v6903_v61  ;;  %vm9897_vm8 = vcmp.lt.s32.totalorder %v6885_v6, 127 }
 0x824   :  { %v6302_v4 = vpack.c.bf16 %v3412_v11, %v3370_v16  ;;  %v3421_v32 = vpop.permute.xlu1 %3420  ;;  %v3419_v5 = vpop.permute.xlu0 %3418  ;;  %v6300_v46 = vpack.c.bf16 %v3413_v45, %v3371_v36  ;;  %v3507_v52 = vrot.slane %v5984_v23, %v6896_v14  ;;  %v3519_v50 = vrot.slane %v5984_v23, %v6901_v56  ;;  %vm9898_vm9 = vmmov %vm9897_vm8 }
 0x825   :  { %v3428_v63 = vsel %vm671_vm14, %v3419_v5, %v3421_v32  ;;  %v3525_v19 = vmul.f32 %v3511_v57, %v8415_v26  ;;  %v3557_v45 = vrot.slane %v5985_v28, %v6903_v61  ;;  %v3549_v16 = vrot.slane %v5985_v28, %v6896_v14  ;;  %vm9899_vm6 = vmmov %vm9897_vm8 }
 0x826   :  { %6301 = vmatprep.subr.bf16.mxu1 %v6300_v46  ;;  %v3453_v55 = vmul.f32 %v3439_v13, %v3428_v63  ;;  %v3561_v36 = vrot.slane %v5985_v28, %v6901_v56  ;;  %v3526_v27 = vmul.f32 %v3515_v31, %v8433_v62  ;;  %v3524_v46 = vmul.f32 %v3507_v52, %v8412_v34  ;;  %vm9900_vm7 = vmmov %vm9899_vm6 }
 0x827   :  { %6303 = vmatpush1.bf16.msra.mxu1 %v6302_v4 }
 0x828   :  { %v3463_v8 = vpop.permute.xlu1 %3462  ;;  %v3461_v15 = vpop.permute.xlu0 %3460 }
 0x829   :  { %v3470_v17 = vsel %vm715_vm1, %v3461_v15, %v3463_v8 }
 0x82a   :  { %v3495_v18 = vmul.f32 %v3481_v25, %v3470_v17  ;;  %v3527_v17 = vmul.f32 %v3519_v50, %v8426_v58 }
 0x82c   :  { %v3467_v2 = vpop.permute.xlu1 %3466  ;;  %v3425_v0 = vpop.permute.xlu0 %3424  ;;  %v6256_v9 = vpack.c.bf16 %v3495_v18, %v3453_v55  ;;  %v5986_v55 = vld [vmem:[%s9632_s1 + $0x38] sm:$0xf]  ;;  %v5987_v18 = vld [vmem:[%s9632_s1 + $0x3c] sm:$0xf] }
 0x82d   :  { %v3471_v40 = vsel %vm715_vm1, %v3467_v2, %v3461_v15  ;;  %v3429_v10 = vsel %vm671_vm14, %v3425_v0, %v3419_v5 }
 0x82e   :  { %v3494_v7 = vmul.f32 %v3477_v24, %v3471_v40  ;;  %v3452_v51 = vmul.f32 %v3435_v60, %v3429_v10  ;;  %6257 = vmatprep.subr.bf16.mxu0 %v6256_v9  ;;  %v3595_v40 = vrot.slane %v5986_v55, %v6894_v12  ;;  %v3637_v10 = vrot.slane %v5987_v18, %v6894_v12 }
 0x830   :  { %v6258_v30 = vpack.c.bf16 %v3494_v7, %v3452_v51  ;;  %v3465_v33 = vpop.permute.xlu1 %3464  ;;  %v3423_v20 = vpop.permute.xlu0 %3422 }
 0x831   :  { %v3468_v47 = vsel %vm715_vm1, %v3465_v33, %v3467_v2  ;;  %v3469_v1 = vsel %vm715_vm1, %v3463_v8, %v3465_v33  ;;  %v3426_v22 = vsel %vm671_vm14, %v3423_v20, %v3425_v0  ;;  %v3427_v48 = vsel %vm671_vm14, %v3421_v32, %v3423_v20 }
 0x832   :  { %v3496_v42 = vmul.f32 %v3485_v37, %v3469_v1  ;;  %v3497_v41 = vmul.f32 %v3489_v21, %v3468_v47  ;;  %v3454_v59 = vmul.f32 %v3443_v3, %v3427_v48  ;;  %v3455_v35 = vmul.f32 %v3447_v38, %v3426_v22  ;;  %6259 = vmatpush1.bf16.msra.mxu0 %v6258_v30 }
 0x833   :  { %v3633_v3 = vrot.slane %v5987_v18, %v6896_v14  ;;  %v3591_v38 = vrot.slane %v5986_v55, %v6896_v14  ;;  %v3641_v47 = vrot.slane %v5987_v18, %v6903_v61  ;;  %v3645_v1 = vrot.slane %v5987_v18, %v6901_v56 }
 0x834   :  { %v6306_v53 = vpack.c.bf16 %v3496_v42, %v3454_v59  ;;  %v3537_v29 = vpop.permute.xlu1 %3536  ;;  %v3535_v44 = vpop.permute.xlu0 %3534  ;;  %v6304_v49 = vpack.c.bf16 %v3497_v41, %v3455_v35  ;;  %v3599_v42 = vrot.slane %v5986_v55, %v6903_v61  ;;  %v3603_v41 = vrot.slane %v5986_v55, %v6901_v56 }
 0x835   :  { %v3541_v43 = vsel %vm9897_vm8, %v3535_v44, %v3537_v29  ;;  %vm9901_vm8 = vcmp.lt.s32.totalorder %v6885_v6, 126 }
 0x836   :  { %v3567_v11 = vmul.f32 %v3553_v54, %v3541_v43  ;;  %6305 = vmatprep.subr.bf16.mxu1 %v6304_v49 }
 0x837   :  { %6307 = vmatpush1.bf16.msra.mxu1 %v6306_v53 }
 0x838   :  { %v3539_v39 = vpop.permute.xlu1 %3538  ;;  %v3533_v4 = vpop.permute.xlu0 %3532  ;;  %v6260_v32 = vpack.c.bf16 %v3567_v11, %v3525_v19  ;;  %v5988_v11 = vld [vmem:[%s9632_s1 + $0x40] sm:$0xf] }
 0x839   :  { %v3540_v5 = vsel %vm9898_vm9, %v3537_v29, %v3539_v39  ;;  %v3542_v13 = vsel %vm9899_vm6, %v3533_v4, %v3535_v44  ;;  %v3543_v25 = vsel %vm9900_vm7, %v3539_v39, %v3533_v4  ;;  %vm9902_vm9 = vmmov %vm9901_vm8  ;;  %v3679_v4 = vrot.slane %v5988_v11, %v6894_v12 }
 0x83a   :  { %v3568_v63 = vmul.f32 %v3557_v45, %v3540_v5  ;;  %v3566_v8 = vmul.f32 %v3549_v16, %v3542_v13  ;;  %v3569_v15 = vmul.f32 %v3561_v36, %v3543_v25  ;;  %6261 = vmatprep.subr.bf16.mxu0 %v6260_v32  ;;  %vm9903_vm6 = vmmov %vm9901_vm8  ;;  %v5989_v45 = vld [vmem:[%s9632_s1 + $0x44] sm:$0xf] }
 0x83b   :  { %vm9904_vm7 = vmmov %vm9903_vm6  ;;  %v3721_v32 = vrot.slane %v5989_v45, %v6894_v12 }
 0x83c   :  { %v6310_v24 = vpack.c.bf16 %v3568_v63, %v3526_v27  ;;  %v6262_v60 = vpack.c.bf16 %v3566_v8, %v3524_v46  ;;  %v3579_v2 = vpop.permute.xlu1 %3578  ;;  %v3577_v0 = vpop.permute.xlu0 %3576  ;;  %v6308_v9 = vpack.c.bf16 %v3569_v15, %v3527_v17  ;;  %v3717_v15 = vrot.slane %v5989_v45, %v6896_v14 }
 0x83d   :  { %v3583_v37 = vsel %vm9901_vm8, %v3577_v0, %v3579_v2  ;;  %vm9905_vm8 = vcmp.lt.s32.totalorder %v6885_v6, 113  ;;  %v3675_v17 = vrot.slane %v5988_v11, %v6896_v14 }
 0x83e   :  { %6263 = vmatpush1.bf16.msra.mxu0 %v6262_v60  ;;  %6309 = vmatprep.subr.bf16.mxu1 %v6308_v9  ;;  %v3609_v7 = vmul.f32 %v3595_v40, %v3583_v37  ;;  %v3725_v9 = vrot.slane %v5989_v45, %v6903_v61  ;;  %v3729_v40 = vrot.slane %v5989_v45, %v6901_v56 }
 0x83f   :  { %6311 = vmatpush1.bf16.msra.mxu1 %v6310_v24  ;;  %v3683_v37 = vrot.slane %v5988_v11, %v6903_v61 }
 0x840   :  { %v3621_v21 = vpop.permute.xlu1 %3620  ;;  %v3619_v28 = vpop.permute.xlu0 %3618 }
 0x841   :  { %v3625_v23 = vsel %vm878_vm15, %v3619_v28, %v3621_v21 }
 0x842   :  { %v3651_v51 = vmul.f32 %v3637_v10, %v3625_v23 }
 0x844   :  { %v3617_v30 = vpop.permute.xlu1 %3616  ;;  %v3575_v33 = vpop.permute.xlu0 %3574  ;;  %v6264_v20 = vpack.c.bf16 %v3651_v51, %v3609_v7 }
 0x845   :  { %v3626_v54 = vsel %vm878_vm15, %v3617_v30, %v3619_v28  ;;  %v3584_v57 = vsel %vm9902_vm9, %v3575_v33, %v3577_v0  ;;  %vm9906_vm9 = vmmov %vm9905_vm8 }
 0x846   :  { %v3650_v22 = vmul.f32 %v3633_v3, %v3626_v54  ;;  %v3608_v48 = vmul.f32 %v3591_v38, %v3584_v57  ;;  %6265 = vmatprep.subr.bf16.mxu0 %v6264_v20 }
 0x848   :  { %v6266_v59 = vpack.c.bf16 %v3650_v22, %v3608_v48  ;;  %v3623_v35 = vpop.permute.xlu1 %3622  ;;  %v3581_v53 = vpop.permute.xlu0 %3580  ;;  %v5991_v22 = vld [vmem:[%s9632_s1 + $0x4c] sm:$0xf] }
 0x849   :  { %v3624_v29 = vsel %vm878_vm15, %v3621_v21, %v3623_v35  ;;  %v3627_v44 = vsel %vm878_vm15, %v3623_v35, %v3617_v30  ;;  %v3582_v49 = vsel %vm9903_vm6, %v3579_v2, %v3581_v53  ;;  %v3585_v31 = vsel %vm9904_vm7, %v3581_v53, %v3575_v33  ;;  %vm9907_vm6 = vmmov %vm9905_vm8 }
 0x84a   :  { %v3652_v43 = vmul.f32 %v3641_v47, %v3624_v29  ;;  %v3653_v52 = vmul.f32 %v3645_v1, %v3627_v44  ;;  %v3610_v19 = vmul.f32 %v3599_v42, %v3582_v49  ;;  %v3611_v50 = vmul.f32 %v3603_v41, %v3585_v31  ;;  %6267 = vmatpush1.bf16.msra.mxu0 %v6266_v59  ;;  %vm9908_vm7 = vmmov %vm9907_vm6  ;;  %v5990_v1 = vld [vmem:[%s9632_s1 + $0x48] sm:$0xf] }
 0x84b   :  { %v3687_v21 = vrot.slane %v5988_v11, %v6901_v56  ;;  %v3763_v59 = vrot.slane %v5990_v1, %v6894_v12  ;;  %v3805_v35 = vrot.slane %v5991_v22, %v6894_v12  ;;  %v3801_v31 = vrot.slane %v5991_v22, %v6896_v14 }
 0x84c   :  { %v6314_v16 = vpack.c.bf16 %v3652_v43, %v3610_v19  ;;  %v3663_v36 = vpop.permute.xlu1 %3662  ;;  %v3661_v27 = vpop.permute.xlu0 %3660  ;;  %v6312_v39 = vpack.c.bf16 %v3653_v52, %v3611_v50  ;;  %v3759_v19 = vrot.slane %v5990_v1, %v6896_v14 }
 0x84d   :  { %v3667_v5 = vsel %vm9905_vm8, %v3661_v27, %v3663_v36  ;;  %vm9909_vm8 = vcmp.lt.s32.totalorder %v6885_v6, 111 }
 0x84e   :  { %6313 = vmatprep.subr.bf16.mxu1 %v6312_v39  ;;  %v3693_v63 = vmul.f32 %v3679_v4, %v3667_v5  ;;  %v3809_v39 = vrot.slane %v5991_v22, %v6903_v61  ;;  %v3813_v4 = vrot.slane %v5991_v22, %v6901_v56  ;;  %v3767_v5 = vrot.slane %v5990_v1, %v6903_v61 }
 0x84f   :  { %6315 = vmatpush1.bf16.msra.mxu1 %v6314_v16 }
 0x850   :  { %v3705_v46 = vpop.permute.xlu1 %3704  ;;  %v3703_v13 = vpop.permute.xlu0 %3702 }
 0x851   :  { %v3709_v25 = vsel %vm966_vm2, %v3703_v13, %v3705_v46 }
 0x852   :  { %v3735_v8 = vmul.f32 %v3721_v32, %v3709_v25 }
 0x854   :  { %v3701_v55 = vpop.permute.xlu1 %3700  ;;  %v6268_v18 = vpack.c.bf16 %v3735_v8, %v3693_v63 }
 0x855   :  { %v3710_v24 = vsel %vm966_vm2, %v3701_v55, %v3703_v13  ;;  %v3659_v60 = vpop.permute.xlu0 %3658 }
 0x856   :  { %v3734_v2 = vmul.f32 %v3717_v15, %v3710_v24  ;;  %v3668_v0 = vsel %vm9906_vm9, %v3659_v60, %v3661_v27  ;;  %6269 = vmatprep.subr.bf16.mxu0 %v6268_v18  ;;  %vm9910_vm9 = vmmov %vm9909_vm8 }
 0x857   :  { %v3692_v10 = vmul.f32 %v3675_v17, %v3668_v0 }
 0x858   :  { %v3707_v28 = vpop.permute.xlu1 %3706 }
 0x859   :  { %v6270_v23 = vpack.c.bf16 %v3734_v2, %v3692_v10  ;;  %v3708_v7 = vsel %vm966_vm2, %v3705_v46, %v3707_v28  ;;  %v3711_v51 = vsel %vm966_vm2, %v3707_v28, %v3701_v55  ;;  %v3665_v3 = vpop.permute.xlu0 %3664  ;;  %v3771_v46 = vrot.slane %v5990_v1, %v6901_v56 }
 0x85a   :  { %v3736_v38 = vmul.f32 %v3725_v9, %v3708_v7  ;;  %v3737_v30 = vmul.f32 %v3729_v40, %v3711_v51  ;;  %v3666_v33 = vsel %vm9907_vm6, %v3663_v36, %v3665_v3  ;;  %v3669_v20 = vsel %vm9908_vm7, %v3665_v3, %v3659_v60  ;;  %vm9911_vm6 = vmmov %vm9909_vm8  ;;  %v5992_v9 = vld [vmem:[%s9632_s1 + $0x50] sm:$0xf]  ;;  %v5993_v40 = vld [vmem:[%s9632_s1 + $0x54] sm:$0xf] }
 0x85b   :  { %v3694_v54 = vmul.f32 %v3683_v37, %v3666_v33  ;;  %v3695_v57 = vmul.f32 %v3687_v21, %v3669_v20  ;;  %6271 = vmatpush1.bf16.msra.mxu0 %v6270_v23  ;;  %vm9912_vm7 = vmmov %vm9911_vm6  ;;  %v3847_v28 = vrot.slane %v5992_v9, %v6894_v12  ;;  %v3889_v23 = vrot.slane %v5993_v40, %v6894_v12 }
 0x85c   :  { %v3747_v47 = vpop.permute.xlu1 %3746 }
 0x85d   :  { %v6318_v48 = vpack.c.bf16 %v3736_v38, %v3694_v54  ;;  %v3745_v42 = vpop.permute.xlu0 %3744  ;;  %v6316_v41 = vpack.c.bf16 %v3737_v30, %v3695_v57  ;;  %v3885_v30 = vrot.slane %v5993_v40, %v6896_v14  ;;  %v3843_v54 = vrot.slane %v5992_v9, %v6896_v14 }
 0x85e   :  { %v3751_v53 = vsel %vm9909_vm8, %v3745_v42, %v3747_v47  ;;  %vm9913_vm8 = vcmp.lt.s32.totalorder %v6885_v6, 96 }
 0x85f   :  { %6317 = vmatprep.subr.bf16.mxu1 %v6316_v41  ;;  %v3777_v43 = vmul.f32 %v3763_v59, %v3751_v53  ;;  %v3893_v41 = vrot.slane %v5993_v40, %v6903_v61  ;;  %v3897_v59 = vrot.slane %v5993_v40, %v6901_v56  ;;  %v3851_v53 = vrot.slane %v5992_v9, %v6903_v61 }
 0x860   :  { %6319 = vmatpush1.bf16.msra.mxu1 %v6318_v48  ;;  %v3789_v29 = vpop.permute.xlu1 %3788 }
 0x861   :  { %v3787_v44 = vpop.permute.xlu0 %3786 }
 0x862   :  { %v3793_v49 = vsel %vm1054_vm12, %v3787_v44, %v3789_v29 }
 0x863   :  { %v3819_v52 = vmul.f32 %v3805_v35, %v3793_v49 }
 0x864   :  { %v3785_v50 = vpop.permute.xlu1 %3784 }
 0x865   :  { %v3794_v11 = vsel %vm1054_vm12, %v3785_v50, %v3787_v44  ;;  %v3743_v45 = vpop.permute.xlu0 %3742  ;;  %v6272_v16 = vpack.c.bf16 %v3819_v52, %v3777_v43 }
 0x866   :  { %v3818_v36 = vmul.f32 %v3801_v31, %v3794_v11  ;;  %v3752_v27 = vsel %vm9910_vm9, %v3743_v45, %v3745_v42  ;;  %vm9914_vm9 = vmmov %vm9913_vm8 }
 0x867   :  { %v3776_v32 = vmul.f32 %v3759_v19, %v3752_v27  ;;  %6273 = vmatprep.subr.bf16.mxu0 %v6272_v16 }
 0x868   :  { %v3791_v13 = vpop.permute.xlu1 %3790 }
 0x869   :  { %v6274_v25 = vpack.c.bf16 %v3818_v36, %v3776_v32  ;;  %v3792_v63 = vsel %vm1054_vm12, %v3789_v29, %v3791_v13  ;;  %v3795_v8 = vsel %vm1054_vm12, %v3791_v13, %v3785_v50  ;;  %v3749_v15 = vpop.permute.xlu0 %3748  ;;  %v3855_v29 = vrot.slane %v5992_v9, %v6901_v56 }
 0x86a   :  { %v3820_v17 = vmul.f32 %v3809_v39, %v3792_v63  ;;  %v3821_v55 = vmul.f32 %v3813_v4, %v3795_v8  ;;  %v3750_v18 = vsel %vm9911_vm6, %v3747_v47, %v3749_v15  ;;  %v3753_v24 = vsel %vm9912_vm7, %v3749_v15, %v3743_v45  ;;  %v5994_v39 = vld [vmem:[%s9632_s1 + $0x58] sm:$0xf]  ;;  %v5995_v4 = vld [vmem:[%s9632_s1 + $0x5c] sm:$0xf]  ;;  %vm9915_vm6 = vmmov %vm9913_vm8 }
 0x86b   :  { %v3778_v60 = vmul.f32 %v3767_v5, %v3750_v18  ;;  %v3779_v2 = vmul.f32 %v3771_v46, %v3753_v24  ;;  %6275 = vmatpush1.bf16.msra.mxu0 %v6274_v25  ;;  %v3931_v13 = vrot.slane %v5994_v39, %v6894_v12  ;;  %v3973_v25 = vrot.slane %v5995_v4, %v6894_v12  ;;  %vm9916_vm7 = vmmov %vm9915_vm6 }
 0x86c   :  { %v3831_v0 = vpop.permute.xlu1 %3830 }
 0x86d   :  { %v6322_v10 = vpack.c.bf16 %v3820_v17, %v3778_v60  ;;  %v3829_v37 = vpop.permute.xlu0 %3828  ;;  %v6320_v21 = vpack.c.bf16 %v3821_v55, %v3779_v2  ;;  %v3969_v55 = vrot.slane %v5995_v4, %v6896_v14  ;;  %v3927_v60 = vrot.slane %v5994_v39, %v6896_v14 }
 0x86e   :  { %v3835_v7 = vsel %vm1098_vm0, %v3829_v37, %v3831_v0 }
 0x86f   :  { %6321 = vmatprep.subr.bf16.mxu1 %v6320_v21  ;;  %v3861_v33 = vmul.f32 %v3847_v28, %v3835_v7  ;;  %v3977_v21 = vrot.slane %v5995_v4, %v6903_v61  ;;  %v3981_v28 = vrot.slane %v5995_v4, %v6901_v56  ;;  %v3935_v7 = vrot.slane %v5994_v39, %v6903_v61  ;;  %v5997_v4 = vld [vmem:[%s9630_s4 + $0x40] sm:$0xff] }
 0x870   :  { %6323 = vmatpush1.bf16.msra.mxu1 %v6322_v10  ;;  %v3873_v51 = vpop.permute.xlu1 %3872 }
 0x871   :  { %v3871_v3 = vpop.permute.xlu0 %3870 }
 0x872   :  { %v3877_v38 = vsel %vm1142_vm13, %v3871_v3, %v3873_v51 }
 0x873   :  { %v3903_v20 = vmul.f32 %v3889_v23, %v3877_v38  ;;  %v5996_v38 = vld [vmem:[%s9632_s1 + $0x60] sm:$0xf] }
 0x874   :  { %v3869_v57 = vpop.permute.xlu1 %3868 }
 0x875   :  { %v3878_v47 = vsel %vm1142_vm13, %v3869_v57, %v3871_v3  ;;  %v3827_v1 = vpop.permute.xlu0 %3826  ;;  %v6276_v22 = vpack.c.bf16 %v3903_v20, %v3861_v33 }
 0x876   :  { %v3902_v48 = vmul.f32 %v3885_v30, %v3878_v47  ;;  %v3836_v42 = vsel %vm1098_vm0, %v3827_v1, %v3829_v37 }
 0x877   :  { %v3860_v35 = vmul.f32 %v3843_v54, %v3836_v42  ;;  %6277 = vmatprep.subr.bf16.mxu0 %v6276_v22 }
 0x878   :  { %v3875_v44 = vpop.permute.xlu1 %3874 }
 0x879   :  { %v6278_v49 = vpack.c.bf16 %v3902_v48, %v3860_v35  ;;  %v3876_v31 = vsel %vm1142_vm13, %v3873_v51, %v3875_v44  ;;  %v3879_v43 = vsel %vm1142_vm13, %v3875_v44, %v3869_v57  ;;  %v3833_v52 = vpop.permute.xlu0 %3832  ;;  %v3939_v51 = vrot.slane %v5994_v39, %v6901_v56 }
 0x87a   :  { %v3904_v19 = vmul.f32 %v3893_v41, %v3876_v31  ;;  %v3905_v50 = vmul.f32 %v3897_v59, %v3879_v43  ;;  %v3834_v11 = vsel %vm1098_vm0, %v3831_v0, %v3833_v52  ;;  %v3837_v45 = vsel %vm1098_vm0, %v3833_v52, %v3827_v1 }
 0x87b   :  { %v3862_v16 = vmul.f32 %v3851_v53, %v3834_v11  ;;  %v3863_v36 = vmul.f32 %v3855_v29, %v3837_v45  ;;  %6279 = vmatpush1.bf16.msra.mxu0 %v6278_v49  ;;  %v4015_v41 = vrot.slane %v5996_v38, %v6894_v12  ;;  %v4019_v49 = vrot.slane %v5996_v38, %v6903_v61 }
 0x87c   :  { %v3915_v27 = vpop.permute.xlu1 %3914  ;;  %v4011_v31 = vrot.slane %v5996_v38, %v6896_v14  ;;  %v4023_v52 = vrot.slane %v5996_v38, %v6901_v56 }
 0x87d   :  { %v6326_v32 = vpack.c.bf16 %v3904_v19, %v3862_v16  ;;  %v3913_v5 = vpop.permute.xlu0 %3912  ;;  %v6324_v46 = vpack.c.bf16 %v3905_v50, %v3863_v36 }
 0x87e   :  { %v3919_v63 = vsel %vm9913_vm8, %v3913_v5, %v3915_v27 }
 0x87f   :  { %6325 = vmatprep.subr.bf16.mxu1 %v6324_v46  ;;  %v3945_v18 = vmul.f32 %v3931_v13, %v3919_v63 }
 0x880   :  { %6327 = vmatpush1.bf16.msra.mxu1 %v6326_v32  ;;  %v3957_v8 = vpop.permute.xlu1 %3956  ;;  %v6001_v32 = vld [vmem:[%s9630_s4 + $0x50] sm:$0xff] }
 0x881   :  { %v3955_v15 = vpop.permute.xlu0 %3954 }
 0x882   :  { %v3961_v17 = vsel %vm1230_vm11, %v3955_v15, %v3957_v8 }
 0x883   :  { %v3987_v24 = vmul.f32 %v3973_v25, %v3961_v17 }
 0x884   :  { %v3953_v2 = vpop.permute.xlu1 %3952 }
 0x885   :  { %v3962_v0 = vsel %vm1230_vm11, %v3953_v2, %v3955_v15  ;;  %v3911_v9 = vpop.permute.xlu0 %3910  ;;  %v6280_v40 = vpack.c.bf16 %v3987_v24, %v3945_v18 }
 0x886   :  { %v3986_v10 = vmul.f32 %v3969_v55, %v3962_v0  ;;  %v3920_v37 = vsel %vm9914_vm9, %v3911_v9, %v3913_v5 }
 0x887   :  { %v3944_v23 = vmul.f32 %v3927_v60, %v3920_v37  ;;  %6281 = vmatprep.subr.bf16.mxu0 %v6280_v40 }
 0x888   :  { %v3959_v3 = vpop.permute.xlu1 %3958 }
 0x889   :  { %v6282_v30 = vpack.c.bf16 %v3986_v10, %v3944_v23  ;;  %v3960_v33 = vsel %vm1230_vm11, %v3957_v8, %v3959_v3  ;;  %v3963_v20 = vsel %vm1230_vm11, %v3959_v3, %v3953_v2  ;;  %v3917_v54 = vpop.permute.xlu0 %3916 }
 0x88a   :  { %v3988_v57 = vmul.f32 %v3977_v21, %v3960_v33  ;;  %v3989_v47 = vmul.f32 %v3981_v28, %v3963_v20  ;;  %v3918_v1 = vsel %vm9915_vm6, %v3915_v27, %v3917_v54  ;;  %v3921_v22 = vsel %vm9916_vm7, %v3917_v54, %v3911_v9  ;;  %v6005_v20 = vld [vmem:[%s9633_s6 + $0x10] sm:$0xff] }
 0x88b   :  { %v3946_v48 = vmul.f32 %v3935_v7, %v3918_v1  ;;  %v3947_v42 = vmul.f32 %v3939_v51, %v3921_v22  ;;  %6283 = vmatpush1.bf16.msra.mxu0 %v6282_v30  ;;  %vm9930_vm6 = vcmp.lt.s32.totalorder %v6885_v6, 18 }
 0x88c   :  { %v3999_v59 = vpop.permute.xlu1 %3998  ;;  %vm9931_vm7 = vmmov %vm9930_vm6 }
 0x88d   :  { %v6330_v35 = vpack.c.bf16 %v3988_v57, %v3946_v48  ;;  %v3997_v53 = vpop.permute.xlu0 %3996  ;;  %v6328_v29 = vpack.c.bf16 %v3989_v47, %v3947_v42  ;;  %v6006_v47 = vld [vmem:[%s9634_s7 + $0x10] sm:$0xff] }
 0x88e   :  { %v4003_v44 = vsel %vm1274_vm10, %v3997_v53, %v3999_v59 }
 0x88f   :  { %6329 = vmatprep.subr.bf16.mxu1 %v6328_v29  ;;  %v4029_v43 = vmul.f32 %v4015_v41, %v4003_v44 }
 0x890   :  { %6331 = vmatpush1.bf16.msra.mxu1 %v6330_v35  ;;  %v4001_v19 = vpop.permute.xlu1 %4000 }
 0x891   :  { %v4002_v50 = vsel %vm1274_vm10, %v3999_v59, %v4001_v19  ;;  %v3995_v11 = vpop.permute.xlu0 %3994  ;;  %4147 = vmatprep.subr.mxu0 %v4029_v43 }
 0x892   :  { %v4030_v45 = vmul.f32 %v4019_v49, %v4002_v50  ;;  %v4004_v16 = vsel %vm1274_vm10, %v3995_v11, %v3997_v53  ;;  %v4005_v36 = vsel %vm1274_vm10, %v4001_v19, %v3995_v11  ;;  %v4372_v11 = vld [vmem:[%s9632_s1] sm:$0xf] }
 0x893   :  { %v4028_v27 = vmul.f32 %v4011_v31, %v4004_v16  ;;  %v4031_v39 = vmul.f32 %v4023_v52, %v4005_v36 }
 0x895   :  { %4148 = vmatpush1.msra.mxu0 %v4028_v27  ;;  %4282 = vmatprep.subr.mxu1 %v4031_v39  ;;  %v4381_v27 = vrot.slane %v4372_v11, %v6894_v12 }
 0x896   :  { %4164 = vmatmul.mubr.f32.vlgmr.msra.gmra.mrb[6].mxu0 %v5997_v4  ;;  %4283 = vmatpush1.msra.mxu1 %v4030_v45  ;;  %v6007_v45 = vld [vmem:[%s9632_s1 + $0x4] sm:$0xf] }
 0x897   :  { %4299 = vmatmul.mubr.f32.vlgmr.msra.gmra.mrb[6].mxu1 %v6001_v32  ;;  %v4423_v39 = vrot.slane %v6007_v45, %v6894_v12 }
 0x8a1   :  { %v4229_v5 = vpop.permute.xlu1 %4228 }
 0x8a2   :  { %v4094_v46 = vpop.permute.xlu0 %4093 }
 0x969   :  { %v4165_v13 = vpop.f32.mrb[6].mxu0 }
 0x96a   :  { %v4166_v25 = vadd.f32 %v4165_v13, %v4094_v46  ;;  %v4167_v63 = vpop.f32.mrb[7].mxu0  ;;  %v4300_v8 = vpop.f32.mrb[6].mxu1  ;;  %v4419_v13 = vrot.slane %v6007_v45, %v6896_v14 }
 0x96b   :  { %v4168_v15 = vadd.f32 %v4167_v63, %v4094_v46  ;;  %v4301_v17 = vadd.f32 %v4300_v8, %v4229_v5  ;;  %v4302_v55 = vpop.f32.mrb[7].mxu1  ;;  %v4377_v8 = vrot.slane %v4372_v11, %v6896_v14 }
 0x96c   :  { %v4316_v18 = vmul.f32 %v4166_v25, %v4166_v25  ;;  %v4303_v2 = vadd.f32 %v4302_v55, %v4229_v5 }
 0x96d   :  { %v4311_v24 = vadd.f32 %v4168_v15, %v4166_v25  ;;  %v4317_v60 = vmul.f32 %v4168_v15, %v4168_v15  ;;  %v4318_v40 = vmul.f32 %v4301_v17, %v4301_v17 }
 0x96e   :  { %v4319_v10 = vmul.f32 %v4303_v2, %v4303_v2 }
 0x96f   :  { %v4320_v0 = vadd.f32 %v4317_v60, %v4316_v18  ;;  %v4312_v9 = vadd.f32 %v4311_v24, %v4301_v17  ;;  %v4427_v18 = vrot.slane %v6007_v45, %v6903_v61 }
 0x971   :  { %v4313_v37 = vadd.f32 %v4312_v9, %v4303_v2  ;;  %v4321_v21 = vadd.f32 %v4320_v0, %v4318_v40  ;;  %v4385_v0 = vrot.slane %v4372_v11, %v6903_v61 }
 0x973   :  { %4314 = vadd.xlane.f32.xlu0 %v4313_v37  ;;  %v4322_v28 = vadd.f32 %v4321_v21, %v4319_v10  ;;  %v4389_v10 = vrot.slane %v4372_v11, %v6901_v56 }
 0x975   :  { %4323 = vadd.xlane.f32.xlu1 %v4322_v28 }
 0xa00   :  { %v4315_v23 = vpop.xlane.xlu0 %4314 }
 0xa01   :  { %v4325_v7 = vmul.f32 0.001953125, %v4315_v23 }
 0xa02   :  { %v4324_v51 = vpop.xlane.xlu1 %4323 }
 0xa03   :  { %v4327_v3 = vmul.f32 %v4325_v7, %v4325_v7  ;;  %v4326_v38 = vmul.f32 0.001953125, %v4324_v51 }
 0xa05   :  { %v4328_v30 = vsub.f32 %v4326_v38, %v4327_v3 }
 0xa07   :  { %v4331_v33 = vadd.f32 1e-05, %v4328_v30 }
 0xa09   :  { %6462 = vrsqrt.f32 %v4331_v33 }
 0xa13   :  { %v6463_v54 = vpop.eup %6462 }
 0xa14   :  { %v4333_v57 = vmul.f32 %v6463_v54, %v6005_v20  ;;  %v6008_v54 = vld [vmem:[%s9632_s1 + $0x8] sm:$0xf] }
 0xa15   :  { %v4461_v11 = vrot.slane %v6008_v54, %v6896_v14 }
 0xa16   :  { %4340 = vperm.xlu0 %6454, %v4333_v57   ;;  %v4336_v1 = vmul.f32 %v4333_v57, %v4325_v7  ;;  %v6009_v57 = vld [vmem:[%s9632_s1 + $0xc] sm:$0xf] }
 0xa18   :  { %v4337_v22 = vsub.f32 %v6006_v47, %v4336_v1 }
 0xa1a   :  { %4349 = vperm.xlu1 %6455, %v4337_v22  }
 0xa95   :  { %v4341_v48 = vpop.permute.xlu0 %4340 }
 0xa96   :  { %v4343_v42 = vmul.f32 %v4341_v48, %v4166_v25  ;;  %v4344_v41 = vmul.f32 %v4341_v48, %v4168_v15  ;;  %v4346_v49 = vmul.f32 %v4341_v48, %v4303_v2  ;;  %v4345_v43 = vmul.f32 %v4341_v48, %v4301_v17 }
 0xa97   :  { %v4431_v2 = vrot.slane %v6007_v45, %v6901_v56 }
 0xa99   :  { %v4350_v59 = vpop.permute.xlu1 %4349 }
 0xa9a   :  { %v4352_v35 = vadd.f32 %v4350_v59, %v4343_v42  ;;  %v4353_v53 = vadd.f32 %v4350_v59, %v4344_v41  ;;  %v4355_v31 = vadd.f32 %v4350_v59, %v4346_v49  ;;  %v4354_v52 = vadd.f32 %v4350_v59, %v4345_v43 }
 0xa9b   :  { %v4465_v42 = vrot.slane %v6008_v54, %v6894_v12  ;;  %v4507_v41 = vrot.slane %v6009_v57, %v6894_v12 }
 0xa9c   :  { %v9009_v29 = vmax.f32 %v4352_v35, 0.0  ;;  %v9011_v44 = vmax.f32 %v4353_v53, 0.0  ;;  %v9021_v19 = vmax.f32 %v4355_v31, 0.0  ;;  %v9027_v50 = vmax.f32 %v4354_v52, 0.0 }
 0xa9d   :  { %v4503_v52 = vrot.slane %v6009_v57, %v6896_v14 }
 0xa9e   :  { %4362 = vrot.lane.b32.xlu1 %v9011_v44, %s9917_s24  ;;  %4360 = vrot.lane.b32.xlu0 %v9009_v29, %s9917_s24 }
 0xaa2   :  { %4404 = vrot.lane.b32.xlu1 %v9011_v44, %s9918_s28  ;;  %4402 = vrot.lane.b32.xlu0 %v9009_v29, %s9918_s28 }
 0xaa6   :  { %4408 = vrot.lane.b32.xlu1 %v9021_v19, %s9918_s28  ;;  %4366 = vrot.lane.b32.xlu0 %v9021_v19, %s9917_s24 }
 0xaaa   :  { %4406 = vrot.lane.b32.xlu1 %v9027_v50, %s9918_s28  ;;  %4364 = vrot.lane.b32.xlu0 %v9027_v50, %s9917_s24  ;;  %s9924_s24 = smov 16  }
 0xaae   :  { %4446 = vrot.lane.b32.xlu1 %v9011_v44, %s9919_s0  ;;  %4444 = vrot.lane.b32.xlu0 %v9009_v29, %s9919_s0 }
 0xab2   :  { %4488 = vrot.lane.b32.xlu1 %v9011_v44, %s9920_s2  ;;  %4486 = vrot.lane.b32.xlu0 %v9009_v29, %s9920_s2 }
 0xab6   :  { %4492 = vrot.lane.b32.xlu1 %v9021_v19, %s9920_s2  ;;  %4450 = vrot.lane.b32.xlu0 %v9021_v19, %s9919_s0 }
 0xaba   :  { %4490 = vrot.lane.b32.xlu1 %v9027_v50, %s9920_s2  ;;  %4448 = vrot.lane.b32.xlu0 %v9027_v50, %s9919_s0 }
 0xabe   :  { %4530 = vrot.lane.b32.xlu1 %v9011_v44, %s9921_s3  ;;  %4528 = vrot.lane.b32.xlu0 %v9009_v29, %s9921_s3 }
 0xac2   :  { %4572 = vrot.lane.b32.xlu1 %v9011_v44, %s9922_s20  ;;  %4570 = vrot.lane.b32.xlu0 %v9009_v29, %s9922_s20 }
 0xac6   :  { %4576 = vrot.lane.b32.xlu1 %v9021_v19, %s9922_s20  ;;  %4534 = vrot.lane.b32.xlu0 %v9021_v19, %s9921_s3 }
 0xaca   :  { %4574 = vrot.lane.b32.xlu1 %v9027_v50, %s9922_s20  ;;  %4532 = vrot.lane.b32.xlu0 %v9027_v50, %s9921_s3 }
 0xace   :  { %4614 = vrot.lane.b32.xlu1 %v9011_v44, %s9923_s23  ;;  %4612 = vrot.lane.b32.xlu0 %v9009_v29, %s9923_s23 }
 0xad2   :  { %4656 = vrot.lane.b32.xlu1 %v9011_v44, %s9924_s24  ;;  %4654 = vrot.lane.b32.xlu0 %v9009_v29, %s9924_s24 }
 0xad6   :  { %4660 = vrot.lane.b32.xlu1 %v9021_v19, %s9924_s24  ;;  %4618 = vrot.lane.b32.xlu0 %v9021_v19, %s9923_s23 }
 0xada   :  { %4658 = vrot.lane.b32.xlu1 %v9027_v50, %s9924_s24  ;;  %4616 = vrot.lane.b32.xlu0 %v9027_v50, %s9923_s23 }
 0xade   :  { %4698 = vrot.lane.b32.xlu1 %v9011_v44, %s9859_s19  ;;  %4696 = vrot.lane.b32.xlu0 %v9009_v29, %s9859_s19 }
 0xae2   :  { %4740 = vrot.lane.b32.xlu1 %v9011_v44, %s9860_s13  ;;  %4738 = vrot.lane.b32.xlu0 %v9009_v29, %s9860_s13 }
 0xae6   :  { %4744 = vrot.lane.b32.xlu1 %v9021_v19, %s9860_s13  ;;  %4702 = vrot.lane.b32.xlu0 %v9021_v19, %s9859_s19 }
 0xaea   :  { %4742 = vrot.lane.b32.xlu1 %v9027_v50, %s9860_s13  ;;  %4700 = vrot.lane.b32.xlu0 %v9027_v50, %s9859_s19 }
 0xaee   :  { %4782 = vrot.lane.b32.xlu1 %v9011_v44, %s9861_s26  ;;  %4780 = vrot.lane.b32.xlu0 %v9009_v29, %s9861_s26 }
 0xaf2   :  { %4824 = vrot.lane.b32.xlu1 %v9011_v44, %s9862_s27  ;;  %4822 = vrot.lane.b32.xlu0 %v9009_v29, %s9862_s27 }
 0xaf6   :  { %4828 = vrot.lane.b32.xlu1 %v9021_v19, %s9862_s27  ;;  %4786 = vrot.lane.b32.xlu0 %v9021_v19, %s9861_s26 }
 0xafa   :  { %4826 = vrot.lane.b32.xlu1 %v9027_v50, %s9862_s27  ;;  %4784 = vrot.lane.b32.xlu0 %v9027_v50, %s9861_s26 }
 0xafe   :  { %4898 = vrot.lane.b32.xlu1 %v9027_v50, %s9863_s11  ;;  %4896 = vrot.lane.b32.xlu0 %v9011_v44, %s9863_s11 }
 0xb02   :  { %4900 = vrot.lane.b32.xlu1 %v9021_v19, %s9863_s11  ;;  %4894 = vrot.lane.b32.xlu0 %v9009_v29, %s9863_s11 }
 0xb06   :  { %4940 = vrot.lane.b32.xlu1 %v9027_v50, %s9864_s14  ;;  %4938 = vrot.lane.b32.xlu0 %v9011_v44, %s9864_s14 }
 0xb0a   :  { %4982 = vrot.lane.b32.xlu1 %v9027_v50, %s9865_s30  ;;  %4980 = vrot.lane.b32.xlu0 %v9011_v44, %s9865_s30 }
 0xb0e   :  { %4978 = vrot.lane.b32.xlu1 %v9009_v29, %s9865_s30  ;;  %4936 = vrot.lane.b32.xlu0 %v9009_v29, %s9864_s14 }
 0xb10   :  { %v4363_v16 = vpop.permute.xlu1 %4362  ;;  %v4361_v36 = vpop.permute.xlu0 %4360 }
 0xb11   :  { %v4370_v4 = vsel %vm232_vm3, %v4361_v36, %v4363_v16 }
 0xb12   :  { %4984 = vrot.lane.b32.xlu1 %v9021_v19, %s9865_s30  ;;  %4942 = vrot.lane.b32.xlu0 %v9021_v19, %s9864_s14  ;;  %v4395_v25 = vmul.f32 %v4381_v27, %v4370_v4  ;;  %v4511_v27 = vrot.slane %v6009_v57, %v6903_v61 }
 0xb14   :  { %v4405_v32 = vpop.permute.xlu1 %4404  ;;  %v4403_v5 = vpop.permute.xlu0 %4402 }
 0xb15   :  { %v4412_v46 = vsel %vm275_vm4, %v4403_v5, %v4405_v32 }
 0xb16   :  { %v4437_v63 = vmul.f32 %v4423_v39, %v4412_v46  ;;  %5024 = vrot.lane.b32.xlu1 %v9027_v50, %s9866_s22  ;;  %5022 = vrot.lane.b32.xlu0 %v9011_v44, %s9866_s22 }
 0xb18   :  { %v4409_v15 = vpop.permute.xlu1 %4408  ;;  %v4367_v17 = vpop.permute.xlu0 %4366  ;;  %v6332_v55 = vpack.c.bf16 %v4437_v63, %v4395_v25  ;;  %v4473_v25 = vrot.slane %v6008_v54, %v6901_v56 }
 0xb19   :  { %v4413_v24 = vsel %vm275_vm4, %v4409_v15, %v4403_v5  ;;  %v4371_v60 = vsel %vm232_vm3, %v4367_v17, %v4361_v36  ;;  %v4469_v5 = vrot.slane %v6008_v54, %v6903_v61 }
 0xb1a   :  { %v4436_v9 = vmul.f32 %v4419_v13, %v4413_v24  ;;  %v4394_v40 = vmul.f32 %v4377_v8, %v4371_v60  ;;  %5066 = vrot.lane.b32.xlu1 %v9027_v50, %s9817_s17  ;;  %5064 = vrot.lane.b32.xlu0 %v9011_v44, %s9817_s17 }
 0xb1b   :  { %6333 = vmatprep.subr.bf16.mxu0 %v6332_v55 }
 0xb1c   :  { %v6334_v37 = vpack.c.bf16 %v4436_v9, %v4394_v40  ;;  %v4407_v21 = vpop.permute.xlu1 %4406  ;;  %v4365_v28 = vpop.permute.xlu0 %4364  ;;  %v6010_v40 = vld [vmem:[%s9632_s1 + $0x10] sm:$0xf] }
 0xb1d   :  { %v4410_v23 = vsel %vm275_vm4, %v4407_v21, %v4409_v15  ;;  %v4411_v7 = vsel %vm275_vm4, %v4405_v32, %v4407_v21  ;;  %v4368_v51 = vsel %vm232_vm3, %v4365_v28, %v4367_v17  ;;  %v4369_v3 = vsel %vm232_vm3, %v4363_v16, %v4365_v28 }
 0xb1e   :  { %v4438_v38 = vmul.f32 %v4427_v18, %v4411_v7  ;;  %v4439_v30 = vmul.f32 %v4431_v2, %v4410_v23  ;;  %v4396_v33 = vmul.f32 %v4385_v0, %v4369_v3  ;;  %v4397_v20 = vmul.f32 %v4389_v10, %v4368_v51  ;;  %5062 = vrot.lane.b32.xlu1 %v9009_v29, %s9817_s17  ;;  %v6011_v10 = vld [vmem:[%s9632_s1 + $0x14] sm:$0xf] }
 0xb1f   :  { %5020 = vrot.lane.b32.xlu0 %v9009_v29, %s9866_s22  ;;  %6335 = vmatpush1.bf16.msra.mxu0 %v6334_v37  ;;  %vm9925_vm3 = vcmp.lt.s32.totalorder %v6885_v6, 31  ;;  %v4515_v32 = vrot.slane %v6009_v57, %v6901_v56  ;;  %v4549_v7 = vrot.slane %v6010_v40, %v6894_v12  ;;  %v4591_v51 = vrot.slane %v6011_v10, %v6894_v12 }
 0xb20   :  { %v6382_v47 = vpack.c.bf16 %v4438_v38, %v4396_v33  ;;  %v4447_v1 = vpop.permute.xlu1 %4446  ;;  %v4445_v22 = vpop.permute.xlu0 %4444  ;;  %v6380_v48 = vpack.c.bf16 %v4439_v30, %v4397_v20  ;;  %vm9926_vm4 = vmmov %vm9925_vm3  ;;  %v4587_v57 = vrot.slane %v6011_v10, %v6896_v14 }
 0xb21   :  { %v4454_v59 = vsel %vm319_vm5, %v4445_v22, %v4447_v1  ;;  %vm9927_vm8 = vmmov %vm9925_vm3 }
 0xb22   :  { %5068 = vrot.lane.b32.xlu1 %v9021_v19, %s9817_s17  ;;  %6381 = vmatprep.subr.bf16.mxu1 %v6380_v48  ;;  %v4479_v31 = vmul.f32 %v4465_v42, %v4454_v59  ;;  %vm9928_vm9 = vmmov %vm9925_vm3  ;;  %v4595_v42 = vrot.slane %v6011_v10, %v6903_v61 }
 0xb23   :  { %5026 = vrot.lane.b32.xlu0 %v9021_v19, %s9866_s22  ;;  %6383 = vmatpush1.bf16.msra.mxu1 %v6382_v47  ;;  %v4545_v47 = vrot.slane %v6010_v40, %v6896_v14 }
 0xb24   :  { %v4489_v35 = vpop.permute.xlu1 %4488  ;;  %v4487_v53 = vpop.permute.xlu0 %4486 }
 0xb25   :  { %v4496_v49 = vsel %vm9925_vm3, %v4487_v53, %v4489_v35 }
 0xb26   :  { %v4521_v43 = vmul.f32 %v4507_v41, %v4496_v49  ;;  %5108 = vrot.lane.b32.xlu1 %v9027_v50, %s9818_s15 }
 0xb27   :  { %5106 = vrot.lane.b32.xlu0 %v9011_v44, %s9818_s15 }
 0xb28   :  { %v4493_v45 = vpop.permute.xlu1 %4492  ;;  %v4451_v16 = vpop.permute.xlu0 %4450  ;;  %v6336_v36 = vpack.c.bf16 %v4521_v43, %v4479_v31  ;;  %v4557_v43 = vrot.slane %v6010_v40, %v6901_v56 }
 0xb29   :  { %v4497_v39 = vsel %vm9926_vm4, %v4493_v45, %v4487_v53  ;;  %v4455_v4 = vsel %vm319_vm5, %v4451_v16, %v4445_v22  ;;  %v4553_v53 = vrot.slane %v6010_v40, %v6903_v61  ;;  %vm9933_vm4 = vmmov %vm9930_vm6 }
 0xb2a   :  { %v4520_v46 = vmul.f32 %v4503_v52, %v4497_v39  ;;  %v4478_v13 = vmul.f32 %v4461_v11, %v4455_v4  ;;  %5150 = vrot.lane.b32.xlu1 %v9027_v50, %s9819_s16  ;;  %6337 = vmatprep.subr.bf16.mxu0 %v6336_v36 }
 0xb2b   :  { %5148 = vrot.lane.b32.xlu0 %v9011_v44, %s9819_s16 }
 0xb2c   :  { %v6338_v63 = vpack.c.bf16 %v4520_v46, %v4478_v13  ;;  %v4491_v8 = vpop.permute.xlu1 %4490  ;;  %v4449_v15 = vpop.permute.xlu0 %4448  ;;  %v6012_v13 = vld [vmem:[%s9632_s1 + $0x18] sm:$0xf] }
 0xb2d   :  { %v4494_v17 = vsel %vm9927_vm8, %v4491_v8, %v4493_v45  ;;  %v4495_v55 = vsel %vm9928_vm9, %v4489_v35, %v4491_v8  ;;  %v4452_v18 = vsel %vm319_vm5, %v4449_v15, %v4451_v16  ;;  %v4453_v24 = vsel %vm319_vm5, %v4447_v1, %v4449_v15  ;;  %vm9934_vm8 = vmmov %vm9933_vm4 }
 0xb2e   :  { %v4522_v60 = vmul.f32 %v4511_v27, %v4495_v55  ;;  %v4523_v2 = vmul.f32 %v4515_v32, %v4494_v17  ;;  %v4480_v0 = vmul.f32 %v4469_v5, %v4453_v24  ;;  %v4481_v9 = vmul.f32 %v4473_v25, %v4452_v18  ;;  %5146 = vrot.lane.b32.xlu1 %v9009_v29, %s9819_s16  ;;  %v6013_v25 = vld [vmem:[%s9632_s1 + $0x1c] sm:$0xf] }
 0xb2f   :  { %5104 = vrot.lane.b32.xlu0 %v9009_v29, %s9818_s15  ;;  %6339 = vmatpush1.bf16.msra.mxu0 %v6338_v63  ;;  %vm9929_vm5 = vcmp.lt.s32.totalorder %v6885_v6, 30  ;;  %v4599_v35 = vrot.slane %v6011_v10, %v6901_v56  ;;  %v4633_v55 = vrot.slane %v6012_v13, %v6894_v12  ;;  %v4675_v18 = vrot.slane %v6013_v25, %v6894_v12 }
 0xb30   :  { %v6386_v37 = vpack.c.bf16 %v4522_v60, %v4480_v0  ;;  %v4531_v21 = vpop.permute.xlu1 %4530  ;;  %v4529_v28 = vpop.permute.xlu0 %4528  ;;  %v6384_v23 = vpack.c.bf16 %v4523_v2, %v4481_v9  ;;  %vm9932_vm3 = vmmov %vm9929_vm5  ;;  %v4671_v10 = vrot.slane %v6013_v25, %v6896_v14 }
 0xb31   :  { %v4538_v3 = vsel %vm9929_vm5, %v4529_v28, %v4531_v21  ;;  %vm9935_vm9 = vmmov %vm9932_vm3 }
 0xb32   :  { %5152 = vrot.lane.b32.xlu1 %v9021_v19, %s9819_s16  ;;  %6385 = vmatprep.subr.bf16.mxu1 %v6384_v23  ;;  %v4563_v20 = vmul.f32 %v4549_v7, %v4538_v3  ;;  %vm9936_vm5 = vmmov %vm9932_vm3  ;;  %v4679_v7 = vrot.slane %v6013_v25, %v6903_v61 }
 0xb33   :  { %5110 = vrot.lane.b32.xlu0 %v9021_v19, %s9818_s15  ;;  %6387 = vmatpush1.bf16.msra.mxu1 %v6386_v37  ;;  %v4629_v37 = vrot.slane %v6012_v13, %v6896_v14 }
 0xb34   :  { %v4573_v38 = vpop.permute.xlu1 %4572  ;;  %v4571_v30 = vpop.permute.xlu0 %4570 }
 0xb35   :  { %v4580_v33 = vsel %vm9930_vm6, %v4571_v30, %v4573_v38  ;;  %vm9937_vm6 = vcmp.lt.s32.totalorder %v6885_v6, 17 }
 0xb36   :  { %v4605_v54 = vmul.f32 %v4591_v51, %v4580_v33  ;;  %5192 = vrot.lane.b32.xlu1 %v9027_v50, %s9820_s12 }
 0xb37   :  { %5190 = vrot.lane.b32.xlu0 %v9011_v44, %s9820_s12 }
 0xb38   :  { %v4577_v1 = vpop.permute.xlu1 %4576  ;;  %v4535_v22 = vpop.permute.xlu0 %4534  ;;  %v6340_v48 = vpack.c.bf16 %v4605_v54, %v4563_v20  ;;  %v4641_v54 = vrot.slane %v6012_v13, %v6901_v56 }
 0xb39   :  { %v4581_v41 = vsel %vm9931_vm7, %v4577_v1, %v4571_v30  ;;  %v4539_v59 = vsel %vm9932_vm3, %v4535_v22, %v4529_v28  ;;  %vm9938_vm7 = vcmp.lt.s32.totalorder %v6885_v6, 16  ;;  %v4637_v30 = vrot.slane %v6012_v13, %v6903_v61 }
 0xb3a   :  { %v4604_v49 = vmul.f32 %v4587_v57, %v4581_v41  ;;  %v4562_v31 = vmul.f32 %v4545_v47, %v4539_v59  ;;  %5234 = vrot.lane.b32.xlu1 %v9027_v50, %s9821_s18  ;;  %6341 = vmatprep.subr.bf16.mxu0 %v6340_v48  ;;  %vm9939_vm3 = vmmov %vm9938_vm7 }
 0xb3b   :  { %5232 = vrot.lane.b32.xlu0 %v9011_v44, %s9821_s18 }
 0xb3c   :  { %v6342_v52 = vpack.c.bf16 %v4604_v49, %v4562_v31  ;;  %v4575_v11 = vpop.permute.xlu1 %4574  ;;  %v4533_v45 = vpop.permute.xlu0 %4532  ;;  %v6014_v31 = vld [vmem:[%s9632_s1 + $0x20] sm:$0xf] }
 0xb3d   :  { %v4578_v16 = vsel %vm9933_vm4, %v4575_v11, %v4577_v1  ;;  %v4579_v36 = vsel %vm9934_vm8, %v4573_v38, %v4575_v11  ;;  %v4536_v27 = vsel %vm9935_vm9, %v4533_v45, %v4535_v22  ;;  %v4537_v39 = vsel %vm9936_vm5, %v4531_v21, %v4533_v45  ;;  %vm9940_vm4 = vmmov %vm9937_vm6 }
 0xb3e   :  { %v4606_v4 = vmul.f32 %v4595_v42, %v4579_v36  ;;  %v4607_v32 = vmul.f32 %v4599_v35, %v4578_v16  ;;  %v4564_v5 = vmul.f32 %v4553_v53, %v4537_v39  ;;  %v4565_v46 = vmul.f32 %v4557_v43, %v4536_v27  ;;  %5230 = vrot.lane.b32.xlu1 %v9009_v29, %s9821_s18  ;;  %vm9941_vm8 = vmmov %vm9939_vm3  ;;  %v6015_v43 = vld [vmem:[%s9632_s1 + $0x24] sm:$0xf]  ;;  %v6032_v36 = vld [vmem:[%s9630_s4 + $0x68] sm:$0xff] }
 0xb3f   :  { %5188 = vrot.lane.b32.xlu0 %v9009_v29, %s9820_s12  ;;  %6343 = vmatpush1.bf16.msra.mxu0 %v6342_v52  ;;  %v4683_v38 = vrot.slane %v6013_v25, %v6901_v56  ;;  %vm9942_vm9 = vmmov %vm9939_vm3  ;;  %v6036_v27 = vld [vmem:[%s9630_s4 + $0x78] sm:$0xff]  ;;  %v4717_v39 = vrot.slane %v6014_v31, %v6894_v12 }
 0xb40   :  { %v6390_v63 = vpack.c.bf16 %v4606_v4, %v4564_v5  ;;  %v4615_v8 = vpop.permute.xlu1 %4614  ;;  %v4613_v15 = vpop.permute.xlu0 %4612  ;;  %v6388_v17 = vpack.c.bf16 %v4607_v32, %v4565_v46  ;;  %vm9943_vm5 = vmmov %vm9940_vm4  ;;  %v4759_v4 = vrot.slane %v6015_v43, %v6894_v12 }
 0xb41   :  { %v4622_v24 = vsel %vm9937_vm6, %v4613_v15, %v4615_v8  ;;  %vm9944_vm6 = vmmov %vm9940_vm4 }
 0xb42   :  { %5236 = vrot.lane.b32.xlu1 %v9021_v19, %s9821_s18  ;;  %6389 = vmatprep.subr.bf16.mxu1 %v6388_v17  ;;  %v4647_v9 = vmul.f32 %v4633_v55, %v4622_v24  ;;  %v4763_v24 = vrot.slane %v6015_v43, %v6903_v61 }
 0xb43   :  { %5194 = vrot.lane.b32.xlu0 %v9021_v19, %s9820_s12  ;;  %6391 = vmatpush1.bf16.msra.mxu1 %v6390_v63 }
 0xb44   :  { %v4657_v60 = vpop.permute.xlu1 %4656  ;;  %v4655_v2 = vpop.permute.xlu0 %4654 }
 0xb45   :  { %v4664_v0 = vsel %vm9938_vm7, %v4655_v2, %v4657_v60  ;;  %vm9945_vm7 = vcmask 588800  }
 0xb46   :  { %v4689_v40 = vmul.f32 %v4675_v18, %v4664_v0  ;;  %5276 = vrot.lane.b32.xlu1 %v9027_v50, %s9823_s29  ;;  %6034 = vmatprep.mubr.msk.f32.mxu0 %vm9945_vm7, %v6032_v36  ;;  %v4767_v0 = vrot.slane %v6015_v43, %v6901_v56 }
 0xb47   :  { %5274 = vrot.lane.b32.xlu0 %v9011_v44, %s9823_s29 }
 0xb48   :  { %v4661_v21 = vpop.permute.xlu1 %4660  ;;  %v4619_v28 = vpop.permute.xlu0 %4618  ;;  %v6344_v23 = vpack.c.bf16 %v4689_v40, %v4647_v9  ;;  %v4721_v9 = vrot.slane %v6014_v31, %v6903_v61 }
 0xb49   :  { %v4665_v51 = vsel %vm9939_vm3, %v4661_v21, %v4655_v2  ;;  %v4623_v3 = vsel %vm9940_vm4, %v4619_v28, %v4613_v15  ;;  %vm9946_vm3 = vcmp.lt.s32.totalorder %v6885_v6, 15  ;;  %vm9947_vm4 = vmmov %vm9945_vm7  ;;  %v4713_v15 = vrot.slane %v6014_v31, %v6896_v14 }
 0xb4a   :  { %v4688_v33 = vmul.f32 %v4671_v10, %v4665_v51  ;;  %v4646_v20 = vmul.f32 %v4629_v37, %v4623_v3  ;;  %5318 = vrot.lane.b32.xlu1 %v9027_v50, %s9888_s21  ;;  %6345 = vmatprep.subr.bf16.mxu0 %v6344_v23  ;;  %v4725_v37 = vrot.slane %v6014_v31, %v6901_v56 }
 0xb4b   :  { %5316 = vrot.lane.b32.xlu0 %v9011_v44, %s9888_s21  ;;  %6038 = vmatprep.mubr.msk.f32.mxu1 %vm9947_vm4, %v6036_v27  ;;  %vm9953_vm4 = vmmov %vm9946_vm3 }
 0xb4c   :  { %v6346_v57 = vpack.c.bf16 %v4688_v33, %v4646_v20  ;;  %v4659_v47 = vpop.permute.xlu1 %4658  ;;  %v4617_v1 = vpop.permute.xlu0 %4616 }
 0xb4d   :  { %v4662_v22 = vsel %vm9941_vm8, %v4659_v47, %v4661_v21  ;;  %v4663_v48 = vsel %vm9942_vm9, %v4657_v60, %v4659_v47  ;;  %v4620_v42 = vsel %vm9943_vm5, %v4617_v1, %v4619_v28  ;;  %v4621_v41 = vsel %vm9944_vm6, %v4615_v8, %v4617_v1  ;;  %vm9950_vm5 = vmmov %vm9946_vm3  ;;  %v6037_v21 = vld [vmem:[%s9631_s5 + $0x18] sm:$0xff]  ;;  %v6016_v47 = vld [vmem:[%s9632_s1 + $0x28] sm:$0xf] }
 0xb4e   :  { %v4690_v59 = vmul.f32 %v4679_v7, %v4663_v48  ;;  %v4691_v35 = vmul.f32 %v4683_v38, %v4662_v22  ;;  %v4648_v53 = vmul.f32 %v4637_v30, %v4621_v41  ;;  %v4649_v49 = vmul.f32 %v4641_v54, %v4620_v42  ;;  %5314 = vrot.lane.b32.xlu1 %v9009_v29, %s9888_s21  ;;  %v6017_v1 = vld [vmem:[%s9632_s1 + $0x2c] sm:$0xf] }
 0xb4f   :  { %5272 = vrot.lane.b32.xlu0 %v9009_v29, %s9823_s29  ;;  %6347 = vmatpush1.bf16.msra.mxu0 %v6346_v57  ;;  %vm9948_vm8 = vcmp.lt.s32.totalorder %v6885_v6, 14  ;;  %v4755_v8 = vrot.slane %v6015_v43, %v6896_v14 }
 0xb50   :  { %v6394_v52 = vpack.c.bf16 %v4690_v59, %v4648_v53  ;;  %v4699_v11 = vpop.permute.xlu1 %4698  ;;  %v4697_v45 = vpop.permute.xlu0 %4696  ;;  %v6392_v16 = vpack.c.bf16 %v4691_v35, %v4649_v49  ;;  %vm9949_vm9 = vmmov %vm9948_vm8  ;;  %v4801_v59 = vrot.slane %v6016_v47, %v6894_v12  ;;  %v4843_v35 = vrot.slane %v6017_v1, %v6894_v12 }
 0xb51   :  { %v4706_v32 = vsel %vm9946_vm3, %v4697_v45, %v4699_v11  ;;  %vm9951_vm6 = vmmov %vm9948_vm8 }
 0xb52   :  { %5320 = vrot.lane.b32.xlu1 %v9021_v19, %s9888_s21  ;;  %6393 = vmatprep.subr.bf16.mxu1 %v6392_v16  ;;  %v4731_v25 = vmul.f32 %v4717_v39, %v4706_v32  ;;  %vm9952_vm7 = vmmov %vm9951_vm6  ;;  %v4797_v16 = vrot.slane %v6016_v47, %v6896_v14 }
 0xb53   :  { %5278 = vrot.lane.b32.xlu0 %v9021_v19, %s9823_s29  ;;  %6395 = vmatpush1.bf16.msra.mxu1 %v6394_v52 }
 0xb54   :  { %v4741_v5 = vpop.permute.xlu1 %4740  ;;  %v4739_v46 = vpop.permute.xlu0 %4738 }
 0xb55   :  { %v4748_v13 = vsel %vm9948_vm8, %v4739_v46, %v4741_v5  ;;  %vm9954_vm8 = vcmp.lt.s32.totalorder %v6885_v6, 127 }
 0xb56   :  { %v4773_v63 = vmul.f32 %v4759_v4, %v4748_v13  ;;  %5360 = vrot.lane.b32.xlu1 %v9027_v50, %s9829_s25  ;;  %v6019_v13 = vld [vmem:[%s9632_s1 + $0x34] sm:$0xf] }
 0xb57   :  { %5358 = vrot.lane.b32.xlu0 %v9011_v44, %s9829_s25 }
 0xb58   :  { %v4745_v17 = vpop.permute.xlu1 %4744  ;;  %v4703_v55 = vpop.permute.xlu0 %4702  ;;  %v6348_v18 = vpack.c.bf16 %v4773_v63, %v4731_v25  ;;  %v6018_v25 = vld [vmem:[%s9632_s1 + $0x30] sm:$0xf] }
 0xb59   :  { %v4749_v60 = vsel %vm9949_vm9, %v4745_v17, %v4739_v46  ;;  %v4707_v2 = vsel %vm9950_vm5, %v4703_v55, %v4697_v45  ;;  %v4839_v45 = vrot.slane %v6017_v1, %v6896_v14  ;;  %v4851_v46 = vrot.slane %v6017_v1, %v6901_v56 }
 0xb5a   :  { %v4772_v40 = vmul.f32 %v4755_v8, %v4749_v60  ;;  %v4730_v10 = vmul.f32 %v4713_v15, %v4707_v2  ;;  %5362 = vrot.lane.b32.xlu1 %v9021_v19, %s9829_s25  ;;  %6349 = vmatprep.subr.bf16.mxu0 %v6348_v18  ;;  %v4805_v15 = vrot.slane %v6016_v47, %v6903_v61  ;;  %vm9958_vm5 = vcmp.lt.s32.totalorder %v6885_v6, 126 }
 0xb5b   :  { %5356 = vrot.lane.b32.xlu0 %v9009_v29, %s9829_s25  ;;  %v4915_v60 = vrot.slane %v6019_v13, %v6894_v12  ;;  %v4873_v2 = vrot.slane %v6018_v25, %v6894_v12 }
 0xb5c   :  { %v6350_v28 = vpack.c.bf16 %v4772_v40, %v4730_v10  ;;  %v4743_v23 = vpop.permute.xlu1 %4742  ;;  %v4701_v7 = vpop.permute.xlu0 %4700 }
 0xb5d   :  { %v4746_v51 = vsel %vm9951_vm6, %v4743_v23, %v4745_v17  ;;  %v4747_v3 = vsel %vm9952_vm7, %v4741_v5, %v4743_v23  ;;  %v4704_v38 = vsel %vm9946_vm3, %v4701_v7, %v4703_v55  ;;  %v4705_v30 = vsel %vm9953_vm4, %v4699_v11, %v4701_v7  ;;  %vm9959_vm6 = vmmov %vm9958_vm5 }
 0xb5e   :  { %v4774_v33 = vmul.f32 %v4763_v24, %v4747_v3  ;;  %v4775_v20 = vmul.f32 %v4767_v0, %v4746_v51  ;;  %v4732_v54 = vmul.f32 %v4721_v9, %v4705_v30  ;;  %v4733_v57 = vmul.f32 %v4725_v37, %v4704_v38  ;;  %5590 = vperm.xlu1 %6455, %v6037_v21   ;;  %vm9960_vm7 = vmmov %vm9958_vm5 }
 0xb5f   :  { %5455 = vperm.xlu0 %6454, %v6037_v21   ;;  %6351 = vmatpush1.bf16.msra.mxu0 %v6350_v28  ;;  %v4847_v5 = vrot.slane %v6017_v1, %v6903_v61  ;;  %v4809_v17 = vrot.slane %v6016_v47, %v6901_v56  ;;  %v4877_v30 = vrot.slane %v6018_v25, %v6903_v61  ;;  %vm9961_vm3 = vmmov %vm9958_vm5 }
 0xb60   :  { %v6398_v22 = vpack.c.bf16 %v4774_v33, %v4732_v54  ;;  %v4783_v48 = vpop.permute.xlu1 %4782  ;;  %v4781_v42 = vpop.permute.xlu0 %4780  ;;  %v6396_v41 = vpack.c.bf16 %v4775_v20, %v4733_v57  ;;  %v4869_v20 = vrot.slane %v6018_v25, %v6896_v14  ;;  %v4887_v54 = vmul.f32 %v4873_v2, %v9011_v44 }
 0xb61   :  { %v4790_v53 = vsel %vm671_vm14, %v4781_v42, %v4783_v48  ;;  %v4881_v57 = vrot.slane %v6018_v25, %v6901_v56  ;;  %v4919_v1 = vrot.slane %v6019_v13, %v6903_v61 }
 0xb62   :  { %6397 = vmatprep.subr.bf16.mxu1 %v6396_v41  ;;  %v4815_v52 = vmul.f32 %v4801_v59, %v4790_v53  ;;  %v4886_v44 = vmul.f32 %v4869_v20, %v9009_v29  ;;  %v6021_v29 = vld [vmem:[%s9632_s1 + $0x3c] sm:$0xf] }
 0xb63   :  { %6399 = vmatpush1.bf16.msra.mxu1 %v6398_v22  ;;  %v4911_v22 = vrot.slane %v6019_v13, %v6896_v14 }
 0xb64   :  { %v4825_v49 = vpop.permute.xlu1 %4824  ;;  %v4823_v31 = vpop.permute.xlu0 %4822 }
 0xb65   :  { %v4832_v43 = vsel %vm715_vm1, %v4823_v31, %v4825_v49 }
 0xb66   :  { %v4857_v11 = vmul.f32 %v4843_v35, %v4832_v43 }
 0xb68   :  { %v4829_v36 = vpop.permute.xlu1 %4828  ;;  %v4787_v27 = vpop.permute.xlu0 %4786  ;;  %v6352_v39 = vpack.c.bf16 %v4857_v11, %v4815_v52 }
 0xb69   :  { %v4833_v4 = vsel %vm715_vm1, %v4829_v36, %v4823_v31  ;;  %v4791_v32 = vsel %vm671_vm14, %v4787_v27, %v4781_v42  ;;  %v4888_v42 = vmul.f32 %v4877_v30, %v9027_v50  ;;  %v4889_v50 = vmul.f32 %v4881_v57, %v9021_v19 }
 0xb6a   :  { %v4856_v63 = vmul.f32 %v4839_v45, %v4833_v4  ;;  %v4814_v8 = vmul.f32 %v4797_v16, %v4791_v32  ;;  %6353 = vmatprep.subr.bf16.mxu0 %v6352_v39  ;;  %v6020_v45 = vld [vmem:[%s9632_s1 + $0x38] sm:$0xf] }
 0xb6b   :  { %v4957_v32 = vrot.slane %v6020_v45, %v6894_v12 }
 0xb6c   :  { %v6354_v55 = vpack.c.bf16 %v4856_v63, %v4814_v8  ;;  %v4827_v18 = vpop.permute.xlu1 %4826  ;;  %v4785_v24 = vpop.permute.xlu0 %4784 }
 0xb6d   :  { %v4830_v0 = vsel %vm715_vm1, %v4827_v18, %v4829_v36  ;;  %v4831_v9 = vsel %vm715_vm1, %v4825_v49, %v4827_v18  ;;  %v4788_v40 = vsel %vm671_vm14, %v4785_v24, %v4787_v27  ;;  %v4789_v10 = vsel %vm671_vm14, %v4783_v48, %v4785_v24  ;;  %vm9955_vm14 = vmmov %vm9954_vm8 }
 0xb6e   :  { %v4858_v37 = vmul.f32 %v4847_v5, %v4831_v9  ;;  %v4859_v21 = vmul.f32 %v4851_v46, %v4830_v0  ;;  %v4816_v28 = vmul.f32 %v4805_v15, %v4789_v10  ;;  %v4817_v23 = vmul.f32 %v4809_v17, %v4788_v40  ;;  %6355 = vmatpush1.bf16.msra.mxu0 %v6354_v55  ;;  %vm9956_vm1 = vmmov %vm9954_vm8 }
 0xb6f   :  { %v4923_v48 = vrot.slane %v6019_v13, %v6901_v56  ;;  %vm9957_vm9 = vmmov %vm9956_vm1  ;;  %v4999_v5 = vrot.slane %v6021_v29, %v6894_v12  ;;  %v4995_v15 = vrot.slane %v6021_v29, %v6896_v14  ;;  %v4953_v17 = vrot.slane %v6020_v45, %v6896_v14 }
 0xb70   :  { %v6402_v7 = vpack.c.bf16 %v4858_v37, %v4816_v28  ;;  %v4899_v51 = vpop.permute.xlu1 %4898  ;;  %v4897_v3 = vpop.permute.xlu0 %4896  ;;  %v6400_v38 = vpack.c.bf16 %v4859_v21, %v4817_v23  ;;  %v5003_v0 = vrot.slane %v6021_v29, %v6903_v61  ;;  %v5007_v9 = vrot.slane %v6021_v29, %v6901_v56 }
 0xb71   :  { %v4903_v33 = vsel %vm9954_vm8, %v4897_v3, %v4899_v51  ;;  %v4961_v37 = vrot.slane %v6020_v45, %v6903_v61  ;;  %v4965_v21 = vrot.slane %v6020_v45, %v6901_v56 }
 0xb72   :  { %v4929_v47 = vmul.f32 %v4915_v60, %v4903_v33  ;;  %6401 = vmatprep.subr.bf16.mxu1 %v6400_v38 }
 0xb73   :  { %6403 = vmatpush1.bf16.msra.mxu1 %v6402_v7 }
 0xb74   :  { %v4901_v41 = vpop.permute.xlu1 %4900  ;;  %v4895_v59 = vpop.permute.xlu0 %4894  ;;  %v6356_v35 = vpack.c.bf16 %v4929_v47, %v4887_v54  ;;  %v6022_v47 = vld [vmem:[%s9632_s1 + $0x40] sm:$0xf] }
 0xb75   :  { %v4902_v53 = vsel %vm9955_vm14, %v4899_v51, %v4901_v41  ;;  %v4904_v49 = vsel %vm9956_vm1, %v4895_v59, %v4897_v3  ;;  %v4905_v31 = vsel %vm9957_vm9, %v4901_v41, %v4895_v59  ;;  %v5041_v59 = vrot.slane %v6022_v47, %v6894_v12 }
 0xb76   :  { %v4930_v43 = vmul.f32 %v4919_v1, %v4902_v53  ;;  %v4928_v52 = vmul.f32 %v4911_v22, %v4904_v49  ;;  %v4931_v11 = vmul.f32 %v4923_v48, %v4905_v31  ;;  %6357 = vmatprep.subr.bf16.mxu0 %v6356_v35  ;;  %v6023_v1 = vld [vmem:[%s9632_s1 + $0x44] sm:$0xf] }
 0xb77   :  { %v5083_v35 = vrot.slane %v6023_v1, %v6894_v12 }
 0xb78   :  { %v6406_v16 = vpack.c.bf16 %v4930_v43, %v4888_v42  ;;  %v6358_v36 = vpack.c.bf16 %v4928_v52, %v4886_v44  ;;  %v4941_v27 = vpop.permute.xlu1 %4940  ;;  %v4939_v39 = vpop.permute.xlu0 %4938  ;;  %v6404_v4 = vpack.c.bf16 %v4931_v11, %v4889_v50  ;;  %v5079_v11 = vrot.slane %v6023_v1, %v6896_v14 }
 0xb79   :  { %v4945_v19 = vsel %vm9958_vm5, %v4939_v39, %v4941_v27  ;;  %v5037_v50 = vrot.slane %v6022_v47, %v6896_v14 }
 0xb7a   :  { %6359 = vmatpush1.bf16.msra.mxu0 %v6358_v36  ;;  %6405 = vmatprep.subr.bf16.mxu1 %v6404_v4  ;;  %v4971_v63 = vmul.f32 %v4957_v32, %v4945_v19  ;;  %v5087_v4 = vrot.slane %v6023_v1, %v6903_v61  ;;  %v5091_v32 = vrot.slane %v6023_v1, %v6901_v56 }
 0xb7b   :  { %6407 = vmatpush1.bf16.msra.mxu1 %v6406_v16  ;;  %v5045_v19 = vrot.slane %v6022_v47, %v6903_v61 }
 0xb7c   :  { %v4983_v46 = vpop.permute.xlu1 %4982  ;;  %v4981_v13 = vpop.permute.xlu0 %4980 }
 0xb7d   :  { %v4987_v25 = vsel %vm878_vm15, %v4981_v13, %v4983_v46 }
 0xb7e   :  { %v5013_v8 = vmul.f32 %v4999_v5, %v4987_v25 }
 0xb80   :  { %v4979_v55 = vpop.permute.xlu1 %4978  ;;  %v4937_v18 = vpop.permute.xlu0 %4936  ;;  %v6360_v24 = vpack.c.bf16 %v5013_v8, %v4971_v63 }
 0xb81   :  { %v4988_v60 = vsel %vm878_vm15, %v4979_v55, %v4981_v13  ;;  %v4946_v2 = vsel %vm9959_vm6, %v4937_v18, %v4939_v39 }
 0xb82   :  { %v5012_v40 = vmul.f32 %v4995_v15, %v4988_v60  ;;  %v4970_v10 = vmul.f32 %v4953_v17, %v4946_v2  ;;  %6361 = vmatprep.subr.bf16.mxu0 %v6360_v24 }
 0xb84   :  { %v6362_v28 = vpack.c.bf16 %v5012_v40, %v4970_v10  ;;  %v4985_v23 = vpop.permute.xlu1 %4984  ;;  %v4943_v7 = vpop.permute.xlu0 %4942  ;;  %v6025_v40 = vld [vmem:[%s9632_s1 + $0x4c] sm:$0xf] }
 0xb85   :  { %v4986_v51 = vsel %vm878_vm15, %v4983_v46, %v4985_v23  ;;  %v4989_v3 = vsel %vm878_vm15, %v4985_v23, %v4979_v55  ;;  %v4944_v38 = vsel %vm9960_vm7, %v4941_v27, %v4943_v7  ;;  %v4947_v30 = vsel %vm9961_vm3, %v4943_v7, %v4937_v18 }
 0xb86   :  { %v5014_v33 = vmul.f32 %v5003_v0, %v4986_v51  ;;  %v5015_v20 = vmul.f32 %v5007_v9, %v4989_v3  ;;  %v4972_v54 = vmul.f32 %v4961_v37, %v4944_v38  ;;  %v4973_v57 = vmul.f32 %v4965_v21, %v4947_v30  ;;  %6363 = vmatpush1.bf16.msra.mxu0 %v6362_v28  ;;  %v6024_v9 = vld [vmem:[%s9632_s1 + $0x48] sm:$0xf] }
 0xb87   :  { %vm9962_vm15 = vcmp.lt.s32.totalorder %v6885_v6, 113  ;;  %v5049_v46 = vrot.slane %v6022_v47, %v6901_v56  ;;  %v5125_v28 = vrot.slane %v6024_v9, %v6894_v12  ;;  %v5167_v23 = vrot.slane %v6025_v40, %v6894_v12 }
 0xb88   :  { %v6410_v22 = vpack.c.bf16 %v5014_v33, %v4972_v54  ;;  %v5025_v48 = vpop.permute.xlu1 %5024  ;;  %v5023_v42 = vpop.permute.xlu0 %5022  ;;  %v6408_v41 = vpack.c.bf16 %v5015_v20, %v4973_v57  ;;  %vm9963_vm4 = vmmov %vm9962_vm15  ;;  %v5163_v30 = vrot.slane %v6025_v40, %v6896_v14  ;;  %v5121_v54 = vrot.slane %v6024_v9, %v6896_v14 }
 0xb89   :  { %v5029_v53 = vsel %vm9962_vm15, %v5023_v42, %v5025_v48  ;;  %vm9964_vm8 = vmmov %vm9963_vm4 }
 0xb8a   :  { %6409 = vmatprep.subr.bf16.mxu1 %v6408_v41  ;;  %v5055_v43 = vmul.f32 %v5041_v59, %v5029_v53  ;;  %vm9965_vm14 = vmmov %vm9963_vm4  ;;  %v5171_v41 = vrot.slane %v6025_v40, %v6903_v61  ;;  %v5175_v59 = vrot.slane %v6025_v40, %v6901_v56  ;;  %v5129_v53 = vrot.slane %v6024_v9, %v6903_v61 }
 0xb8b   :  { %6411 = vmatpush1.bf16.msra.mxu1 %v6410_v22 }
 0xb8c   :  { %v5067_v44 = vpop.permute.xlu1 %5066  ;;  %v5065_v49 = vpop.permute.xlu0 %5064 }
 0xb8d   :  { %v5071_v31 = vsel %vm966_vm2, %v5065_v49, %v5067_v44 }
 0xb8e   :  { %v5097_v52 = vmul.f32 %v5083_v35, %v5071_v31 }
 0xb90   :  { %v5063_v45 = vpop.permute.xlu1 %5062  ;;  %v6364_v29 = vpack.c.bf16 %v5097_v52, %v5055_v43 }
 0xb91   :  { %v5072_v16 = vsel %vm966_vm2, %v5063_v45, %v5065_v49  ;;  %v5021_v36 = vpop.permute.xlu0 %5020 }
 0xb92   :  { %v5096_v27 = vmul.f32 %v5079_v11, %v5072_v16  ;;  %v5030_v39 = vsel %vm9963_vm4, %v5021_v36, %v5023_v42  ;;  %6365 = vmatprep.subr.bf16.mxu0 %v6364_v29 }
 0xb93   :  { %v5054_v5 = vmul.f32 %v5037_v50, %v5030_v39 }
 0xb94   :  { %v5069_v13 = vpop.permute.xlu1 %5068 }
 0xb95   :  { %v6366_v25 = vpack.c.bf16 %v5096_v27, %v5054_v5  ;;  %v5070_v63 = vsel %vm966_vm2, %v5067_v44, %v5069_v13  ;;  %v5073_v8 = vsel %vm966_vm2, %v5069_v13, %v5063_v45  ;;  %v5027_v15 = vpop.permute.xlu0 %5026  ;;  %vm9966_vm2 = vcmp.lt.s32.totalorder %v6885_v6, 111 }
 0xb96   :  { %v5098_v17 = vmul.f32 %v5087_v4, %v5070_v63  ;;  %v5099_v55 = vmul.f32 %v5091_v32, %v5073_v8  ;;  %v5028_v18 = vsel %vm9964_vm8, %v5025_v48, %v5027_v15  ;;  %v5031_v24 = vsel %vm9965_vm14, %v5027_v15, %v5021_v36  ;;  %vm9967_vm1 = vmmov %vm9966_vm2  ;;  %v6026_v4 = vld [vmem:[%s9632_s1 + $0x50] sm:$0xf]  ;;  %v6027_v32 = vld [vmem:[%s9632_s1 + $0x54] sm:$0xf] }
 0xb97   :  { %v5056_v60 = vmul.f32 %v5045_v19, %v5028_v18  ;;  %v5057_v2 = vmul.f32 %v5049_v46, %v5031_v24  ;;  %6367 = vmatpush1.bf16.msra.mxu0 %v6366_v25  ;;  %v5133_v44 = vrot.slane %v6024_v9, %v6901_v56  ;;  %vm9968_vm9 = vmmov %vm9967_vm1  ;;  %v5209_v13 = vrot.slane %v6026_v4, %v6894_v12 }
 0xb98   :  { %v5109_v0 = vpop.permute.xlu1 %5108  ;;  %vm9969_vm5 = vmmov %vm9967_vm1  ;;  %v5251_v25 = vrot.slane %v6027_v32, %v6894_v12 }
 0xb99   :  { %v6414_v10 = vpack.c.bf16 %v5098_v17, %v5056_v60  ;;  %v5107_v37 = vpop.permute.xlu0 %5106  ;;  %v6412_v21 = vpack.c.bf16 %v5099_v55, %v5057_v2  ;;  %v5247_v55 = vrot.slane %v6027_v32, %v6896_v14  ;;  %v5205_v60 = vrot.slane %v6026_v4, %v6896_v14 }
 0xb9a   :  { %v5113_v7 = vsel %vm9966_vm2, %v5107_v37, %v5109_v0 }
 0xb9b   :  { %6413 = vmatprep.subr.bf16.mxu1 %v6412_v21  ;;  %v5139_v33 = vmul.f32 %v5125_v28, %v5113_v7  ;;  %v5255_v21 = vrot.slane %v6027_v32, %v6903_v61  ;;  %v5259_v28 = vrot.slane %v6027_v32, %v6901_v56  ;;  %v5213_v7 = vrot.slane %v6026_v4, %v6903_v61 }
 0xb9c   :  { %6415 = vmatpush1.bf16.msra.mxu1 %v6414_v10  ;;  %v5151_v51 = vpop.permute.xlu1 %5150 }
 0xb9d   :  { %v5149_v3 = vpop.permute.xlu0 %5148 }
 0xb9e   :  { %v5155_v38 = vsel %vm1054_vm12, %v5149_v3, %v5151_v51 }
 0xb9f   :  { %v5181_v20 = vmul.f32 %v5167_v23, %v5155_v38 }
 0xba0   :  { %v5147_v57 = vpop.permute.xlu1 %5146 }
 0xba1   :  { %v5156_v47 = vsel %vm1054_vm12, %v5147_v57, %v5149_v3  ;;  %v5105_v1 = vpop.permute.xlu0 %5104  ;;  %v6368_v22 = vpack.c.bf16 %v5181_v20, %v5139_v33 }
 0xba2   :  { %v5180_v48 = vmul.f32 %v5163_v30, %v5156_v47  ;;  %v5114_v42 = vsel %vm9967_vm1, %v5105_v1, %v5107_v37 }
 0xba3   :  { %v5138_v35 = vmul.f32 %v5121_v54, %v5114_v42  ;;  %6369 = vmatprep.subr.bf16.mxu0 %v6368_v22 }
 0xba4   :  { %v5153_v49 = vpop.permute.xlu1 %5152 }
 0xba5   :  { %v6370_v31 = vpack.c.bf16 %v5180_v48, %v5138_v35  ;;  %v5154_v43 = vsel %vm1054_vm12, %v5151_v51, %v5153_v49  ;;  %v5157_v52 = vsel %vm1054_vm12, %v5153_v49, %v5147_v57  ;;  %v5111_v11 = vpop.permute.xlu0 %5110  ;;  %v5217_v51 = vrot.slane %v6026_v4, %v6901_v56 }
 0xba6   :  { %v5182_v50 = vmul.f32 %v5171_v41, %v5154_v43  ;;  %v5183_v45 = vmul.f32 %v5175_v59, %v5157_v52  ;;  %v5112_v29 = vsel %vm9968_vm9, %v5109_v0, %v5111_v11  ;;  %v5115_v16 = vsel %vm9969_vm5, %v5111_v11, %v5105_v1  ;;  %v6028_v41 = vld [vmem:[%s9632_s1 + $0x58] sm:$0xf]  ;;  %v6029_v59 = vld [vmem:[%s9632_s1 + $0x5c] sm:$0xf] }
 0xba7   :  { %v5140_v36 = vmul.f32 %v5129_v53, %v5112_v29  ;;  %v5141_v27 = vmul.f32 %v5133_v44, %v5115_v16  ;;  %6371 = vmatpush1.bf16.msra.mxu0 %v6370_v31  ;;  %v5293_v49 = vrot.slane %v6028_v41, %v6894_v12  ;;  %v5335_v31 = vrot.slane %v6029_v59, %v6894_v12 }
 0xba8   :  { %v5193_v39 = vpop.permute.xlu1 %5192  ;;  %vm9970_vm12 = vcmp.lt.s32.totalorder %v6885_v6, 96 }
 0xba9   :  { %v6418_v5 = vpack.c.bf16 %v5182_v50, %v5140_v36  ;;  %v5191_v19 = vpop.permute.xlu0 %5190  ;;  %v6416_v46 = vpack.c.bf16 %v5183_v45, %v5141_v27  ;;  %v5331_v45 = vrot.slane %v6029_v59, %v6896_v14  ;;  %v5289_v36 = vrot.slane %v6028_v41, %v6896_v14 }
 0xbaa   :  { %v5197_v63 = vsel %vm1098_vm0, %v5191_v19, %v5193_v39 }
 0xbab   :  { %6417 = vmatprep.subr.bf16.mxu1 %v6416_v46  ;;  %v5223_v18 = vmul.f32 %v5209_v13, %v5197_v63  ;;  %v5339_v46 = vrot.slane %v6029_v59, %v6903_v61  ;;  %v5343_v13 = vrot.slane %v6029_v59, %v6901_v56  ;;  %v5297_v63 = vrot.slane %v6028_v41, %v6903_v61 }
 0xbac   :  { %6419 = vmatpush1.bf16.msra.mxu1 %v6418_v5  ;;  %v5235_v8 = vpop.permute.xlu1 %5234 }
 0xbad   :  { %v5233_v15 = vpop.permute.xlu0 %5232 }
 0xbae   :  { %v5239_v17 = vsel %vm1142_vm13, %v5233_v15, %v5235_v8 }
 0xbaf   :  { %v5265_v24 = vmul.f32 %v5251_v25, %v5239_v17  ;;  %v6030_v17 = vld [vmem:[%s9632_s1 + $0x60] sm:$0xf] }
 0xbb0   :  { %v5231_v2 = vpop.permute.xlu1 %5230 }
 0xbb1   :  { %v5240_v0 = vsel %vm1142_vm13, %v5231_v2, %v5233_v15  ;;  %v5189_v9 = vpop.permute.xlu0 %5188  ;;  %v6372_v40 = vpack.c.bf16 %v5265_v24, %v5223_v18 }
 0xbb2   :  { %v5264_v10 = vmul.f32 %v5247_v55, %v5240_v0  ;;  %v5198_v37 = vsel %vm1098_vm0, %v5189_v9, %v5191_v19 }
 0xbb3   :  { %v5222_v23 = vmul.f32 %v5205_v60, %v5198_v37  ;;  %6373 = vmatprep.subr.bf16.mxu0 %v6372_v40 }
 0xbb4   :  { %v5237_v3 = vpop.permute.xlu1 %5236 }
 0xbb5   :  { %v6374_v38 = vpack.c.bf16 %v5264_v10, %v5222_v23  ;;  %v5238_v30 = vsel %vm1142_vm13, %v5235_v8, %v5237_v3  ;;  %v5241_v33 = vsel %vm1142_vm13, %v5237_v3, %v5231_v2  ;;  %v5195_v20 = vpop.permute.xlu0 %5194  ;;  %vm9971_vm13 = vmmov %vm9970_vm12  ;;  %v5301_v8 = vrot.slane %v6028_v41, %v6901_v56 }
 0xbb6   :  { %v5266_v54 = vmul.f32 %v5255_v21, %v5238_v30  ;;  %v5267_v57 = vmul.f32 %v5259_v28, %v5241_v33  ;;  %v5196_v47 = vsel %vm1098_vm0, %v5193_v39, %v5195_v20  ;;  %v5199_v1 = vsel %vm1098_vm0, %v5195_v20, %v5189_v9  ;;  %vm9972_vm0 = vmmov %vm9970_vm12 }
 0xbb7   :  { %v5224_v22 = vmul.f32 %v5213_v7, %v5196_v47  ;;  %v5225_v48 = vmul.f32 %v5217_v51, %v5199_v1  ;;  %6375 = vmatpush1.bf16.msra.mxu0 %v6374_v38  ;;  %vm9973_vm6 = vmmov %vm9972_vm0  ;;  %v5377_v21 = vrot.slane %v6030_v17, %v6894_v12  ;;  %v5381_v38 = vrot.slane %v6030_v17, %v6903_v61 }
 0xbb8   :  { %v5277_v42 = vpop.permute.xlu1 %5276  ;;  %v5373_v33 = vrot.slane %v6030_v17, %v6896_v14  ;;  %v5385_v20 = vrot.slane %v6030_v17, %v6901_v56  ;;  %v6031_v14 = vld [vmem:[%s9630_s4 + $0x60] sm:$0xff]  ;;  %v6035_v56 = vld [vmem:[%s9630_s4 + $0x70] sm:$0xff] }
 0xbb9   :  { %v6422_v35 = vpack.c.bf16 %v5266_v54, %v5224_v22  ;;  %v5275_v53 = vpop.permute.xlu0 %5274  ;;  %v6420_v44 = vpack.c.bf16 %v5267_v57, %v5225_v48 }
 0xbba   :  { %v5281_v43 = vsel %vm9970_vm12, %v5275_v53, %v5277_v42 }
 0xbbb   :  { %6421 = vmatprep.subr.bf16.mxu1 %v6420_v44  ;;  %v5307_v29 = vmul.f32 %v5293_v49, %v5281_v43 }
 0xbbc   :  { %6423 = vmatpush1.bf16.msra.mxu1 %v6422_v35  ;;  %v5319_v52 = vpop.permute.xlu1 %5318 }
 0xbbd   :  { %v5317_v11 = vpop.permute.xlu0 %5316 }
 0xbbe   :  { %v5323_v50 = vsel %vm1230_vm11, %v5317_v11, %v5319_v52 }
 0xbbf   :  { %v5349_v16 = vmul.f32 %v5335_v31, %v5323_v50 }
 0xbc0   :  { %v5315_v27 = vpop.permute.xlu1 %5314 }
 0xbc1   :  { %v5324_v39 = vsel %vm1230_vm11, %v5315_v27, %v5317_v11  ;;  %v5273_v4 = vpop.permute.xlu0 %5272  ;;  %v6376_v32 = vpack.c.bf16 %v5349_v16, %v5307_v29 }
 0xbc2   :  { %v5348_v5 = vmul.f32 %v5331_v45, %v5324_v39  ;;  %v5282_v19 = vsel %vm9971_vm13, %v5273_v4, %v5275_v53 }
 0xbc3   :  { %v5306_v25 = vmul.f32 %v5289_v36, %v5282_v19  ;;  %6377 = vmatprep.subr.bf16.mxu0 %v6376_v32 }
 0xbc4   :  { %v5321_v15 = vpop.permute.xlu1 %5320 }
 0xbc5   :  { %v6378_v55 = vpack.c.bf16 %v5348_v5, %v5306_v25  ;;  %v5322_v18 = vsel %vm1230_vm11, %v5319_v52, %v5321_v15  ;;  %v5325_v24 = vsel %vm1230_vm11, %v5321_v15, %v5315_v27  ;;  %v5279_v60 = vpop.permute.xlu0 %5278  ;;  %v6039_v15 = vld [vmem:[%s9633_s6 + $0x18] sm:$0xff] }
 0xbc6   :  { %v5350_v2 = vmul.f32 %v5339_v46, %v5322_v18  ;;  %v5351_v0 = vmul.f32 %v5343_v13, %v5325_v24  ;;  %v5280_v9 = vsel %vm9972_vm0, %v5277_v42, %v5279_v60  ;;  %v5283_v40 = vsel %vm9973_vm6, %v5279_v60, %v5273_v4  ;;  %v6040_v18 = vld [vmem:[%s9634_s7 + $0x18] sm:$0xff]  ;;  %v5727_v60 = vld [vmem:[%s9635_s9] sm:$0xf] }
 0xbc7   :  { %v5308_v10 = vmul.f32 %v5297_v63, %v5280_v9  ;;  %v5309_v37 = vmul.f32 %v5301_v8, %v5283_v40  ;;  %6379 = vmatpush1.bf16.msra.mxu0 %v6378_v55  ;;  %v9974_v42 = vmov 0.0  }
 0xbc8   :  { %v5361_v28 = vpop.permute.xlu1 %5360 }
 0xbc9   :  { %v6426_v23 = vpack.c.bf16 %v5350_v2, %v5308_v10  ;;  %v5359_v7 = vpop.permute.xlu0 %5358  ;;  %v6424_v51 = vpack.c.bf16 %v5351_v0, %v5309_v37  ;;  %v5814_v0 = vld [vmem:[%s9635_s9] sm:$0xf] }
 0xbca   :  { %v5365_v3 = vsel %vm1274_vm10, %v5359_v7, %v5361_v28 }
 0xbcb   :  { %v5391_v30 = vmul.f32 %v5377_v21, %v5365_v3  ;;  %6425 = vmatprep.subr.bf16.mxu1 %v6424_v51 }
 0xbcc   :  { %6427 = vmatpush1.bf16.msra.mxu1 %v6426_v23  ;;  %v5363_v54 = vpop.permute.xlu1 %5362 }
 0xbcd   :  { %v5364_v12 = vsel %vm1274_vm10, %v5361_v28, %v5363_v54  ;;  %v5357_v57 = vpop.permute.xlu0 %5356  ;;  %5509 = vmatprep.subr.mxu0 %v5391_v30 }
 0xbce   :  { %v5392_v47 = vmul.f32 %v5381_v38, %v5364_v12  ;;  %v5366_v1 = vsel %vm1274_vm10, %v5357_v57, %v5359_v7  ;;  %v5367_v61 = vsel %vm1274_vm10, %v5363_v54, %v5357_v57  ;;  %vm5733_vm10 = vcmask 64512  }
 0xbcf   :  { %v5390_v22 = vmul.f32 %v5373_v33, %v5366_v1  ;;  %v5393_v48 = vmul.f32 %v5385_v20, %v5367_v61  ;;  %v5726_v1 = vld [vmem:[%s9636_s8] sm:$0xf] }
 0xbd0   :  { %v5813_v61 = vld [vmem:[%s9636_s8] sm:$0xf] }
 0xbd1   :  { %5510 = vmatpush1.msra.mxu0 %v5390_v22  ;;  %5644 = vmatprep.subr.mxu1 %v5393_v48 }
 0xbd2   :  { %5526 = vmatmul.mubr.f32.vlgmr.msra.gmra.mrb[8].mxu0 %v6031_v14  ;;  %5645 = vmatpush1.msra.mxu1 %v5392_v47 }
 0xbd3   :  { %5661 = vmatmul.mubr.f32.vlgmr.msra.gmra.mrb[8].mxu1 %v6035_v56  ;;  %5801 = vmatprep.mubr.f32.mxu0 %v9974_v42 }
 0xbd4   :  { %5887 = vmatprep.mubr.f32.mxu1 %v9974_v42 }
 0xbdd   :  { %v5591_v6 = vpop.permute.xlu1 %5590 }
 0xbde   :  { %v5456_v41 = vpop.permute.xlu0 %5455 }
 0xca5   :  { %v5527_v59 = vpop.f32.mrb[8].mxu0 }
 0xca6   :  { %v5528_v35 = vadd.f32 %v5527_v59, %v5456_v41  ;;  %v5529_v53 = vpop.f32.mrb[9].mxu0  ;;  %v5662_v44 = vpop.f32.mrb[8].mxu1 }
 0xca7   :  { %v5530_v49 = vadd.f32 %v5529_v53, %v5456_v41  ;;  %v5663_v31 = vadd.f32 %v5662_v44, %v5591_v6  ;;  %v5664_v43 = vpop.f32.mrb[9].mxu1 }
 0xca8   :  { %v5678_v52 = vmul.f32 %v5528_v35, %v5528_v35  ;;  %v5665_v45 = vadd.f32 %v5664_v43, %v5591_v6 }
 0xca9   :  { %v5673_v11 = vadd.f32 %v5530_v49, %v5528_v35  ;;  %v5679_v50 = vmul.f32 %v5530_v49, %v5530_v49  ;;  %v5680_v36 = vmul.f32 %v5663_v31, %v5663_v31 }
 0xcaa   :  { %v5681_v27 = vmul.f32 %v5665_v45, %v5665_v45 }
 0xcab   :  { %v5682_v29 = vadd.f32 %v5679_v50, %v5678_v52  ;;  %v5674_v16 = vadd.f32 %v5673_v11, %v5663_v31 }
 0xcad   :  { %v5675_v39 = vadd.f32 %v5674_v16, %v5665_v45  ;;  %v5683_v4 = vadd.f32 %v5682_v29, %v5680_v36 }
 0xcaf   :  { %5676 = vadd.xlane.f32.xlu0 %v5675_v39  ;;  %v5684_v32 = vadd.f32 %v5683_v4, %v5681_v27 }
 0xcb1   :  { %5685 = vadd.xlane.f32.xlu1 %v5684_v32 }
 0xd3c   :  { %v5677_v5 = vpop.xlane.xlu0 %5676 }
 0xd3d   :  { %v5687_v19 = vmul.f32 0.001953125, %v5677_v5 }
 0xd3e   :  { %v5686_v46 = vpop.xlane.xlu1 %5685 }
 0xd3f   :  { %v5689_v13 = vmul.f32 %v5687_v19, %v5687_v19  ;;  %v5688_v25 = vmul.f32 0.001953125, %v5686_v46 }
 0xd41   :  { %v5690_v63 = vsub.f32 %v5688_v25, %v5689_v13 }
 0xd43   :  { %v5693_v8 = vadd.f32 1e-05, %v5690_v63 }
 0xd45   :  { %6464 = vrsqrt.f32 %v5693_v8 }
 0xd4f   :  { %v6465_v17 = vpop.eup %6464 }
 0xd50   :  { %v5695_v55 = vmul.f32 %v6465_v17, %v6039_v15 }
 0xd52   :  { %5702 = vperm.xlu0 %6454, %v5695_v55   ;;  %v5698_v24 = vmul.f32 %v5695_v55, %v5687_v19 }
 0xd54   :  { %v5699_v2 = vsub.f32 %v6040_v18, %v5698_v24 }
 0xd56   :  { %5730 = vperm.xlu0 %6454, %v5727_v60   ;;  %5711 = vperm.xlu1 %6455, %v5699_v2  }
 0xd5a   :  { %5817 = vperm.xlu1 %6455, %v5814_v0  }
 0xdd1   :  { %v5703_v9 = vpop.permute.xlu0 %5702 }
 0xdd2   :  { %v5705_v40 = vmul.f32 %v5703_v9, %v5528_v35  ;;  %v5706_v10 = vmul.f32 %v5703_v9, %v5530_v49  ;;  %v5707_v37 = vmul.f32 %v5703_v9, %v5663_v31  ;;  %v5708_v21 = vmul.f32 %v5703_v9, %v5665_v45 }
 0xdd5   :  { %v5712_v28 = vpop.permute.xlu1 %5711 }
 0xdd6   :  { %v5714_v23 = vadd.f32 %v5712_v28, %v5705_v40  ;;  %v5715_v7 = vadd.f32 %v5712_v28, %v5706_v10  ;;  %v5716_v51 = vadd.f32 %v5712_v28, %v5707_v37  ;;  %v5717_v3 = vadd.f32 %v5712_v28, %v5708_v21 }
 0xdd8   :  { %v5718_v38 = vmul.f32 0.1, %v5714_v23  ;;  %v5720_v30 = vmul.f32 0.1, %v5716_v51  ;;  %v5719_v33 = vmul.f32 0.1, %v5715_v7 }
 0xdd9   :  { %v5721_v20 = vmul.f32 0.1, %v5717_v3 }
 0xdda   :  { %v5723_v54 = vadd.f32 %v5719_v33, %v8415_v26  ;;  %v5722_v12 = vadd.f32 %v5718_v38, %v8412_v34  ;;  %v5724_v57 = vadd.f32 %v5720_v30, %v8433_v62  ;;  %v5731_v34 = vpop.permute.xlu0 %5730  ;;  %v5818_v26 = vpop.permute.xlu1 %5817 }
 0xddb   :  { %v5725_v47 = vadd.f32 %v5721_v20, %v8426_v58 }
 0xddc   :  { %5737 = vmatprep.subr.mxu0 %v5723_v54 }
 0xddd   :  { %5823 = vmatprep.subr.mxu1 %v5725_v47  ;;  %5738 = vmatpush1.msra.mxu0 %v5722_v12 }
 0xdde   :  { %5824 = vmatpush1.msra.mxu1 %v5724_v57  ;;  %6041 = vmatmul.mubr.msk.f32.vlgmr.msra.gmra.mrb[10].mxu0 %vm5733_vm10, %v5726_v1 }
 0xddf   :  { %6042 = vmatmul.mubr.msk.f32.vlgmr.msra.gmra.mrb[10].mxu1 %vm5733_vm10, %v5813_v61 }
 0xeb1   :  { %v5803_v62 = vpop.f32.mrb[10].mxu0 }
 0xeb2   :  { %v5804_v22 = vadd.f32 %v5803_v62, %v5731_v34  ;;  %v5889_v58 = vpop.f32.mrb[10].mxu1  ;;  %v5805_v48 = vpop.f32.mrb[11].mxu0 }
 0xeb3   :  { %v5890_v14 = vadd.f32 %v5889_v58, %v5818_v26  ;;  %v5806_v56 = vadd.f32 %v5805_v48, %v5731_v34  ;;  %v5891_v42 = vpop.f32.mrb[11].mxu1 }
 0xeb4   :  { %v5892_v6 = vadd.f32 %v5891_v42, %v5818_v26 }
 0xeb5   :  { %v5810_v41 = vcombine.low %v5804_v22, %v5806_v56 }
 0xeb6   :  { %v5896_v59 = vcombine.low %v5890_v14, %v5892_v6 }
 0xeb7   :  { %5812 = vst [vmem:[%s9637_s10] sm:$0xff] %v5810_v41 }
 0xeb8   :  { %6043 = vst [vmem:[%s9637_s10 + $0x8] sm:$0xff] %v5896_v59 }

</bundles_post_ra>
